<compile_context>
chip_gen: v6e
topology: v6e:2x2x1
jax: 0.10.0
libtpu: 0.0.40
codegen_flags: <defaults>
</compile_context>

<pallas_src>
import functools
import math

import jax
import jax.numpy as jnp
from jax.experimental import pallas as pl
from jax.experimental.pallas import tpu as pltpu


def _round_up(v, m):
    return (v + m - 1) // m * m


def _predictor_fused_kernel(alpha_ref, colmask_ref, x_hbm, w_ref, b_ref, o_ref,
                            xpad_ref, stack_ref, dma_sem, *,
                            C_in, C_pad, H, W, W_pad, TILE_H, HALO, n_layers,
                            n_out, apply_clamp, clamp_hi, compute_dtype):
    """Fused n_layers x (PReLU? -> Conv3x3 'same') stack for one (batch, H-tile).

    Activation layout: channels on sublanes, rows flattened onto lanes with
    every row padded to W_pad (multiple of 128) lanes.  The host zero-pads
    W -> W_pad and H by HALO rows, so each row's trailing lanes are physical
    zeros: the left/right halo of a 3x3 conv becomes two lane rolls plus
    128-aligned slices (no per-tap edge selects), and the top/bottom image
    boundary is real zero data inside the DMA'd window.

    alpha_ref  : (n_layers-1,) SMEM                    PReLU slopes
    colmask_ref: (1, Ntile) VMEM f32                   1.0 on real columns
    x_hbm      : (B, C_in, (H+2*HALO)*W_pad) ANY/HBM   padded, flattened input
    w_ref      : (n_layers, C_pad, 9*C_pad) VMEM       packed conv weights
    b_ref      : (n_layers, C_pad, 1) VMEM f32         packed biases
    o_ref      : (1, n_out, TILE_H, W) VMEM            output block
    xpad_ref   : (C_pad, R*W_pad) VMEM f32             padded activations
    stack_ref  : (9*C_pad, Ntile) VMEM compute_dtype   im2col tap bands
    """
    R = TILE_H + 2 * HALO
    Ntile = (R - 2) * W_pad
    RW = R * W_pad

    b = pl.program_id(0)
    t = pl.program_id(1)
    r0 = t * TILE_H                       # window start row in the padded image

    # Kick off this tile's halo-extended input window DMA (identical shape for
    # every tile thanks to the host-side spatial pad).
    start = pl.multiple_of(r0 * W_pad, 128)
    copy = pltpu.make_async_copy(
        x_hbm.at[b, :, pl.ds(start, RW)],
        xpad_ref.at[0:C_in, :],
        dma_sem.at[0])
    copy.start()

    # Zero the padded input channels once per tile (later layers keep them zero
    # automatically because the packed weights/biases of padded channels are 0).
    if C_in < C_pad:
        xpad_ref[C_in:, :] = jnp.zeros((C_pad - C_in, RW), jnp.float32)

    # Keep-mask for stored activations: real columns (host-computed colmask)
    # AND in-image rows (so the zero padding the reference conv applies at the
    # image top/bottom stays exact for every layer, not just the first).
    # One multiply per layer replaces the previous version's 6 edge selects.
    lane = jax.lax.broadcasted_iota(jnp.int32, (1, Ntile), 1)
    lo = (HALO - 1 - r0) * W_pad
    hi = (H + HALO - 1 - r0) * W_pad
    row_ok = jnp.logical_and(lane >= lo, lane < hi)
    mask = jnp.where(row_ok, colmask_ref[...], 0.0)          # (1, Ntile) f32

    copy.wait()

    for layer in range(n_layers):
        x = xpad_ref[...]                                    # (C_pad, RW) f32
        if layer > 0:                                        # mode 'PC': PReLU
            a = alpha_ref[layer - 1]
            x = jnp.where(x >= 0.0, x, a * x)

        # Two lane shifts shared by all dx=0 / dx=2 taps (XLU work only).
        xl = pltpu.roll(x, 1, 1)                             # xl[:, p] = x[:, p-1]
        xr = pltpu.roll(x, RW - 1, 1)                        # xr[:, p] = x[:, p+1]

        # im2col: write the nine (C_pad, Ntile) tap bands straight into the
        # persistent stack scratch; every slice / store is 128-lane aligned and
        # a whole sublane tile (C_pad is a multiple of 16).
        for dy in range(3):
            base = dy * W_pad
            for dx, src in ((0, xl), (1, x), (2, xr)):
                tap = 3 * dy + dx
                stack_ref[tap * C_pad:(tap + 1) * C_pad, :] = (
                    src[:, base:base + Ntile].astype(compute_dtype))

        # One MXU matmul per layer: (C_pad, 9*C_pad) x (9*C_pad, Ntile), f32 acc.
        # (M = C_pad is small; N = Ntile is large so the weight push amortizes.)
        y = jnp.dot(w_ref[layer], stack_ref[...],
                    preferred_element_type=jnp.float32) + b_ref[layer]

        if layer < n_layers - 1:
            # Write back rows 1..R-2 (128-aligned store); the mask keeps the
            # physical zero padding intact for the next layer's taps.
            xpad_ref[:, W_pad:W_pad + Ntile] = y * mask
        else:
            if apply_clamp:
                y = jnp.maximum(y, 0.0)
                if clamp_hi is not None and math.isfinite(clamp_hi):
                    y = jnp.minimum(y, clamp_hi)
            # Lane-aligned source slices; only the tiny (n_out, W) output
            # stores are narrower than a lane tile.
            for tt in range(TILE_H):
                src0 = (HALO - 1 + tt) * W_pad
                o_ref[0, :, tt, :] = y[:n_out, src0:src0 + W].astype(o_ref.dtype)


def _pick_tile_h(H, n_layers, max_rows):
    """Pick the output-tile height.  Multi-tile requires TILE_H % 8 == 0
    (output block layout) and H % TILE_H == 0 (exact output blocks)."""
    if H + 2 <= max_rows:
        return H, 1
    cap = min(H, max(8, ((max_rows - 2 * n_layers) // 8) * 8))
    best = None
    for th in range(8, cap + 1, 8):
        if H % th == 0:
            best = th
    if best is None:
        # TODO(synk): H with no multiple-of-8 divisor under the VMEM budget
        # needs host H-padding or partial output blocks; fall back to one tile.
        return H, 1
    return best, H // best


def predictor_forward(x_nchw, w_packed, b_packed, alphas, *, n_out,
                      apply_clamp, upper_bound,
                      compute_dtype=jnp.bfloat16, tile_h=None):
    """x_nchw: (B, C, H, W) f32.  Returns (B, n_out, H, W) f32."""
    B, C, H, W = x_nchw.shape
    n_layers, C_pad, _ = w_packed.shape

    # Rows are padded to a lane-aligned W_pad (>= W+1): row r's trailing zeros
    # double as its right halo and as row r+1's left halo.
    W_pad = _round_up(W + 1, 128)

    cbytes = jnp.dtype(compute_dtype).itemsize
    # Rough per-padded-row working set: xpad + x/xl/xr/y f32 temporaries (~8x)
    # plus the 9-band im2col scratch and its matmul read.  Target ~24 MiB so
    # the kernel stays comfortably inside v7x's 64 MiB VMEM (and the smaller
    # default scoped limits on v5e/v6e).
    per_row = C_pad * W_pad * (4 * 8 + 9 * 2 * cbytes)
    max_rows = max(16, int((24 << 20) // per_row))
    # TODO(synk): for very large C_pad*W the 9x im2col scratch dominates; chunk
    # the matmul N dimension to allow taller tiles (smaller halo overhead).

    if tile_h is None:
        TILE_H, n_tiles = _pick_tile_h(H, n_layers, max_rows)
    else:
        assert H % tile_h == 0 and (tile_h % 8 == 0 or tile_h == H)
        TILE_H, n_tiles = tile_h, H // tile_h

    # A fused stack of n_layers 3x3 convs needs n_layers halo rows per side
    # (recomputed redundantly per tile); a single full-image tile only needs a
    # one-row zero guard.
    HALO = n_layers if n_tiles > 1 else 1
    R = TILE_H + 2 * HALO
    Ntile = (R - 2) * W_pad

    # One host pad pass realizes the physical zero halo (top/bottom HALO rows,
    # right-of-row columns) and makes every tile's DMA window an identical
    # rectangular (C, R*W_pad) slab of a flat array.  (The old channel padding
    # is gone: only the real C channels are DMA'd.)
    x_padded = jnp.pad(x_nchw, ((0, 0), (0, 0), (HALO, HALO), (0, W_pad - W)))
    x_flat = x_padded.reshape(B, C, (H + 2 * HALO) * W_pad)

    colmask = jnp.tile((jnp.arange(W_pad) < W).astype(jnp.float32),
                       R - 2).reshape(1, Ntile)

    est = (8 * C_pad * R * W_pad * 4                 # xpad + value temporaries
           + 2 * 9 * C_pad * Ntile * cbytes          # im2col scratch + its read
           + 4 * Ntile * 4                           # colmask + mask
           + 2 * n_layers * C_pad * (9 * C_pad * cbytes + 4)
           + 4 * n_out * TILE_H * 128 * 4)
    vmem_limit = int(min(48 << 20, max(32 << 20, 2 * est)))

    kernel = functools.partial(
        _predictor_fused_kernel,
        C_in=C, C_pad=C_pad, H=H, W=W, W_pad=W_pad, TILE_H=TILE_H, HALO=HALO,
        n_layers=n_layers, n_out=n_out, apply_clamp=apply_clamp,
        clamp_hi=upper_bound, compute_dtype=compute_dtype)

    out = pl.pallas_call(
        kernel,
        out_shape=jax.ShapeDtypeStruct((B, n_out, H, W), jnp.float32),
        grid=(B, n_tiles),
        in_specs=[
            pl.BlockSpec(memory_space=pltpu.MemorySpace.SMEM),      # PReLU alphas
            pl.BlockSpec((1, Ntile), lambda b, t: (0, 0)),          # column mask
            pl.BlockSpec(memory_space=pl.ANY),                      # x (HBM)
            # Weights / biases are grid-invariant (constant index_map) so they
            # are fetched once and stay resident.
            # TODO(synk): single-buffer them (pl.Buffered(1)) once verified to
            # reclaim the duplicate VMEM copy for larger tiles.
            pl.BlockSpec((n_layers, C_pad, 9 * C_pad), lambda b, t: (0, 0, 0)),
            pl.BlockSpec((n_layers, C_pad, 1), lambda b, t: (0, 0, 0)),
        ],
        out_specs=pl.BlockSpec((1, n_out, TILE_H, W),
                               lambda b, t: (b, 0, t, 0)),
        scratch_shapes=[
            pltpu.VMEM((C_pad, R * W_pad), jnp.float32),            # padded act.
            pltpu.VMEM((9 * C_pad, Ntile), compute_dtype),          # im2col bands
            pltpu.SemaphoreType.DMA((1,)),
        ],
        compiler_params=pltpu.CompilerParams(
            # Every (batch, tile) step is independent (halo recomputed), so the
            # grid can shard across v7x's two TensorCores.
            dimension_semantics=("parallel", "parallel"),
            vmem_limit_bytes=vmem_limit),
    )(alphas, colmask, x_flat, w_packed.astype(compute_dtype), b_packed)
    return out


class PredictorPallas:
    """JAX/Pallas port of Predictor (single fused PReLU/Conv3x3 stack kernel)."""

    def __init__(self, n_feats, n_layers=5, reduction=2, hard_constrain=False,
                 nc_adapter=1, depth_pos=-1, upper_bound=float('inf'),
                 key=jax.random.PRNGKey(0)):
        self.n_layers = n_layers
        self.hard_constrain = hard_constrain
        self.depth_pos = depth_pos
        self.upper_bound = upper_bound
        self.nc_adapter = nc_adapter
        pred_feats = n_feats // reduction

        plan = ([(n_feats, pred_feats, False)]
                + [(pred_feats, pred_feats, True)] * (n_layers - 2)
                + [(pred_feats, nc_adapter, True)])

        # Channels padded to a multiple of 16 so every im2col band is a whole
        # sublane tile even in bf16 and all layers share one resident packed
        # weight array.  Padded channels have zero weights/biases so they carry
        # exact zeros through the stack.
        C_pad = _round_up(max(n_feats, pred_feats, nc_adapter), 16)
        self.C_pad = C_pad

        ref_layers = []
        w_packed, b_packed, alphas = [], [], []
        for (cin, cout, has_prelu) in plan:
            key, kw, kb = jax.random.split(key, 3)
            bound = 1.0 / math.sqrt(9 * cin)
            w = jax.random.uniform(kw, (3, 3, cin, cout), jnp.float32,
                                   minval=-bound, maxval=bound)     # HWIO
            b = jax.random.uniform(kb, (cout,), jnp.float32,
                                   minval=-bound, maxval=bound)
            alpha = jnp.float32(0.25)                               # PReLU default
            ref_layers.append((w, b, alpha, has_prelu))
            if has_prelu:
                alphas.append(alpha)

            # Pack to kernel layout: rows = out channel, cols = (tap, in chan).
            w_oyxi = jnp.transpose(w, (3, 0, 1, 2))                 # (cout,3,3,cin)
            wm = jnp.zeros((C_pad, 3, 3, C_pad), jnp.float32)
            wm = wm.at[:cout, :, :, :cin].set(w_oyxi)
            w_packed.append(wm.reshape(C_pad, 9 * C_pad))
            b_packed.append(jnp.zeros((C_pad, 1), jnp.float32).at[:cout, 0].set(b))

        self.ref_layers = ref_layers
        self.w_packed = jnp.stack(w_packed)      # (n_layers, C_pad, 9*C_pad) f32
        self.b_packed = jnp.stack(b_packed)      # (n_layers, C_pad, 1) f32
        self.alphas = (jnp.stack(alphas) if alphas
                       else jnp.zeros((1,), jnp.float32))

    def __call__(self, x_nchw, depth=None, *, compute_dtype=jnp.bfloat16,
                 tile_h=None):
        x = x_nchw
        if self.depth_pos == 0 and depth is not None:
            x = x * depth.reshape(-1, 1, 1, 1)
        if 0 < self.depth_pos < self.n_layers:
            # TODO(synk): mid-stack depth injection would require splitting the
            # fused kernel; unsupported (default config uses depth_pos=-1).
            raise NotImplementedError("depth_pos inside the fused layer stack")

        fuse_clamp = (not self.hard_constrain) and (self.depth_pos < self.n_layers)
        y = predictor_forward(x, self.w_packed, self.b_packed, self.alphas,
                              n_out=self.nc_adapter, apply_clamp=fuse_clamp,
                              upper_bound=self.upper_bound,
                              compute_dtype=compute_dtype, tile_h=tile_h)

        if self.depth_pos >= self.n_layers and depth is not None:
            y = y * depth.reshape(-1, 1, 1, 1)
            if not self.hard_constrain:
                y = jnp.clip(y, 0.0, self.upper_bound)
        if self.hard_constrain:
            # TODO(synk): global per-image mean normalization kept in plain JAX
            # (inactive under default config; no epsilon, as in the reference).
            y = y / y.mean(axis=(1, 2, 3), keepdims=True) * depth.reshape(-1, 1, 1, 1)
        return y


def _ref_forward(ref_layers, x_nchw, upper_bound):
    """Pure-JAX reference (matches PyTorch forward at default config)."""
    x = x_nchw
    for (w, b, alpha, has_prelu) in ref_layers:
        if has_prelu:
            x = jnp.where(x >= 0.0, x, alpha * x)
        x = jax.lax.conv_general_dilated(
            x, w, window_strides=(1, 1), padding='SAME',
            dimension_numbers=('NCHW', 'HWIO', 'NCHW'))
        x = x + b.reshape(1, -1, 1, 1)
    return jnp.clip(x, 0.0, upper_bound)


if __name__ == "__main__":
    key = jax.random.PRNGKey(0)
    kx1, kx2, kp = jax.random.split(key, 3)

    B, n_feats = 2, 8                               # pred_feats=4, nc_adapter=1
    model = PredictorPallas(n_feats=n_feats, key=kp)

    cases = [
        # (input, tile_h): small single-tile image, and a taller image forced
        # onto 3 H-tiles (exercises the overlapped halo-window DMA path).
        (jax.random.normal(kx1, (B, n_feats, 16, 16), jnp.float32), None),
        (jax.random.normal(kx2, (B, n_feats, 48, 16), jnp.float32), 16),
    ]

    for x, tile_h in cases:
        y_ref = _ref_forward(model.ref_layers, x, model.upper_bound)

        # f32 MXU path: must match the dense conv reference tightly.
        y32 = jax.block_until_ready(
            model(x, compute_dtype=jnp.float32, tile_h=tile_h))
        assert y32.shape == y_ref.shape, (y32.shape, y_ref.shape)
        err32 = float(jnp.max(jnp.abs(y32 - y_ref)))
        assert jnp.allclose(y32, y_ref, atol=1e-4, rtol=1e-4), err32

        # bf16 MXU fast path (default): looser tolerance.
        ybf = jax.block_until_ready(model(x, tile_h=tile_h))
        errbf = float(jnp.max(jnp.abs(ybf - y_ref)))
        assert errbf < 2e-2, errbf

    print("KERNEL_OK")
</pallas_src>

<mosaic_0001>
module attributes {stable_mosaic.version = 11 : i64} {
  func.func @_predictor_fused_kernel(%arg0: i32, %arg1: i32, %arg2: memref<4xf32, #tpu.memory_space<smem>>, %arg3: memref<1x2048xf32, #tpu.memory_space<vmem>>, %arg4: memref<2x8x2304xf32, #tpu.memory_space<any>>, %arg5: memref<5x16x144xf32, #tpu.memory_space<vmem>>, %arg6: memref<5x16x1xf32, #tpu.memory_space<vmem>>, %arg7: memref<1x1x16x16xf32, #tpu.memory_space<vmem>>, %arg8: memref<16x2304xf32, #tpu.memory_space<vmem>>, %arg9: memref<144x2048xf32, #tpu.memory_space<vmem>>, %arg10: memref<1x!tpu.dma_semaphore, #tpu.memory_space<semaphore_mem>>) attributes {dimension_semantics = [#tpu.dimension_semantics<parallel>, #tpu.dimension_semantics<parallel>], iteration_bounds = array<i64: 2, 1>, scalar_prefetch = 0 : i64, scratch_operands = 3 : i64, tpu.core_type = #tpu.core_type<tc>, window_params = [{transform_indices = @transform_0, window_bounds = array<i64: 4>}, {pipeline_mode = #tpu.pipeline_mode<synchronous>, transform_indices = @transform_1, window_bounds = array<i64: 1, 2048>}, {}, {pipeline_mode = #tpu.pipeline_mode<synchronous>, transform_indices = @transform_3, window_bounds = array<i64: 5, 16, 144>}, {pipeline_mode = #tpu.pipeline_mode<synchronous>, transform_indices = @transform_4, window_bounds = array<i64: 5, 16, 1>}, {transform_indices = @transform_5, window_bounds = array<i64: 1, 1, 16, 16>}]} {
    %c16_i32 = arith.constant 16 : i32
    %0 = arith.muli %arg1, %c16_i32 : i32
    %c128_i32 = arith.constant 128 : i32
    %1 = arith.muli %0, %c128_i32 : i32
    %2 = tpu.assume_multiple %1, 128 : i32
    %c0_i32 = arith.constant 0 : i32
    %c0_i32_0 = arith.constant 0 : i32
    %3 = tpu.memref_slice %arg4[%arg0, %c0_i32_0, %2] : memref<2x8x2304xf32, #tpu.memory_space<any>> -> memref<1x8x2304xf32, #tpu.memory_space<any>>
    %4 = tpu.memref_squeeze %3 : memref<1x8x2304xf32, #tpu.memory_space<any>> -> memref<8x2304xf32, #tpu.memory_space<any>>
    %c0_i32_1 = arith.constant 0 : i32
    %c0_i32_2 = arith.constant 0 : i32
    %5 = tpu.memref_slice %arg8[%c0_i32_1, %c0_i32_2] : memref<16x2304xf32, #tpu.memory_space<vmem>> -> memref<8x2304xf32, #tpu.memory_space<vmem>>
    %6 = tpu.memref_slice %arg10[%c0_i32] : memref<1x!tpu.dma_semaphore, #tpu.memory_space<semaphore_mem>> -> memref<1x!tpu.dma_semaphore, #tpu.memory_space<semaphore_mem>>
    %7 = tpu.memref_squeeze %6 : memref<1x!tpu.dma_semaphore, #tpu.memory_space<semaphore_mem>> -> memref<!tpu.dma_semaphore, #tpu.memory_space<semaphore_mem>>
    tpu.enqueue_dma source(%4 : memref<8x2304xf32, #tpu.memory_space<any>>) target(%5 : memref<8x2304xf32, #tpu.memory_space<vmem>>) target_semaphore(%7 : memref<!tpu.dma_semaphore, #tpu.memory_space<semaphore_mem>>)
    %cst = arith.constant 0.000000e+00 : f32
    %8 = vector.broadcast %cst : f32 to vector<8x2304xf32>
    %c8 = arith.constant 8 : index
    %c0 = arith.constant 0 : index
    %9 = vector.load %arg8[%c8, %c0] : memref<16x2304xf32, #tpu.memory_space<vmem>>, vector<8x2304xf32>
    tpu.vector_store %arg8[%c8, %c0], %8 {strides = array<i32>} : memref<16x2304xf32, #tpu.memory_space<vmem>>, vector<8x2304xf32>,
    %10 = tpu.iota {dimensions = array<i32: 1>} : vector<1x2048xi32>
    %c0_i32_3 = arith.constant 0 : i32
    %11 = arith.subi %c0_i32_3, %0 : i32
    %c128_i32_4 = arith.constant 128 : i32
    %12 = arith.muli %11, %c128_i32_4 : i32
    %c16_i32_5 = arith.constant 16 : i32
    %13 = arith.subi %c16_i32_5, %0 : i32
    %c128_i32_6 = arith.constant 128 : i32
    %14 = arith.muli %13, %c128_i32_6 : i32
    %15 = vector.broadcast %12 : i32 to vector<1x2048xi32>
    %16 = arith.cmpi sge, %10, %15 : vector<1x2048xi32>
    %17 = vector.broadcast %14 : i32 to vector<1x2048xi32>
    %18 = arith.cmpi slt, %10, %17 : vector<1x2048xi32>
    %19 = arith.andi %16, %18 : vector<1x2048xi1>
    %c0_7 = arith.constant 0 : index
    %c0_8 = arith.constant 0 : index
    %20 = vector.load %arg3[%c0_7, %c0_8] : memref<1x2048xf32, #tpu.memory_space<vmem>>, vector<1x2048xf32>
    %cst_9 = arith.constant 0.000000e+00 : f32
    %21 = vector.broadcast %cst_9 : f32 to vector<1x2048xf32>
    %22 = arith.select %19, %20, %21 : vector<1x2048xi1>, vector<1x2048xf32>
    %c0_i32_10 = arith.constant 0 : i32
    %c0_i32_11 = arith.constant 0 : i32
    %23 = tpu.memref_slice %arg4[%arg0, %c0_i32_11, %2] : memref<2x8x2304xf32, #tpu.memory_space<any>> -> memref<1x8x2304xf32, #tpu.memory_space<any>>
    %24 = tpu.memref_squeeze %23 : memref<1x8x2304xf32, #tpu.memory_space<any>> -> memref<8x2304xf32, #tpu.memory_space<any>>
    %c0_i32_12 = arith.constant 0 : i32
    %c0_i32_13 = arith.constant 0 : i32
    %25 = tpu.memref_slice %arg8[%c0_i32_12, %c0_i32_13] : memref<16x2304xf32, #tpu.memory_space<vmem>> -> memref<8x2304xf32, #tpu.memory_space<vmem>>
    %26 = tpu.memref_slice %arg10[%c0_i32_10] : memref<1x!tpu.dma_semaphore, #tpu.memory_space<semaphore_mem>> -> memref<1x!tpu.dma_semaphore, #tpu.memory_space<semaphore_mem>>
    %27 = tpu.memref_squeeze %26 : memref<1x!tpu.dma_semaphore, #tpu.memory_space<semaphore_mem>> -> memref<!tpu.dma_semaphore, #tpu.memory_space<semaphore_mem>>
    tpu.wait_dma2 semaphore(%27 : memref<!tpu.dma_semaphore, #tpu.memory_space<semaphore_mem>>) src(%24 : memref<8x2304xf32, #tpu.memory_space<any>>) dst(%25 : memref<8x2304xf32, #tpu.memory_space<vmem>>)
    %c0_14 = arith.constant 0 : index
    %c0_15 = arith.constant 0 : index
    %28 = vector.load %arg8[%c0_14, %c0_15] : memref<16x2304xf32, #tpu.memory_space<vmem>>, vector<16x2304xf32>
    %c1_i32 = arith.constant 1 : i32
    %29 = tpu.dynamic_rotate %28 by %c1_i32 dim 1 : vector<16x2304xf32>, i32 -> vector<16x2304xf32>
    %c2303_i32 = arith.constant 2303 : i32
    %30 = tpu.dynamic_rotate %28 by %c2303_i32 dim 1 : vector<16x2304xf32>, i32 -> vector<16x2304xf32>
    %31 = vector.extract_strided_slice %29 {offsets = [0, 0], sizes = [16, 2048], strides = [1, 1]} : vector<16x2304xf32> to vector<16x2048xf32>
    %c0_16 = arith.constant 0 : index
    %c0_17 = arith.constant 0 : index
    %32 = vector.load %arg9[%c0_16, %c0_17] : memref<144x2048xf32, #tpu.memory_space<vmem>>, vector<16x2048xf32>
    tpu.vector_store %arg9[%c0_16, %c0_17], %31 {strides = array<i32>} : memref<144x2048xf32, #tpu.memory_space<vmem>>, vector<16x2048xf32>,
    %33 = vector.extract_strided_slice %28 {offsets = [0, 0], sizes = [16, 2048], strides = [1, 1]} : vector<16x2304xf32> to vector<16x2048xf32>
    %c16 = arith.constant 16 : index
    %c0_18 = arith.constant 0 : index
    %34 = vector.load %arg9[%c16, %c0_18] : memref<144x2048xf32, #tpu.memory_space<vmem>>, vector<16x2048xf32>
    tpu.vector_store %arg9[%c16, %c0_18], %33 {strides = array<i32>} : memref<144x2048xf32, #tpu.memory_space<vmem>>, vector<16x2048xf32>,
    %35 = vector.extract_strided_slice %30 {offsets = [0, 0], sizes = [16, 2048], strides = [1, 1]} : vector<16x2304xf32> to vector<16x2048xf32>
    %c32 = arith.constant 32 : index
    %c0_19 = arith.constant 0 : index
    %36 = vector.load %arg9[%c32, %c0_19] : memref<144x2048xf32, #tpu.memory_space<vmem>>, vector<16x2048xf32>
    tpu.vector_store %arg9[%c32, %c0_19], %35 {strides = array<i32>} : memref<144x2048xf32, #tpu.memory_space<vmem>>, vector<16x2048xf32>,
    %37 = vector.extract_strided_slice %29 {offsets = [0, 128], sizes = [16, 2048], strides = [1, 1]} : vector<16x2304xf32> to vector<16x2048xf32>
    %c48 = arith.constant 48 : index
    %c0_20 = arith.constant 0 : index
    %38 = vector.load %arg9[%c48, %c0_20] : memref<144x2048xf32, #tpu.memory_space<vmem>>, vector<16x2048xf32>
    tpu.vector_store %arg9[%c48, %c0_20], %37 {strides = array<i32>} : memref<144x2048xf32, #tpu.memory_space<vmem>>, vector<16x2048xf32>,
    %39 = vector.extract_strided_slice %28 {offsets = [0, 128], sizes = [16, 2048], strides = [1, 1]} : vector<16x2304xf32> to vector<16x2048xf32>
    %c64 = arith.constant 64 : index
    %c0_21 = arith.constant 0 : index
    %40 = vector.load %arg9[%c64, %c0_21] : memref<144x2048xf32, #tpu.memory_space<vmem>>, vector<16x2048xf32>
    tpu.vector_store %arg9[%c64, %c0_21], %39 {strides = array<i32>} : memref<144x2048xf32, #tpu.memory_space<vmem>>, vector<16x2048xf32>,
    %41 = vector.extract_strided_slice %30 {offsets = [0, 128], sizes = [16, 2048], strides = [1, 1]} : vector<16x2304xf32> to vector<16x2048xf32>
    %c80 = arith.constant 80 : index
    %c0_22 = arith.constant 0 : index
    %42 = vector.load %arg9[%c80, %c0_22] : memref<144x2048xf32, #tpu.memory_space<vmem>>, vector<16x2048xf32>
    tpu.vector_store %arg9[%c80, %c0_22], %41 {strides = array<i32>} : memref<144x2048xf32, #tpu.memory_space<vmem>>, vector<16x2048xf32>,
    %43 = vector.extract_strided_slice %29 {offsets = [0, 256], sizes = [16, 2048], strides = [1, 1]} : vector<16x2304xf32> to vector<16x2048xf32>
    %c96 = arith.constant 96 : index
    %c0_23 = arith.constant 0 : index
    %44 = vector.load %arg9[%c96, %c0_23] : memref<144x2048xf32, #tpu.memory_space<vmem>>, vector<16x2048xf32>
    tpu.vector_store %arg9[%c96, %c0_23], %43 {strides = array<i32>} : memref<144x2048xf32, #tpu.memory_space<vmem>>, vector<16x2048xf32>,
    %45 = vector.extract_strided_slice %28 {offsets = [0, 256], sizes = [16, 2048], strides = [1, 1]} : vector<16x2304xf32> to vector<16x2048xf32>
    %c112 = arith.constant 112 : index
    %c0_24 = arith.constant 0 : index
    %46 = vector.load %arg9[%c112, %c0_24] : memref<144x2048xf32, #tpu.memory_space<vmem>>, vector<16x2048xf32>
    tpu.vector_store %arg9[%c112, %c0_24], %45 {strides = array<i32>} : memref<144x2048xf32, #tpu.memory_space<vmem>>, vector<16x2048xf32>,
    %47 = vector.extract_strided_slice %30 {offsets = [0, 256], sizes = [16, 2048], strides = [1, 1]} : vector<16x2304xf32> to vector<16x2048xf32>
    %c128 = arith.constant 128 : index
    %c0_25 = arith.constant 0 : index
    %48 = vector.load %arg9[%c128, %c0_25] : memref<144x2048xf32, #tpu.memory_space<vmem>>, vector<16x2048xf32>
    tpu.vector_store %arg9[%c128, %c0_25], %47 {strides = array<i32>} : memref<144x2048xf32, #tpu.memory_space<vmem>>, vector<16x2048xf32>,
    %c0_26 = arith.constant 0 : index
    %c0_27 = arith.constant 0 : index
    %c0_28 = arith.constant 0 : index
    %49 = vector.load %arg5[%c0_26, %c0_27, %c0_28] : memref<5x16x144xf32, #tpu.memory_space<vmem>>, vector<1x16x144xf32>
    %50 = vector.shape_cast %49 : vector<1x16x144xf32> to vector<16x144xf32>
    %c0_29 = arith.constant 0 : index
    %c0_30 = arith.constant 0 : index
    %51 = vector.load %arg9[%c0_29, %c0_30] : memref<144x2048xf32, #tpu.memory_space<vmem>>, vector<144x2048xf32>
    %cst_31 = arith.constant dense<0.000000e+00> : vector<16x2048xf32>
    %52 = tpu.matmul %50, %51, %cst_31 {dimension_numbers = #tpu.dot_dimension_numbers<[1], [0], [0], [1], [0, 0, 1, 1], [], []>} : vector<16x144xf32>, vector<144x2048xf32>, vector<16x2048xf32> -> vector<16x2048xf32>
    %c0_32 = arith.constant 0 : index
    %c0_33 = arith.constant 0 : index
    %c0_34 = arith.constant 0 : index
    %53 = vector.load %arg6[%c0_32, %c0_33, %c0_34] : memref<5x16x1xf32, #tpu.memory_space<vmem>>, vector<1x16x1xf32>
    %54 = vector.shape_cast %53 : vector<1x16x1xf32> to vector<16x1xf32>
    %55 = vector.broadcast %54 : vector<16x1xf32> to vector<16x2048xf32>
    %56 = arith.addf %52, %55 : vector<16x2048xf32>
    %57 = vector.broadcast %22 : vector<1x2048xf32> to vector<16x2048xf32>
    %58 = arith.mulf %56, %57 : vector<16x2048xf32>
    %c0_35 = arith.constant 0 : index
    %c128_36 = arith.constant 128 : index
    %59 = vector.load %arg8[%c0_35, %c128_36] : memref<16x2304xf32, #tpu.memory_space<vmem>>, vector<16x2048xf32>
    tpu.vector_store %arg8[%c0_35, %c128_36], %58 {strides = array<i32>} : memref<16x2304xf32, #tpu.memory_space<vmem>>, vector<16x2048xf32>,
    %c0_37 = arith.constant 0 : index
    %c0_38 = arith.constant 0 : index
    %60 = vector.load %arg8[%c0_37, %c0_38] : memref<16x2304xf32, #tpu.memory_space<vmem>>, vector<16x2304xf32>
    %c0_39 = arith.constant 0 : index
    %61 = memref.load %arg2[%c0_39] : memref<4xf32, #tpu.memory_space<smem>>
    %cst_40 = arith.constant 0.000000e+00 : f32
    %62 = vector.broadcast %cst_40 : f32 to vector<16x2304xf32>
    %63 = arith.cmpf oge, %60, %62 : vector<16x2304xf32>
    %64 = vector.broadcast %61 : f32 to vector<16x2304xf32>
    %65 = arith.mulf %64, %60 : vector<16x2304xf32>
    %66 = arith.select %63, %60, %65 : vector<16x2304xi1>, vector<16x2304xf32>
    %c1_i32_41 = arith.constant 1 : i32
    %67 = tpu.dynamic_rotate %66 by %c1_i32_41 dim 1 : vector<16x2304xf32>, i32 -> vector<16x2304xf32>
    %c2303_i32_42 = arith.constant 2303 : i32
    %68 = tpu.dynamic_rotate %66 by %c2303_i32_42 dim 1 : vector<16x2304xf32>, i32 -> vector<16x2304xf32>
    %69 = vector.extract_strided_slice %67 {offsets = [0, 0], sizes = [16, 2048], strides = [1, 1]} : vector<16x2304xf32> to vector<16x2048xf32>
    %c0_43 = arith.constant 0 : index
    %c0_44 = arith.constant 0 : index
    %70 = vector.load %arg9[%c0_43, %c0_44] : memref<144x2048xf32, #tpu.memory_space<vmem>>, vector<16x2048xf32>
    tpu.vector_store %arg9[%c0_43, %c0_44], %69 {strides = array<i32>} : memref<144x2048xf32, #tpu.memory_space<vmem>>, vector<16x2048xf32>,
    %71 = vector.extract_strided_slice %66 {offsets = [0, 0], sizes = [16, 2048], strides = [1, 1]} : vector<16x2304xf32> to vector<16x2048xf32>
    %c16_45 = arith.constant 16 : index
    %c0_46 = arith.constant 0 : index
    %72 = vector.load %arg9[%c16_45, %c0_46] : memref<144x2048xf32, #tpu.memory_space<vmem>>, vector<16x2048xf32>
    tpu.vector_store %arg9[%c16_45, %c0_46], %71 {strides = array<i32>} : memref<144x2048xf32, #tpu.memory_space<vmem>>, vector<16x2048xf32>,
    %73 = vector.extract_strided_slice %68 {offsets = [0, 0], sizes = [16, 2048], strides = [1, 1]} : vector<16x2304xf32> to vector<16x2048xf32>
    %c32_47 = arith.constant 32 : index
    %c0_48 = arith.constant 0 : index
    %74 = vector.load %arg9[%c32_47, %c0_48] : memref<144x2048xf32, #tpu.memory_space<vmem>>, vector<16x2048xf32>
    tpu.vector_store %arg9[%c32_47, %c0_48], %73 {strides = array<i32>} : memref<144x2048xf32, #tpu.memory_space<vmem>>, vector<16x2048xf32>,
    %75 = vector.extract_strided_slice %67 {offsets = [0, 128], sizes = [16, 2048], strides = [1, 1]} : vector<16x2304xf32> to vector<16x2048xf32>
    %c48_49 = arith.constant 48 : index
    %c0_50 = arith.constant 0 : index
    %76 = vector.load %arg9[%c48_49, %c0_50] : memref<144x2048xf32, #tpu.memory_space<vmem>>, vector<16x2048xf32>
    tpu.vector_store %arg9[%c48_49, %c0_50], %75 {strides = array<i32>} : memref<144x2048xf32, #tpu.memory_space<vmem>>, vector<16x2048xf32>,
    %77 = vector.extract_strided_slice %66 {offsets = [0, 128], sizes = [16, 2048], strides = [1, 1]} : vector<16x2304xf32> to vector<16x2048xf32>
    %c64_51 = arith.constant 64 : index
    %c0_52 = arith.constant 0 : index
    %78 = vector.load %arg9[%c64_51, %c0_52] : memref<144x2048xf32, #tpu.memory_space<vmem>>, vector<16x2048xf32>
    tpu.vector_store %arg9[%c64_51, %c0_52], %77 {strides = array<i32>} : memref<144x2048xf32, #tpu.memory_space<vmem>>, vector<16x2048xf32>,
    %79 = vector.extract_strided_slice %68 {offsets = [0, 128], sizes = [16, 2048], strides = [1, 1]} : vector<16x2304xf32> to vector<16x2048xf32>
    %c80_53 = arith.constant 80 : index
    %c0_54 = arith.constant 0 : index
    %80 = vector.load %arg9[%c80_53, %c0_54] : memref<144x2048xf32, #tpu.memory_space<vmem>>, vector<16x2048xf32>
    tpu.vector_store %arg9[%c80_53, %c0_54], %79 {strides = array<i32>} : memref<144x2048xf32, #tpu.memory_space<vmem>>, vector<16x2048xf32>,
    %81 = vector.extract_strided_slice %67 {offsets = [0, 256], sizes = [16, 2048], strides = [1, 1]} : vector<16x2304xf32> to vector<16x2048xf32>
    %c96_55 = arith.constant 96 : index
    %c0_56 = arith.constant 0 : index
    %82 = vector.load %arg9[%c96_55, %c0_56] : memref<144x2048xf32, #tpu.memory_space<vmem>>, vector<16x2048xf32>
    tpu.vector_store %arg9[%c96_55, %c0_56], %81 {strides = array<i32>} : memref<144x2048xf32, #tpu.memory_space<vmem>>, vector<16x2048xf32>,
    %83 = vector.extract_strided_slice %66 {offsets = [0, 256], sizes = [16, 2048], strides = [1, 1]} : vector<16x2304xf32> to vector<16x2048xf32>
    %c112_57 = arith.constant 112 : index
    %c0_58 = arith.constant 0 : index
    %84 = vector.load %arg9[%c112_57, %c0_58] : memref<144x2048xf32, #tpu.memory_space<vmem>>, vector<16x2048xf32>
    tpu.vector_store %arg9[%c112_57, %c0_58], %83 {strides = array<i32>} : memref<144x2048xf32, #tpu.memory_space<vmem>>, vector<16x2048xf32>,
    %85 = vector.extract_strided_slice %68 {offsets = [0, 256], sizes = [16, 2048], strides = [1, 1]} : vector<16x2304xf32> to vector<16x2048xf32>
    %c128_59 = arith.constant 128 : index
    %c0_60 = arith.constant 0 : index
    %86 = vector.load %arg9[%c128_59, %c0_60] : memref<144x2048xf32, #tpu.memory_space<vmem>>, vector<16x2048xf32>
    tpu.vector_store %arg9[%c128_59, %c0_60], %85 {strides = array<i32>} : memref<144x2048xf32, #tpu.memory_space<vmem>>, vector<16x2048xf32>,
    %c1 = arith.constant 1 : index
    %c0_61 = arith.constant 0 : index
    %c0_62 = arith.constant 0 : index
    %87 = vector.load %arg5[%c1, %c0_61, %c0_62] : memref<5x16x144xf32, #tpu.memory_space<vmem>>, vector<1x16x144xf32>
    %88 = vector.shape_cast %87 : vector<1x16x144xf32> to vector<16x144xf32>
    %c0_63 = arith.constant 0 : index
    %c0_64 = arith.constant 0 : index
    %89 = vector.load %arg9[%c0_63, %c0_64] : memref<144x2048xf32, #tpu.memory_space<vmem>>, vector<144x2048xf32>
    %cst_65 = arith.constant dense<0.000000e+00> : vector<16x2048xf32>
    %90 = tpu.matmul %88, %89, %cst_65 {dimension_numbers = #tpu.dot_dimension_numbers<[1], [0], [0], [1], [0, 0, 1, 1], [], []>} : vector<16x144xf32>, vector<144x2048xf32>, vector<16x2048xf32> -> vector<16x2048xf32>
    %c1_66 = arith.constant 1 : index
    %c0_67 = arith.constant 0 : index
    %c0_68 = arith.constant 0 : index
    %91 = vector.load %arg6[%c1_66, %c0_67, %c0_68] : memref<5x16x1xf32, #tpu.memory_space<vmem>>, vector<1x16x1xf32>
    %92 = vector.shape_cast %91 : vector<1x16x1xf32> to vector<16x1xf32>
    %93 = vector.broadcast %92 : vector<16x1xf32> to vector<16x2048xf32>
    %94 = arith.addf %90, %93 : vector<16x2048xf32>
    %95 = vector.broadcast %22 : vector<1x2048xf32> to vector<16x2048xf32>
    %96 = arith.mulf %94, %95 : vector<16x2048xf32>
    %c0_69 = arith.constant 0 : index
    %c128_70 = arith.constant 128 : index
    %97 = vector.load %arg8[%c0_69, %c128_70] : memref<16x2304xf32, #tpu.memory_space<vmem>>, vector<16x2048xf32>
    tpu.vector_store %arg8[%c0_69, %c128_70], %96 {strides = array<i32>} : memref<16x2304xf32, #tpu.memory_space<vmem>>, vector<16x2048xf32>,
    %c0_71 = arith.constant 0 : index
    %c0_72 = arith.constant 0 : index
    %98 = vector.load %arg8[%c0_71, %c0_72] : memref<16x2304xf32, #tpu.memory_space<vmem>>, vector<16x2304xf32>
    %c1_73 = arith.constant 1 : index
    %99 = memref.load %arg2[%c1_73] : memref<4xf32, #tpu.memory_space<smem>>
    %cst_74 = arith.constant 0.000000e+00 : f32
    %100 = vector.broadcast %cst_74 : f32 to vector<16x2304xf32>
    %101 = arith.cmpf oge, %98, %100 : vector<16x2304xf32>
    %102 = vector.broadcast %99 : f32 to vector<16x2304xf32>
    %103 = arith.mulf %102, %98 : vector<16x2304xf32>
    %104 = arith.select %101, %98, %103 : vector<16x2304xi1>, vector<16x2304xf32>
    %c1_i32_75 = arith.constant 1 : i32
    %105 = tpu.dynamic_rotate %104 by %c1_i32_75 dim 1 : vector<16x2304xf32>, i32 -> vector<16x2304xf32>
    %c2303_i32_76 = arith.constant 2303 : i32
    %106 = tpu.dynamic_rotate %104 by %c2303_i32_76 dim 1 : vector<16x2304xf32>, i32 -> vector<16x2304xf32>
    %107 = vector.extract_strided_slice %105 {offsets = [0, 0], sizes = [16, 2048], strides = [1, 1]} : vector<16x2304xf32> to vector<16x2048xf32>
    %c0_77 = arith.constant 0 : index
    %c0_78 = arith.constant 0 : index
    %108 = vector.load %arg9[%c0_77, %c0_78] : memref<144x2048xf32, #tpu.memory_space<vmem>>, vector<16x2048xf32>
    tpu.vector_store %arg9[%c0_77, %c0_78], %107 {strides = array<i32>} : memref<144x2048xf32, #tpu.memory_space<vmem>>, vector<16x2048xf32>,
    %109 = vector.extract_strided_slice %104 {offsets = [0, 0], sizes = [16, 2048], strides = [1, 1]} : vector<16x2304xf32> to vector<16x2048xf32>
    %c16_79 = arith.constant 16 : index
    %c0_80 = arith.constant 0 : index
    %110 = vector.load %arg9[%c16_79, %c0_80] : memref<144x2048xf32, #tpu.memory_space<vmem>>, vector<16x2048xf32>
    tpu.vector_store %arg9[%c16_79, %c0_80], %109 {strides = array<i32>} : memref<144x2048xf32, #tpu.memory_space<vmem>>, vector<16x2048xf32>,
    %111 = vector.extract_strided_slice %106 {offsets = [0, 0], sizes = [16, 2048], strides = [1, 1]} : vector<16x2304xf32> to vector<16x2048xf32>
    %c32_81 = arith.constant 32 : index
    %c0_82 = arith.constant 0 : index
    %112 = vector.load %arg9[%c32_81, %c0_82] : memref<144x2048xf32, #tpu.memory_space<vmem>>, vector<16x2048xf32>
    tpu.vector_store %arg9[%c32_81, %c0_82], %111 {strides = array<i32>} : memref<144x2048xf32, #tpu.memory_space<vmem>>, vector<16x2048xf32>,
    %113 = vector.extract_strided_slice %105 {offsets = [0, 128], sizes = [16, 2048], strides = [1, 1]} : vector<16x2304xf32> to vector<16x2048xf32>
    %c48_83 = arith.constant 48 : index
    %c0_84 = arith.constant 0 : index
    %114 = vector.load %arg9[%c48_83, %c0_84] : memref<144x2048xf32, #tpu.memory_space<vmem>>, vector<16x2048xf32>
    tpu.vector_store %arg9[%c48_83, %c0_84], %113 {strides = array<i32>} : memref<144x2048xf32, #tpu.memory_space<vmem>>, vector<16x2048xf32>,
    %115 = vector.extract_strided_slice %104 {offsets = [0, 128], sizes = [16, 2048], strides = [1, 1]} : vector<16x2304xf32> to vector<16x2048xf32>
    %c64_85 = arith.constant 64 : index
    %c0_86 = arith.constant 0 : index
    %116 = vector.load %arg9[%c64_85, %c0_86] : memref<144x2048xf32, #tpu.memory_space<vmem>>, vector<16x2048xf32>
    tpu.vector_store %arg9[%c64_85, %c0_86], %115 {strides = array<i32>} : memref<144x2048xf32, #tpu.memory_space<vmem>>, vector<16x2048xf32>,
    %117 = vector.extract_strided_slice %106 {offsets = [0, 128], sizes = [16, 2048], strides = [1, 1]} : vector<16x2304xf32> to vector<16x2048xf32>
    %c80_87 = arith.constant 80 : index
    %c0_88 = arith.constant 0 : index
    %118 = vector.load %arg9[%c80_87, %c0_88] : memref<144x2048xf32, #tpu.memory_space<vmem>>, vector<16x2048xf32>
    tpu.vector_store %arg9[%c80_87, %c0_88], %117 {strides = array<i32>} : memref<144x2048xf32, #tpu.memory_space<vmem>>, vector<16x2048xf32>,
    %119 = vector.extract_strided_slice %105 {offsets = [0, 256], sizes = [16, 2048], strides = [1, 1]} : vector<16x2304xf32> to vector<16x2048xf32>
    %c96_89 = arith.constant 96 : index
    %c0_90 = arith.constant 0 : index
    %120 = vector.load %arg9[%c96_89, %c0_90] : memref<144x2048xf32, #tpu.memory_space<vmem>>, vector<16x2048xf32>
    tpu.vector_store %arg9[%c96_89, %c0_90], %119 {strides = array<i32>} : memref<144x2048xf32, #tpu.memory_space<vmem>>, vector<16x2048xf32>,
    %121 = vector.extract_strided_slice %104 {offsets = [0, 256], sizes = [16, 2048], strides = [1, 1]} : vector<16x2304xf32> to vector<16x2048xf32>
    %c112_91 = arith.constant 112 : index
    %c0_92 = arith.constant 0 : index
    %122 = vector.load %arg9[%c112_91, %c0_92] : memref<144x2048xf32, #tpu.memory_space<vmem>>, vector<16x2048xf32>
    tpu.vector_store %arg9[%c112_91, %c0_92], %121 {strides = array<i32>} : memref<144x2048xf32, #tpu.memory_space<vmem>>, vector<16x2048xf32>,
    %123 = vector.extract_strided_slice %106 {offsets = [0, 256], sizes = [16, 2048], strides = [1, 1]} : vector<16x2304xf32> to vector<16x2048xf32>
    %c128_93 = arith.constant 128 : index
    %c0_94 = arith.constant 0 : index
    %124 = vector.load %arg9[%c128_93, %c0_94] : memref<144x2048xf32, #tpu.memory_space<vmem>>, vector<16x2048xf32>
    tpu.vector_store %arg9[%c128_93, %c0_94], %123 {strides = array<i32>} : memref<144x2048xf32, #tpu.memory_space<vmem>>, vector<16x2048xf32>,
    %c2 = arith.constant 2 : index
    %c0_95 = arith.constant 0 : index
    %c0_96 = arith.constant 0 : index
    %125 = vector.load %arg5[%c2, %c0_95, %c0_96] : memref<5x16x144xf32, #tpu.memory_space<vmem>>, vector<1x16x144xf32>
    %126 = vector.shape_cast %125 : vector<1x16x144xf32> to vector<16x144xf32>
    %c0_97 = arith.constant 0 : index
    %c0_98 = arith.constant 0 : index
    %127 = vector.load %arg9[%c0_97, %c0_98] : memref<144x2048xf32, #tpu.memory_space<vmem>>, vector<144x2048xf32>
    %cst_99 = arith.constant dense<0.000000e+00> : vector<16x2048xf32>
    %128 = tpu.matmul %126, %127, %cst_99 {dimension_numbers = #tpu.dot_dimension_numbers<[1], [0], [0], [1], [0, 0, 1, 1], [], []>} : vector<16x144xf32>, vector<144x2048xf32>, vector<16x2048xf32> -> vector<16x2048xf32>
    %c2_100 = arith.constant 2 : index
    %c0_101 = arith.constant 0 : index
    %c0_102 = arith.constant 0 : index
    %129 = vector.load %arg6[%c2_100, %c0_101, %c0_102] : memref<5x16x1xf32, #tpu.memory_space<vmem>>, vector<1x16x1xf32>
    %130 = vector.shape_cast %129 : vector<1x16x1xf32> to vector<16x1xf32>
    %131 = vector.broadcast %130 : vector<16x1xf32> to vector<16x2048xf32>
    %132 = arith.addf %128, %131 : vector<16x2048xf32>
    %133 = vector.broadcast %22 : vector<1x2048xf32> to vector<16x2048xf32>
    %134 = arith.mulf %132, %133 : vector<16x2048xf32>
    %c0_103 = arith.constant 0 : index
    %c128_104 = arith.constant 128 : index
    %135 = vector.load %arg8[%c0_103, %c128_104] : memref<16x2304xf32, #tpu.memory_space<vmem>>, vector<16x2048xf32>
    tpu.vector_store %arg8[%c0_103, %c128_104], %134 {strides = array<i32>} : memref<16x2304xf32, #tpu.memory_space<vmem>>, vector<16x2048xf32>,
    %c0_105 = arith.constant 0 : index
    %c0_106 = arith.constant 0 : index
    %136 = vector.load %arg8[%c0_105, %c0_106] : memref<16x2304xf32, #tpu.memory_space<vmem>>, vector<16x2304xf32>
    %c2_107 = arith.constant 2 : index
    %137 = memref.load %arg2[%c2_107] : memref<4xf32, #tpu.memory_space<smem>>
    %cst_108 = arith.constant 0.000000e+00 : f32
    %138 = vector.broadcast %cst_108 : f32 to vector<16x2304xf32>
    %139 = arith.cmpf oge, %136, %138 : vector<16x2304xf32>
    %140 = vector.broadcast %137 : f32 to vector<16x2304xf32>
    %141 = arith.mulf %140, %136 : vector<16x2304xf32>
    %142 = arith.select %139, %136, %141 : vector<16x2304xi1>, vector<16x2304xf32>
    %c1_i32_109 = arith.constant 1 : i32
    %143 = tpu.dynamic_rotate %142 by %c1_i32_109 dim 1 : vector<16x2304xf32>, i32 -> vector<16x2304xf32>
    %c2303_i32_110 = arith.constant 2303 : i32
    %144 = tpu.dynamic_rotate %142 by %c2303_i32_110 dim 1 : vector<16x2304xf32>, i32 -> vector<16x2304xf32>
    %145 = vector.extract_strided_slice %143 {offsets = [0, 0], sizes = [16, 2048], strides = [1, 1]} : vector<16x2304xf32> to vector<16x2048xf32>
    %c0_111 = arith.constant 0 : index
    %c0_112 = arith.constant 0 : index
    %146 = vector.load %arg9[%c0_111, %c0_112] : memref<144x2048xf32, #tpu.memory_space<vmem>>, vector<16x2048xf32>
    tpu.vector_store %arg9[%c0_111, %c0_112], %145 {strides = array<i32>} : memref<144x2048xf32, #tpu.memory_space<vmem>>, vector<16x2048xf32>,
    %147 = vector.extract_strided_slice %142 {offsets = [0, 0], sizes = [16, 2048], strides = [1, 1]} : vector<16x2304xf32> to vector<16x2048xf32>
    %c16_113 = arith.constant 16 : index
    %c0_114 = arith.constant 0 : index
    %148 = vector.load %arg9[%c16_113, %c0_114] : memref<144x2048xf32, #tpu.memory_space<vmem>>, vector<16x2048xf32>
    tpu.vector_store %arg9[%c16_113, %c0_114], %147 {strides = array<i32>} : memref<144x2048xf32, #tpu.memory_space<vmem>>, vector<16x2048xf32>,
    %149 = vector.extract_strided_slice %144 {offsets = [0, 0], sizes = [16, 2048], strides = [1, 1]} : vector<16x2304xf32> to vector<16x2048xf32>
    %c32_115 = arith.constant 32 : index
    %c0_116 = arith.constant 0 : index
    %150 = vector.load %arg9[%c32_115, %c0_116] : memref<144x2048xf32, #tpu.memory_space<vmem>>, vector<16x2048xf32>
    tpu.vector_store %arg9[%c32_115, %c0_116], %149 {strides = array<i32>} : memref<144x2048xf32, #tpu.memory_space<vmem>>, vector<16x2048xf32>,
    %151 = vector.extract_strided_slice %143 {offsets = [0, 128], sizes = [16, 2048], strides = [1, 1]} : vector<16x2304xf32> to vector<16x2048xf32>
    %c48_117 = arith.constant 48 : index
    %c0_118 = arith.constant 0 : index
    %152 = vector.load %arg9[%c48_117, %c0_118] : memref<144x2048xf32, #tpu.memory_space<vmem>>, vector<16x2048xf32>
    tpu.vector_store %arg9[%c48_117, %c0_118], %151 {strides = array<i32>} : memref<144x2048xf32, #tpu.memory_space<vmem>>, vector<16x2048xf32>,
    %153 = vector.extract_strided_slice %142 {offsets = [0, 128], sizes = [16, 2048], strides = [1, 1]} : vector<16x2304xf32> to vector<16x2048xf32>
    %c64_119 = arith.constant 64 : index
    %c0_120 = arith.constant 0 : index
    %154 = vector.load %arg9[%c64_119, %c0_120] : memref<144x2048xf32, #tpu.memory_space<vmem>>, vector<16x2048xf32>
    tpu.vector_store %arg9[%c64_119, %c0_120], %153 {strides = array<i32>} : memref<144x2048xf32, #tpu.memory_space<vmem>>, vector<16x2048xf32>,
    %155 = vector.extract_strided_slice %144 {offsets = [0, 128], sizes = [16, 2048], strides = [1, 1]} : vector<16x2304xf32> to vector<16x2048xf32>
    %c80_121 = arith.constant 80 : index
    %c0_122 = arith.constant 0 : index
    %156 = vector.load %arg9[%c80_121, %c0_122] : memref<144x2048xf32, #tpu.memory_space<vmem>>, vector<16x2048xf32>
    tpu.vector_store %arg9[%c80_121, %c0_122], %155 {strides = array<i32>} : memref<144x2048xf32, #tpu.memory_space<vmem>>, vector<16x2048xf32>,
    %157 = vector.extract_strided_slice %143 {offsets = [0, 256], sizes = [16, 2048], strides = [1, 1]} : vector<16x2304xf32> to vector<16x2048xf32>
    %c96_123 = arith.constant 96 : index
    %c0_124 = arith.constant 0 : index
    %158 = vector.load %arg9[%c96_123, %c0_124] : memref<144x2048xf32, #tpu.memory_space<vmem>>, vector<16x2048xf32>
    tpu.vector_store %arg9[%c96_123, %c0_124], %157 {strides = array<i32>} : memref<144x2048xf32, #tpu.memory_space<vmem>>, vector<16x2048xf32>,
    %159 = vector.extract_strided_slice %142 {offsets = [0, 256], sizes = [16, 2048], strides = [1, 1]} : vector<16x2304xf32> to vector<16x2048xf32>
    %c112_125 = arith.constant 112 : index
    %c0_126 = arith.constant 0 : index
    %160 = vector.load %arg9[%c112_125, %c0_126] : memref<144x2048xf32, #tpu.memory_space<vmem>>, vector<16x2048xf32>
    tpu.vector_store %arg9[%c112_125, %c0_126], %159 {strides = array<i32>} : memref<144x2048xf32, #tpu.memory_space<vmem>>, vector<16x2048xf32>,
    %161 = vector.extract_strided_slice %144 {offsets = [0, 256], sizes = [16, 2048], strides = [1, 1]} : vector<16x2304xf32> to vector<16x2048xf32>
    %c128_127 = arith.constant 128 : index
    %c0_128 = arith.constant 0 : index
    %162 = vector.load %arg9[%c128_127, %c0_128] : memref<144x2048xf32, #tpu.memory_space<vmem>>, vector<16x2048xf32>
    tpu.vector_store %arg9[%c128_127, %c0_128], %161 {strides = array<i32>} : memref<144x2048xf32, #tpu.memory_space<vmem>>, vector<16x2048xf32>,
    %c3 = arith.constant 3 : index
    %c0_129 = arith.constant 0 : index
    %c0_130 = arith.constant 0 : index
    %163 = vector.load %arg5[%c3, %c0_129, %c0_130] : memref<5x16x144xf32, #tpu.memory_space<vmem>>, vector<1x16x144xf32>
    %164 = vector.shape_cast %163 : vector<1x16x144xf32> to vector<16x144xf32>
    %c0_131 = arith.constant 0 : index
    %c0_132 = arith.constant 0 : index
    %165 = vector.load %arg9[%c0_131, %c0_132] : memref<144x2048xf32, #tpu.memory_space<vmem>>, vector<144x2048xf32>
    %cst_133 = arith.constant dense<0.000000e+00> : vector<16x2048xf32>
    %166 = tpu.matmul %164, %165, %cst_133 {dimension_numbers = #tpu.dot_dimension_numbers<[1], [0], [0], [1], [0, 0, 1, 1], [], []>} : vector<16x144xf32>, vector<144x2048xf32>, vector<16x2048xf32> -> vector<16x2048xf32>
    %c3_134 = arith.constant 3 : index
    %c0_135 = arith.constant 0 : index
    %c0_136 = arith.constant 0 : index
    %167 = vector.load %arg6[%c3_134, %c0_135, %c0_136] : memref<5x16x1xf32, #tpu.memory_space<vmem>>, vector<1x16x1xf32>
    %168 = vector.shape_cast %167 : vector<1x16x1xf32> to vector<16x1xf32>
    %169 = vector.broadcast %168 : vector<16x1xf32> to vector<16x2048xf32>
    %170 = arith.addf %166, %169 : vector<16x2048xf32>
    %171 = vector.broadcast %22 : vector<1x2048xf32> to vector<16x2048xf32>
    %172 = arith.mulf %170, %171 : vector<16x2048xf32>
    %c0_137 = arith.constant 0 : index
    %c128_138 = arith.constant 128 : index
    %173 = vector.load %arg8[%c0_137, %c128_138] : memref<16x2304xf32, #tpu.memory_space<vmem>>, vector<16x2048xf32>
    tpu.vector_store %arg8[%c0_137, %c128_138], %172 {strides = array<i32>} : memref<16x2304xf32, #tpu.memory_space<vmem>>, vector<16x2048xf32>,
    %c0_139 = arith.constant 0 : index
    %c0_140 = arith.constant 0 : index
    %174 = vector.load %arg8[%c0_139, %c0_140] : memref<16x2304xf32, #tpu.memory_space<vmem>>, vector<16x2304xf32>
    %c3_141 = arith.constant 3 : index
    %175 = memref.load %arg2[%c3_141] : memref<4xf32, #tpu.memory_space<smem>>
    %cst_142 = arith.constant 0.000000e+00 : f32
    %176 = vector.broadcast %cst_142 : f32 to vector<16x2304xf32>
    %177 = arith.cmpf oge, %174, %176 : vector<16x2304xf32>
    %178 = vector.broadcast %175 : f32 to vector<16x2304xf32>
    %179 = arith.mulf %178, %174 : vector<16x2304xf32>
    %180 = arith.select %177, %174, %179 : vector<16x2304xi1>, vector<16x2304xf32>
    %c1_i32_143 = arith.constant 1 : i32
    %181 = tpu.dynamic_rotate %180 by %c1_i32_143 dim 1 : vector<16x2304xf32>, i32 -> vector<16x2304xf32>
    %c2303_i32_144 = arith.constant 2303 : i32
    %182 = tpu.dynamic_rotate %180 by %c2303_i32_144 dim 1 : vector<16x2304xf32>, i32 -> vector<16x2304xf32>
    %183 = vector.extract_strided_slice %181 {offsets = [0, 0], sizes = [16, 2048], strides = [1, 1]} : vector<16x2304xf32> to vector<16x2048xf32>
    %c0_145 = arith.constant 0 : index
    %c0_146 = arith.constant 0 : index
    %184 = vector.load %arg9[%c0_145, %c0_146] : memref<144x2048xf32, #tpu.memory_space<vmem>>, vector<16x2048xf32>
    tpu.vector_store %arg9[%c0_145, %c0_146], %183 {strides = array<i32>} : memref<144x2048xf32, #tpu.memory_space<vmem>>, vector<16x2048xf32>,
    %185 = vector.extract_strided_slice %180 {offsets = [0, 0], sizes = [16, 2048], strides = [1, 1]} : vector<16x2304xf32> to vector<16x2048xf32>
    %c16_147 = arith.constant 16 : index
    %c0_148 = arith.constant 0 : index
    %186 = vector.load %arg9[%c16_147, %c0_148] : memref<144x2048xf32, #tpu.memory_space<vmem>>, vector<16x2048xf32>
    tpu.vector_store %arg9[%c16_147, %c0_148], %185 {strides = array<i32>} : memref<144x2048xf32, #tpu.memory_space<vmem>>, vector<16x2048xf32>,
    %187 = vector.extract_strided_slice %182 {offsets = [0, 0], sizes = [16, 2048], strides = [1, 1]} : vector<16x2304xf32> to vector<16x2048xf32>
    %c32_149 = arith.constant 32 : index
    %c0_150 = arith.constant 0 : index
    %188 = vector.load %arg9[%c32_149, %c0_150] : memref<144x2048xf32, #tpu.memory_space<vmem>>, vector<16x2048xf32>
    tpu.vector_store %arg9[%c32_149, %c0_150], %187 {strides = array<i32>} : memref<144x2048xf32, #tpu.memory_space<vmem>>, vector<16x2048xf32>,
    %189 = vector.extract_strided_slice %181 {offsets = [0, 128], sizes = [16, 2048], strides = [1, 1]} : vector<16x2304xf32> to vector<16x2048xf32>
    %c48_151 = arith.constant 48 : index
    %c0_152 = arith.constant 0 : index
    %190 = vector.load %arg9[%c48_151, %c0_152] : memref<144x2048xf32, #tpu.memory_space<vmem>>, vector<16x2048xf32>
    tpu.vector_store %arg9[%c48_151, %c0_152], %189 {strides = array<i32>} : memref<144x2048xf32, #tpu.memory_space<vmem>>, vector<16x2048xf32>,
    %191 = vector.extract_strided_slice %180 {offsets = [0, 128], sizes = [16, 2048], strides = [1, 1]} : vector<16x2304xf32> to vector<16x2048xf32>
    %c64_153 = arith.constant 64 : index
    %c0_154 = arith.constant 0 : index
    %192 = vector.load %arg9[%c64_153, %c0_154] : memref<144x2048xf32, #tpu.memory_space<vmem>>, vector<16x2048xf32>
    tpu.vector_store %arg9[%c64_153, %c0_154], %191 {strides = array<i32>} : memref<144x2048xf32, #tpu.memory_space<vmem>>, vector<16x2048xf32>,
    %193 = vector.extract_strided_slice %182 {offsets = [0, 128], sizes = [16, 2048], strides = [1, 1]} : vector<16x2304xf32> to vector<16x2048xf32>
    %c80_155 = arith.constant 80 : index
    %c0_156 = arith.constant 0 : index
    %194 = vector.load %arg9[%c80_155, %c0_156] : memref<144x2048xf32, #tpu.memory_space<vmem>>, vector<16x2048xf32>
    tpu.vector_store %arg9[%c80_155, %c0_156], %193 {strides = array<i32>} : memref<144x2048xf32, #tpu.memory_space<vmem>>, vector<16x2048xf32>,
    %195 = vector.extract_strided_slice %181 {offsets = [0, 256], sizes = [16, 2048], strides = [1, 1]} : vector<16x2304xf32> to vector<16x2048xf32>
    %c96_157 = arith.constant 96 : index
    %c0_158 = arith.constant 0 : index
    %196 = vector.load %arg9[%c96_157, %c0_158] : memref<144x2048xf32, #tpu.memory_space<vmem>>, vector<16x2048xf32>
    tpu.vector_store %arg9[%c96_157, %c0_158], %195 {strides = array<i32>} : memref<144x2048xf32, #tpu.memory_space<vmem>>, vector<16x2048xf32>,
    %197 = vector.extract_strided_slice %180 {offsets = [0, 256], sizes = [16, 2048], strides = [1, 1]} : vector<16x2304xf32> to vector<16x2048xf32>
    %c112_159 = arith.constant 112 : index
    %c0_160 = arith.constant 0 : index
    %198 = vector.load %arg9[%c112_159, %c0_160] : memref<144x2048xf32, #tpu.memory_space<vmem>>, vector<16x2048xf32>
    tpu.vector_store %arg9[%c112_159, %c0_160], %197 {strides = array<i32>} : memref<144x2048xf32, #tpu.memory_space<vmem>>, vector<16x2048xf32>,
    %199 = vector.extract_strided_slice %182 {offsets = [0, 256], sizes = [16, 2048], strides = [1, 1]} : vector<16x2304xf32> to vector<16x2048xf32>
    %c128_161 = arith.constant 128 : index
    %c0_162 = arith.constant 0 : index
    %200 = vector.load %arg9[%c128_161, %c0_162] : memref<144x2048xf32, #tpu.memory_space<vmem>>, vector<16x2048xf32>
    tpu.vector_store %arg9[%c128_161, %c0_162], %199 {strides = array<i32>} : memref<144x2048xf32, #tpu.memory_space<vmem>>, vector<16x2048xf32>,
    %c4 = arith.constant 4 : index
    %c0_163 = arith.constant 0 : index
    %c0_164 = arith.constant 0 : index
    %201 = vector.load %arg5[%c4, %c0_163, %c0_164] : memref<5x16x144xf32, #tpu.memory_space<vmem>>, vector<1x16x144xf32>
    %202 = vector.shape_cast %201 : vector<1x16x144xf32> to vector<16x144xf32>
    %c0_165 = arith.constant 0 : index
    %c0_166 = arith.constant 0 : index
    %203 = vector.load %arg9[%c0_165, %c0_166] : memref<144x2048xf32, #tpu.memory_space<vmem>>, vector<144x2048xf32>
    %cst_167 = arith.constant dense<0.000000e+00> : vector<16x2048xf32>
    %204 = tpu.matmul %202, %203, %cst_167 {dimension_numbers = #tpu.dot_dimension_numbers<[1], [0], [0], [1], [0, 0, 1, 1], [], []>} : vector<16x144xf32>, vector<144x2048xf32>, vector<16x2048xf32> -> vector<16x2048xf32>
    %c4_168 = arith.constant 4 : index
    %c0_169 = arith.constant 0 : index
    %c0_170 = arith.constant 0 : index
    %205 = vector.load %arg6[%c4_168, %c0_169, %c0_170] : memref<5x16x1xf32, #tpu.memory_space<vmem>>, vector<1x16x1xf32>
    %206 = vector.shape_cast %205 : vector<1x16x1xf32> to vector<16x1xf32>
    %207 = vector.broadcast %206 : vector<16x1xf32> to vector<16x2048xf32>
    %208 = arith.addf %204, %207 : vector<16x2048xf32>
    %cst_171 = arith.constant 0.000000e+00 : f32
    %209 = vector.broadcast %cst_171 : f32 to vector<16x2048xf32>
    %210 = arith.maximumf %208, %209 : vector<16x2048xf32>
    %211 = vector.extract_strided_slice %210 {offsets = [0, 0], sizes = [1, 16], strides = [1, 1]} : vector<16x2048xf32> to vector<1x16xf32>
    %c0_172 = arith.constant 0 : index
    %c0_173 = arith.constant 0 : index
    %c0_174 = arith.constant 0 : index
    %c0_175 = arith.constant 0 : index
    %212 = vector.load %arg7[%c0_172, %c0_173, %c0_174, %c0_175] : memref<1x1x16x16xf32, #tpu.memory_space<vmem>>, vector<1x1x1x16xf32>
    %213 = vector.shape_cast %212 : vector<1x1x1x16xf32> to vector<1x16xf32>
    %214 = vector.shape_cast %211 : vector<1x16xf32> to vector<1x1x1x16xf32>
    tpu.vector_store %arg7[%c0_172, %c0_173, %c0_174, %c0_175], %214 {strides = array<i32>} : memref<1x1x16x16xf32, #tpu.memory_space<vmem>>, vector<1x1x1x16xf32>,
    %215 = vector.extract_strided_slice %210 {offsets = [0, 128], sizes = [1, 16], strides = [1, 1]} : vector<16x2048xf32> to vector<1x16xf32>
    %c0_176 = arith.constant 0 : index
    %c0_177 = arith.constant 0 : index
    %c1_178 = arith.constant 1 : index
    %c0_179 = arith.constant 0 : index
    %216 = vector.load %arg7[%c0_176, %c0_177, %c1_178, %c0_179] : memref<1x1x16x16xf32, #tpu.memory_space<vmem>>, vector<1x1x1x16xf32>
    %217 = vector.shape_cast %216 : vector<1x1x1x16xf32> to vector<1x16xf32>
    %218 = vector.shape_cast %215 : vector<1x16xf32> to vector<1x1x1x16xf32>
    tpu.vector_store %arg7[%c0_176, %c0_177, %c1_178, %c0_179], %218 {strides = array<i32>} : memref<1x1x16x16xf32, #tpu.memory_space<vmem>>, vector<1x1x1x16xf32>,
    %219 = vector.extract_strided_slice %210 {offsets = [0, 256], sizes = [1, 16], strides = [1, 1]} : vector<16x2048xf32> to vector<1x16xf32>
    %c0_180 = arith.constant 0 : index
    %c0_181 = arith.constant 0 : index
    %c2_182 = arith.constant 2 : index
    %c0_183 = arith.constant 0 : index
    %220 = vector.load %arg7[%c0_180, %c0_181, %c2_182, %c0_183] : memref<1x1x16x16xf32, #tpu.memory_space<vmem>>, vector<1x1x1x16xf32>
    %221 = vector.shape_cast %220 : vector<1x1x1x16xf32> to vector<1x16xf32>
    %222 = vector.shape_cast %219 : vector<1x16xf32> to vector<1x1x1x16xf32>
    tpu.vector_store %arg7[%c0_180, %c0_181, %c2_182, %c0_183], %222 {strides = array<i32>} : memref<1x1x16x16xf32, #tpu.memory_space<vmem>>, vector<1x1x1x16xf32>,
    %223 = vector.extract_strided_slice %210 {offsets = [0, 384], sizes = [1, 16], strides = [1, 1]} : vector<16x2048xf32> to vector<1x16xf32>
    %c0_184 = arith.constant 0 : index
    %c0_185 = arith.constant 0 : index
    %c3_186 = arith.constant 3 : index
    %c0_187 = arith.constant 0 : index
    %224 = vector.load %arg7[%c0_184, %c0_185, %c3_186, %c0_187] : memref<1x1x16x16xf32, #tpu.memory_space<vmem>>, vector<1x1x1x16xf32>
    %225 = vector.shape_cast %224 : vector<1x1x1x16xf32> to vector<1x16xf32>
    %226 = vector.shape_cast %223 : vector<1x16xf32> to vector<1x1x1x16xf32>
    tpu.vector_store %arg7[%c0_184, %c0_185, %c3_186, %c0_187], %226 {strides = array<i32>} : memref<1x1x16x16xf32, #tpu.memory_space<vmem>>, vector<1x1x1x16xf32>,
    %227 = vector.extract_strided_slice %210 {offsets = [0, 512], sizes = [1, 16], strides = [1, 1]} : vector<16x2048xf32> to vector<1x16xf32>
    %c0_188 = arith.constant 0 : index
    %c0_189 = arith.constant 0 : index
    %c4_190 = arith.constant 4 : index
    %c0_191 = arith.constant 0 : index
    %228 = vector.load %arg7[%c0_188, %c0_189, %c4_190, %c0_191] : memref<1x1x16x16xf32, #tpu.memory_space<vmem>>, vector<1x1x1x16xf32>
    %229 = vector.shape_cast %228 : vector<1x1x1x16xf32> to vector<1x16xf32>
    %230 = vector.shape_cast %227 : vector<1x16xf32> to vector<1x1x1x16xf32>
    tpu.vector_store %arg7[%c0_188, %c0_189, %c4_190, %c0_191], %230 {strides = array<i32>} : memref<1x1x16x16xf32, #tpu.memory_space<vmem>>, vector<1x1x1x16xf32>,
    %231 = vector.extract_strided_slice %210 {offsets = [0, 640], sizes = [1, 16], strides = [1, 1]} : vector<16x2048xf32> to vector<1x16xf32>
    %c0_192 = arith.constant 0 : index
    %c0_193 = arith.constant 0 : index
    %c5 = arith.constant 5 : index
    %c0_194 = arith.constant 0 : index
    %232 = vector.load %arg7[%c0_192, %c0_193, %c5, %c0_194] : memref<1x1x16x16xf32, #tpu.memory_space<vmem>>, vector<1x1x1x16xf32>
    %233 = vector.shape_cast %232 : vector<1x1x1x16xf32> to vector<1x16xf32>
    %234 = vector.shape_cast %231 : vector<1x16xf32> to vector<1x1x1x16xf32>
    tpu.vector_store %arg7[%c0_192, %c0_193, %c5, %c0_194], %234 {strides = array<i32>} : memref<1x1x16x16xf32, #tpu.memory_space<vmem>>, vector<1x1x1x16xf32>,
    %235 = vector.extract_strided_slice %210 {offsets = [0, 768], sizes = [1, 16], strides = [1, 1]} : vector<16x2048xf32> to vector<1x16xf32>
    %c0_195 = arith.constant 0 : index
    %c0_196 = arith.constant 0 : index
    %c6 = arith.constant 6 : index
    %c0_197 = arith.constant 0 : index
    %236 = vector.load %arg7[%c0_195, %c0_196, %c6, %c0_197] : memref<1x1x16x16xf32, #tpu.memory_space<vmem>>, vector<1x1x1x16xf32>
    %237 = vector.shape_cast %236 : vector<1x1x1x16xf32> to vector<1x16xf32>
    %238 = vector.shape_cast %235 : vector<1x16xf32> to vector<1x1x1x16xf32>
    tpu.vector_store %arg7[%c0_195, %c0_196, %c6, %c0_197], %238 {strides = array<i32>} : memref<1x1x16x16xf32, #tpu.memory_space<vmem>>, vector<1x1x1x16xf32>,
    %239 = vector.extract_strided_slice %210 {offsets = [0, 896], sizes = [1, 16], strides = [1, 1]} : vector<16x2048xf32> to vector<1x16xf32>
    %c0_198 = arith.constant 0 : index
    %c0_199 = arith.constant 0 : index
    %c7 = arith.constant 7 : index
    %c0_200 = arith.constant 0 : index
    %240 = vector.load %arg7[%c0_198, %c0_199, %c7, %c0_200] : memref<1x1x16x16xf32, #tpu.memory_space<vmem>>, vector<1x1x1x16xf32>
    %241 = vector.shape_cast %240 : vector<1x1x1x16xf32> to vector<1x16xf32>
    %242 = vector.shape_cast %239 : vector<1x16xf32> to vector<1x1x1x16xf32>
    tpu.vector_store %arg7[%c0_198, %c0_199, %c7, %c0_200], %242 {strides = array<i32>} : memref<1x1x16x16xf32, #tpu.memory_space<vmem>>, vector<1x1x1x16xf32>,
    %243 = vector.extract_strided_slice %210 {offsets = [0, 1024], sizes = [1, 16], strides = [1, 1]} : vector<16x2048xf32> to vector<1x16xf32>
    %c0_201 = arith.constant 0 : index
    %c0_202 = arith.constant 0 : index
    %c8_203 = arith.constant 8 : index
    %c0_204 = arith.constant 0 : index
    %244 = vector.load %arg7[%c0_201, %c0_202, %c8_203, %c0_204] : memref<1x1x16x16xf32, #tpu.memory_space<vmem>>, vector<1x1x1x16xf32>
    %245 = vector.shape_cast %244 : vector<1x1x1x16xf32> to vector<1x16xf32>
    %246 = vector.shape_cast %243 : vector<1x16xf32> to vector<1x1x1x16xf32>
    tpu.vector_store %arg7[%c0_201, %c0_202, %c8_203, %c0_204], %246 {strides = array<i32>} : memref<1x1x16x16xf32, #tpu.memory_space<vmem>>, vector<1x1x1x16xf32>,
    %247 = vector.extract_strided_slice %210 {offsets = [0, 1152], sizes = [1, 16], strides = [1, 1]} : vector<16x2048xf32> to vector<1x16xf32>
    %c0_205 = arith.constant 0 : index
    %c0_206 = arith.constant 0 : index
    %c9 = arith.constant 9 : index
    %c0_207 = arith.constant 0 : index
    %248 = vector.load %arg7[%c0_205, %c0_206, %c9, %c0_207] : memref<1x1x16x16xf32, #tpu.memory_space<vmem>>, vector<1x1x1x16xf32>
    %249 = vector.shape_cast %248 : vector<1x1x1x16xf32> to vector<1x16xf32>
    %250 = vector.shape_cast %247 : vector<1x16xf32> to vector<1x1x1x16xf32>
    tpu.vector_store %arg7[%c0_205, %c0_206, %c9, %c0_207], %250 {strides = array<i32>} : memref<1x1x16x16xf32, #tpu.memory_space<vmem>>, vector<1x1x1x16xf32>,
    %251 = vector.extract_strided_slice %210 {offsets = [0, 1280], sizes = [1, 16], strides = [1, 1]} : vector<16x2048xf32> to vector<1x16xf32>
    %c0_208 = arith.constant 0 : index
    %c0_209 = arith.constant 0 : index
    %c10 = arith.constant 10 : index
    %c0_210 = arith.constant 0 : index
    %252 = vector.load %arg7[%c0_208, %c0_209, %c10, %c0_210] : memref<1x1x16x16xf32, #tpu.memory_space<vmem>>, vector<1x1x1x16xf32>
    %253 = vector.shape_cast %252 : vector<1x1x1x16xf32> to vector<1x16xf32>
    %254 = vector.shape_cast %251 : vector<1x16xf32> to vector<1x1x1x16xf32>
    tpu.vector_store %arg7[%c0_208, %c0_209, %c10, %c0_210], %254 {strides = array<i32>} : memref<1x1x16x16xf32, #tpu.memory_space<vmem>>, vector<1x1x1x16xf32>,
    %255 = vector.extract_strided_slice %210 {offsets = [0, 1408], sizes = [1, 16], strides = [1, 1]} : vector<16x2048xf32> to vector<1x16xf32>
    %c0_211 = arith.constant 0 : index
    %c0_212 = arith.constant 0 : index
    %c11 = arith.constant 11 : index
    %c0_213 = arith.constant 0 : index
    %256 = vector.load %arg7[%c0_211, %c0_212, %c11, %c0_213] : memref<1x1x16x16xf32, #tpu.memory_space<vmem>>, vector<1x1x1x16xf32>
    %257 = vector.shape_cast %256 : vector<1x1x1x16xf32> to vector<1x16xf32>
    %258 = vector.shape_cast %255 : vector<1x16xf32> to vector<1x1x1x16xf32>
    tpu.vector_store %arg7[%c0_211, %c0_212, %c11, %c0_213], %258 {strides = array<i32>} : memref<1x1x16x16xf32, #tpu.memory_space<vmem>>, vector<1x1x1x16xf32>,
    %259 = vector.extract_strided_slice %210 {offsets = [0, 1536], sizes = [1, 16], strides = [1, 1]} : vector<16x2048xf32> to vector<1x16xf32>
    %c0_214 = arith.constant 0 : index
    %c0_215 = arith.constant 0 : index
    %c12 = arith.constant 12 : index
    %c0_216 = arith.constant 0 : index
    %260 = vector.load %arg7[%c0_214, %c0_215, %c12, %c0_216] : memref<1x1x16x16xf32, #tpu.memory_space<vmem>>, vector<1x1x1x16xf32>
    %261 = vector.shape_cast %260 : vector<1x1x1x16xf32> to vector<1x16xf32>
    %262 = vector.shape_cast %259 : vector<1x16xf32> to vector<1x1x1x16xf32>
    tpu.vector_store %arg7[%c0_214, %c0_215, %c12, %c0_216], %262 {strides = array<i32>} : memref<1x1x16x16xf32, #tpu.memory_space<vmem>>, vector<1x1x1x16xf32>,
    %263 = vector.extract_strided_slice %210 {offsets = [0, 1664], sizes = [1, 16], strides = [1, 1]} : vector<16x2048xf32> to vector<1x16xf32>
    %c0_217 = arith.constant 0 : index
    %c0_218 = arith.constant 0 : index
    %c13 = arith.constant 13 : index
    %c0_219 = arith.constant 0 : index
    %264 = vector.load %arg7[%c0_217, %c0_218, %c13, %c0_219] : memref<1x1x16x16xf32, #tpu.memory_space<vmem>>, vector<1x1x1x16xf32>
    %265 = vector.shape_cast %264 : vector<1x1x1x16xf32> to vector<1x16xf32>
    %266 = vector.shape_cast %263 : vector<1x16xf32> to vector<1x1x1x16xf32>
    tpu.vector_store %arg7[%c0_217, %c0_218, %c13, %c0_219], %266 {strides = array<i32>} : memref<1x1x16x16xf32, #tpu.memory_space<vmem>>, vector<1x1x1x16xf32>,
    %267 = vector.extract_strided_slice %210 {offsets = [0, 1792], sizes = [1, 16], strides = [1, 1]} : vector<16x2048xf32> to vector<1x16xf32>
    %c0_220 = arith.constant 0 : index
    %c0_221 = arith.constant 0 : index
    %c14 = arith.constant 14 : index
    %c0_222 = arith.constant 0 : index
    %268 = vector.load %arg7[%c0_220, %c0_221, %c14, %c0_222] : memref<1x1x16x16xf32, #tpu.memory_space<vmem>>, vector<1x1x1x16xf32>
    %269 = vector.shape_cast %268 : vector<1x1x1x16xf32> to vector<1x16xf32>
    %270 = vector.shape_cast %267 : vector<1x16xf32> to vector<1x1x1x16xf32>
    tpu.vector_store %arg7[%c0_220, %c0_221, %c14, %c0_222], %270 {strides = array<i32>} : memref<1x1x16x16xf32, #tpu.memory_space<vmem>>, vector<1x1x1x16xf32>,
    %271 = vector.extract_strided_slice %210 {offsets = [0, 1920], sizes = [1, 16], strides = [1, 1]} : vector<16x2048xf32> to vector<1x16xf32>
    %c0_223 = arith.constant 0 : index
    %c0_224 = arith.constant 0 : index
    %c15 = arith.constant 15 : index
    %c0_225 = arith.constant 0 : index
    %272 = vector.load %arg7[%c0_223, %c0_224, %c15, %c0_225] : memref<1x1x16x16xf32, #tpu.memory_space<vmem>>, vector<1x1x1x16xf32>
    %273 = vector.shape_cast %272 : vector<1x1x1x16xf32> to vector<1x16xf32>
    %274 = vector.shape_cast %271 : vector<1x16xf32> to vector<1x1x1x16xf32>
    tpu.vector_store %arg7[%c0_223, %c0_224, %c15, %c0_225], %274 {strides = array<i32>} : memref<1x1x16x16xf32, #tpu.memory_space<vmem>>, vector<1x1x1x16xf32>,
    return
  }
  func.func @transform_0(%arg0: i32, %arg1: i32) -> i32 {
    %c0_i32 = arith.constant 0 : i32
    %c0_i32_0 = arith.constant 0 : i32
    return %c0_i32 : i32
  }
  func.func @transform_1(%arg0: i32, %arg1: i32) -> (i32, i32) {
    %c0_i32 = arith.constant 0 : i32
    %c0_i32_0 = arith.constant 0 : i32
    %c0_i32_1 = arith.constant 0 : i32
    return %c0_i32, %c0_i32_0 : i32, i32
  }
  func.func @transform_3(%arg0: i32, %arg1: i32) -> (i32, i32, i32) {
    %c0_i32 = arith.constant 0 : i32
    %c0_i32_0 = arith.constant 0 : i32
    %c0_i32_1 = arith.constant 0 : i32
    %c0_i32_2 = arith.constant 0 : i32
    return %c0_i32, %c0_i32_0, %c0_i32_1 : i32, i32, i32
  }
  func.func @transform_4(%arg0: i32, %arg1: i32) -> (i32, i32, i32) {
    %c0_i32 = arith.constant 0 : i32
    %c0_i32_0 = arith.constant 0 : i32
    %c0_i32_1 = arith.constant 0 : i32
    %c0_i32_2 = arith.constant 0 : i32
    return %c0_i32, %c0_i32_0, %c0_i32_1 : i32, i32, i32
  }
  func.func @transform_5(%arg0: i32, %arg1: i32) -> (i32, i32, i32, i32) {
    %c0_i32 = arith.constant 0 : i32
    %c0_i32_0 = arith.constant 0 : i32
    %c0_i32_1 = arith.constant 0 : i32
    return %arg0, %c0_i32, %arg1, %c0_i32_0 : i32, i32, i32, i32
  }
}

</mosaic_0001>

<bundles_post_ra>
// kernel: tpu_custom_call.1
= control target key start
LH: loop header
LB: loop body
LE: loop exit
PB: predicated region body
PF: predicated region fallthrough
CT: control target
= control target key end

     0   :  { %10 = vsyncpa [#allocation8], 0  ;;  %s14337_s0 = inlined_call_operand.vmem [shape: f32[4], index: 0, kind: input, shape index: {}]   ;;  %s14338_s1 = inlined_call_operand.vmem [shape: f32[1,2048], index: 1, kind: input, shape index: {}]   ;;  %s14339_s2 = inlined_call_operand.hbm [shape: f32[2,8,2304], index: 2, kind: input, shape index: {}]   ;;  %s14340_s3 = inlined_call_operand.hbm [shape: f32[5,16,144], index: 3, kind: input, shape index: {}]   ;;  %s14341_s4 = inlined_call_operand.vmem [shape: f32[5,16,1], index: 4, kind: input, shape index: {}]   ;;  %s14342_s5 = inlined_call_operand.hbm [shape: f32[2,1,16,16], index: 5, kind: output, shape index: {}]  }
   0x1   :  { %11 = vsyncpa [#allocation6], 0 }
   0x2   :  { %12 = vsyncpa [#allocation7], 0 }
   0x3   :  { %14 = vsyncpa [#allocation7 + $0x1], 0  ;;  %s9055_s18 = smov 0   ;;  %s9057_s19 = smov 0  }
   0x4   :  { %s9059_s20 = smov 0   ;;  %s9061_s21 = smov 0  }
   0x5   :  { %s9063_s22 = smov 0   ;;  %s9065_s23 = smov 0  }
   0x6 LB: > { %s8661_s24 = sadd.s32 4294967295, %s9011_s23   ;;  %s8662_s25 = sadd.s32 4294967294, %s9011_s23   ;;  %s9011_s23 = sphi %s9065_s23, %s20_s23   ;;  %s9007_s22 = sphi %s9063_s22, %s14649_s22   ;;  %s9003_s21 = sphi %s9061_s21, %s14648_s21   ;;  %s8999_s20 = sphi %s9059_s20, %s14647_s20   ;;  %s8995_s19 = sphi %s9057_s19, %s14646_s19   ;;  %s8991_s18 = sphi %s9055_s18, %s14645_s18  }
   0x7   : > { %s32_s26 = sadd.s32 1, %s9007_s22  ;;  %s125_s27 = sadd.s32 1, %s8999_s20 }
   0x8   : > { %p34_p0 = scmp.ge.s32.totalorder %s32_s26, 2  ;;  %p135_p1 = scmp.ne.s32.totalorder %s8999_s20, %s8995_s19 }
   0x9   : > { %p136_p2 = scmp.eq.s32.totalorder %s8661_s24, 1  ;;  %p141_p3 = scmp.ne.s32.totalorder %s8995_s19, %s8991_s18 }
   0xa   : > { %s14651_s26 = smov (%p34_p0, %s32_s26), 0  ;;  %p142_p5 = scmp.eq.s32.totalorder %s8662_s25, 1 }
   0xb   : > { %p9095_p4 = por %p136_p2, %p135_p1  ;;  %s120_s29 = ssub.s32 %s9007_s22, %s14651_s26 }
   0xc   : > { %p8663_p6 = scmp.ge.s32.totalorder %s9011_s23, 1  ;;  %p123_p7 = scmp.eq.s32.totalorder %s120_s29, 0 }
   0xd   : > { %s14468_s28 = scalar_select %p9095_p4, 1, 0 }
   0xe   : > { %p9102_p8 = por %p142_p5, %p141_p3  ;;  %p149_p9 = scmp.lt.s32.totalorder %s9011_s23, 3 }
   0xf   : > { %s9108_s6 = scalar_select %p123_p7, %s8999_s20, %s125_s27  }
  0x10   : > { %s14469_s30 = scalar_select %p9102_p8, 1, 0 }
  0x11   : > { %p9110_p10 = pnand %p8663_p6, %p149_p9  ;;  %p9114_p11 = scmp.eq.s32.totalorder %s8661_s24, 0 }
  0x12   : > { %s162_s11 = sshll.u32 %s14337_s0, 4  ;;  %s9013_s13 = smov [#allocation9]   ;;  %s163_s11 = int_to_ptr.vmem [resolvable:$true] %s162_s11 }
  0x13   : > { %s14470_s7 = scalar_select %p9110_p10, 1, 0 }
  0x14   : > { %s14471_s8 = scalar_select %p9114_p11, 1, 0 }
  0x15   : > { %p8780_p12 = pneg %p9110_p10  ;;  %s175_s14 = sshll.u32 %s9013_s13, 4  ;;  %s176_s14 = int_to_ptr.vmem [resolvable:$true] %s175_s14 }
  0x16   : > { %s8862_s15 = scalar_lea.vmem %s163_s11, 16  ;;  %p8870_p5 = scmp.lt.s32.totalorder %s163_s11, %s163_s11 }
  0x17   : > { %p9125_p13 = pnand %p9114_p11, %p8780_p12  ;;  %p8863_p0 = scmp.ne.s32.totalorder %s163_s11, %s8862_s15 }
  0x18   : > { %p8871_p6 = scmp.lt.s32.totalorder %s8862_s15, %s8862_s15 }
  0x19   : > { %p8864_p1 = pneg %p9125_p13 }
  0x1a   : > { %p8872_p7 = por %p8871_p6, %p8870_p5 }
  0x1b   : > { %p8865_p2 = pnand %p8864_p1, %p8863_p0 }
  0x1d   : > { %p8866_p3 = pneg %p8865_p2 }
  0x1f   : > { %p8873_p9 = pnand %p8872_p7, %p8866_p3 }
  0x21   : > { %8876 = shalt.err (!%p8873_p9)
}
  0x22   : > { %s9014_s16 = smov [#allocation5]   ;;  %s8888_s17 = scalar_lea.vmem %s176_s14, 2560 }
  0x23   : > { %8783 = dma.vmem_to_smem (!%p9125_p13), %s163_s11, 16, %s9014_s16, [#allocation8]  }
  0x24   : > { %p8889_p12 = scmp.ne.s32.totalorder %s176_s14, %s8888_s17  ;;  %p8896_p11 = scmp.lt.s32.totalorder %s176_s14, %s176_s14 }
  0x25   : > { %p8897_p10 = scmp.lt.s32.totalorder %s8888_s17, %s8888_s17 }
  0x26   : > { %p8891_p8 = pnand %p8889_p12, %p8864_p1 }
  0x27   : > { %p8898_p0 = por %p8897_p10, %p8896_p11 }
  0x28   : > { %p8892_p4 = pneg %p8891_p8 }
  0x2a   : > { %p8899_p2 = pnand %p8898_p0, %p8892_p4 }
  0x2c   : > { %8902 = shalt.err (!%p8899_p2)
}
  0x2d   : > { %s9015_s24 = smov 256   ;;  %s9016_s25 = smov 16  }
  0x2e   : > { %8786 = dma.hbm_to_vmem [thread:$0]  (!%p9125_p13), %s14340_s3, 2560, %s176_s14, [#allocation6], %s9015_s24, %s9015_s24, %s9016_s25  }
  0x2f   : > { %p14473_p3 = scmp.ne.s32.totalorder %s14470_s7, 0 }
  0x31   : > { %194 = sbr.rel (%p14473_p3) target bundleno = 2151 (0x867), region = 36 }
  0x36   : > { %p14474_p5 = scmp.ne.s32.totalorder %s14471_s8, 0 }
  0x38   : > { %8976 = dma.done.wait (%p14474_p5), [#allocation8], 16  }
  0x39   : > { %8978 = vsyncadd (%p14474_p5), [#allocation8], 4294967280 }
  0x3a   : > { %8980 = dma.done.wait (%p14474_p5), [#allocation6], 2560  }
  0x3b   : > { %8982 = vsyncadd (%p14474_p5), [#allocation6], 4294964736 }
  0x3c   : > { %204 = sfence }
  0x3d   : > { %s217_s9 = sand.u32 1, %s8995_s19   ;;  %s8768_s10 = smul.u32 2304, %s9003_s21  ;;  %v258_v0 = vlaneseq  ;;  %v9164_v3 = vld [vmem:[%s14338_s1] sm:$0xff]  ;;  %v9169_v4 = vld [vmem:[%s14338_s1 + $0x8] sm:$0xff] }
  0x3e   : > { %s9152_s7 = sshll.u32 %s217_s9, 4  ;;  %s9017_s8 = smov [#allocation2]   ;;  %14475 = vst [vmem:[#allocation19_spill] sm:$0xff] %v9164_v3  ;;  %14476 = vst [vmem:[#allocation20_spill] sm:$0xff] %v9169_v4 }
  0x3f   : > { %s228_s13 = scalar_lea.hbm %s14339_s2, %s8768_s10  ;;  %v9157_v1 = vand.u32 127, %v258_v0  ;;  %v9159_v2 = vshrl.u32 %v258_v0, 7  ;;  %s236_s14 = sshll.u32 %s9017_s8, 4  ;;  %s237_s14 = int_to_ptr.vmem [resolvable:$true] %s236_s14 }
  0x40   : > { %s8903_s25 = scalar_lea.hbm %s228_s13, 2304  ;;  %s8905_s10 = scalar_lea.hbm %s14339_s2, 4608 }
  0x41   : > { %v9172_v5 = vsub.s32 0, %v9159_v2  ;;  %v339_v6 = vsub.s32 1, %v9159_v2  ;;  %v343_v7 = vsub.s32 2, %v9159_v2  ;;  %v347_v8 = vsub.s32 3, %v9159_v2  ;;  %p8904_p4 = scmp.ne.s32.totalorder %s228_s13, %s8903_s25  ;;  %p8906_p8 = scmp.lt.s32.totalorder %s228_s13, %s14339_s2 }
  0x42   : > { %p8907_p10 = scmp.lt.s32.totalorder %s8905_s10, %s8903_s25 }
  0x43   : > { %14477 = vst [vmem:[#allocation21_spill] sm:$0xff] %v9172_v5 }
  0x44   : > { %p8908_p11 = por %p8907_p10, %p8906_p8 }
  0x46   : > { %p8909_p13 = pnand %p8908_p11, %p8904_p4 }
  0x48   : > { %8912 = shalt.err (!%p8909_p13)  }
  0x49   : > { %s8913_s8 = scalar_lea.vmem %s237_s14, 2304  ;;  %s8917_s15 = scalar_lea.vmem %s237_s14, 4608 }
  0x4a   : > { %p8914_p1 = scmp.ne.s32.totalorder %s237_s14, %s8913_s8  ;;  %p8918_p6 = scmp.lt.s32.totalorder %s237_s14, %s237_s14 }
  0x4b   : > { %p8919_p7 = scmp.lt.s32.totalorder %s8917_s15, %s8913_s8 }
  0x4d   : > { %p8920_p9 = por %p8919_p7, %p8918_p6 }
  0x4f   : > { %p8921_p12 = pnand %p8920_p9, %p8914_p1 }
  0x51   : > { %8924 = shalt.err (!%p8921_p12)  }
  0x52   : > { %239 = dma.hbm_to_vmem [thread:$0]  %s228_s13, 2304, %s237_s14, [#allocation4]  ;;  %v351_v9 = vsub.s32 4, %v9159_v2  ;;  %v355_v10 = vsub.s32 5, %v9159_v2  ;;  %v359_v11 = vsub.s32 6, %v9159_v2  ;;  %v363_v12 = vsub.s32 7, %v9159_v2 }
  0x53   : > { %v9018_v13 = vmov 0.0   ;;  %v9190_v15 = vrot.slane %v9164_v3, %v339_v6  ;;  %v9193_v16 = vrot.slane %v9164_v3, %v343_v7  ;;  %v9196_v17 = vrot.slane %v9164_v3, %v347_v8  ;;  %s9234_s13 = scalar_lea.vmem [#allocation10], %s9152_s7 }
  0x54   : > { %240 = vst [vmem:[#allocation2 + $0x90] sm:$0xff] %v9018_v13  ;;  %241 = vst [vmem:[#allocation2 + $0x98] sm:$0xff] %v9018_v13  ;;  %v9199_v18 = vrot.slane %v9164_v3, %v351_v9  ;;  %v9202_v19 = vrot.slane %v9164_v3, %v355_v10  ;;  %v9205_v20 = vrot.slane %v9164_v3, %v359_v11 }
  0x55   : > { %242 = vst [vmem:[#allocation2 + $0xa0] sm:$0xff] %v9018_v13  ;;  %243 = vst [vmem:[#allocation2 + $0xa8] sm:$0xff] %v9018_v13  ;;  %v9208_v21 = vrot.slane %v9164_v3, %v363_v12  ;;  %v9213_v23 = vrot.slane %v9169_v4, %v339_v6  ;;  %v9216_v24 = vrot.slane %v9169_v4, %v343_v7 }
  0x56   : > { %244 = vst [vmem:[#allocation2 + $0xb0] sm:$0xff] %v9018_v13  ;;  %245 = vst [vmem:[#allocation2 + $0xb8] sm:$0xff] %v9018_v13  ;;  %v9219_v25 = vrot.slane %v9169_v4, %v347_v8  ;;  %v9222_v26 = vrot.slane %v9169_v4, %v351_v9  ;;  %v9225_v27 = vrot.slane %v9169_v4, %v355_v10 }
  0x57   : > { %246 = vst [vmem:[#allocation2 + $0xc0] sm:$0xff] %v9018_v13  ;;  %247 = vst [vmem:[#allocation2 + $0xc8] sm:$0xff] %v9018_v13  ;;  %v9228_v28 = vrot.slane %v9169_v4, %v359_v11  ;;  %v9231_v29 = vrot.slane %v9169_v4, %v363_v12 }
  0x58   : > { %248 = vst [vmem:[#allocation2 + $0xd0] sm:$0xff] %v9018_v13  ;;  %249 = vst [vmem:[#allocation2 + $0xd8] sm:$0xff] %v9018_v13 }
  0x59   : > { %250 = vst [vmem:[#allocation2 + $0xe0] sm:$0xff] %v9018_v13  ;;  %251 = vst [vmem:[#allocation2 + $0xe8] sm:$0xff] %v9018_v13 }
  0x5a   : > { %252 = vst [vmem:[#allocation2 + $0xf0] sm:$0xff] %v9018_v13  ;;  %253 = vst [vmem:[#allocation2 + $0xf8] sm:$0xff] %v9018_v13 }
  0x5b   : > { %254 = vst [vmem:[#allocation2 + $0x100] sm:$0xff] %v9018_v13  ;;  %255 = vst [vmem:[#allocation2 + $0x108] sm:$0xff] %v9018_v13 }
  0x5c   : > { %256 = vst [vmem:[#allocation2 + $0x110] sm:$0xff] %v9018_v13  ;;  %257 = vst [vmem:[#allocation2 + $0x118] sm:$0xff] %v9018_v13 }
  0x5d   : > { %14478 = vst [vmem:[#allocation22_spill] sm:$0xff] %v9190_v15  ;;  %14479 = vst [vmem:[#allocation23_spill] sm:$0xff] %v9193_v16 }
  0x5e   : > { %14480 = vst [vmem:[#allocation24_spill] sm:$0xff] %v9196_v17  ;;  %14481 = vst [vmem:[#allocation25_spill] sm:$0xff] %v9199_v18 }
  0x5f   : > { %14482 = vst [vmem:[#allocation26_spill] sm:$0xff] %v9202_v19  ;;  %14483 = vst [vmem:[#allocation27_spill] sm:$0xff] %v9205_v20 }
  0x60   : > { %14484 = vst [vmem:[#allocation28_spill] sm:$0xff] %v9208_v21  ;;  %14485 = vst [vmem:[#allocation29_spill] sm:$0xff] %v9213_v23 }
  0x61   : > { %14486 = vst [vmem:[#allocation30_spill] sm:$0xff] %v9216_v24  ;;  %14487 = vst [vmem:[#allocation31_spill] sm:$0xff] %v9219_v25 }
  0x62   : > { %14488 = vst [vmem:[#allocation32_spill] sm:$0xff] %v9222_v26  ;;  %14489 = vst [vmem:[#allocation33_spill] sm:$0xff] %v9225_v27 }
  0x63   : > { %14490 = vst [vmem:[#allocation34_spill] sm:$0xff] %v9228_v28  ;;  %14491 = vst [vmem:[#allocation35_spill] sm:$0xff] %v9231_v29 }
  0x64   : > { %8983 = dma.done.wait [#allocation4], 2304 }
  0x65   : > { %8984 = vsyncadd [#allocation4], 4294964992  ;;  %v9236_v30 = vld [vmem:[#allocation2 + $0xa0] sm:$0xff]  ;;  %v9238_v31 = vld [vmem:[#allocation2 + $0x98] sm:$0xff]  ;;  %s9019_s14 = smov 1   ;;  %s9020_s7 = smov 127  }
  0x66   : > { %479 = vrot.lane.b32.xlu0 %v9236_v30, %s9019_s14  ;;  %475 = vrot.lane.b32.xlu1 %v9238_v31, %s9019_s14  ;;  %v9244_v32 = vld [vmem:[#allocation2 + $0xa8] sm:$0xff]  ;;  %v9246_v33 = vld [vmem:[#allocation2 + $0x10] sm:$0xff]  ;;  %v9248_v34 = vld [vmem:[#allocation2 + $0xb8] sm:$0xff]  ;;  %vm1279_vm0 = vcmask 130048   ;;  %vm541_vm1 = vcmp.lt.s32.totalorder %v9157_v1, 1  ;;  %v9021_v8 = vmov 0  }
  0x67   : > { %1286 = vmatprep.subr.mxu0 %v9244_v32  ;;  %v9251_v35 = vld [vmem:[#allocation2 + $0x18] sm:$0xff]  ;;  %v9253_v36 = vld [vmem:[#allocation2 + $0xb0] sm:$0xff]  ;;  %1363 = vmatprep.subr.mxu1 %v9248_v34  ;;  %v9263_v37 = vld [vmem:[#allocation2 + $0x28] sm:$0xff]  ;;  %vm650_vm2 = vcmp.lt.s32.totalorder %v9157_v1, 127  ;;  %s2066_s27 = sld [smem:[#allocation5]]  ;;  %s8566_s15 = sshll.u32 %s9234_s13, 4  ;;  %s14284_s15 = int_to_ptr.vmem [resolvable:$true] %s8566_s15 }
  0x68   : > { %1287 = vmatpush1.msra.mxu0 %v9236_v30  ;;  %1364 = vmatpush1.msra.mxu1 %v9253_v36  ;;  %v9265_v38 = vld [vmem:[#allocation2 + $0x20] sm:$0xff]  ;;  %v9274_v39 = vld [vmem:[#allocation2 + $0x8] sm:$0xff]  ;;  %v9304_v40 = vld [vmem:[#allocation2 + $0x90] sm:$0xff]  ;;  %s8705_s8 = sld [smem:[#allocation5 + $0x1]]  ;;  %p14643_p2 = scmp.ne.s32.totalorder %s14468_s28, 0 }
  0x69   : > { %1288 = vmatprep.subr.mxu0 %v9251_v35  ;;  %1365 = vmatprep.subr.mxu1 %v9263_v37  ;;  %v9306_v41 = vld [vmem:[#allocation2] sm:$0xff]  ;;  %v9316_v42 = vld [vmem:[#allocation2 + $0x118] sm:$0xff]  ;;  %v9318_v43 = vld [vmem:[#allocation2 + $0x88] sm:$0xff]  ;;  %s8724_s25 = sld [smem:[#allocation5 + $0x2]] }
  0x6a   : > { %483 = vrot.lane.b32.xlu0 %v9244_v32, %s9019_s14  ;;  %477 = vrot.lane.b32.xlu1 %v9246_v33, %s9019_s14  ;;  %14492 = vst [vmem:[#allocation36_spill] sm:$0xff] %v9316_v42  ;;  %14493 = vst [vmem:[#allocation37_spill] sm:$0xff] %v9318_v43  ;;  %v9320_v44 = vld [vmem:[#allocation9 + $0x8] sm:$0xff]  ;;  %v9330_v45 = vld [vmem:[#allocation2 + $0xc0] sm:$0xff]  ;;  %s8743_s12 = sld [smem:[#allocation5 + $0x3]] }
  0x6b   : > { %1289 = vmatpush1.msra.mxu0 %v9246_v33  ;;  %1366 = vmatpush1.msra.mxu1 %v9265_v38  ;;  %v9332_v46 = vld [vmem:[#allocation2 + $0x30] sm:$0xff]  ;;  %v9338_v47 = vld [vmem:[#allocation2 + $0xc8] sm:$0xff]  ;;  %v9344_v48 = vld [vmem:[#allocation2 + $0x38] sm:$0xff] }
  0x6c   : > { %8671 = vmatprep.mubr.msk.f32.mxu0 %vm1279_vm0, %v9320_v44  ;;  %8673 = vmatprep.mubr.msk.f32.mxu1 %vm1279_vm0, %v9320_v44  ;;  %v9350_v49 = vld [vmem:[#allocation2 + $0xd0] sm:$0xff]  ;;  %v9352_v50 = vld [vmem:[#allocation2 + $0xd8] sm:$0xff]  ;;  %v9358_v51 = vld [vmem:[#allocation2 + $0x40] sm:$0xff] }
  0x6d   : > { %v9360_v52 = vld [vmem:[#allocation2 + $0x48] sm:$0xff]  ;;  %v9378_v53 = vld [vmem:[#allocation2 + $0xe0] sm:$0xff]  ;;  %v9380_v54 = vld [vmem:[#allocation2 + $0x50] sm:$0xff]  ;;  %8856 = vset.pattern.permute.xlu1 %v9021_v8  ;;  %8855 = vset.pattern.permute.xlu0 %v9021_v8 }
  0x6e   : > { %481 = vrot.lane.b32.xlu0 %v9251_v35, %s9019_s14  ;;  %487 = vrot.lane.b32.xlu1 %v9253_v36, %s9019_s14  ;;  %v9386_v55 = vld [vmem:[#allocation2 + $0xe8] sm:$0xff]  ;;  %v9392_v56 = vld [vmem:[#allocation2 + $0x58] sm:$0xff]  ;;  %v9398_v57 = vld [vmem:[#allocation2 + $0xf0] sm:$0xff] }
  0x6f   : > { %v9400_v58 = vld [vmem:[#allocation2 + $0xf8] sm:$0xff]  ;;  %v9406_v59 = vld [vmem:[#allocation2 + $0x60] sm:$0xff]  ;;  %v9408_v60 = vld [vmem:[#allocation2 + $0x68] sm:$0xff] }
  0x70   : > { %v9426_v61 = vld [vmem:[#allocation2 + $0x100] sm:$0xff]  ;;  %v9428_v62 = vld [vmem:[#allocation2 + $0x70] sm:$0xff]  ;;  %v9437_v7 = vld [vmem:[#allocation2 + $0x108] sm:$0xff] }
  0x71   : > { %14494 = vst [vmem:[#allocation38_spill] sm:$0xff] %v9428_v62  ;;  %v9454_v13 = vld [vmem:[#allocation2 + $0x78] sm:$0xff]  ;;  %v9471_v29 = vld [vmem:[#allocation2 + $0x80] sm:$0xff]  ;;  %v1268_v20 = vld [vmem:[%s14341_s4 + $0x8] sm:$0xff] }
  0x72   : > { %491 = vrot.lane.b32.xlu0 %v9248_v34, %s9019_s14  ;;  %473 = vrot.lane.b32.xlu1 %v9274_v39, %s9019_s14  ;;  %14496 = vst [vmem:[#allocation40_spill] sm:$0xff] %v9471_v29  ;;  %v1267_v17 = vld [vmem:[%s14341_s4] sm:$0xff] }
  0x76   : > { %485 = vrot.lane.b32.xlu0 %v9265_v38, %s9019_s14  ;;  %489 = vrot.lane.b32.xlu1 %v9263_v37, %s9019_s14 }
  0x7a   : > { %588 = vrot.lane.b32.xlu0 %v9236_v30, %s9020_s7  ;;  %592 = vrot.lane.b32.xlu1 %v9244_v32, %s9020_s7 }
  0x7e   : > { %584 = vrot.lane.b32.xlu0 %v9238_v31, %s9020_s7  ;;  %586 = vrot.lane.b32.xlu1 %v9246_v33, %s9020_s7 }
  0x82   : > { %590 = vrot.lane.b32.xlu0 %v9251_v35, %s9020_s7  ;;  %596 = vrot.lane.b32.xlu1 %v9253_v36, %s9020_s7 }
  0x86   : > { %600 = vrot.lane.b32.xlu0 %v9248_v34, %s9020_s7  ;;  %582 = vrot.lane.b32.xlu1 %v9274_v39, %s9020_s7 }
  0x8a   : > { %594 = vrot.lane.b32.xlu0 %v9265_v38, %s9020_s7  ;;  %598 = vrot.lane.b32.xlu1 %v9263_v37, %s9020_s7 }
  0x8e   : > { %471 = vrot.lane.b32.xlu0 %v9304_v40, %s9019_s14  ;;  %469 = vrot.lane.b32.xlu1 %v9306_v41, %s9019_s14 }
  0x92   : > { %580 = vrot.lane.b32.xlu0 %v9304_v40, %s9020_s7  ;;  %578 = vrot.lane.b32.xlu1 %v9306_v41, %s9020_s7 }
  0x96   : > { %539 = vrot.lane.b32.xlu0 %v9316_v42, %s9019_s14  ;;  %537 = vrot.lane.b32.xlu1 %v9318_v43, %s9019_s14 }
  0x9a   : > { %604 = vrot.lane.b32.xlu0 %v9330_v45, %s9020_s7  ;;  %602 = vrot.lane.b32.xlu1 %v9332_v46, %s9020_s7 }
  0x9e   : > { %495 = vrot.lane.b32.xlu0 %v9330_v45, %s9019_s14  ;;  %499 = vrot.lane.b32.xlu1 %v9338_v47, %s9019_s14 }
  0xa2   : > { %493 = vrot.lane.b32.xlu0 %v9332_v46, %s9019_s14  ;;  %497 = vrot.lane.b32.xlu1 %v9344_v48, %s9019_s14 }
  0xa6   : > { %503 = vrot.lane.b32.xlu0 %v9350_v49, %s9019_s14  ;;  %507 = vrot.lane.b32.xlu1 %v9352_v50, %s9019_s14 }
  0xaa   : > { %501 = vrot.lane.b32.xlu0 %v9358_v51, %s9019_s14  ;;  %505 = vrot.lane.b32.xlu1 %v9360_v52, %s9019_s14 }
  0xae   : > { %608 = vrot.lane.b32.xlu0 %v9338_v47, %s9020_s7  ;;  %606 = vrot.lane.b32.xlu1 %v9344_v48, %s9020_s7 }
  0xb2   : > { %612 = vrot.lane.b32.xlu0 %v9350_v49, %s9020_s7  ;;  %616 = vrot.lane.b32.xlu1 %v9352_v50, %s9020_s7 }
  0xb6   : > { %610 = vrot.lane.b32.xlu0 %v9358_v51, %s9020_s7  ;;  %614 = vrot.lane.b32.xlu1 %v9360_v52, %s9020_s7 }
  0xba   : > { %620 = vrot.lane.b32.xlu0 %v9378_v53, %s9020_s7  ;;  %618 = vrot.lane.b32.xlu1 %v9380_v54, %s9020_s7 }
  0xbe   : > { %511 = vrot.lane.b32.xlu0 %v9378_v53, %s9019_s14  ;;  %515 = vrot.lane.b32.xlu1 %v9386_v55, %s9019_s14 }
  0xc2   : > { %509 = vrot.lane.b32.xlu0 %v9380_v54, %s9019_s14  ;;  %513 = vrot.lane.b32.xlu1 %v9392_v56, %s9019_s14 }
  0xc6   : > { %519 = vrot.lane.b32.xlu0 %v9398_v57, %s9019_s14  ;;  %523 = vrot.lane.b32.xlu1 %v9400_v58, %s9019_s14 }
  0xca   : > { %517 = vrot.lane.b32.xlu0 %v9406_v59, %s9019_s14  ;;  %521 = vrot.lane.b32.xlu1 %v9408_v60, %s9019_s14 }
  0xce   : > { %624 = vrot.lane.b32.xlu0 %v9386_v55, %s9020_s7  ;;  %622 = vrot.lane.b32.xlu1 %v9392_v56, %s9020_s7 }
  0xd2   : > { %628 = vrot.lane.b32.xlu0 %v9398_v57, %s9020_s7  ;;  %632 = vrot.lane.b32.xlu1 %v9400_v58, %s9020_s7 }
  0xd6   : > { %626 = vrot.lane.b32.xlu0 %v9406_v59, %s9020_s7  ;;  %630 = vrot.lane.b32.xlu1 %v9408_v60, %s9020_s7 }
  0xd8   : > { %v480_v63 = vpop.permute.xlu0 %479  ;;  %v9430_v0 = vpop.permute.xlu1 %475 }
  0xd9   : > { %v9449_v10 = vsel %vm541_vm1, %v9430_v0, %v480_v63 }
  0xda   : > { %636 = vrot.lane.b32.xlu0 %v9426_v61, %s9020_s7  ;;  %634 = vrot.lane.b32.xlu1 %v9428_v62, %s9020_s7 }
  0xdc   : > { %v484_v2 = vpop.permute.xlu0 %483  ;;  %v478_v6 = vpop.permute.xlu1 %477 }
  0xdd   : > { %v9441_v9 = vsel %vm541_vm1, %v480_v63, %v484_v2  ;;  %v9465_v63 = vld [vmem:[#allocation2 + $0x110] sm:$0xff] }
  0xde   : > { %527 = vrot.lane.b32.xlu0 %v9426_v61, %s9019_s14  ;;  %1290 = vmatprep.subr.mxu0 %v9441_v9  ;;  %14495 = vst [vmem:[#allocation39_spill] sm:$0xff] %v9465_v63 }
  0xdf   : > { %531 = vrot.lane.b32.xlu1 %v9437_v7, %s9019_s14  ;;  %1291 = vmatpush1.msra.mxu0 %v9449_v10 }
  0xe0   : > { %v482_v11 = vpop.permute.xlu0 %481  ;;  %v488_v12 = vpop.permute.xlu1 %487 }
  0xe1   : > { %v9458_v8 = vsel %vm541_vm1, %v478_v6, %v482_v11  ;;  %v9491_v26 = vsel %vm541_vm1, %v484_v2, %v488_v12 }
  0xe2   : > { %525 = vrot.lane.b32.xlu0 %v9428_v62, %s9019_s14  ;;  %1292 = vmatprep.subr.mxu0 %v9458_v8 }
  0xe3   : > { %529 = vrot.lane.b32.xlu1 %v9454_v13, %s9019_s14 }
  0xe4   : > { %v9467_v22 = vpop.permute.xlu0 %491  ;;  %v9469_v14 = vpop.permute.xlu1 %473 }
  0xe5   : > { %v9476_v28 = vsel %vm541_vm1, %v9469_v14, %v478_v6  ;;  %v9481_v27 = vsel %vm541_vm1, %v488_v12, %v9467_v22 }
  0xe6   : > { %535 = vrot.lane.b32.xlu0 %v9465_v63, %s9019_s14  ;;  %1293 = vmatpush1.msra.mxu0 %v9476_v28 }
  0xe7   : > { %1367 = vmatprep.subr.mxu1 %v9481_v27  ;;  %533 = vrot.lane.b32.xlu1 %v9471_v29, %s9019_s14 }
  0xe8   : > { %1368 = vmatpush1.msra.mxu1 %v9491_v26  ;;  %v486_v6 = vpop.permute.xlu0 %485  ;;  %v9494_v25 = vpop.permute.xlu1 %489 }
  0xe9   : > { %v9499_v24 = vsel %vm541_vm1, %v486_v6, %v9494_v25  ;;  %v9503_v23 = vsel %vm541_vm1, %v482_v11, %v486_v6 }
  0xea   : > { %1369 = vmatprep.subr.mxu1 %v9499_v24  ;;  %640 = vrot.lane.b32.xlu0 %v9437_v7, %s9020_s7 }
  0xeb   : > { %638 = vrot.lane.b32.xlu1 %v9454_v13, %s9020_s7  ;;  %1370 = vmatpush1.msra.mxu1 %v9503_v23 }
  0xec   : > { %v589_v2 = vpop.permute.xlu0 %588  ;;  %v593_v12 = vpop.permute.xlu1 %592 }
  0xed   : > { %v9514_v4 = vsel %vm650_vm2, %v589_v2, %v593_v12 }
  0xee   : > { %1294 = vmatprep.subr.mxu0 %v9514_v4  ;;  %644 = vrot.lane.b32.xlu0 %v9465_v63, %s9020_s7 }
  0xef   : > { %648 = vrot.lane.b32.xlu1 %v9316_v42, %s9020_s7 }
  0xf0   : > { %v585_v11 = vpop.permute.xlu0 %584  ;;  %v587_v6 = vpop.permute.xlu1 %586 }
  0xf1   : > { %v682_v21 = vsel %vm650_vm2, %v585_v11, %v589_v2 }
  0xf2   : > { %1295 = vmatpush1.msra.mxu0 %v682_v21  ;;  %642 = vrot.lane.b32.xlu0 %v9471_v29, %s9020_s7 }
  0xf3   : > { %646 = vrot.lane.b32.xlu1 %v9318_v43, %s9020_s7 }
  0xf4   : > { %v591_v19 = vpop.permute.xlu0 %590  ;;  %v597_v18 = vpop.permute.xlu1 %596 }
  0xf5   : > { %v9535_v2 = vsel %vm650_vm2, %v587_v6, %v591_v19  ;;  %v678_v29 = vsel %vm650_vm2, %v593_v12, %v597_v18 }
  0xf6   : > { %1296 = vmatprep.subr.mxu0 %v9535_v2  ;;  %1276 = vperm.xlu0 %8855, %v1268_v20  }
  0xf7   : > { %1271 = vperm.xlu1 %8856, %v1267_v17  }
  0xf8   : > { %v9538_v15 = vpop.permute.xlu0 %600  ;;  %v583_v16 = vpop.permute.xlu1 %582 }
  0xf9   : > { %v681_v3 = vsel %vm650_vm2, %v583_v16, %v587_v6  ;;  %v9545_v5 = vsel %vm650_vm2, %v597_v18, %v9538_v15 }
  0xfa   : > { %1297 = vmatpush1.msra.mxu0 %v681_v3  ;;  %1371 = vmatprep.subr.mxu1 %v9545_v5 }
  0xfb   : > { %1298 = vmatprep.subr.mxu0 %v9236_v30  ;;  %1372 = vmatpush1.msra.mxu1 %v678_v29 }
  0xfc   : > { %v595_v17 = vpop.permute.xlu0 %594  ;;  %1299 = vmatpush1.msra.mxu0 %v9238_v31  ;;  %v9552_v20 = vpop.permute.xlu1 %598 }
  0xfd   : > { %1300 = vmatprep.subr.mxu0 %v9246_v33  ;;  %v9558_v6 = vsel %vm650_vm2, %v595_v17, %v9552_v20  ;;  %v677_v43 = vsel %vm650_vm2, %v591_v19, %v595_v17 }
  0xfe   : > { %1301 = vmatpush1.msra.mxu0 %v9274_v39  ;;  %1373 = vmatprep.subr.mxu1 %v9558_v6 }
  0xff   : > { %1302 = vmatprep.subr.mxu0 %v9449_v10  ;;  %1374 = vmatpush1.msra.mxu1 %v677_v43 }
 0x100   : > { %v472_v18 = vpop.permute.xlu0 %471  ;;  %1375 = vmatprep.subr.mxu1 %v9253_v36  ;;  %v470_v12 = vpop.permute.xlu1 %469 }
 0x101   : > { %1376 = vmatpush1.msra.mxu1 %v9244_v32  ;;  %v575_v63 = vsel %vm541_vm1, %v472_v18, %v9430_v0  ;;  %v574_v19 = vsel %vm541_vm1, %v470_v12, %v9469_v14 }
 0x102   : > { %1303 = vmatpush1.msra.mxu0 %v575_v63  ;;  %1377 = vmatprep.subr.mxu1 %v9265_v38 }
 0x103   : > { %1304 = vmatprep.subr.mxu0 %v9476_v28  ;;  %1378 = vmatpush1.msra.mxu1 %v9251_v35 }
 0x104   : > { %v9576_v17 = vpop.permute.xlu0 %580  ;;  %1305 = vmatpush1.msra.mxu0 %v574_v19  ;;  %1379 = vmatprep.subr.mxu1 %v9491_v26  ;;  %v9579_v42 = vpop.permute.xlu1 %578 }
 0x105   : > { %1306 = vmatprep.subr.mxu0 %v682_v21  ;;  %1380 = vmatpush1.msra.mxu1 %v9441_v9  ;;  %v684_v0 = vsel %vm650_vm2, %v9576_v17, %v585_v11  ;;  %v683_v14 = vsel %vm650_vm2, %v9579_v42, %v583_v16 }
 0x106   : > { %1307 = vmatpush1.msra.mxu0 %v684_v0  ;;  %1381 = vmatprep.subr.mxu1 %v9503_v23 }
 0x107   : > { %1308 = vmatprep.subr.mxu0 %v681_v3  ;;  %1382 = vmatpush1.msra.mxu1 %v9458_v8 }
 0x108   : > { %v9590_v62 = vpop.permute.xlu0 %539  ;;  %1309 = vmatpush1.msra.mxu0 %v683_v14  ;;  %1383 = vmatprep.subr.mxu1 %v678_v29  ;;  %v9592_v21 = vpop.permute.xlu1 %537 }
 0x109   : > { %1310 = vmatprep.subr.mxu0 %v9238_v31  ;;  %1384 = vmatpush1.msra.mxu1 %v9514_v4  ;;  %v577_v31 = vsel %vm541_vm1, %v9590_v62, %v472_v18 }
 0x10a   : > { %1311 = vmatpush1.msra.mxu0 %v9304_v40  ;;  %1385 = vmatprep.subr.mxu1 %v677_v43 }
 0x10b   : > { %1312 = vmatprep.subr.mxu0 %v9274_v39  ;;  %1386 = vmatpush1.msra.mxu1 %v9535_v2  ;;  %v576_v39 = vsel %vm541_vm1, %v9592_v21, %v470_v12 }
 0x10c   : > { %v9599_v3 = vpop.permute.xlu0 %604  ;;  %1313 = vmatpush1.msra.mxu0 %v9306_v41  ;;  %1387 = vmatprep.subr.mxu1 %v9244_v32  ;;  %v9603_v16 = vpop.permute.xlu1 %602  ;;  %v9645_v41 = vld [vmem:[#allocation9 + $0x18] sm:$0xff] }
 0x10d   : > { %1314 = vmatprep.subr.mxu0 %v575_v63  ;;  %1388 = vmatpush1.msra.mxu1 %v9236_v30  ;;  %v9618_v30 = vld [vmem:[#allocation9] sm:$0xff] }
 0x10e   : > { %1315 = vmatpush1.msra.mxu0 %v577_v31  ;;  %1389 = vmatprep.subr.mxu1 %v9251_v35 }
 0x10f   : > { %1316 = vmatprep.subr.mxu0 %v574_v19  ;;  %1390 = vmatpush1.msra.mxu1 %v9246_v33  ;;  %v9625_v33 = vsel %vm650_vm2, %v9538_v15, %v9599_v3 }
 0x110   : > { %v496_v32 = vpop.permute.xlu0 %495  ;;  %1317 = vmatpush1.msra.mxu0 %v576_v39  ;;  %1391 = vmatprep.subr.mxu1 %v9441_v9  ;;  %v500_v40 = vpop.permute.xlu1 %499  ;;  %v9653_v9 = vld [vmem:[#allocation9 + $0x10] sm:$0xff] }
 0x111   : > { %1346 = vmatprep.subr.mxu0 %v678_v29  ;;  %1392 = vmatpush1.msra.mxu1 %v9449_v10  ;;  %v9660_v10 = vsel %vm541_vm1, %v9467_v22, %v496_v32 }
 0x112   : > { %1347 = vmatpush2.msra.mxu0 %v9514_v4  ;;  %1393 = vmatprep.subr.mxu1 %v9458_v8  ;;  %v9635_v4 = vsel %vm650_vm2, %v9552_v20, %v9603_v16 }
 0x113   : > { %1348 = vmatprep.subr.mxu0 %v677_v43  ;;  %1394 = vmatpush1.msra.mxu1 %v9476_v28  ;;  %v9651_v43 = vsel %vm541_vm1, %v496_v32, %v500_v40 }
 0x114   : > { %v494_v35 = vpop.permute.xlu0 %493  ;;  %1349 = vmatpush2.msra.mxu0 %v9535_v2  ;;  %1423 = vmatprep.subr.mxu1 %v9625_v33  ;;  %v498_v29 = vpop.permute.xlu1 %497 }
 0x115   : > { %1351 = vmatmul.mubr.f32.vlgmr.msra.gmra.mxu0 %v9618_v30  ;;  %1424 = vmatpush2.msra.mxu1 %v9545_v5  ;;  %v9669_v8 = vsel %vm541_vm1, %v494_v35, %v498_v29  ;;  %v9679_v22 = vsel %vm541_vm1, %v9494_v25, %v494_v35 }
 0x116   : > { %1440 = vmatprep.subr.mxu0 %v9338_v47  ;;  %1425 = vmatprep.subr.mxu1 %v9635_v4 }
 0x117   : > { %1441 = vmatpush1.msra.mxu0 %v9330_v45  ;;  %1426 = vmatpush2.msra.mxu1 %v9558_v6 }
 0x118   : > { %1442 = vmatprep.subr.mxu0 %v9344_v48  ;;  %v504_v15 = vpop.permute.xlu0 %503  ;;  %1428 = vmatmul.mubr.f32.vlgmr.msra.gmra.mxu1 %v9618_v30  ;;  %v9643_v28 = vpop.permute.xlu1 %507 }
 0x119   : > { %1443 = vmatpush1.msra.mxu0 %v9332_v46  ;;  %1517 = vmatprep.subr.mxu1 %v9352_v50  ;;  %v9686_v2 = vsel %vm541_vm1, %v504_v15, %v9643_v28  ;;  %v9697_v25 = vsel %vm541_vm1, %v500_v40, %v504_v15 }
 0x11a   : > { %1444 = vmatprep.subr.mxu0 %v9651_v43  ;;  %1518 = vmatpush1.msra.mxu1 %v9350_v49 }
 0x11b   : > { %8672 = vmatprep.mubr.msk.f32.mxu0 %vm1279_vm0, %v9645_v41  ;;  %1445 = vmatpush1.msra.mxu0 %v9660_v10 }
 0x11c   : > { %1519 = vmatprep.subr.mxu1 %v9360_v52  ;;  %1357 = vmatmul.mubr.f32.gmra.mxu0 %v9653_v9  ;;  %v502_v63 = vpop.permute.xlu0 %501  ;;  %v9671_v11 = vpop.permute.xlu1 %505 }
 0x11d   : > { %8674 = vmatprep.mubr.msk.f32.mxu1 %vm1279_vm0, %v9645_v41  ;;  %1446 = vmatprep.subr.mxu0 %v9669_v8  ;;  %v9691_v20 = vsel %vm541_vm1, %v502_v63, %v9671_v11  ;;  %v9701_v18 = vsel %vm541_vm1, %v498_v29, %v502_v63 }
 0x11e   : > { %1520 = vmatpush1.msra.mxu1 %v9358_v51  ;;  %1447 = vmatpush1.msra.mxu0 %v9679_v22 }
 0x11f   : > { %1434 = vmatmul.mubr.f32.gmra.mxu1 %v9653_v9  ;;  %1521 = vmatprep.subr.mxu1 %v9686_v2 }
 0x120   : > { %1522 = vmatpush1.msra.mxu1 %v9697_v25  ;;  %v609_v12 = vpop.permute.xlu0 %608  ;;  %v607_v19 = vpop.permute.xlu1 %606  ;;  %8675 = vmatprep.mubr.msk.f32.mxu0 %vm1279_vm0, %v9320_v44 }
 0x121   : > { %1523 = vmatprep.subr.mxu1 %v9691_v20  ;;  %v9710_v0 = vsel %vm650_vm2, %v9599_v3, %v609_v12  ;;  %8677 = vmatprep.mubr.msk.f32.mxu1 %vm1279_vm0, %v9320_v44  ;;  %v9720_v14 = vsel %vm650_vm2, %v9603_v16, %v607_v19 }
 0x122   : > { %1524 = vmatpush1.msra.mxu1 %v9701_v18  ;;  %1448 = vmatprep.subr.mxu0 %v9710_v0 }
 0x123   : > { %1449 = vmatpush1.msra.mxu0 %v9625_v33 }
 0x124   : > { %v613_v31 = vpop.permute.xlu0 %612  ;;  %1450 = vmatprep.subr.mxu0 %v9720_v14  ;;  %v9723_v39 = vpop.permute.xlu1 %616 }
 0x125   : > { %1451 = vmatpush1.msra.mxu0 %v9635_v4  ;;  %v9729_v3 = vsel %vm650_vm2, %v613_v31, %v9723_v39  ;;  %v670_v32 = vsel %vm650_vm2, %v609_v12, %v613_v31 }
 0x126   : > { %1452 = vmatprep.subr.mxu0 %v9330_v45  ;;  %1525 = vmatprep.subr.mxu1 %v9729_v3 }
 0x127   : > { %1453 = vmatpush1.msra.mxu0 %v9248_v34  ;;  %1526 = vmatpush1.msra.mxu1 %v670_v32 }
 0x128   : > { %v611_v16 = vpop.permute.xlu0 %610  ;;  %1454 = vmatprep.subr.mxu0 %v9332_v46  ;;  %v9737_v40 = vpop.permute.xlu1 %614 }
 0x129   : > { %1455 = vmatpush1.msra.mxu0 %v9263_v37  ;;  %v9743_v35 = vsel %vm650_vm2, %v611_v16, %v9737_v40  ;;  %v669_v29 = vsel %vm650_vm2, %v607_v19, %v611_v16 }
 0x12a   : > { %1456 = vmatprep.subr.mxu0 %v9660_v10  ;;  %1527 = vmatprep.subr.mxu1 %v9743_v35 }
 0x12b   : > { %1457 = vmatpush1.msra.mxu0 %v9481_v27  ;;  %1528 = vmatpush1.msra.mxu1 %v669_v29 }
 0x12c   : > { %v9750_v15 = vpop.permute.xlu0 %620  ;;  %1458 = vmatprep.subr.mxu0 %v9679_v22  ;;  %1529 = vmatprep.subr.mxu1 %v9350_v49  ;;  %v9754_v63 = vpop.permute.xlu1 %618 }
 0x12d   : > { %1459 = vmatpush1.msra.mxu0 %v9499_v24  ;;  %1530 = vmatpush1.msra.mxu1 %v9338_v47 }
 0x12e   : > { %1460 = vmatprep.subr.mxu0 %v9625_v33  ;;  %1531 = vmatprep.subr.mxu1 %v9358_v51 }
 0x12f   : > { %1461 = vmatpush1.msra.mxu0 %v9545_v5  ;;  %1532 = vmatpush1.msra.mxu1 %v9344_v48 }
 0x130   : > { %v512_v12 = vpop.permute.xlu0 %511  ;;  %1462 = vmatprep.subr.mxu0 %v9635_v4  ;;  %1533 = vmatprep.subr.mxu1 %v9697_v25  ;;  %v9764_v19 = vpop.permute.xlu1 %515 }
 0x131   : > { %1463 = vmatpush1.msra.mxu0 %v9558_v6  ;;  %1534 = vmatpush1.msra.mxu1 %v9651_v43 }
 0x132   : > { %1464 = vmatprep.subr.mxu0 %v9248_v34  ;;  %1535 = vmatprep.subr.mxu1 %v9701_v18 }
 0x133   : > { %1465 = vmatpush1.msra.mxu0 %v9253_v36  ;;  %1536 = vmatpush1.msra.mxu1 %v9669_v8 }
 0x134   : > { %v510_v5 = vpop.permute.xlu0 %509  ;;  %1466 = vmatprep.subr.mxu0 %v9263_v37  ;;  %1537 = vmatprep.subr.mxu1 %v670_v32  ;;  %v9773_v33 = vpop.permute.xlu1 %513 }
 0x135   : > { %1467 = vmatpush1.msra.mxu0 %v9265_v38  ;;  %1538 = vmatpush1.msra.mxu1 %v9710_v0  ;;  %v665_v38 = vsel %vm650_vm2, %v9737_v40, %v9754_v63  ;;  %v9842_v6 = vsel %vm541_vm1, %v9671_v11, %v510_v5 }
 0x136   : > { %1468 = vmatprep.subr.mxu0 %v9481_v27  ;;  %1539 = vmatprep.subr.mxu1 %v669_v29 }
 0x137   : > { %1469 = vmatpush1.msra.mxu0 %v9491_v26  ;;  %1540 = vmatpush1.msra.mxu1 %v9720_v14 }
 0x138   : > { %v520_v34 = vpop.permute.xlu0 %519  ;;  %1470 = vmatprep.subr.mxu0 %v9499_v24  ;;  %1541 = vmatprep.subr.mxu1 %v9338_v47  ;;  %v9782_v36 = vpop.permute.xlu1 %523  ;;  %v9833_v47 = vsel %vm541_vm1, %v510_v5, %v9773_v33 }
 0x139   : > { %1471 = vmatpush1.msra.mxu0 %v9503_v23  ;;  %1542 = vmatpush1.msra.mxu1 %v9330_v45  ;;  %v9802_v23 = vsel %vm650_vm2, %v9723_v39, %v9750_v15  ;;  %v9819_v45 = vsel %vm541_vm1, %v512_v12, %v9764_v19  ;;  %v9875_v11 = vsel %vm541_vm1, %v9764_v19, %v520_v34  ;;  %v14499_v19 = vld [vmem:[#allocation39_spill] sm:$0xff] }
 0x13a   : > { %1500 = vmatprep.subr.mxu0 %v670_v32  ;;  %1543 = vmatprep.subr.mxu1 %v9344_v48 }
 0x13b   : > { %1501 = vmatpush2.msra.mxu0 %v9710_v0  ;;  %1544 = vmatpush1.msra.mxu1 %v9332_v46  ;;  %v9826_v46 = vsel %vm541_vm1, %v9643_v28, %v512_v12 }
 0x13c   : > { %v518_v26 = vpop.permute.xlu0 %517  ;;  %1502 = vmatprep.subr.mxu0 %v669_v29  ;;  %1545 = vmatprep.subr.mxu1 %v9651_v43  ;;  %v9790_v24 = vpop.permute.xlu1 %521 }
 0x13d   : > { %1503 = vmatpush2.msra.mxu0 %v9720_v14  ;;  %1546 = vmatpush1.msra.mxu1 %v9660_v10  ;;  %v9866_v10 = vsel %vm541_vm1, %v520_v34, %v9782_v36  ;;  %v9893_v31 = vsel %vm541_vm1, %v9773_v33, %v518_v26  ;;  %v14500_v33 = vld [vmem:[#allocation37_spill] sm:$0xff] }
 0x13e   : > { %1505 = vmatmul.mubr.f32.vlgmr.msra.gmra.mxu0 %v9618_v30  ;;  %1547 = vmatprep.subr.mxu1 %v9669_v8 }
 0x13f   : > { %1594 = vmatprep.subr.mxu0 %v9386_v55  ;;  %1548 = vmatpush1.msra.mxu1 %v9679_v22  ;;  %v9881_v22 = vsel %vm541_vm1, %v518_v26, %v9790_v24 }
 0x140   : > { %1595 = vmatpush1.msra.mxu0 %v9378_v53  ;;  %1577 = vmatprep.subr.mxu1 %v9802_v23  ;;  %v623_v27 = vpop.permute.xlu1 %622  ;;  %v625_v37 = vpop.permute.xlu0 %624 }
 0x141   : > { %1596 = vmatprep.subr.mxu0 %v9392_v56  ;;  %8676 = vmatprep.mubr.msk.f32.mxu0 %vm1279_vm0, %v9645_v41  ;;  %v9849_v28 = vsel %vm650_vm2, %v9750_v15, %v625_v37  ;;  %v9859_v43 = vsel %vm650_vm2, %v9754_v63, %v623_v27 }
 0x142   : > { %1578 = vmatpush2.msra.mxu1 %v9729_v3  ;;  %1597 = vmatpush1.msra.mxu0 %v9380_v54 }
 0x143   : > { %1511 = vmatmul.mubr.f32.gmra.mxu0 %v9653_v9  ;;  %1579 = vmatprep.subr.mxu1 %v665_v38 }
 0x144   : > { %1598 = vmatprep.subr.mxu0 %v9819_v45  ;;  %1580 = vmatpush2.msra.mxu1 %v9743_v35  ;;  %v9835_v48 = vpop.permute.xlu1 %632  ;;  %v629_v4 = vpop.permute.xlu0 %628 }
 0x145   : > { %1599 = vmatpush1.msra.mxu0 %v9826_v46  ;;  %1582 = vmatmul.mubr.f32.vlgmr.msra.gmra.mxu1 %v9618_v30  ;;  %v9886_v0 = vsel %vm650_vm2, %v629_v4, %v9835_v48  ;;  %v662_v39 = vsel %vm650_vm2, %v625_v37, %v629_v4  ;;  %v14502_v4 = vld [vmem:[#allocation21_spill] sm:$0xff] }
 0x146   : > { %1600 = vmatprep.subr.mxu0 %v9833_v47  ;;  %1671 = vmatprep.subr.mxu1 %v9400_v58 }
 0x147   : > { %1601 = vmatpush1.msra.mxu0 %v9842_v6  ;;  %1672 = vmatpush1.msra.mxu1 %v9398_v57 }
 0x148   : > { %1602 = vmatprep.subr.mxu0 %v9849_v28  ;;  %1673 = vmatprep.subr.mxu1 %v9408_v60  ;;  %v9870_v8 = vpop.permute.xlu1 %630  ;;  %v627_v14 = vpop.permute.xlu0 %626 }
 0x149   : > { %8678 = vmatprep.mubr.msk.f32.mxu1 %vm1279_vm0, %v9645_v41  ;;  %1603 = vmatpush1.msra.mxu0 %v9802_v23  ;;  %v9902_v32 = vsel %vm650_vm2, %v627_v14, %v9870_v8  ;;  %v661_v40 = vsel %vm650_vm2, %v623_v27, %v627_v14 }
 0x14a   : > { %1674 = vmatpush1.msra.mxu1 %v9406_v59  ;;  %1604 = vmatprep.subr.mxu0 %v9859_v43 }
 0x14b   : > { %1588 = vmatmul.mubr.f32.gmra.mxu1 %v9653_v9  ;;  %1675 = vmatprep.subr.mxu1 %v9866_v10 }
 0x14c   : > { %1605 = vmatpush1.msra.mxu0 %v665_v38  ;;  %1676 = vmatpush1.msra.mxu1 %v9875_v11  ;;  %v9907_v16 = vpop.permute.xlu1 %634  ;;  %v9914_v29 = vpop.permute.xlu0 %636 }
 0x14d   : > { %1606 = vmatprep.subr.mxu0 %v9378_v53  ;;  %1677 = vmatprep.subr.mxu1 %v9881_v22 }
 0x14e   : > { %1607 = vmatpush1.msra.mxu0 %v9352_v50  ;;  %1678 = vmatpush1.msra.mxu1 %v9893_v31 }
 0x14f   : > { %1608 = vmatprep.subr.mxu0 %v9380_v54  ;;  %1679 = vmatprep.subr.mxu1 %v9886_v0 }
 0x150   : > { %1609 = vmatpush1.msra.mxu0 %v9360_v52  ;;  %1680 = vmatpush1.msra.mxu1 %v662_v39  ;;  %v528_v63 = vpop.permute.xlu0 %527 }
 0x151   : > { %1610 = vmatprep.subr.mxu0 %v9826_v46  ;;  %1681 = vmatprep.subr.mxu1 %v9902_v32  ;;  %v9924_v15 = vpop.permute.xlu1 %531 }
 0x152   : > { %1611 = vmatpush1.msra.mxu0 %v9686_v2  ;;  %1682 = vmatpush1.msra.mxu1 %v661_v40 }
 0x153   : > { %1612 = vmatprep.subr.mxu0 %v9842_v6  ;;  %1683 = vmatprep.subr.mxu1 %v9398_v57 }
 0x154   : > { %1613 = vmatpush1.msra.mxu0 %v9691_v20  ;;  %1684 = vmatpush1.msra.mxu1 %v9386_v55 }
 0x155   : > { %1614 = vmatprep.subr.mxu0 %v9802_v23  ;;  %1685 = vmatprep.subr.mxu1 %v9406_v59 }
 0x156   : > { %1615 = vmatpush1.msra.mxu0 %v9729_v3  ;;  %1686 = vmatpush1.msra.mxu1 %v9392_v56  ;;  %v9936_v3 = vpop.permute.xlu1 %529 }
 0x157   : > { %1616 = vmatprep.subr.mxu0 %v665_v38  ;;  %1687 = vmatprep.subr.mxu1 %v9875_v11 }
 0x158   : > { %1617 = vmatpush1.msra.mxu0 %v9743_v35  ;;  %1688 = vmatpush1.msra.mxu1 %v9819_v45  ;;  %v14498_v35 = vld [vmem:[#allocation36_spill] sm:$0xff] }
 0x159   : > { %1618 = vmatprep.subr.mxu0 %v9352_v50  ;;  %1689 = vmatprep.subr.mxu1 %v9893_v31  ;;  %v526_v50 = vpop.permute.xlu0 %525 }
 0x15a   : > { %1619 = vmatpush1.msra.mxu0 %v9350_v49  ;;  %1690 = vmatpush1.msra.mxu1 %v9833_v47  ;;  %v534_v49 = vpop.permute.xlu1 %533  ;;  %v10001_v12 = vsel %vm541_vm1, %v9790_v24, %v526_v50 }
 0x15b   : > { %1620 = vmatprep.subr.mxu0 %v9360_v52  ;;  %1691 = vmatprep.subr.mxu1 %v662_v39  ;;  %v9962_v52 = vsel %vm650_vm2, %v9835_v48, %v9914_v29  ;;  %v542_v27 = vsel %vm541_vm1, %v534_v49, %v9592_v21  ;;  %v544_v38 = vsel %vm541_vm1, %v9936_v3, %v534_v49 }
 0x15c   : > { %1621 = vmatpush1.msra.mxu0 %v9358_v51  ;;  %1692 = vmatpush1.msra.mxu1 %v9849_v28 }
 0x15d   : > { %1622 = vmatprep.subr.mxu0 %v9686_v2  ;;  %1693 = vmatprep.subr.mxu1 %v661_v40  ;;  %v536_v51 = vpop.permute.xlu0 %535  ;;  %v14497_v2 = vld [vmem:[#allocation38_spill] sm:$0xff] }
 0x15e   : > { %1623 = vmatpush1.msra.mxu0 %v9697_v25  ;;  %1694 = vmatpush1.msra.mxu1 %v9859_v43  ;;  %v9992_v25 = vsel %vm541_vm1, %v9782_v36, %v528_v63  ;;  %v14501_v36 = vld [vmem:[#allocation40_spill] sm:$0xff]  ;;  %v543_v26 = vsel %vm541_vm1, %v536_v51, %v9590_v62  ;;  %v545_v24 = vsel %vm541_vm1, %v9924_v15, %v536_v51 }
 0x15f   : > { %1624 = vmatprep.subr.mxu0 %v9691_v20  ;;  %1695 = vmatprep.subr.mxu1 %v9386_v55  ;;  %v9984_v20 = vsel %vm541_vm1, %v526_v50, %v9936_v3 }
 0x160   : > { %1625 = vmatpush1.msra.mxu0 %v9701_v18  ;;  %1696 = vmatpush1.msra.mxu1 %v9378_v53  ;;  %v9969_v53 = vsel %vm541_vm1, %v528_v63, %v9924_v15 }
 0x161   : > { %1654 = vmatprep.subr.mxu0 %v662_v39  ;;  %1697 = vmatprep.subr.mxu1 %v9392_v56  ;;  %v641_v55 = vpop.permute.xlu0 %640  ;;  %v657_v56 = vsel %vm650_vm2, %v9870_v8, %v9907_v16 }
 0x162   : > { %1655 = vmatpush2.msra.mxu0 %v9849_v28  ;;  %1698 = vmatpush1.msra.mxu1 %v9380_v54  ;;  %v639_v54 = vpop.permute.xlu1 %638  ;;  %v10010_v5 = vsel %vm650_vm2, %v9914_v29, %v641_v55  ;;  %v14503_v28 = vld [vmem:[#allocation19_spill] sm:$0xff] }
 0x163   : > { %1656 = vmatprep.subr.mxu0 %v661_v40  ;;  %1699 = vmatprep.subr.mxu1 %v9819_v45  ;;  %v10020_v34 = vsel %vm650_vm2, %v9907_v16, %v639_v54 }
 0x164   : > { %1657 = vmatpush2.msra.mxu0 %v9859_v43  ;;  %8679 = vmatprep.mubr.msk.f32.mxu0 %vm1279_vm0, %v9320_v44  ;;  %v14504_v43 = vrot.slane %v14503_v28, %v14502_v4  ;;  %v14515_v28 = vld [vmem:[#allocation26_spill] sm:$0xff] }
 0x165   : > { %1700 = vmatpush1.msra.mxu1 %v9826_v46  ;;  %1659 = vmatmul.mubr.f32.vlgmr.msra.gmra.mxu0 %v9618_v30  ;;  %v645_v18 = vpop.permute.xlu0 %644 }
 0x166   : > { %1701 = vmatprep.subr.mxu1 %v9833_v47  ;;  %1748 = vmatprep.subr.mxu0 %v9437_v7  ;;  %v654_v45 = vsel %vm650_vm2, %v641_v55, %v645_v18  ;;  %v10080_v47 = vstv %s2066_s27  ;;  %s9022_s27 = smov [#allocation10]  }
 0x167   : > { %1702 = vmatpush1.msra.mxu1 %v9842_v6  ;;  %1749 = vmatpush1.msra.mxu0 %v9426_v61  ;;  %s8929_s29 = sshll.u32 %s9022_s27, 4  ;;  %s8930_s29 = int_to_ptr.vmem [resolvable:$false] %s8929_s29 }
 0x168   : > { %1731 = vmatprep.subr.mxu1 %v9962_v52  ;;  %1750 = vmatprep.subr.mxu0 %v9454_v13  ;;  %s8931_s10 = scalar_lea.vmem %s8930_s29, 512  ;;  %p8932_p4 = scmp.lt.s32.totalorder %s14284_s15, %s8930_s29 }
 0x169   : > { %8680 = vmatprep.mubr.msk.f32.mxu0 %vm1279_vm0, %v9645_v41  ;;  %1732 = vmatpush2.msra.mxu1 %v9886_v0  ;;  %v643_v23 = vpop.permute.xlu0 %642 }
 0x16a   : > { %1751 = vmatpush1.msra.mxu0 %v14497_v2  ;;  %1733 = vmatprep.subr.mxu1 %v657_v56  ;;  %v653_v46 = vsel %vm650_vm2, %v639_v54, %v643_v23 }
 0x16b   : > { %1665 = vmatmul.mubr.f32.gmra.mxu0 %v9653_v9  ;;  %1752 = vmatprep.subr.mxu0 %v9969_v53 }
 0x16c   : > { %1734 = vmatpush2.msra.mxu1 %v9902_v32  ;;  %8681 = vmatprep.mubr.msk.f32.mxu1 %vm1279_vm0, %v9320_v44  ;;  %v10003_v44 = vpop.permute.xlu1 %648 }
 0x16d   : > { %1753 = vmatpush1.msra.mxu0 %v9992_v25  ;;  %1736 = vmatmul.mubr.f32.vlgmr.msra.gmra.mxu1 %v9618_v30  ;;  %v10037_v37 = vsel %vm650_vm2, %v645_v18, %v10003_v44 }
 0x16e   : > { %1754 = vmatprep.subr.mxu0 %v9984_v20  ;;  %1825 = vmatprep.subr.mxu1 %v14498_v35 }
 0x16f   : > { %1755 = vmatpush1.msra.mxu0 %v10001_v12  ;;  %1826 = vmatpush1.msra.mxu1 %v14499_v19 }
 0x170   : > { %1756 = vmatprep.subr.mxu0 %v10010_v5  ;;  %1827 = vmatprep.subr.mxu1 %v14500_v33  ;;  %v10039_v62 = vpop.permute.xlu1 %646 }
 0x171   : > { %8682 = vmatprep.mubr.msk.f32.mxu1 %vm1279_vm0, %v9645_v41  ;;  %1757 = vmatpush1.msra.mxu0 %v9962_v52  ;;  %v10051_v21 = vsel %vm650_vm2, %v643_v23, %v10039_v62  ;;  %v685_v6 = vsel %vm650_vm2, %v10039_v62, %v9579_v42  ;;  %v10130_v42 = vrot.slane %v14504_v43, %v14502_v4  ;;  %v10147_v63 = vpop.permute.xlu0 %1276 }
 0x172   : > { %1828 = vmatpush1.msra.mxu1 %v14501_v36  ;;  %1758 = vmatprep.subr.mxu0 %v10020_v34  ;;  %v10234_v43 = vrot.slane %v14515_v28, %v14502_v4 }
 0x173   : > { %1742 = vmatmul.mubr.f32.gmra.mxu1 %v9653_v9  ;;  %1829 = vmatprep.subr.mxu1 %v543_v26  ;;  %14505 = vst [vmem:[#allocation38_spill] sm:$0xff] %v10130_v42  ;;  %v14510_v26 = vld [vmem:[#allocation24_spill] sm:$0xff] }
 0x174   : > { %1759 = vmatpush1.msra.mxu0 %v657_v56  ;;  %1830 = vmatpush1.msra.mxu1 %v545_v24  ;;  %14516 = vst [vmem:[#allocation19_spill] sm:$0xff] %v10234_v43 }
 0x175   : > { %1760 = vmatprep.subr.mxu0 %v9426_v61  ;;  %1831 = vmatprep.subr.mxu1 %v542_v27  ;;  %v2065_v27 = vld [vmem:[#allocation2 + $0x118] sm:$0xff] }
 0x176   : > { %1761 = vmatpush1.msra.mxu0 %v9400_v58  ;;  %1832 = vmatpush1.msra.mxu1 %v544_v38  ;;  %vm2102_vm12 = vcmp.ge.f32.partialorder %v2065_v27, 0.0 }
 0x177   : > { %1762 = vmatprep.subr.mxu0 %v14497_v2  ;;  %1833 = vmatprep.subr.mxu1 %v10037_v37 }
 0x178   : > { %1763 = vmatpush1.msra.mxu0 %v9408_v60  ;;  %1834 = vmatpush1.msra.mxu1 %v654_v45 }
 0x179   : > { %1764 = vmatprep.subr.mxu0 %v9992_v25  ;;  %1835 = vmatprep.subr.mxu1 %v10051_v21 }
 0x17a   : > { %1765 = vmatpush1.msra.mxu0 %v9866_v10  ;;  %1836 = vmatpush1.msra.mxu1 %v653_v46 }
 0x17b   : > { %1766 = vmatprep.subr.mxu0 %v10001_v12  ;;  %1837 = vmatprep.subr.mxu1 %v14499_v19 }
 0x17c   : > { %1767 = vmatpush1.msra.mxu0 %v9881_v22  ;;  %1838 = vmatpush1.msra.mxu1 %v9437_v7 }
 0x17d   : > { %1768 = vmatprep.subr.mxu0 %v9962_v52  ;;  %1839 = vmatprep.subr.mxu1 %v14501_v36 }
 0x17e   : > { %1769 = vmatpush1.msra.mxu0 %v9886_v0  ;;  %1840 = vmatpush1.msra.mxu1 %v9454_v13 }
 0x17f   : > { %1770 = vmatprep.subr.mxu0 %v657_v56  ;;  %1841 = vmatprep.subr.mxu1 %v545_v24  ;;  %v10197_v24 = vrot.slane %v14510_v26, %v14502_v4 }
 0x180   : > { %1771 = vmatpush1.msra.mxu0 %v9902_v32  ;;  %1842 = vmatpush1.msra.mxu1 %v9969_v53 }
 0x181   : > { %1772 = vmatprep.subr.mxu0 %v9400_v58  ;;  %1843 = vmatprep.subr.mxu1 %v544_v38  ;;  %v2030_v58 = vld [vmem:[#allocation2] sm:$0xff]  ;;  %14511 = vst [vmem:[#allocation37_spill] sm:$0xff] %v10197_v24  ;;  %v2139_v38 = vmul.f32 %v10080_v47, %v2065_v27 }
 0x182   : > { %1773 = vmatpush1.msra.mxu0 %v9398_v57  ;;  %1844 = vmatpush1.msra.mxu1 %v9984_v20  ;;  %v2048_v57 = vld [vmem:[#allocation2 + $0x90] sm:$0xff]  ;;  %vm2067_vm3 = vcmp.ge.f32.partialorder %v2030_v58, 0.0 }
 0x183   : > { %1774 = vmatprep.subr.mxu0 %v9408_v60  ;;  %1845 = vmatprep.subr.mxu1 %v654_v45  ;;  %v2122_v60 = vmul.f32 %v10080_v47, %v2048_v57  ;;  %vm2085_vm4 = vcmp.ge.f32.partialorder %v2048_v57, 0.0 }
 0x184   : > { %1775 = vmatpush1.msra.mxu0 %v9406_v59  ;;  %1846 = vmatpush1.msra.mxu1 %v10010_v5  ;;  %v2104_v59 = vmul.f32 %v10080_v47, %v2030_v58 }
 0x185   : > { %1776 = vmatprep.subr.mxu0 %v9866_v10  ;;  %1847 = vmatprep.subr.mxu1 %v653_v46  ;;  %v10107_v48 = vsel %vm2085_vm4, %v2048_v57, %v2122_v60  ;;  %v14513_v60 = vld [vmem:[#allocation25_spill] sm:$0xff] }
 0x186   : > { %1777 = vmatpush1.msra.mxu0 %v9875_v11  ;;  %1848 = vmatpush1.msra.mxu1 %v10020_v34  ;;  %v14506_v11 = vld [vmem:[#allocation23_spill] sm:$0xff] }
 0x187   : > { %1778 = vmatprep.subr.mxu0 %v9881_v22  ;;  %1849 = vmatprep.subr.mxu1 %v9437_v7  ;;  %v8857_v7 = vld [vmem:[#allocation9 + $0x8] sm:$0xff]  ;;  %v10135_v22 = vrot.slane %v14506_v11, %v14502_v4 }
 0x188   : > { %1779 = vmatpush1.msra.mxu0 %v9893_v31  ;;  %1850 = vmatpush1.msra.mxu1 %v9426_v61  ;;  %v10096_v61 = vsel %vm2067_vm3, %v2030_v58, %v2104_v59  ;;  %v10218_v58 = vsel %vm2102_vm12, %v2065_v27, %v2139_v38 }
 0x189   : > { %1808 = vmatprep.subr.mxu0 %v654_v45  ;;  %1851 = vmatprep.subr.mxu1 %v9454_v13  ;;  %v686_v13 = vsel %vm650_vm2, %v10003_v44, %v9576_v17  ;;  %v10124_v17 = vpop.permute.xlu1 %1271  ;;  %14507 = vst [vmem:[#allocation36_spill] sm:$0xff] %v10135_v22  ;;  %14512 = vst [vmem:[#allocation40_spill] sm:$0xff] %v10218_v58 }
 0x18a   : > { %1809 = vmatpush2.msra.mxu0 %v10010_v5  ;;  %1852 = vmatpush1.msra.mxu1 %v14497_v2 }
 0x18b   : > { %1810 = vmatprep.subr.mxu0 %v653_v46  ;;  %1853 = vmatprep.subr.mxu1 %v9969_v53 }
 0x18c   : > { %1811 = vmatpush2.msra.mxu0 %v10020_v34  ;;  %8683 = vmatprep.mubr.msk.f32.mxu0 %vm1279_vm0, %v8857_v7  ;;  %v2047_v34 = vld [vmem:[#allocation2 + $0x88] sm:$0xff] }
 0x18d   : > { %1854 = vmatpush1.msra.mxu1 %v9992_v25  ;;  %1813 = vmatmul.mubr.f32.vlgmr.msra.gmra.mxu0 %v9618_v30  ;;  %v2121_v23 = vmul.f32 %v10080_v47, %v2047_v34  ;;  %vm2084_vm11 = vcmp.ge.f32.partialorder %v2047_v34, 0.0 }
 0x18e   : > { %1855 = vmatprep.subr.mxu1 %v9984_v20  ;;  %8684 = vmatprep.mubr.msk.f32.mxu0 %vm1279_vm0, %v9645_v41 }
 0x18f   : > { %1856 = vmatpush1.msra.mxu1 %v10001_v12  ;;  %8685 = vmatprep.mubr.msk.f32.mxu1 %vm1279_vm0, %v8857_v7  ;;  %v10210_v45 = vsel %vm2084_vm11, %v2047_v34, %v2121_v23  ;;  %v10227_v7 = vrot.slane %v14513_v60, %v14502_v4 }
 0x190   : > { %1885 = vmatprep.subr.mxu1 %v686_v13  ;;  %2176 = vrot.lane.b32.xlu0 %v10096_v61, %s9019_s14 }
 0x191   : > { %1886 = vmatpush2.msra.mxu1 %v10037_v37  ;;  %1819 = vmatmul.mubr.f32.gmra.mxu0 %v9653_v9  ;;  %14514 = vst [vmem:[#allocation21_spill] sm:$0xff] %v10227_v7 }
 0x192   : > { %1887 = vmatprep.subr.mxu1 %v685_v6  ;;  %2178 = vrot.lane.b32.xlu1 %v10107_v48, %s9019_s14 }
 0x193   : > { %1888 = vmatpush2.msra.mxu1 %v10051_v21 }
 0x194   : > { %1890 = vmatmul.mubr.f32.vlgmr.msra.gmra.mxu1 %v9618_v30 }
 0x195   : > { %8686 = vmatprep.mubr.msk.f32.mxu1 %vm1279_vm0, %v9645_v41 }
 0x198   : > { %1896 = vmatmul.mubr.f32.gmra.mxu1 %v9653_v9  ;;  %v14508_v9 = vld [vmem:[#allocation22_spill] sm:$0xff] }
 0x199   : > { %v10140_v14 = vrot.slane %v14508_v9, %v14502_v4 }
 0x19b   : > { %14509 = vst [vmem:[#allocation39_spill] sm:$0xff] %v10140_v14 }
 0x1d5   : > { %v1352_v10 = vpop.f32.mrf.mxu0 }
 0x1d6   : > { %v1353_v8 = vadd.f32 %v1352_v10, %v10124_v17 }
 0x1d7   : > { %v1354_v30 = vpop.f32.mrf.mxu0 }
 0x1d8   : > { %v1429_v0 = vpop.f32.mrf.mxu1  ;;  %v1355_v41 = vadd.f32 %v1354_v30, %v10124_v17  ;;  %v1966_v31 = vmul.f32 %v10130_v42, %v1353_v8 }
 0x1d9   : > { %v1430_v39 = vadd.f32 %v1429_v0, %v10124_v17 }
 0x1da   : > { %vm2068_vm5 = vcmp.ge.f32.partialorder %v1966_v31, 0.0  ;;  %v2105_v32 = vmul.f32 %v10080_v47, %v1966_v31  ;;  %v1431_v40 = vpop.f32.mrf.mxu1  ;;  %v1967_v29 = vmul.f32 %v10140_v14, %v1355_v41 }
 0x1db   : > { %v1968_v16 = vmul.f32 %v10135_v22, %v1430_v39  ;;  %v1432_v36 = vadd.f32 %v1431_v40, %v10124_v17 }
 0x1dc   : > { %v1358_v15 = vpop.f32.mrf.mxu0  ;;  %v10149_v3 = vsel %vm2068_vm5, %v1966_v31, %v2105_v32  ;;  %v2106_v2 = vmul.f32 %v10080_v47, %v1967_v29  ;;  %vm2069_vm7 = vcmp.ge.f32.partialorder %v1967_v29, 0.0  ;;  %v14517_v32 = vld [vmem:[#allocation27_spill] sm:$0xff] }
 0x1dd   : > { %2180 = vrot.lane.b32.xlu0 %v10149_v3, %s9019_s14  ;;  %vm2070_vm6 = vcmp.ge.f32.partialorder %v1968_v16, 0.0  ;;  %v2107_v50 = vmul.f32 %v10080_v47, %v1968_v16  ;;  %v1359_v49 = vadd.f32 %v1358_v15, %v10147_v63  ;;  %v1969_v37 = vmul.f32 %v10197_v24, %v1432_v36 }
 0x1de   : > { %v1360_v51 = vpop.f32.mrf.mxu0  ;;  %v10172_v44 = vsel %vm2069_vm7, %v1967_v29, %v2106_v2  ;;  %v10264_v2 = vld [vmem:[#allocation9 + $0x28] sm:$0xff] }
 0x1df   : > { %v1435_v52 = vpop.f32.mrf.mxu1  ;;  %v1361_v53 = vadd.f32 %v1360_v51, %v10147_v63  ;;  %v10156_v54 = vsel %vm2070_vm6, %v1968_v16, %v2107_v50  ;;  %v1982_v55 = vmul.f32 %v10130_v42, %v1359_v49  ;;  %v2108_v46 = vmul.f32 %v10080_v47, %v1969_v37  ;;  %8689 = vmatprep.mubr.msk.f32.mxu0 %vm1279_vm0, %v10264_v2 }
 0x1e0   : > { %v1436_v56 = vadd.f32 %v1435_v52, %v10147_v63  ;;  %2188 = vrot.lane.b32.xlu1 %v10156_v54, %s9019_s14  ;;  %vm2071_vm13 = vcmp.ge.f32.partialorder %v1969_v37, 0.0  ;;  %v10248_v16 = vrot.slane %v14517_v32, %v14502_v4  ;;  %8691 = vmatprep.mubr.msk.f32.mxu1 %vm1279_vm0, %v10264_v2  ;;  %v14524_v32 = vld [vmem:[#allocation29_spill] sm:$0xff] }
 0x1e1   : > { %v1983_v20 = vmul.f32 %v10140_v14, %v1361_v53  ;;  %2288 = vrot.lane.b32.xlu0 %v10149_v3, %s9020_s7  ;;  %v2123_v25 = vmul.f32 %v10080_v47, %v1982_v55  ;;  %vm2086_vm8 = vcmp.ge.f32.partialorder %v1982_v55, 0.0  ;;  %v1437_v62 = vpop.f32.mrf.mxu1  ;;  %v10223_v59 = vsel %vm2071_vm13, %v1969_v37, %v2108_v46  ;;  %v14519_v37 = vld [vmem:[#allocation28_spill] sm:$0xff] }
 0x1e2   : > { %v1984_v18 = vmul.f32 %v10135_v22, %v1436_v56  ;;  %v1438_v21 = vadd.f32 %v1437_v62, %v10147_v63  ;;  %14518 = vst [vmem:[#allocation23_spill] sm:$0xff] %v10248_v16  ;;  %v10296_v62 = vrot.slane %v14519_v37, %v14502_v4 }
 0x1e3   : > { %vm2087_vm9 = vcmp.ge.f32.partialorder %v1983_v20, 0.0  ;;  %v2124_v35 = vmul.f32 %v10080_v47, %v1983_v20  ;;  %v10178_v5 = vsel %vm2086_vm8, %v1982_v55, %v2123_v25 }
 0x1e4   : > { %vm2088_vm10 = vcmp.ge.f32.partialorder %v1984_v18, 0.0  ;;  %v2125_v12 = vmul.f32 %v10080_v47, %v1984_v18  ;;  %2296 = vrot.lane.b32.xlu1 %v10156_v54, %s9020_s7  ;;  %v1985_v57 = vmul.f32 %v10197_v24, %v1438_v21  ;;  %14520 = vst [vmem:[#allocation22_spill] sm:$0xff] %v10296_v62 }
 0x1e5   : > { %v10174_v19 = vsel %vm2087_vm9, %v1983_v20, %v2124_v35  ;;  %2184 = vrot.lane.b32.xlu0 %v10172_v44, %s9019_s14 }
 0x1e6   : > { %v10180_v33 = vsel %vm2088_vm10, %v1984_v18, %v2125_v12  ;;  %v2126_v10 = vmul.f32 %v10080_v47, %v1985_v57  ;;  %vm2089_vm14 = vcmp.ge.f32.partialorder %v1985_v57, 0.0 }
 0x1e7   : > { %2992 = vmatprep.subr.mxu0 %v10180_v33 }
 0x1e8   : > { %2993 = vmatpush1.msra.mxu0 %v10174_v19  ;;  %2182 = vrot.lane.b32.xlu1 %v10178_v5, %s9019_s14  ;;  %v10242_v9 = vsel %vm2089_vm14, %v1985_v57, %v2126_v10 }
 0x1e9   : > { %2994 = vmatprep.subr.mxu0 %v10156_v54  ;;  %2292 = vrot.lane.b32.xlu0 %v10172_v44, %s9020_s7 }
 0x1ea   : > { %2995 = vmatpush1.msra.mxu0 %v10172_v44 }
 0x1ec   : > { %2290 = vrot.lane.b32.xlu1 %v10178_v5, %s9020_s7 }
 0x1ed   : > { %2190 = vrot.lane.b32.xlu0 %v10180_v33, %s9019_s14 }
 0x1f0   : > { %2186 = vrot.lane.b32.xlu1 %v10174_v19, %s9019_s14 }
 0x1f1   : > { %2298 = vrot.lane.b32.xlu0 %v10180_v33, %s9020_s7 }
 0x1f4   : > { %2294 = vrot.lane.b32.xlu1 %v10174_v19, %s9020_s7 }
 0x1f5   : > { %2284 = vrot.lane.b32.xlu0 %v10096_v61, %s9020_s7 }
 0x1f8   : > { %2286 = vrot.lane.b32.xlu1 %v10107_v48, %s9020_s7 }
 0x1f9   : > { %2244 = vrot.lane.b32.xlu0 %v10210_v45, %s9019_s14 }
 0x1fc   : > { %2246 = vrot.lane.b32.xlu1 %v10218_v58, %s9019_s14 }
 0x1fd   : > { %2300 = vrot.lane.b32.xlu0 %v10223_v59, %s9020_s7 }
 0x1fe   : > { %v1506_v13 = vpop.f32.mrf.mxu0 }
 0x1ff   : > { %v1507_v6 = vadd.f32 %v1506_v13, %v10124_v17 }
 0x200   : > { %v1508_v8 = vpop.f32.mrf.mxu0  ;;  %2192 = vrot.lane.b32.xlu1 %v10223_v59, %s9019_s14 }
 0x201   : > { %v1970_v11 = vmul.f32 %v10227_v7, %v1507_v6  ;;  %v1509_v30 = vadd.f32 %v1508_v8, %v10124_v17 }
 0x203   : > { %v1971_v0 = vmul.f32 %v10234_v43, %v1509_v30  ;;  %v1512_v41 = vpop.f32.mrf.mxu0  ;;  %vm2072_vm15 = vcmp.ge.f32.partialorder %v1970_v11, 0.0  ;;  %v2109_v31 = vmul.f32 %v10080_v47, %v1970_v11  ;;  %v14521_v30 = vld [vmem:[#allocation20_spill] sm:$0xff] }
 0x204   : > { %v1513_v39 = vadd.f32 %v1512_v41, %v10147_v63  ;;  %2302 = vrot.lane.b32.xlu1 %v10242_v9, %s9020_s7 }
 0x205   : > { %v1514_v40 = vpop.f32.mrf.mxu0  ;;  %v1583_v29 = vpop.f32.mrf.mxu1  ;;  %v10252_v15 = vsel %vm2072_vm15, %v1970_v11, %v2109_v31  ;;  %v2110_v53 = vmul.f32 %v10080_v47, %v1971_v0  ;;  %vm2073_vm4 = vcmp.ge.f32.partialorder %v1971_v0, 0.0 }
 0x206   : > { %v1986_v50 = vmul.f32 %v10227_v7, %v1513_v39  ;;  %v1584_v49 = vadd.f32 %v1583_v29, %v10124_v17  ;;  %2196 = vrot.lane.b32.xlu0 %v10252_v15, %s9019_s14  ;;  %v1515_v51 = vadd.f32 %v1514_v40, %v10147_v63  ;;  %v10341_v40 = vrot.slane %v14524_v32, %v14502_v4 }
 0x207   : > { %v1585_v52 = vpop.f32.mrf.mxu1  ;;  %v10274_v12 = vsel %vm2073_vm4, %v1971_v0, %v2110_v53  ;;  %v14522_v0 = vrot.slane %v14521_v30, %v14502_v4 }
 0x208   : > { %v1972_v55 = vmul.f32 %v10248_v16, %v1584_v49  ;;  %2194 = vrot.lane.b32.xlu1 %v10242_v9, %s9019_s14  ;;  %vm2090_vm3 = vcmp.ge.f32.partialorder %v1986_v50, 0.0  ;;  %v2127_v56 = vmul.f32 %v10080_v47, %v1986_v50  ;;  %v1987_v25 = vmul.f32 %v10234_v43, %v1515_v51  ;;  %14525 = vst [vmem:[#allocation25_spill] sm:$0xff] %v10341_v40 }
 0x209   : > { %v1586_v27 = vadd.f32 %v1585_v52, %v10124_v17  ;;  %v10332_v41 = vrot.slane %v14522_v0, %v14502_v4 }
 0x20a   : > { %vm2074_vm5 = vcmp.ge.f32.partialorder %v1972_v55, 0.0  ;;  %v2111_v20 = vmul.f32 %v10080_v47, %v1972_v55  ;;  %v10272_v35 = vsel %vm2090_vm3, %v1986_v50, %v2127_v56  ;;  %v2128_v26 = vmul.f32 %v10080_v47, %v1987_v25 }
 0x20b   : > { %v1589_v18 = vpop.f32.mrf.mxu1  ;;  %3069 = vmatprep.subr.mxu1 %v10272_v35  ;;  %vm2091_vm6 = vcmp.ge.f32.partialorder %v1987_v25, 0.0  ;;  %v1973_v57 = vmul.f32 %v10296_v62, %v1586_v27  ;;  %14523 = vst [vmem:[#allocation24_spill] sm:$0xff] %v10332_v41 }
 0x20c   : > { %v1590_v34 = vadd.f32 %v1589_v18, %v10147_v63  ;;  %2200 = vrot.lane.b32.xlu1 %v10274_v12, %s9019_s14  ;;  %v10280_v36 = vsel %vm2074_vm5, %v1972_v55, %v2111_v20  ;;  %3070 = vmatpush1.msra.mxu1 %v10242_v9  ;;  %v10298_v38 = vsel %vm2091_vm6, %v1987_v25, %v2128_v26  ;;  %v14526_v55 = vld [vmem:[#allocation30_spill] sm:$0xff] }
 0x20d   : > { %2204 = vrot.lane.b32.xlu0 %v10280_v36, %s9019_s14  ;;  %3071 = vmatprep.subr.mxu1 %v10252_v15  ;;  %v1591_v21 = vpop.f32.mrf.mxu1  ;;  %v2112_v28 = vmul.f32 %v10080_v47, %v1973_v57  ;;  %vm2075_vm8 = vcmp.ge.f32.partialorder %v1973_v57, 0.0  ;;  %v10351_v56 = vrot.slane %v14526_v55, %v14502_v4 }
 0x20e   : > { %3072 = vmatpush1.msra.mxu1 %v10223_v59  ;;  %v1988_v23 = vmul.f32 %v10248_v16, %v1590_v34  ;;  %v1592_v60 = vadd.f32 %v1591_v21, %v10147_v63 }
 0x20f   : > { %v10319_v10 = vsel %vm2075_vm8, %v1973_v57, %v2112_v28  ;;  %14527 = vst [vmem:[#allocation26_spill] sm:$0xff] %v10351_v56 }
 0x210   : > { %2306 = vrot.lane.b32.xlu1 %v10272_v35, %s9020_s7  ;;  %v2129_v46 = vmul.f32 %v10080_v47, %v1988_v23  ;;  %vm2092_vm7 = vcmp.ge.f32.partialorder %v1988_v23, 0.0  ;;  %v1989_v6 = vmul.f32 %v10296_v62, %v1592_v60 }
 0x211   : > { %2304 = vrot.lane.b32.xlu0 %v10252_v15, %s9020_s7 }
 0x212   : > { %v10309_v13 = vsel %vm2092_vm7, %v1988_v23, %v2129_v46  ;;  %v2130_v8 = vmul.f32 %v10080_v47, %v1989_v6  ;;  %vm2093_vm9 = vcmp.ge.f32.partialorder %v1989_v6, 0.0 }
 0x214   : > { %2202 = vrot.lane.b32.xlu1 %v10298_v38, %s9019_s14  ;;  %v10326_v11 = vsel %vm2093_vm9, %v1989_v6, %v2130_v8 }
 0x215   : > { %2198 = vrot.lane.b32.xlu0 %v10272_v35, %s9019_s14 }
 0x218   : > { %2310 = vrot.lane.b32.xlu1 %v10298_v38, %s9020_s7 }
 0x219   : > { %2206 = vrot.lane.b32.xlu0 %v10309_v13, %s9019_s14 }
 0x21c   : > { %2308 = vrot.lane.b32.xlu1 %v10274_v12, %s9020_s7 }
 0x21d   : > { %2314 = vrot.lane.b32.xlu0 %v10309_v13, %s9020_s7 }
 0x220   : > { %2208 = vrot.lane.b32.xlu1 %v10319_v10, %s9019_s14 }
 0x221   : > { %2312 = vrot.lane.b32.xlu0 %v10280_v36, %s9020_s7 }
 0x224   : > { %2318 = vrot.lane.b32.xlu1 %v10326_v11, %s9020_s7 }
 0x225   : > { %v1660_v31 = vpop.f32.mrf.mxu0  ;;  %2316 = vrot.lane.b32.xlu0 %v10319_v10, %s9020_s7 }
 0x226   : > { %v1661_v39 = vadd.f32 %v1660_v31, %v10124_v17 }
 0x227   : > { %v1662_v29 = vpop.f32.mrf.mxu0 }
 0x228   : > { %v1974_v50 = vmul.f32 %v10332_v41, %v1661_v39  ;;  %v1663_v49 = vadd.f32 %v1662_v29, %v10124_v17  ;;  %2210 = vrot.lane.b32.xlu1 %v10326_v11, %s9019_s14  ;;  %v14528_v29 = vld [vmem:[#allocation31_spill] sm:$0xff] }
 0x22a   : > { %v1975_v51 = vmul.f32 %v10341_v40, %v1663_v49  ;;  %vm2076_vm10 = vcmp.ge.f32.partialorder %v1974_v50, 0.0  ;;  %v2113_v52 = vmul.f32 %v10080_v47, %v1974_v50 }
 0x22b   : > { %v1666_v53 = vpop.f32.mrf.mxu0 }
 0x22c   : > { %v1667_v20 = vadd.f32 %v1666_v53, %v10147_v63  ;;  %v10354_v25 = vsel %vm2076_vm10, %v1974_v50, %v2113_v52  ;;  %vm2077_vm11 = vcmp.ge.f32.partialorder %v1975_v51, 0.0  ;;  %v2114_v18 = vmul.f32 %v10080_v47, %v1975_v51 }
 0x22d   : > { %v1668_v34 = vpop.f32.mrf.mxu0  ;;  %v1737_v26 = vpop.f32.mrf.mxu1  ;;  %2212 = vrot.lane.b32.xlu0 %v10354_v25, %s9019_s14  ;;  %v10383_v50 = vrot.slane %v14528_v29, %v14502_v4 }
 0x22e   : > { %v1990_v23 = vmul.f32 %v10332_v41, %v1667_v20  ;;  %v1669_v27 = vadd.f32 %v1668_v34, %v10147_v63  ;;  %v1738_v37 = vadd.f32 %v1737_v26, %v10124_v17  ;;  %v10362_v21 = vsel %vm2077_vm11, %v1975_v51, %v2114_v18 }
 0x22f   : > { %v1739_v46 = vpop.f32.mrf.mxu1  ;;  %2216 = vrot.lane.b32.xlu1 %v10362_v21, %s9019_s14  ;;  %14529 = vst [vmem:[#allocation27_spill] sm:$0xff] %v10383_v50 }
 0x230   : > { %v1991_v57 = vmul.f32 %v10341_v40, %v1669_v27  ;;  %v1976_v60 = vmul.f32 %v10351_v56, %v1738_v37  ;;  %vm2094_vm12 = vcmp.ge.f32.partialorder %v1990_v23, 0.0  ;;  %v2131_v6 = vmul.f32 %v10080_v47, %v1990_v23 }
 0x231   : > { %v1740_v32 = vadd.f32 %v1739_v46, %v10124_v17  ;;  %v10420_v46 = vpop.permute.xlu0 %2176 }
 0x232   : > { %vm2078_vm13 = vcmp.ge.f32.partialorder %v1976_v60, 0.0  ;;  %v2115_v28 = vmul.f32 %v10080_v47, %v1976_v60  ;;  %v10370_v30 = vsel %vm2094_vm12, %v1990_v23, %v2131_v6  ;;  %v2132_v0 = vmul.f32 %v10080_v47, %v1991_v57  ;;  %v10428_v6 = vpop.permute.xlu1 %2178 }
 0x233   : > { %v1743_v8 = vpop.f32.mrf.mxu1  ;;  %2322 = vrot.lane.b32.xlu1 %v10370_v30, %s9020_s7  ;;  %vm2095_vm14 = vcmp.ge.f32.partialorder %v1991_v57, 0.0  ;;  %v1977_v53 = vmul.f32 %v10383_v50, %v1740_v32 }
 0x234   : > { %v1744_v31 = vadd.f32 %v1743_v8, %v10147_v63  ;;  %v10376_v39 = vsel %vm2078_vm13, %v1976_v60, %v2115_v28  ;;  %v10385_v49 = vsel %vm2095_vm14, %v1991_v57, %v2132_v0  ;;  %v14530_v57 = vld [vmem:[#allocation32_spill] sm:$0xff]  ;;  %v14532_v0 = vld [vmem:[#allocation33_spill] sm:$0xff] }
 0x235   : > { %2220 = vrot.lane.b32.xlu0 %v10376_v39, %s9019_s14  ;;  %v1745_v52 = vpop.f32.mrf.mxu1  ;;  %v2116_v34 = vmul.f32 %v10080_v47, %v1977_v53  ;;  %vm2079_vm3 = vcmp.ge.f32.partialorder %v1977_v53, 0.0  ;;  %v10424_v60 = vrot.slane %v14530_v57, %v14502_v4  ;;  %v14534_v57 = vld [vmem:[#allocation34_spill] sm:$0xff] }
 0x236   : > { %v1992_v51 = vmul.f32 %v10351_v56, %v1744_v31  ;;  %v1746_v55 = vadd.f32 %v1745_v52, %v10147_v63  ;;  %v10435_v31 = vrot.slane %v14532_v0, %v14502_v4 }
 0x237   : > { %2218 = vrot.lane.b32.xlu1 %v10385_v49, %s9019_s14  ;;  %v10407_v23 = vsel %vm2079_vm3, %v1977_v53, %v2116_v34  ;;  %14531 = vst [vmem:[#allocation28_spill] sm:$0xff] %v10424_v60 }
 0x238   : > { %v2133_v20 = vmul.f32 %v10080_v47, %v1992_v51  ;;  %vm2096_vm15 = vcmp.ge.f32.partialorder %v1992_v51, 0.0  ;;  %v1993_v18 = vmul.f32 %v10383_v50, %v1746_v55  ;;  %14533 = vst [vmem:[#allocation20_spill] sm:$0xff] %v10435_v31 }
 0x239   : > { %2320 = vrot.lane.b32.xlu0 %v10354_v25, %s9020_s7 }
 0x23a   : > { %v10403_v26 = vsel %vm2096_vm15, %v1992_v51, %v2133_v20  ;;  %v2134_v27 = vmul.f32 %v10080_v47, %v1993_v18  ;;  %vm2097_vm4 = vcmp.ge.f32.partialorder %v1993_v18, 0.0 }
 0x23b   : > { %2326 = vrot.lane.b32.xlu1 %v10385_v49, %s9020_s7 }
 0x23c   : > { %v10414_v37 = vsel %vm2097_vm4, %v1993_v18, %v2134_v27 }
 0x23d   : > { %2214 = vrot.lane.b32.xlu0 %v10370_v30, %s9019_s14 }
 0x23f   : > { %2324 = vrot.lane.b32.xlu1 %v10362_v21, %s9020_s7 }
 0x241   : > { %2222 = vrot.lane.b32.xlu0 %v10403_v26, %s9019_s14 }
 0x243   : > { %2224 = vrot.lane.b32.xlu1 %v10407_v23, %s9019_s14 }
 0x245   : > { %2330 = vrot.lane.b32.xlu0 %v10403_v26, %s9020_s7 }
 0x247   : > { %2334 = vrot.lane.b32.xlu1 %v10414_v37, %s9020_s7 }
 0x249   : > { %2328 = vrot.lane.b32.xlu0 %v10376_v39, %s9020_s7 }
 0x24b   : > { %2226 = vrot.lane.b32.xlu1 %v10414_v37, %s9019_s14 }
 0x24d   : > { %v1814_v28 = vpop.f32.mrf.mxu0  ;;  %2332 = vrot.lane.b32.xlu0 %v10407_v23, %s9020_s7 }
 0x24e   : > { %v1815_v8 = vadd.f32 %v1814_v28, %v10124_v17  ;;  %v10448_v28 = vrot.slane %v14534_v57, %v14502_v4 }
 0x24f   : > { %v1816_v32 = vpop.f32.mrf.mxu0  ;;  %v10437_v29 = vpop.permute.xlu0 %2180 }
 0x250   : > { %v1978_v51 = vmul.f32 %v10424_v60, %v1815_v8  ;;  %v1817_v52 = vadd.f32 %v1816_v32, %v10124_v17  ;;  %14535 = vst [vmem:[#allocation29_spill] sm:$0xff] %v10448_v28 }
 0x251   : > { %v1820_v53 = vpop.f32.mrf.mxu0 }
 0x252   : > { %v1979_v55 = vmul.f32 %v10435_v31, %v1817_v52  ;;  %v1821_v20 = vadd.f32 %v1820_v53, %v10147_v63  ;;  %vm2080_vm5 = vcmp.ge.f32.partialorder %v1978_v51, 0.0  ;;  %v2117_v18 = vmul.f32 %v10080_v47, %v1978_v51  ;;  %v10444_v34 = vpop.permute.xlu1 %2188 }
 0x253   : > { %v1822_v27 = vpop.f32.mrf.mxu0  ;;  %v10450_v0 = vpop.permute.xlu0 %2288 }
 0x254   : > { %v1994_v8 = vmul.f32 %v10424_v60, %v1821_v20  ;;  %v1823_v32 = vadd.f32 %v1822_v27, %v10147_v63  ;;  %v1891_v50 = vpop.f32.mrf.mxu1  ;;  %v10454_v52 = vsel %vm2080_vm5, %v1978_v51, %v2117_v18  ;;  %vm2081_vm6 = vcmp.ge.f32.partialorder %v1979_v55, 0.0 }
 0x255   : > { %v1892_v53 = vadd.f32 %v1891_v50, %v10124_v17  ;;  %2228 = vrot.lane.b32.xlu0 %v10454_v52, %s9019_s14  ;;  %v2118_v56 = vmul.f32 %v10080_v47, %v1979_v55 }
 0x256   : > { %v1893_v40 = vpop.f32.mrf.mxu1  ;;  %v10460_v57 = vpop.permute.xlu1 %2296  ;;  %v1995_v41 = vmul.f32 %v10435_v31, %v1823_v32  ;;  %v2135_v51 = vmul.f32 %v10080_v47, %v1994_v8  ;;  %vm2098_vm7 = vcmp.ge.f32.partialorder %v1994_v8, 0.0 }
 0x257   : > { %v1980_v20 = vmul.f32 %v10448_v28, %v1892_v53  ;;  %v10464_v60 = vsel %vm2081_vm6, %v1979_v55, %v2118_v56  ;;  %v2185_v18 = vpop.permute.xlu0 %2184 }
 0x258   : > { %14536 = vst [vmem:[#allocation30_spill] sm:$0xff] %v10464_v60  ;;  %v1897_v27 = vpop.f32.mrf.mxu1  ;;  %2232 = vrot.lane.b32.xlu1 %v10464_v60, %s9019_s14  ;;  %v10473_v32 = vsel %vm2098_vm7, %v1994_v8, %v2135_v51  ;;  %v2136_v56 = vmul.f32 %v10080_v47, %v1995_v41  ;;  %vm2099_vm9 = vcmp.ge.f32.partialorder %v1995_v41, 0.0 }
 0x259   : > { %vm2082_vm8 = vcmp.ge.f32.partialorder %v1980_v20, 0.0  ;;  %v2119_v50 = vmul.f32 %v10080_v47, %v1980_v20  ;;  %v1898_v16 = vadd.f32 %v1897_v27, %v10147_v63  ;;  %v14538_v27 = vld [vmem:[#allocation35_spill] sm:$0xff] }
 0x25a   : > { %v10470_v62 = vpop.permute.xlu1 %2182  ;;  %v1899_v31 = vpop.f32.mrf.mxu1  ;;  %v10486_v51 = vsel %vm2099_vm9, %v1995_v41, %v2136_v56  ;;  %v1894_v56 = vadd.f32 %v1893_v40, %v10124_v17  ;;  %v10540_v17 = vsel %vm541_vm1, %v10437_v29, %v2185_v18 }
 0x25b   : > { %v10475_v53 = vsel %vm2082_vm8, %v1980_v20, %v2119_v50  ;;  %v2293_v55 = vpop.permute.xlu0 %2292  ;;  %v1996_v7 = vmul.f32 %v10448_v28, %v1898_v16  ;;  %v1900_v8 = vadd.f32 %v1899_v31, %v10147_v63  ;;  %v10496_v50 = vrot.slane %v14538_v27, %v14502_v4 }
 0x25c   : > { %14537 = vst [vmem:[#allocation31_spill] sm:$0xff] %v10475_v53  ;;  %2338 = vrot.lane.b32.xlu1 %v10473_v32, %s9020_s7  ;;  %2236 = vrot.lane.b32.xlu0 %v10475_v53, %s9019_s14  ;;  %v10521_v31 = vsel %vm541_vm1, %v2185_v18, %v10444_v34  ;;  %v10561_v18 = vsel %vm650_vm2, %v2293_v55, %v10460_v57 }
 0x25d   : > { %14539 = vst [vmem:[#allocation32_spill] sm:$0xff] %v10496_v50  ;;  %v1997_v22 = vmul.f32 %v10496_v50, %v1900_v8  ;;  %v2137_v16 = vmul.f32 %v10080_v47, %v1996_v7  ;;  %vm2100_vm10 = vcmp.ge.f32.partialorder %v1996_v7, 0.0 }
 0x25e   : > { %v10482_v43 = vpop.permute.xlu1 %2290 }
 0x25f   : > { %v10488_v20 = vpop.permute.xlu0 %2190  ;;  %v10524_v8 = vsel %vm2100_vm10, %v1996_v7, %v2137_v16  ;;  %v2138_v27 = vmul.f32 %v10080_v47, %v1997_v22  ;;  %vm2101_vm11 = vcmp.ge.f32.partialorder %v1997_v22, 0.0  ;;  %v1981_v16 = vmul.f32 %v10496_v50, %v1894_v56 }
 0x260   : > { %2234 = vrot.lane.b32.xlu1 %v10486_v51, %s9019_s14  ;;  %2336 = vrot.lane.b32.xlu0 %v10454_v52, %s9020_s7 }
 0x261   : > { %v10550_v14 = vsel %vm2101_vm11, %v1997_v22, %v2138_v27  ;;  %v2386_v22 = vsel %vm650_vm2, %v10450_v0, %v2293_v55  ;;  %v2120_v56 = vmul.f32 %v10080_v47, %v1981_v16  ;;  %vm2083_vm12 = vcmp.ge.f32.partialorder %v1981_v16, 0.0  ;;  %v8688_v47 = vld [vmem:[%s14341_s4 + $0x18] sm:$0xff] }
 0x262   : > { %v2187_v24 = vpop.permute.xlu1 %2186  ;;  %14541 = vst [vmem:[#allocation34_spill] sm:$0xff] %v10550_v14 }
 0x263   : > { %v10503_v63 = vsel %vm541_vm1, %v2187_v24, %v10488_v20  ;;  %v10508_v41 = vsel %vm541_vm1, %v10470_v62, %v2187_v24  ;;  %v10514_v4 = vpop.permute.xlu0 %2298  ;;  %v10581_v50 = vsel %vm2083_vm12, %v1981_v16, %v2120_v56  ;;  %v2281_v16 = vsel %vm541_vm1, %v10428_v6, %v10470_v62 }
 0x264   : > { %2342 = vrot.lane.b32.xlu1 %v10486_v51, %s9020_s7  ;;  %2230 = vrot.lane.b32.xlu0 %v10473_v32, %s9019_s14 }
 0x265   : > { %2996 = vmatprep.subr.mxu0 %v10503_v63 }
 0x266   : > { %2997 = vmatpush1.msra.mxu0 %v10508_v41  ;;  %v2295_v24 = vpop.permute.xlu1 %2294 }
 0x267   : > { %2998 = vmatprep.subr.mxu0 %v10521_v31  ;;  %v10531_v28 = vsel %vm650_vm2, %v2295_v24, %v10514_v4  ;;  %v2387_v7 = vsel %vm650_vm2, %v10482_v43, %v2295_v24  ;;  %v10552_v42 = vpop.permute.xlu0 %2284 }
 0x268   : > { %2340 = vrot.lane.b32.xlu1 %v10464_v60, %s9020_s7  ;;  %2238 = vrot.lane.b32.xlu0 %v10524_v8, %s9019_s14  ;;  %14542 = vst [vmem:[#allocation35_spill] sm:$0xff] %v10552_v42 }
 0x269   : > { %2999 = vmatpush1.msra.mxu0 %v10540_v17 }
 0x26a   : > { %3000 = vmatprep.subr.mxu0 %v10531_v28  ;;  %v10547_v40 = vpop.permute.xlu1 %2286 }
 0x26b   : > { %14540 = vst [vmem:[#allocation33_spill] sm:$0xff] %v10547_v40  ;;  %3001 = vmatpush1.msra.mxu0 %v2387_v7  ;;  %v10575_v27 = vpop.permute.xlu0 %2244  ;;  %v2389_v62 = vsel %vm650_vm2, %v10547_v40, %v10482_v43 }
 0x26c   : > { %2350 = vrot.lane.b32.xlu1 %v10550_v14, %s9020_s7  ;;  %2346 = vrot.lane.b32.xlu0 %v10524_v8, %s9020_s7  ;;  %14544 = vst [vmem:[#allocation42_spill] sm:$0xff] %v10575_v27 }
 0x26d   : > { %3002 = vmatprep.subr.mxu0 %v10561_v18 }
 0x26e   : > { %3003 = vmatpush1.msra.mxu0 %v2386_v22  ;;  %v10567_v24 = vpop.permute.xlu1 %2246 }
 0x26f   : > { %14543 = vst [vmem:[#allocation41_spill] sm:$0xff] %v10567_v24  ;;  %3004 = vmatprep.subr.mxu0 %v10174_v19 }
 0x270   : > { %2242 = vrot.lane.b32.xlu1 %v10550_v14, %s9019_s14  ;;  %2344 = vrot.lane.b32.xlu0 %v10475_v53, %s9020_s7  ;;  %v10596_v14 = vpop.permute.xlu0 %2300 }
 0x271   : > { %3005 = vmatpush1.msra.mxu0 %v10178_v5 }
 0x272   : > { %3006 = vmatprep.subr.mxu0 %v10172_v44  ;;  %v10579_v55 = vpop.permute.xlu1 %2192 }
 0x273   : > { %3007 = vmatpush1.msra.mxu0 %v10149_v3 }
 0x274   : > { %2354 = vrot.lane.b32.xlu1 %v10218_v58, %s9020_s7  ;;  %2348 = vrot.lane.b32.xlu0 %v10581_v50, %s9020_s7  ;;  %v2280_v58 = vsel %vm541_vm1, %v10420_v46, %v10437_v29  ;;  %v2388_v29 = vsel %vm650_vm2, %v10552_v42, %v10450_v0  ;;  %v2283_v0 = vsel %vm541_vm1, %v10567_v24, %v10428_v6  ;;  %v10650_v6 = vld [vmem:[#allocation9 + $0x38] sm:$0xff] }
 0x275   : > { %3008 = vmatprep.subr.mxu0 %v10508_v41 }
 0x276   : > { %3009 = vmatpush1.msra.mxu0 %v2281_v16  ;;  %v2303_v56 = vpop.permute.xlu1 %2302 }
 0x277   : > { %3010 = vmatprep.subr.mxu0 %v10540_v17 }
 0x278   : > { %2983 = vperm.xlu1 %8856, %v8688_v47   ;;  %2240 = vrot.lane.b32.xlu0 %v10581_v50, %s9019_s14  ;;  %v10609_v53 = vpop.permute.xlu0 %2196 }
 0x279   : > { %3011 = vmatpush1.msra.mxu0 %v2280_v58 }
 0x27a   : > { %3012 = vmatprep.subr.mxu0 %v2387_v7  ;;  %v2195_v60 = vpop.permute.xlu1 %2194  ;;  %v8687_v7 = vld [vmem:[%s14341_s4 + $0x10] sm:$0xff] }
 0x27b   : > { %3013 = vmatpush1.msra.mxu0 %v2389_v62 }
 0x27c   : > { %2352 = vrot.lane.b32.xlu0 %v10210_v45, %s9020_s7  ;;  %3014 = vmatprep.subr.mxu0 %v2386_v22 }
 0x27d   : > { %3015 = vmatpush1.msra.mxu0 %v2388_v29  ;;  %v10668_v29 = vsel %vm541_vm1, %v10488_v20, %v2195_v60 }
 0x27e   : > { %3016 = vmatprep.subr.mxu0 %v10178_v5  ;;  %v2201_v43 = vpop.permute.xlu1 %2200  ;;  %v10645_v5 = vsel %vm650_vm2, %v10460_v57, %v10596_v14 }
 0x27f   : > { %3017 = vmatpush1.msra.mxu0 %v10107_v48  ;;  %v10622_v47 = vpop.permute.xlu0 %2204  ;;  %v2282_v48 = vsel %vm541_vm1, %v10575_v27, %v10420_v46 }
 0x280   : > { %2978 = vperm.xlu0 %8855, %v8687_v7   ;;  %3018 = vmatprep.subr.mxu0 %v10149_v3 }
 0x281   : > { %3019 = vmatpush1.msra.mxu0 %v10096_v61  ;;  %v10637_v61 = vsel %vm650_vm2, %v10514_v4, %v2303_v56 }
 0x282   : > { %3020 = vmatprep.subr.mxu0 %v2281_v16  ;;  %v2307_v22 = vpop.permute.xlu1 %2306  ;;  %v10663_v16 = vld [vmem:[#allocation9 + $0x30] sm:$0xff] }
 0x283   : > { %3021 = vmatpush1.msra.mxu0 %v2283_v0  ;;  %v2305_v62 = vpop.permute.xlu0 %2304  ;;  %v10678_v0 = vsel %vm541_vm1, %v10579_v55, %v10609_v53  ;;  %v10697_v20 = vsel %vm650_vm2, %v2303_v56, %v2307_v22 }
 0x284   : > { %3022 = vmatprep.subr.mxu0 %v2280_v58  ;;  %v10647_v58 = vld [vmem:[#allocation9 + $0x20] sm:$0xff] }
 0x285   : > { %3023 = vmatpush1.msra.mxu0 %v2282_v48 }
 0x286   : > { %3052 = vmatprep.subr.mxu0 %v10637_v61  ;;  %v2203_v3 = vpop.permute.xlu1 %2202 }
 0x287   : > { %3053 = vmatpush2.msra.mxu0 %v10531_v28  ;;  %v2199_v46 = vpop.permute.xlu0 %2198 }
 0x288   : > { %3054 = vmatprep.subr.mxu0 %v10645_v5  ;;  %v10654_v4 = vsel %vm541_vm1, %v2195_v60, %v2199_v46  ;;  %v10691_v60 = vsel %vm541_vm1, %v10444_v34, %v10579_v55  ;;  %v10703_v40 = vsel %vm541_vm1, %v2199_v46, %v2203_v3  ;;  %v10712_v34 = vsel %vm650_vm2, %v10596_v14, %v2305_v62 }
 0x289   : > { %3055 = vmatpush2.msra.mxu0 %v10561_v18  ;;  %3073 = vmatprep.subr.mxu1 %v10654_v4  ;;  %v10717_v55 = vsel %vm541_vm1, %v2201_v43, %v10622_v47 }
 0x28a   : > { %3057 = vmatmul.mubr.f32.vlgmr.msra.gmra.mxu0 %v10647_v58  ;;  %3146 = vmatprep.subr.mxu0 %v10309_v13  ;;  %v2311_v57 = vpop.permute.xlu1 %2310 }
 0x28b   : > { %3147 = vmatpush1.msra.mxu0 %v10298_v38  ;;  %8690 = vmatprep.mubr.msk.f32.mxu0 %vm1279_vm0, %v10650_v6  ;;  %v10670_v7 = vpop.permute.xlu0 %2206  ;;  %v2379_v46 = vsel %vm650_vm2, %v2307_v22, %v2311_v57 }
 0x28c   : > { %3148 = vmatprep.subr.mxu0 %v10280_v36  ;;  %3074 = vmatpush1.msra.mxu1 %v10668_v29  ;;  %v10683_v48 = vsel %vm541_vm1, %v2203_v3, %v10670_v7  ;;  %v10729_v3 = vsel %vm541_vm1, %v10609_v53, %v2201_v43 }
 0x28d   : > { %3149 = vmatpush1.msra.mxu0 %v10274_v12  ;;  %3075 = vmatprep.subr.mxu1 %v10678_v0 }
 0x28e   : > { %3063 = vmatmul.mubr.f32.gmra.mxu0 %v10663_v16  ;;  %3076 = vmatpush1.msra.mxu1 %v10691_v60  ;;  %v2309_v42 = vpop.permute.xlu1 %2308 }
 0x28f   : > { %3077 = vmatprep.subr.mxu1 %v10697_v20  ;;  %3150 = vmatprep.subr.mxu0 %v10683_v48  ;;  %v10705_v27 = vpop.permute.xlu0 %2314  ;;  %v2378_v43 = vsel %vm650_vm2, %v2305_v62, %v2309_v42 }
 0x290   : > { %3078 = vmatpush1.msra.mxu1 %v10637_v61  ;;  %3151 = vmatpush1.msra.mxu0 %v10703_v40  ;;  %v10722_v56 = vsel %vm650_vm2, %v2311_v57, %v10705_v27 }
 0x291   : > { %3079 = vmatprep.subr.mxu1 %v10712_v34  ;;  %3152 = vmatprep.subr.mxu0 %v10717_v55 }
 0x292   : > { %3080 = vmatpush1.msra.mxu1 %v10645_v5  ;;  %3153 = vmatpush1.msra.mxu0 %v10729_v3  ;;  %v10733_v14 = vpop.permute.xlu1 %2208 }
 0x293   : > { %3081 = vmatprep.subr.mxu1 %v10242_v9  ;;  %3154 = vmatprep.subr.mxu0 %v10722_v56  ;;  %v10739_v24 = vpop.permute.xlu0 %2312 }
 0x294   : > { %3082 = vmatpush1.msra.mxu1 %v10180_v33  ;;  %3155 = vmatpush1.msra.mxu0 %v2379_v46  ;;  %v10745_v53 = vsel %vm650_vm2, %v2309_v42, %v10739_v24 }
 0x295   : > { %3083 = vmatprep.subr.mxu1 %v10223_v59  ;;  %3156 = vmatprep.subr.mxu0 %v10745_v53 }
 0x296   : > { %3084 = vmatpush1.msra.mxu1 %v10156_v54  ;;  %3157 = vmatpush1.msra.mxu0 %v2378_v43  ;;  %v10752_v22 = vpop.permute.xlu1 %2318 }
 0x297   : > { %3085 = vmatprep.subr.mxu1 %v10668_v29  ;;  %3158 = vmatprep.subr.mxu0 %v10298_v38  ;;  %v10770_v62 = vpop.permute.xlu0 %2316 }
 0x298   : > { %3086 = vmatpush1.msra.mxu1 %v10503_v63  ;;  %3159 = vmatpush1.msra.mxu0 %v10272_v35 }
 0x299   : > { %3087 = vmatprep.subr.mxu1 %v10691_v60  ;;  %3160 = vmatprep.subr.mxu0 %v10274_v12 }
 0x29a   : > { %3088 = vmatpush1.msra.mxu1 %v10521_v31  ;;  %3161 = vmatpush1.msra.mxu0 %v10252_v15  ;;  %v2211_v42 = vpop.permute.xlu1 %2210 }
 0x29b   : > { %3089 = vmatprep.subr.mxu1 %v10637_v61  ;;  %3162 = vmatprep.subr.mxu0 %v10703_v40 }
 0x29c   : > { %3090 = vmatpush1.msra.mxu1 %v10531_v28  ;;  %3163 = vmatpush1.msra.mxu0 %v10654_v4 }
 0x29d   : > { %3091 = vmatprep.subr.mxu1 %v10645_v5  ;;  %3164 = vmatprep.subr.mxu0 %v10729_v3 }
 0x29e   : > { %3092 = vmatpush1.msra.mxu1 %v10561_v18  ;;  %3165 = vmatpush1.msra.mxu0 %v10678_v0 }
 0x29f   : > { %3093 = vmatprep.subr.mxu1 %v10180_v33  ;;  %3166 = vmatprep.subr.mxu0 %v2379_v46  ;;  %v10780_v18 = vpop.permute.xlu0 %2212 }
 0x2a0   : > { %3094 = vmatpush1.msra.mxu1 %v10174_v19  ;;  %3167 = vmatpush1.msra.mxu0 %v10697_v20 }
 0x2a1   : > { %3095 = vmatprep.subr.mxu1 %v10156_v54  ;;  %v10776_v28 = vpop.permute.xlu1 %2216  ;;  %3168 = vmatprep.subr.mxu0 %v2378_v43 }
 0x2a2   : > { %3096 = vmatpush1.msra.mxu1 %v10172_v44  ;;  %3169 = vmatpush1.msra.mxu0 %v10712_v34 }
 0x2a3   : > { %3097 = vmatprep.subr.mxu1 %v10503_v63  ;;  %3170 = vmatprep.subr.mxu0 %v10272_v35 }
 0x2a4   : > { %3098 = vmatpush1.msra.mxu1 %v10508_v41  ;;  %3171 = vmatpush1.msra.mxu0 %v10242_v9  ;;  %v10833_v41 = vsel %vm541_vm1, %v10670_v7, %v2211_v42 }
 0x2a5   : > { %3099 = vmatprep.subr.mxu1 %v10521_v31  ;;  %3172 = vmatprep.subr.mxu0 %v10252_v15  ;;  %v10788_v54 = vpop.permute.xlu1 %2322  ;;  %v2374_v15 = vsel %vm650_vm2, %v10739_v24, %v10770_v62  ;;  %v10841_v31 = vsel %vm541_vm1, %v10733_v14, %v10780_v18  ;;  %v10851_v24 = vsel %vm541_vm1, %v10622_v47, %v10733_v14 }
 0x2a6   : > { %3100 = vmatpush1.msra.mxu1 %v10540_v17  ;;  %3173 = vmatpush1.msra.mxu0 %v10223_v59  ;;  %v10808_v59 = vsel %vm650_vm2, %v10705_v27, %v10752_v22  ;;  %v10859_v61 = vsel %vm650_vm2, %v10752_v22, %v10788_v54 }
 0x2a7   : > { %v10792_v44 = vpop.permute.xlu0 %2220  ;;  %3129 = vmatprep.subr.mxu1 %v2379_v46  ;;  %3174 = vmatprep.subr.mxu0 %v10654_v4 }
 0x2a8   : > { %3130 = vmatpush2.msra.mxu1 %v10697_v20  ;;  %3175 = vmatpush1.msra.mxu0 %v10668_v29  ;;  %v10893_v29 = vsel %vm541_vm1, %v10776_v28, %v10792_v44 }
 0x2a9   : > { %3131 = vmatprep.subr.mxu1 %v2378_v43  ;;  %3176 = vmatprep.subr.mxu0 %v10678_v0  ;;  %v2219_v19 = vpop.permute.xlu1 %2218  ;;  %v10903_v0 = vsel %vm541_vm1, %v10780_v18, %v10776_v28  ;;  %v14545_v28 = vld [vmem:[#allocation31_spill] sm:$0xff]  ;;  %v14546_v18 = vld [vmem:[#allocation30_spill] sm:$0xff] }
 0x2aa   : > { %3132 = vmatpush2.msra.mxu1 %v10712_v34  ;;  %3177 = vmatpush1.msra.mxu0 %v10691_v60 }
 0x2ab   : > { %v10800_v33 = vpop.permute.xlu0 %2320  ;;  %3134 = vmatmul.mubr.f32.vlgmr.msra.gmra.mxu1 %v10647_v58  ;;  %3223 = vmatprep.subr.mxu1 %v10370_v30 }
 0x2ac   : > { %3224 = vmatpush1.msra.mxu1 %v10326_v11  ;;  %3206 = vmatprep.subr.mxu0 %v10808_v59  ;;  %v10871_v47 = vsel %vm650_vm2, %v10770_v62, %v10800_v33 }
 0x2ad   : > { %3225 = vmatprep.subr.mxu1 %v10354_v25  ;;  %8692 = vmatprep.mubr.msk.f32.mxu1 %vm1279_vm0, %v10650_v6  ;;  %v2327_v9 = vpop.permute.xlu1 %2326 }
 0x2ae   : > { %3207 = vmatpush2.msra.mxu0 %v10722_v56  ;;  %3226 = vmatpush1.msra.mxu1 %v10319_v10  ;;  %v2371_v34 = vsel %vm650_vm2, %v10788_v54, %v2327_v9 }
 0x2af   : > { %v2215_v35 = vpop.permute.xlu0 %2214  ;;  %3140 = vmatmul.mubr.f32.gmra.mxu1 %v10663_v16  ;;  %3208 = vmatprep.subr.mxu0 %v2374_v15 }
 0x2b0   : > { %v10824_v63 = vsel %vm541_vm1, %v2211_v42, %v2215_v35  ;;  %3209 = vmatpush2.msra.mxu0 %v10745_v53  ;;  %8693 = vmatprep.mubr.msk.f32.mxu0 %vm1279_vm0, %v10264_v2  ;;  %v10885_v57 = vsel %vm541_vm1, %v2215_v35, %v2219_v19 }
 0x2b1   : > { %3227 = vmatprep.subr.mxu1 %v10824_v63  ;;  %3211 = vmatmul.mubr.f32.vlgmr.msra.gmra.mxu0 %v10647_v58  ;;  %v2325_v27 = vpop.permute.xlu1 %2324 }
 0x2b2   : > { %3228 = vmatpush1.msra.mxu1 %v10833_v41  ;;  %3300 = vmatprep.subr.mxu0 %v10403_v26  ;;  %v2370_v46 = vsel %vm650_vm2, %v10800_v33, %v2325_v27 }
 0x2b3   : > { %v10844_v17 = vpop.permute.xlu0 %2222  ;;  %3229 = vmatprep.subr.mxu1 %v10841_v31  ;;  %3301 = vmatpush1.msra.mxu0 %v10385_v49 }
 0x2b4   : > { %3230 = vmatpush1.msra.mxu1 %v10851_v24  ;;  %3302 = vmatprep.subr.mxu0 %v10376_v39  ;;  %v10880_v4 = vsel %vm541_vm1, %v2219_v19, %v10844_v17 }
 0x2b5   : > { %3231 = vmatprep.subr.mxu1 %v10859_v61  ;;  %8694 = vmatprep.mubr.msk.f32.mxu0 %vm1279_vm0, %v10650_v6  ;;  %v10895_v7 = vpop.permute.xlu1 %2224 }
 0x2b6   : > { %3232 = vmatpush1.msra.mxu1 %v10808_v59  ;;  %3303 = vmatpush1.msra.mxu0 %v10362_v21 }
 0x2b7   : > { %v10873_v5 = vpop.permute.xlu0 %2330  ;;  %3217 = vmatmul.mubr.f32.gmra.mxu0 %v10663_v16  ;;  %3233 = vmatprep.subr.mxu1 %v10871_v47 }
 0x2b8   : > { %3304 = vmatprep.subr.mxu0 %v10880_v4  ;;  %3234 = vmatpush1.msra.mxu1 %v2374_v15  ;;  %v10912_v20 = vsel %vm650_vm2, %v2327_v9, %v10873_v5 }
 0x2b9   : > { %3305 = vmatpush1.msra.mxu0 %v10885_v57  ;;  %3235 = vmatprep.subr.mxu1 %v10326_v11  ;;  %v10931_v43 = vpop.permute.xlu1 %2334 }
 0x2ba   : > { %3306 = vmatprep.subr.mxu0 %v10893_v29  ;;  %3236 = vmatpush1.msra.mxu1 %v10309_v13 }
 0x2bb   : > { %3307 = vmatpush1.msra.mxu0 %v10903_v0  ;;  %v10906_v60 = vpop.permute.xlu0 %2328  ;;  %3237 = vmatprep.subr.mxu1 %v10319_v10 }
 0x2bc   : > { %3308 = vmatprep.subr.mxu0 %v10912_v20  ;;  %3238 = vmatpush1.msra.mxu1 %v10280_v36  ;;  %v10922_v14 = vsel %vm650_vm2, %v2325_v27, %v10906_v60  ;;  %v14548_v27 = vld [vmem:[#allocation34_spill] sm:$0xff] }
 0x2bd   : > { %3309 = vmatpush1.msra.mxu0 %v2371_v34  ;;  %3239 = vmatprep.subr.mxu1 %v10833_v41  ;;  %v2227_v42 = vpop.permute.xlu1 %2226 }
 0x2be   : > { %3310 = vmatprep.subr.mxu0 %v10922_v14  ;;  %3240 = vmatpush1.msra.mxu1 %v10683_v48 }
 0x2bf   : > { %3311 = vmatpush1.msra.mxu0 %v2370_v46  ;;  %3241 = vmatprep.subr.mxu1 %v10851_v24  ;;  %v10944_v22 = vpop.permute.xlu0 %2332 }
 0x2c0   : > { %3312 = vmatprep.subr.mxu0 %v10385_v49  ;;  %3242 = vmatpush1.msra.mxu1 %v10717_v55 }
 0x2c1   : > { %3313 = vmatpush1.msra.mxu0 %v10370_v30  ;;  %3243 = vmatprep.subr.mxu1 %v10808_v59 }
 0x2c2   : > { %3314 = vmatprep.subr.mxu0 %v10362_v21  ;;  %3244 = vmatpush1.msra.mxu1 %v10722_v56 }
 0x2c3   : > { %3315 = vmatpush1.msra.mxu0 %v10354_v25  ;;  %3245 = vmatprep.subr.mxu1 %v2374_v15 }
 0x2c4   : > { %3316 = vmatprep.subr.mxu0 %v10885_v57  ;;  %3246 = vmatpush1.msra.mxu1 %v10745_v53  ;;  %v11027_v53 = vsel %vm541_vm1, %v10792_v44, %v10895_v7 }
 0x2c5   : > { %3317 = vmatpush1.msra.mxu0 %v10824_v63  ;;  %3247 = vmatprep.subr.mxu1 %v10309_v13 }
 0x2c6   : > { %3318 = vmatprep.subr.mxu0 %v10903_v0  ;;  %3248 = vmatpush1.msra.mxu1 %v10298_v38 }
 0x2c7   : > { %3319 = vmatpush1.msra.mxu0 %v10841_v31  ;;  %3249 = vmatprep.subr.mxu1 %v10280_v36  ;;  %v10953_v56 = vpop.permute.xlu0 %2228 }
 0x2c8   : > { %3320 = vmatprep.subr.mxu0 %v2371_v34  ;;  %3250 = vmatpush1.msra.mxu1 %v10274_v12 }
 0x2c9   : > { %3321 = vmatpush1.msra.mxu0 %v10859_v61  ;;  %3251 = vmatprep.subr.mxu1 %v10683_v48  ;;  %v11008_v48 = vsel %vm541_vm1, %v10844_v17, %v2227_v42 }
 0x2ca   : > { %v10955_v13 = vpop.permute.xlu1 %2232  ;;  %3322 = vmatprep.subr.mxu0 %v2370_v46  ;;  %3252 = vmatpush1.msra.mxu1 %v10703_v40 }
 0x2cb   : > { %3323 = vmatpush1.msra.mxu0 %v10871_v47  ;;  %3253 = vmatprep.subr.mxu1 %v10717_v55  ;;  %v11017_v55 = vsel %vm541_vm1, %v10895_v7, %v10953_v56  ;;  %v11078_v15 = vsel %vm541_vm1, %v10953_v56, %v10955_v13 }
 0x2cc   : > { %3324 = vmatprep.subr.mxu0 %v10370_v30  ;;  %3254 = vmatpush1.msra.mxu1 %v10729_v3  ;;  %v2366_v30 = vsel %vm650_vm2, %v10906_v60, %v10944_v22 }
 0x2cd   : > { %3325 = vmatpush1.msra.mxu0 %v10326_v11  ;;  %3283 = vmatprep.subr.mxu1 %v2371_v34 }
 0x2ce   : > { %v10963_v12 = vpop.permute.xlu0 %2236  ;;  %3326 = vmatprep.subr.mxu0 %v10354_v25  ;;  %3284 = vmatpush2.msra.mxu1 %v10859_v61  ;;  %v10968_v36 = vpop.permute.xlu1 %2338  ;;  %v3690_v61 = vld [vmem:[#allocation2 + $0x90] sm:$0xff] }
 0x2cf   : > { %3327 = vmatpush1.msra.mxu0 %v10319_v10  ;;  %3285 = vmatprep.subr.mxu1 %v2370_v46  ;;  %v10985_v10 = vsel %vm650_vm2, %v10873_v5, %v10931_v43  ;;  %v11070_v59 = vsel %vm541_vm1, %v10955_v13, %v10963_v12  ;;  %vm3727_vm14 = vcmp.ge.f32.partialorder %v3690_v61, 0.0 }
 0x2d0   : > { %3328 = vmatprep.subr.mxu0 %v10824_v63  ;;  %3286 = vmatpush2.msra.mxu1 %v10871_v47 }
 0x2d1   : > { %8695 = vmatprep.mubr.msk.f32.mxu1 %vm1279_vm0, %v10264_v2  ;;  %3329 = vmatpush1.msra.mxu0 %v10833_v41 }
 0x2d2   : > { %v10975_v38 = vpop.permute.xlu0 %2336  ;;  %3288 = vmatmul.mubr.f32.vlgmr.msra.gmra.mxu1 %v10647_v58  ;;  %3330 = vmatprep.subr.mxu0 %v10841_v31  ;;  %v2235_v11 = vpop.permute.xlu1 %2234 }
 0x2d3   : > { %3377 = vmatprep.subr.mxu1 %v10473_v32  ;;  %3331 = vmatpush1.msra.mxu0 %v10851_v24  ;;  %v11050_v44 = vsel %vm650_vm2, %v10944_v22, %v10975_v38 }
 0x2d4   : > { %3378 = vmatpush1.msra.mxu1 %v10414_v37  ;;  %3360 = vmatprep.subr.mxu0 %v10985_v10 }
 0x2d5   : > { %3379 = vmatprep.subr.mxu1 %v10454_v52  ;;  %8696 = vmatprep.mubr.msk.f32.mxu1 %vm1279_vm0, %v10650_v6 }
 0x2d6   : > { %v2231_v25 = vpop.permute.xlu0 %2230  ;;  %3361 = vmatpush2.msra.mxu0 %v10912_v20  ;;  %3380 = vmatpush1.msra.mxu1 %v10407_v23  ;;  %v2343_v62 = vpop.permute.xlu1 %2342 }
 0x2d7   : > { %3294 = vmatmul.mubr.f32.gmra.mxu1 %v10663_v16  ;;  %3362 = vmatprep.subr.mxu0 %v2366_v30  ;;  %v11001_v40 = vsel %vm541_vm1, %v2227_v42, %v2231_v25  ;;  %v11062_v33 = vsel %vm541_vm1, %v2231_v25, %v2235_v11  ;;  %v2363_v31 = vsel %vm650_vm2, %v10968_v36, %v2343_v62 }
 0x2d8   : > { %3381 = vmatprep.subr.mxu1 %v11001_v40  ;;  %3363 = vmatpush2.msra.mxu0 %v10922_v14 }
 0x2d9   : > { %8697 = vmatprep.mubr.msk.f32.mxu0 %vm1279_vm0, %v10264_v2  ;;  %3382 = vmatpush1.msra.mxu1 %v11008_v48  ;;  %v11035_v2 = vsel %vm650_vm2, %v10931_v43, %v10968_v36 }
 0x2da   : > { %v11019_v3 = vpop.permute.xlu0 %2238  ;;  %3365 = vmatmul.mubr.f32.vlgmr.msra.gmra.mxu0 %v10647_v58  ;;  %3383 = vmatprep.subr.mxu1 %v11017_v55  ;;  %v2341_v9 = vpop.permute.xlu1 %2340 }
 0x2db   : > { %3454 = vmatprep.subr.mxu0 %v10524_v8  ;;  %3384 = vmatpush1.msra.mxu1 %v11027_v53  ;;  %v11057_v19 = vsel %vm541_vm1, %v2235_v11, %v11019_v3  ;;  %v2362_v17 = vsel %vm650_vm2, %v10975_v38, %v2341_v9  ;;  %v14553_v38 = vld [vmem:[#allocation38_spill] sm:$0xff] }
 0x2dc   : > { %3455 = vmatpush1.msra.mxu0 %v10486_v51  ;;  %3385 = vmatprep.subr.mxu1 %v11035_v2 }
 0x2dd   : > { %3456 = vmatprep.subr.mxu0 %v14545_v28  ;;  %8698 = vmatprep.mubr.msk.f32.mxu0 %vm1279_vm0, %v10650_v6 }
 0x2de   : > { %3386 = vmatpush1.msra.mxu1 %v10985_v10  ;;  %3457 = vmatpush1.msra.mxu0 %v14546_v18  ;;  %v11044_v54 = vpop.permute.xlu0 %2346 }
 0x2df   : > { %3371 = vmatmul.mubr.f32.gmra.mxu0 %v10663_v16  ;;  %3387 = vmatprep.subr.mxu1 %v11050_v44  ;;  %v11087_v63 = vsel %vm650_vm2, %v2343_v62, %v11044_v54 }
 0x2e0   : > { %3458 = vmatprep.subr.mxu0 %v11057_v19  ;;  %3388 = vmatpush1.msra.mxu1 %v2366_v30 }
 0x2e1   : > { %3459 = vmatpush1.msra.mxu0 %v11062_v33  ;;  %3389 = vmatprep.subr.mxu1 %v10414_v37 }
 0x2e2   : > { %3460 = vmatprep.subr.mxu0 %v11070_v59  ;;  %3390 = vmatpush1.msra.mxu1 %v10403_v26  ;;  %v11080_v35 = vpop.permute.xlu0 %2344 }
 0x2e3   : > { %3461 = vmatpush1.msra.mxu0 %v11078_v15  ;;  %3391 = vmatprep.subr.mxu1 %v10407_v23  ;;  %v11092_v41 = vsel %vm650_vm2, %v2341_v9, %v11080_v35 }
 0x2e4   : > { %3462 = vmatprep.subr.mxu0 %v11087_v63  ;;  %3392 = vmatpush1.msra.mxu1 %v10376_v39 }
 0x2e5   : > { %3463 = vmatpush1.msra.mxu0 %v2363_v31  ;;  %3393 = vmatprep.subr.mxu1 %v11008_v48 }
 0x2e6   : > { %3464 = vmatprep.subr.mxu0 %v11092_v41  ;;  %3394 = vmatpush1.msra.mxu1 %v10880_v4 }
 0x2e7   : > { %3465 = vmatpush1.msra.mxu0 %v2362_v17  ;;  %3395 = vmatprep.subr.mxu1 %v11027_v53 }
 0x2e8   : > { %3466 = vmatprep.subr.mxu0 %v10486_v51  ;;  %3396 = vmatpush1.msra.mxu1 %v10893_v29 }
 0x2e9   : > { %3467 = vmatpush1.msra.mxu0 %v10473_v32  ;;  %3397 = vmatprep.subr.mxu1 %v10985_v10 }
 0x2ea   : > { %3468 = vmatprep.subr.mxu0 %v14546_v18  ;;  %3398 = vmatpush1.msra.mxu1 %v10912_v20 }
 0x2eb   : > { %3469 = vmatpush1.msra.mxu0 %v10454_v52  ;;  %3399 = vmatprep.subr.mxu1 %v2366_v30 }
 0x2ec   : > { %3470 = vmatprep.subr.mxu0 %v11062_v33  ;;  %3400 = vmatpush1.msra.mxu1 %v10922_v14 }
 0x2ed   : > { %3471 = vmatpush1.msra.mxu0 %v11001_v40  ;;  %3401 = vmatprep.subr.mxu1 %v10403_v26 }
 0x2ee   : > { %3472 = vmatprep.subr.mxu0 %v11078_v15  ;;  %3402 = vmatpush1.msra.mxu1 %v10385_v49  ;;  %v2351_v49 = vpop.permute.xlu1 %2350 }
 0x2ef   : > { %3473 = vmatpush1.msra.mxu0 %v11017_v55  ;;  %3403 = vmatprep.subr.mxu1 %v10376_v39  ;;  %v8858_v39 = vld [vmem:[#allocation9 + $0x28] sm:$0xff] }
 0x2f0   : > { %3474 = vmatprep.subr.mxu0 %v2363_v31  ;;  %3404 = vmatpush1.msra.mxu1 %v10362_v21  ;;  %v2349_v21 = vpop.permute.xlu0 %2348 }
 0x2f1   : > { %3475 = vmatpush1.msra.mxu0 %v11035_v2  ;;  %3405 = vmatprep.subr.mxu1 %v10880_v4  ;;  %v2358_v47 = vsel %vm650_vm2, %v11080_v35, %v2349_v21  ;;  %v14549_v4 = vld [vmem:[#allocation41_spill] sm:$0xff] }
 0x2f2   : > { %3476 = vmatprep.subr.mxu0 %v2362_v17  ;;  %3406 = vmatpush1.msra.mxu1 %v10885_v57  ;;  %v2243_v26 = vpop.permute.xlu1 %2242 }
 0x2f3   : > { %3477 = vmatpush1.msra.mxu0 %v11050_v44  ;;  %3407 = vmatprep.subr.mxu1 %v10893_v29  ;;  %v2251_v29 = vsel %vm541_vm1, %v11019_v3, %v2243_v26 }
 0x2f4   : > { %3478 = vmatprep.subr.mxu0 %v10473_v32  ;;  %3408 = vmatpush1.msra.mxu1 %v10903_v0  ;;  %v11144_v32 = vstv %s8705_s8  ;;  %v2241_v24 = vpop.permute.xlu0 %2240  ;;  %v14550_v0 = vld [vmem:[#allocation42_spill] sm:$0xff] }
 0x2f5   : > { %3479 = vmatpush1.msra.mxu0 %v10414_v37  ;;  %3437 = vmatprep.subr.mxu1 %v2363_v31  ;;  %v14547_v37 = vld [vmem:[#allocation40_spill] sm:$0xff]  ;;  %v3764_v7 = vmul.f32 %v11144_v32, %v3690_v61  ;;  %v2248_v60 = vsel %vm541_vm1, %v2241_v24, %v14550_v0  ;;  %v2250_v34 = vsel %vm541_vm1, %v10963_v12, %v2241_v24 }
 0x2f6   : > { %3480 = vmatprep.subr.mxu0 %v10454_v52  ;;  %3438 = vmatpush2.msra.mxu1 %v11035_v2  ;;  %v3672_v52 = vld [vmem:[#allocation2] sm:$0xff]  ;;  %v2355_v57 = vpop.permute.xlu1 %2354 }
 0x2f7   : > { %3481 = vmatpush1.msra.mxu0 %v10407_v23  ;;  %3439 = vmatprep.subr.mxu1 %v2362_v17  ;;  %v2359_v23 = vsel %vm650_vm2, %v11044_v54, %v2351_v49  ;;  %v3746_v5 = vmul.f32 %v11144_v32, %v3672_v52  ;;  %vm3709_vm13 = vcmp.ge.f32.partialorder %v3672_v52, 0.0  ;;  %v2357_v46 = vsel %vm650_vm2, %v2351_v49, %v2355_v57 }
 0x2f8   : > { %3482 = vmatprep.subr.mxu0 %v11001_v40  ;;  %3440 = vmatpush2.msra.mxu1 %v11050_v44  ;;  %v2353_v20 = vpop.permute.xlu0 %2352  ;;  %v11180_v43 = vsel %vm3727_vm14, %v3690_v61, %v3764_v7  ;;  %v14557_v61 = vld [vmem:[#allocation21_spill] sm:$0xff] }
 0x2f9   : > { %8699 = vmatprep.mubr.msk.f32.mxu1 %vm1279_vm0, %v8858_v39  ;;  %3483 = vmatpush1.msra.mxu0 %v11008_v48  ;;  %v11173_v14 = vsel %vm3709_vm13, %v3672_v52, %v3746_v5  ;;  %v2356_v22 = vsel %vm650_vm2, %v2349_v21, %v2353_v20 }
 0x2fa   : > { %3442 = vmatmul.mubr.f32.vlgmr.msra.gmra.mxu1 %v10647_v58  ;;  %3484 = vmatprep.subr.mxu0 %v11017_v55  ;;  %v11220_v25 = vpop.permute.xlu1 %2983 }
 0x2fb   : > { %3531 = vmatprep.subr.mxu1 %v14547_v37  ;;  %3485 = vmatpush1.msra.mxu0 %v11027_v53 }
 0x2fc   : > { %3532 = vmatpush1.msra.mxu1 %v14548_v27  ;;  %3514 = vmatprep.subr.mxu0 %v2359_v23  ;;  %v11215_v56 = vpop.permute.xlu0 %2978 }
 0x2fd   : > { %3533 = vmatprep.subr.mxu1 %v10210_v45  ;;  %8700 = vmatprep.mubr.msk.f32.mxu1 %vm1279_vm0, %v10650_v6  ;;  %v2249_v45 = vsel %vm541_vm1, %v2243_v26, %v14549_v4 }
 0x2fe   : > { %3515 = vmatpush2.msra.mxu0 %v11087_v63  ;;  %3534 = vmatpush1.msra.mxu1 %v10581_v50 }
 0x2ff   : > { %3448 = vmatmul.mubr.f32.gmra.mxu1 %v10663_v16  ;;  %3516 = vmatprep.subr.mxu0 %v2358_v47 }
 0x300   : > { %3535 = vmatprep.subr.mxu1 %v2249_v45  ;;  %3517 = vmatpush2.msra.mxu0 %v11092_v41 }
 0x301   : > { %8701 = vmatprep.mubr.msk.f32.mxu0 %vm1279_vm0, %v8858_v39  ;;  %3536 = vmatpush1.msra.mxu1 %v2251_v29 }
 0x302   : > { %3519 = vmatmul.mubr.f32.vlgmr.msra.gmra.mxu0 %v10647_v58  ;;  %3537 = vmatprep.subr.mxu1 %v2248_v60 }
 0x303   : > { %3538 = vmatpush1.msra.mxu1 %v2250_v34  ;;  %8702 = vmatprep.mubr.msk.f32.mxu0 %vm1279_vm0, %v10650_v6 }
 0x304   : > { %3539 = vmatprep.subr.mxu1 %v2357_v46  ;;  %8703 = vmatprep.mubr.msk.f32.mxu1 %vm1279_vm0, %v8858_v39  ;;  %v14556_v39 = vld [vmem:[#allocation37_spill] sm:$0xff] }
 0x305   : > { %3540 = vmatpush1.msra.mxu1 %v2359_v23  ;;  %3818 = vrot.lane.b32.xlu0 %v11173_v14, %s9019_s14 }
 0x306   : > { %3525 = vmatmul.mubr.f32.gmra.mxu0 %v10663_v16  ;;  %3541 = vmatprep.subr.mxu1 %v2356_v22 }
 0x307   : > { %3542 = vmatpush1.msra.mxu1 %v2358_v47  ;;  %3820 = vrot.lane.b32.xlu1 %v11180_v43, %s9019_s14 }
 0x308   : > { %3543 = vmatprep.subr.mxu1 %v14548_v27 }
 0x309   : > { %3544 = vmatpush1.msra.mxu1 %v10524_v8 }
 0x30a   : > { %3545 = vmatprep.subr.mxu1 %v10581_v50  ;;  %v14551_v50 = vld [vmem:[#allocation33_spill] sm:$0xff] }
 0x30b   : > { %3546 = vmatpush1.msra.mxu1 %v14545_v28  ;;  %v2391_v42 = vsel %vm650_vm2, %v2355_v57, %v14551_v50 }
 0x30c   : > { %3547 = vmatprep.subr.mxu1 %v2251_v29 }
 0x30d   : > { %3548 = vmatpush1.msra.mxu1 %v11057_v19 }
 0x30e   : > { %3549 = vmatprep.subr.mxu1 %v2250_v34 }
 0x30f   : > { %3550 = vmatpush1.msra.mxu1 %v11070_v59 }
 0x310   : > { %3551 = vmatprep.subr.mxu1 %v2359_v23 }
 0x311   : > { %3552 = vmatpush1.msra.mxu1 %v11087_v63 }
 0x312   : > { %3553 = vmatprep.subr.mxu1 %v2358_v47 }
 0x313   : > { %3554 = vmatpush1.msra.mxu1 %v11092_v41 }
 0x314   : > { %3555 = vmatprep.subr.mxu1 %v10524_v8  ;;  %v14552_v8 = vld [vmem:[#allocation35_spill] sm:$0xff] }
 0x315   : > { %3556 = vmatpush1.msra.mxu1 %v10486_v51  ;;  %v2390_v51 = vsel %vm650_vm2, %v2353_v20, %v14552_v8  ;;  %v3707_v8 = vld [vmem:[#allocation2 + $0x118] sm:$0xff] }
 0x316   : > { %3557 = vmatprep.subr.mxu1 %v14545_v28  ;;  %vm3744_vm12 = vcmp.ge.f32.partialorder %v3707_v8, 0.0 }
 0x317   : > { %3558 = vmatpush1.msra.mxu1 %v14546_v18 }
 0x318   : > { %3559 = vmatprep.subr.mxu1 %v11057_v19 }
 0x319   : > { %3560 = vmatpush1.msra.mxu1 %v11062_v33 }
 0x31a   : > { %3561 = vmatprep.subr.mxu1 %v11070_v59 }
 0x31b   : > { %3562 = vmatpush1.msra.mxu1 %v11078_v15  ;;  %v14555_v15 = vld [vmem:[#allocation36_spill] sm:$0xff] }
 0x31c   : > { %3591 = vmatprep.subr.mxu1 %v2391_v42 }
 0x31d   : > { %3592 = vmatpush2.msra.mxu1 %v2357_v46 }
 0x31e   : > { %3593 = vmatprep.subr.mxu1 %v2390_v51 }
 0x31f   : > { %3594 = vmatpush2.msra.mxu1 %v2356_v22 }
 0x320   : > { %3596 = vmatmul.mubr.f32.vlgmr.msra.gmra.mxu1 %v10647_v58 }
 0x321   : > { %8704 = vmatprep.mubr.msk.f32.mxu1 %vm1279_vm0, %v10650_v6 }
 0x324   : > { %3602 = vmatmul.mubr.f32.gmra.mxu1 %v10663_v16  ;;  %v14554_v16 = vld [vmem:[#allocation39_spill] sm:$0xff] }
 0x34a   : > { %v3058_v13 = vpop.f32.mrf.mxu0 }
 0x34b   : > { %v3059_v12 = vadd.f32 %v3058_v13, %v11215_v56 }
 0x34c   : > { %v3060_v36 = vpop.f32.mrf.mxu0 }
 0x34d   : > { %v3608_v10 = vmul.f32 %v3059_v12, %v14553_v38  ;;  %v3061_v11 = vadd.f32 %v3060_v36, %v11215_v56  ;;  %v3781_v12 = vmul.f32 %v11144_v32, %v3707_v8  ;;  %v14558_v36 = vld [vmem:[#allocation19_spill] sm:$0xff] }
 0x34e   : > { %v3064_v30 = vpop.f32.mrf.mxu0 }
 0x34f   : > { %v3065_v58 = vadd.f32 %v3064_v30, %v11220_v25  ;;  %vm3710_vm15 = vcmp.ge.f32.partialorder %v3608_v10, 0.0  ;;  %v3747_v6 = vmul.f32 %v11144_v32, %v3608_v10  ;;  %v3609_v48 = vmul.f32 %v3061_v11, %v14554_v16  ;;  %v3689_v30 = vld [vmem:[#allocation2 + $0x88] sm:$0xff] }
 0x350   : > { %v3066_v40 = vpop.f32.mrf.mxu0  ;;  %vm3726_vm14 = vcmp.ge.f32.partialorder %v3689_v30, 0.0 }
 0x351   : > { %v3624_v55 = vmul.f32 %v3065_v58, %v14553_v38  ;;  %v3067_v3 = vadd.f32 %v3066_v40, %v11220_v25  ;;  %v11227_v53 = vsel %vm3710_vm15, %v3608_v10, %v3747_v6  ;;  %v3748_v18 = vmul.f32 %v11144_v32, %v3609_v48 }
 0x352   : > { %3822 = vrot.lane.b32.xlu0 %v11227_v53, %s9019_s14  ;;  %vm3711_vm4 = vcmp.ge.f32.partialorder %v3609_v48, 0.0  ;;  %v11321_v58 = vsel %vm3744_vm12, %v3707_v8, %v3781_v12 }
 0x353   : > { %vm3728_vm3 = vcmp.ge.f32.partialorder %v3624_v55, 0.0  ;;  %v3765_v2 = vmul.f32 %v11144_v32, %v3624_v55  ;;  %v3625_v62 = vmul.f32 %v3067_v3, %v14554_v16  ;;  %v11240_v54 = vsel %vm3711_vm4, %v3609_v48, %v3748_v18  ;;  %14559 = vst [vmem:[#allocation31_spill] sm:$0xff] %v11321_v58 }
 0x354   : > { %v3763_v48 = vmul.f32 %v11144_v32, %v3689_v30 }
 0x355   : > { %v11233_v28 = vsel %vm3728_vm3, %v3624_v55, %v3765_v2  ;;  %v3766_v44 = vmul.f32 %v11144_v32, %v3625_v62  ;;  %vm3729_vm5 = vcmp.ge.f32.partialorder %v3625_v62, 0.0 }
 0x356   : > { %3930 = vrot.lane.b32.xlu0 %v11227_v53, %s9020_s7  ;;  %3824 = vrot.lane.b32.xlu1 %v11233_v28, %s9019_s14  ;;  %v11334_v2 = vsel %vm3726_vm14, %v3689_v30, %v3763_v48  ;;  %v14564_v48 = vld [vmem:[#allocation25_spill] sm:$0xff] }
 0x357   : > { %v11247_v19 = vsel %vm3729_vm5, %v3625_v62, %v3766_v44  ;;  %14560 = vst [vmem:[#allocation30_spill] sm:$0xff] %v11334_v2 }
 0x35a   : > { %3826 = vrot.lane.b32.xlu0 %v11240_v54, %s9019_s14  ;;  %3932 = vrot.lane.b32.xlu1 %v11233_v28, %s9020_s7 }
 0x35e   : > { %3934 = vrot.lane.b32.xlu0 %v11240_v54, %s9020_s7  ;;  %3828 = vrot.lane.b32.xlu1 %v11247_v19, %s9019_s14 }
 0x362   : > { %3936 = vrot.lane.b32.xlu1 %v11247_v19, %s9020_s7 }
 0x36b   : > { %v3135_v33 = vpop.f32.mrf.mxu1 }
 0x36c   : > { %v3136_v59 = vadd.f32 %v3135_v33, %v11215_v56  ;;  %v14561_v33 = vld [vmem:[#allocation23_spill] sm:$0xff] }
 0x36d   : > { %v3137_v9 = vpop.f32.mrf.mxu1 }
 0x36e   : > { %v3610_v35 = vmul.f32 %v3136_v59, %v14555_v15  ;;  %v3138_v63 = vadd.f32 %v3137_v9, %v11215_v56 }
 0x36f   : > { %v3141_v41 = vpop.f32.mrf.mxu1 }
 0x370   : > { %v3142_v31 = vadd.f32 %v3141_v41, %v11220_v25  ;;  %vm3712_vm6 = vcmp.ge.f32.partialorder %v3610_v35, 0.0  ;;  %v3749_v17 = vmul.f32 %v11144_v32, %v3610_v35  ;;  %v3611_v26 = vmul.f32 %v3138_v63, %v14556_v39  ;;  %v11346_v63 = vld [vmem:[#allocation9 + $0x48] sm:$0xff]  ;;  %v14562_v41 = vld [vmem:[#allocation22_spill] sm:$0xff] }
 0x371   : > { %v3143_v49 = vpop.f32.mrf.mxu1  ;;  %v3212_v21 = vpop.f32.mrf.mxu0  ;;  %8708 = vmatprep.mubr.msk.f32.mxu0 %vm1279_vm0, %v11346_v63  ;;  %8710 = vmatprep.mubr.msk.f32.mxu1 %vm1279_vm0, %v11346_v63 }
 0x372   : > { %v3626_v37 = vmul.f32 %v3142_v31, %v14555_v15  ;;  %v3213_v23 = vadd.f32 %v3212_v21, %v11215_v56  ;;  %v11263_v52 = vsel %vm3712_vm6, %v3610_v35, %v3749_v17  ;;  %v3144_v24 = vadd.f32 %v3143_v49, %v11220_v25 }
 0x373   : > { %v3214_v27 = vpop.f32.mrf.mxu0  ;;  %3830 = vrot.lane.b32.xlu1 %v11263_v52, %s9019_s14  ;;  %v3750_v45 = vmul.f32 %v11144_v32, %v3611_v26  ;;  %vm3713_vm9 = vcmp.ge.f32.partialorder %v3611_v26, 0.0 }
 0x374   : > { %v3612_v47 = vmul.f32 %v3213_v23, %v14557_v61  ;;  %vm3730_vm7 = vcmp.ge.f32.partialorder %v3626_v37, 0.0  ;;  %v3767_v5 = vmul.f32 %v11144_v32, %v3626_v37  ;;  %v3627_v57 = vmul.f32 %v3144_v24, %v14556_v39 }
 0x375   : > { %v11286_v34 = vsel %vm3713_vm9, %v3611_v26, %v3750_v45  ;;  %v3215_v51 = vadd.f32 %v3214_v27, %v11215_v56  ;;  %v14563_v45 = vld [vmem:[#allocation24_spill] sm:$0xff] }
 0x376   : > { %vm3714_vm8 = vcmp.ge.f32.partialorder %v3612_v47, 0.0  ;;  %v3751_v4 = vmul.f32 %v11144_v32, %v3612_v47  ;;  %v11273_v7 = vsel %vm3730_vm7, %v3626_v37, %v3767_v5  ;;  %v3768_v46 = vmul.f32 %v11144_v32, %v3627_v57 }
 0x377   : > { %v3218_v29 = vpop.f32.mrf.mxu0  ;;  %3938 = vrot.lane.b32.xlu1 %v11263_v52, %s9020_s7  ;;  %4634 = vmatprep.subr.mxu0 %v11273_v7  ;;  %vm3731_vm11 = vcmp.ge.f32.partialorder %v3627_v57, 0.0  ;;  %v3613_v10 = vmul.f32 %v3215_v51, %v14558_v36 }
 0x378   : > { %v3219_v0 = vadd.f32 %v3218_v29, %v11220_v25  ;;  %v11279_v60 = vsel %vm3714_vm8, %v3612_v47, %v3751_v4  ;;  %4635 = vmatpush1.msra.mxu0 %v11247_v19  ;;  %v11298_v42 = vsel %vm3731_vm11, %v3627_v57, %v3768_v46 }
 0x379   : > { %3838 = vrot.lane.b32.xlu0 %v11279_v60, %s9019_s14  ;;  %4636 = vmatprep.subr.mxu0 %v11263_v52  ;;  %v3220_v13 = vpop.f32.mrf.mxu0  ;;  %v3752_v40 = vmul.f32 %v11144_v32, %v3613_v10  ;;  %vm3715_vm13 = vcmp.ge.f32.partialorder %v3613_v10, 0.0 }
 0x37a   : > { %v3628_v20 = vmul.f32 %v3219_v0, %v14557_v61  ;;  %4637 = vmatpush1.msra.mxu0 %v11240_v54  ;;  %v3221_v11 = vadd.f32 %v3220_v13, %v11220_v25 }
 0x37b   : > { %3834 = vrot.lane.b32.xlu1 %v11286_v34, %s9019_s14  ;;  %v11332_v3 = vsel %vm3715_vm13, %v3613_v10, %v3752_v40 }
 0x37c   : > { %vm3732_vm10 = vcmp.ge.f32.partialorder %v3628_v20, 0.0  ;;  %v3769_v22 = vmul.f32 %v11144_v32, %v3628_v20  ;;  %v3629_v6 = vmul.f32 %v3221_v11, %v14558_v36 }
 0x37d   : > { %3946 = vrot.lane.b32.xlu0 %v11279_v60, %s9020_s7 }
 0x37e   : > { %v11295_v50 = vsel %vm3732_vm10, %v3628_v20, %v3769_v22  ;;  %v3770_v62 = vmul.f32 %v11144_v32, %v3629_v6  ;;  %vm3733_vm15 = vcmp.ge.f32.partialorder %v3629_v6, 0.0 }
 0x37f   : > { %4711 = vmatprep.subr.mxu1 %v11295_v50  ;;  %3942 = vrot.lane.b32.xlu1 %v11286_v34, %s9020_s7 }
 0x380   : > { %4712 = vmatpush1.msra.mxu1 %v11298_v42  ;;  %v11344_v35 = vsel %vm3733_vm15, %v3629_v6, %v3770_v62 }
 0x381   : > { %4713 = vmatprep.subr.mxu1 %v11279_v60  ;;  %3832 = vrot.lane.b32.xlu0 %v11273_v7, %s9019_s14 }
 0x382   : > { %4714 = vmatpush1.msra.mxu1 %v11286_v34 }
 0x383   : > { %3840 = vrot.lane.b32.xlu1 %v11295_v50, %s9019_s14 }
 0x385   : > { %3940 = vrot.lane.b32.xlu0 %v11273_v7, %s9020_s7 }
 0x387   : > { %3948 = vrot.lane.b32.xlu1 %v11295_v50, %s9020_s7 }
 0x389   : > { %3836 = vrot.lane.b32.xlu0 %v11298_v42, %s9019_s14 }
 0x38b   : > { %3928 = vrot.lane.b32.xlu1 %v11180_v43, %s9020_s7 }
 0x38d   : > { %3944 = vrot.lane.b32.xlu0 %v11298_v42, %s9020_s7 }
 0x38f   : > { %3888 = vrot.lane.b32.xlu1 %v11321_v58, %s9019_s14 }
 0x391   : > { %3926 = vrot.lane.b32.xlu0 %v11173_v14, %s9020_s7 }
 0x392   : > { %v3289_v55 = vpop.f32.mrf.mxu1 }
 0x393   : > { %v3290_v18 = vadd.f32 %v3289_v55, %v11215_v56  ;;  %3842 = vrot.lane.b32.xlu1 %v11332_v3, %s9019_s14 }
 0x394   : > { %v3291_v44 = vpop.f32.mrf.mxu1 }
 0x395   : > { %v3614_v59 = vmul.f32 %v3290_v18, %v14561_v33  ;;  %v3292_v9 = vadd.f32 %v3291_v44, %v11215_v56  ;;  %3886 = vrot.lane.b32.xlu0 %v11334_v2, %s9019_s14 }
 0x397   : > { %v3615_v31 = vmul.f32 %v3292_v9, %v14562_v41  ;;  %v3295_v17 = vpop.f32.mrf.mxu1  ;;  %3952 = vrot.lane.b32.xlu1 %v11344_v35, %s9020_s7  ;;  %v3753_v21 = vmul.f32 %v11144_v32, %v3614_v59  ;;  %vm3716_vm3 = vcmp.ge.f32.partialorder %v3614_v59, 0.0 }
 0x398   : > { %v3296_v49 = vadd.f32 %v3295_v17, %v11220_v25 }
 0x399   : > { %v3297_v26 = vpop.f32.mrf.mxu1  ;;  %3950 = vrot.lane.b32.xlu0 %v11332_v3, %s9020_s7  ;;  %v3754_v27 = vmul.f32 %v11144_v32, %v3615_v31  ;;  %vm3717_vm4 = vcmp.ge.f32.partialorder %v3615_v31, 0.0  ;;  %v11365_v4 = vsel %vm3716_vm3, %v3614_v59, %v3753_v21 }
 0x39a   : > { %v3630_v37 = vmul.f32 %v3296_v49, %v14561_v33  ;;  %v3298_v23 = vadd.f32 %v3297_v26, %v11220_v25  ;;  %v3366_v24 = vpop.f32.mrf.mxu0  ;;  %v14572_v33 = vld [vmem:[#allocation32_spill] sm:$0xff] }
 0x39b   : > { %v3367_v47 = vadd.f32 %v3366_v24, %v11215_v56  ;;  %3844 = vrot.lane.b32.xlu1 %v11344_v35, %s9019_s14  ;;  %v11371_v0 = vsel %vm3717_vm4, %v3615_v31, %v3754_v27  ;;  %v14566_v27 = vld [vmem:[#allocation27_spill] sm:$0xff] }
 0x39c   : > { %v3368_v5 = vpop.f32.mrf.mxu0  ;;  %v3631_v29 = vmul.f32 %v3298_v23, %v14562_v41  ;;  %v3771_v20 = vmul.f32 %v11144_v32, %v3630_v37  ;;  %vm3734_vm5 = vcmp.ge.f32.partialorder %v3630_v37, 0.0 }
 0x39d   : > { %v3616_v57 = vmul.f32 %v3367_v47, %v14563_v45  ;;  %3846 = vrot.lane.b32.xlu0 %v11365_v4, %s9019_s14  ;;  %v3369_v11 = vadd.f32 %v3368_v5, %v11215_v56 }
 0x39e   : > { %v11380_v51 = vsel %vm3734_vm5, %v3630_v37, %v3771_v20  ;;  %v3772_v13 = vmul.f32 %v11144_v32, %v3631_v29  ;;  %vm3735_vm7 = vcmp.ge.f32.partialorder %v3631_v29, 0.0  ;;  %v14565_v37 = vld [vmem:[#allocation26_spill] sm:$0xff] }
 0x39f   : > { %v3372_v46 = vpop.f32.mrf.mxu0  ;;  %3850 = vrot.lane.b32.xlu1 %v11371_v0, %s9019_s14  ;;  %v3755_v8 = vmul.f32 %v11144_v32, %v3616_v57  ;;  %vm3718_vm6 = vcmp.ge.f32.partialorder %v3616_v57, 0.0  ;;  %v3617_v55 = vmul.f32 %v3369_v11, %v14564_v48 }
 0x3a0   : > { %v3373_v22 = vadd.f32 %v3372_v46, %v11220_v25  ;;  %v11391_v30 = vsel %vm3735_vm7, %v3631_v29, %v3772_v13 }
 0x3a1   : > { %3954 = vrot.lane.b32.xlu0 %v11365_v4, %s9020_s7  ;;  %v11386_v10 = vsel %vm3718_vm6, %v3616_v57, %v3755_v8  ;;  %v3374_v6 = vpop.f32.mrf.mxu0  ;;  %v3756_v59 = vmul.f32 %v11144_v32, %v3617_v55  ;;  %vm3719_vm9 = vcmp.ge.f32.partialorder %v3617_v55, 0.0 }
 0x3a2   : > { %v3632_v12 = vmul.f32 %v3373_v22, %v14563_v45  ;;  %v3375_v62 = vadd.f32 %v3374_v6, %v11220_v25 }
 0x3a3   : > { %3956 = vrot.lane.b32.xlu1 %v11380_v51, %s9020_s7  ;;  %v11412_v9 = vsel %vm3719_vm9, %v3617_v55, %v3756_v59 }
 0x3a4   : > { %v3773_v40 = vmul.f32 %v11144_v32, %v3632_v12  ;;  %vm3736_vm8 = vcmp.ge.f32.partialorder %v3632_v12, 0.0  ;;  %v3633_v44 = vmul.f32 %v3375_v62, %v14564_v48 }
 0x3a5   : > { %3854 = vrot.lane.b32.xlu0 %v11386_v10, %s9019_s14 }
 0x3a6   : > { %v11402_v18 = vsel %vm3736_vm8, %v3632_v12, %v3773_v40  ;;  %v3774_v31 = vmul.f32 %v11144_v32, %v3633_v44  ;;  %vm3737_vm10 = vcmp.ge.f32.partialorder %v3633_v44, 0.0 }
 0x3a7   : > { %3852 = vrot.lane.b32.xlu1 %v11391_v30, %s9019_s14 }
 0x3a8   : > { %v11419_v17 = vsel %vm3737_vm10, %v3633_v44, %v3774_v31  ;;  %v14567_v44 = vld [vmem:[#allocation28_spill] sm:$0xff] }
 0x3a9   : > { %3848 = vrot.lane.b32.xlu0 %v11380_v51, %s9019_s14 }
 0x3ab   : > { %3960 = vrot.lane.b32.xlu1 %v11391_v30, %s9020_s7 }
 0x3ad   : > { %3856 = vrot.lane.b32.xlu0 %v11402_v18, %s9019_s14 }
 0x3af   : > { %3958 = vrot.lane.b32.xlu1 %v11371_v0, %s9020_s7 }
 0x3b1   : > { %3964 = vrot.lane.b32.xlu0 %v11402_v18, %s9020_s7 }
 0x3b3   : > { %3858 = vrot.lane.b32.xlu1 %v11412_v9, %s9019_s14 }
 0x3b5   : > { %3962 = vrot.lane.b32.xlu0 %v11386_v10, %s9020_s7 }
 0x3b7   : > { %3968 = vrot.lane.b32.xlu1 %v11419_v17, %s9020_s7 }
 0x3b9   : > { %3966 = vrot.lane.b32.xlu0 %v11412_v9, %s9020_s7 }
 0x3ba   : > { %v3443_v49 = vpop.f32.mrf.mxu1 }
 0x3bb   : > { %v3444_v21 = vadd.f32 %v3443_v49, %v11215_v56  ;;  %3860 = vrot.lane.b32.xlu1 %v11419_v17, %s9019_s14 }
 0x3bc   : > { %v3445_v26 = vpop.f32.mrf.mxu1 }
 0x3bd   : > { %v3618_v23 = vmul.f32 %v3444_v21, %v14565_v37  ;;  %v3446_v24 = vadd.f32 %v3445_v26, %v11215_v56 }
 0x3bf   : > { %v3619_v47 = vmul.f32 %v3446_v24, %v14566_v27  ;;  %v3449_v5 = vpop.f32.mrf.mxu1  ;;  %vm3720_vm11 = vcmp.ge.f32.partialorder %v3618_v23, 0.0  ;;  %v3757_v57 = vmul.f32 %v11144_v32, %v3618_v23 }
 0x3c0   : > { %v3450_v29 = vadd.f32 %v3449_v5, %v11220_v25 }
 0x3c1   : > { %v3451_v20 = vpop.f32.mrf.mxu1  ;;  %v11433_v46 = vsel %vm3720_vm11, %v3618_v23, %v3757_v57  ;;  %vm3721_vm12 = vcmp.ge.f32.partialorder %v3619_v47, 0.0  ;;  %v3758_v22 = vmul.f32 %v11144_v32, %v3619_v47 }
 0x3c2   : > { %v3634_v8 = vmul.f32 %v3450_v29, %v14565_v37  ;;  %v3452_v13 = vadd.f32 %v3451_v20, %v11220_v25  ;;  %v3520_v12 = vpop.f32.mrf.mxu0  ;;  %3862 = vrot.lane.b32.xlu0 %v11433_v46, %s9019_s14 }
 0x3c3   : > { %v3521_v11 = vadd.f32 %v3520_v12, %v11215_v56  ;;  %v11441_v6 = vsel %vm3721_vm12, %v3619_v47, %v3758_v22  ;;  %v11458_v47 = vpop.permute.xlu1 %3820 }
 0x3c4   : > { %v3635_v40 = vmul.f32 %v3452_v13, %v14566_v27  ;;  %v3522_v55 = vpop.f32.mrf.mxu0  ;;  %3866 = vrot.lane.b32.xlu1 %v11441_v6, %s9019_s14  ;;  %vm3738_vm13 = vcmp.ge.f32.partialorder %v3634_v8, 0.0  ;;  %v3775_v62 = vmul.f32 %v11144_v32, %v3634_v8 }
 0x3c5   : > { %v3620_v59 = vmul.f32 %v3521_v11, %v14567_v44  ;;  %v3523_v57 = vadd.f32 %v3522_v55, %v11215_v56  ;;  %v11474_v11 = vpop.permute.xlu0 %3818 }
 0x3c6   : > { %v3526_v31 = vpop.f32.mrf.mxu0  ;;  %3970 = vrot.lane.b32.xlu0 %v11433_v46, %s9020_s7  ;;  %v11450_v49 = vsel %vm3738_vm13, %v3634_v8, %v3775_v62  ;;  %v3776_v23 = vmul.f32 %v11144_v32, %v3635_v40  ;;  %vm3739_vm15 = vcmp.ge.f32.partialorder %v3635_v40, 0.0  ;;  %v14568_v8 = vld [vmem:[#allocation20_spill] sm:$0xff] }
 0x3c7   : > { %v3527_v21 = vadd.f32 %v3526_v31, %v11220_v25  ;;  %vm3722_vm14 = vcmp.ge.f32.partialorder %v3620_v59, 0.0  ;;  %v3759_v26 = vmul.f32 %v11144_v32, %v3620_v59  ;;  %v3621_v13 = vmul.f32 %v3523_v57, %v14568_v8 }
 0x3c8   : > { %3972 = vrot.lane.b32.xlu1 %v11450_v49, %s9020_s7  ;;  %v11465_v29 = vsel %vm3739_vm15, %v3635_v40, %v3776_v23  ;;  %v3528_v20 = vpop.f32.mrf.mxu0  ;;  %v11476_v62 = vpop.permute.xlu1 %3824 }
 0x3c9   : > { %v3636_v24 = vmul.f32 %v3527_v21, %v14567_v44  ;;  %v11460_v5 = vsel %vm3722_vm14, %v3620_v59, %v3759_v26  ;;  %v3529_v12 = vadd.f32 %v3528_v20, %v11220_v25  ;;  %v3760_v59 = vmul.f32 %v11144_v32, %v3621_v13  ;;  %v11488_v31 = vpop.permute.xlu0 %3822  ;;  %v14571_v44 = vld [vmem:[#allocation29_spill] sm:$0xff] }
 0x3ca   : > { %3870 = vrot.lane.b32.xlu0 %v11460_v5, %s9019_s14  ;;  %vm3723_vm4 = vcmp.ge.f32.partialorder %v3621_v13, 0.0 }
 0x3cb   : > { %v3777_v22 = vmul.f32 %v11144_v32, %v3636_v24  ;;  %vm3740_vm3 = vcmp.ge.f32.partialorder %v3636_v24, 0.0  ;;  %v3637_v55 = vmul.f32 %v3529_v12, %v14568_v8  ;;  %v11494_v26 = vsel %vm3723_vm4, %v3621_v13, %v3760_v59 }
 0x3cc   : > { %3868 = vrot.lane.b32.xlu1 %v11465_v29, %s9019_s14  ;;  %v11490_v21 = vpop.permute.xlu1 %3932  ;;  %14569 = vst [vmem:[#allocation40_spill] sm:$0xff] %v11494_v26 }
 0x3cd   : > { %v11480_v40 = vsel %vm3740_vm3, %v3636_v24, %v3777_v22  ;;  %v3778_v23 = vmul.f32 %v11144_v32, %v3637_v55  ;;  %vm3741_vm5 = vcmp.ge.f32.partialorder %v3637_v55, 0.0  ;;  %v11501_v24 = vpop.permute.xlu0 %3930 }
 0x3ce   : > { %3864 = vrot.lane.b32.xlu0 %v11450_v49, %s9019_s14 }
 0x3cf   : > { %v11503_v20 = vsel %vm3741_vm5, %v3637_v55, %v3778_v23 }
 0x3d0   : > { %3976 = vrot.lane.b32.xlu1 %v11465_v29, %s9020_s7  ;;  %v3829_v57 = vpop.permute.xlu1 %3828  ;;  %14570 = vst [vmem:[#allocation34_spill] sm:$0xff] %v11503_v20 }
 0x3d1   : > { %v3827_v13 = vpop.permute.xlu0 %3826 }
 0x3d2   : > { %3872 = vrot.lane.b32.xlu0 %v11480_v40, %s9019_s14 }
 0x3d4   : > { %3974 = vrot.lane.b32.xlu1 %v11441_v6, %s9020_s7  ;;  %v3937_v59 = vpop.permute.xlu1 %3936 }
 0x3d5   : > { %v3935_v36 = vpop.permute.xlu0 %3934  ;;  %v4029_v38 = vsel %vm650_vm2, %v11490_v21, %v3937_v59 }
 0x3d6   : > { %3980 = vrot.lane.b32.xlu0 %v11480_v40, %s9020_s7 }
 0x3d8   : > { %3874 = vrot.lane.b32.xlu1 %v11494_v26, %s9019_s14 }
 0x3da   : > { %3978 = vrot.lane.b32.xlu0 %v11460_v5, %s9020_s7 }
 0x3dc   : > { %3984 = vrot.lane.b32.xlu1 %v11503_v20, %s9020_s7 }
 0x3de   : > { %3982 = vrot.lane.b32.xlu0 %v11494_v26, %s9020_s7 }
 0x3e0   : > { %v3597_v22 = vpop.f32.mrf.mxu1  ;;  %3876 = vrot.lane.b32.xlu1 %v11503_v20, %s9019_s14 }
 0x3e1   : > { %v3598_v12 = vadd.f32 %v3597_v22, %v11215_v56 }
 0x3e2   : > { %v3599_v8 = vpop.f32.mrf.mxu1 }
 0x3e3   : > { %v3622_v27 = vmul.f32 %v3598_v12, %v14571_v44  ;;  %v3600_v55 = vadd.f32 %v3599_v8, %v11215_v56 }
 0x3e4   : > { %v3603_v23 = vpop.f32.mrf.mxu1 }
 0x3e5   : > { %v3604_v37 = vadd.f32 %v3603_v23, %v11220_v25  ;;  %vm3724_vm6 = vcmp.ge.f32.partialorder %v3622_v27, 0.0  ;;  %v3761_v48 = vmul.f32 %v11144_v32, %v3622_v27  ;;  %v11516_v45 = vpop.permute.xlu1 %3830  ;;  %v3623_v61 = vmul.f32 %v3600_v55, %v14572_v33 }
 0x3e6   : > { %v3605_v41 = vpop.f32.mrf.mxu1 }
 0x3e7   : > { %v3638_v22 = vmul.f32 %v3604_v37, %v14571_v44  ;;  %v3606_v39 = vadd.f32 %v3605_v41, %v11220_v25  ;;  %v11521_v15 = vsel %vm3724_vm6, %v3622_v27, %v3761_v48  ;;  %v3762_v55 = vmul.f32 %v11144_v32, %v3623_v61 }
 0x3e8   : > { %14573 = vst [vmem:[#allocation41_spill] sm:$0xff] %v11521_v15  ;;  %3878 = vrot.lane.b32.xlu0 %v11521_v15, %s9019_s14  ;;  %vm3725_vm8 = vcmp.ge.f32.partialorder %v3623_v61, 0.0 }
 0x3e9   : > { %v3639_v56 = vmul.f32 %v3606_v39, %v14572_v33  ;;  %vm3742_vm7 = vcmp.ge.f32.partialorder %v3638_v22, 0.0  ;;  %v3779_v8 = vmul.f32 %v11144_v32, %v3638_v22  ;;  %v11527_v12 = vpop.permute.xlu1 %3938  ;;  %v11539_v39 = vsel %vm3725_vm8, %v3623_v61, %v3762_v55  ;;  %v8707_v33 = vld [vmem:[%s14341_s4 + $0x28] sm:$0xff] }
 0x3ea   : > { %14575 = vst [vmem:[#allocation33_spill] sm:$0xff] %v11539_v39 }
 0x3eb   : > { %v11529_v23 = vsel %vm3742_vm7, %v3638_v22, %v3779_v8  ;;  %v3780_v37 = vmul.f32 %v11144_v32, %v3639_v56  ;;  %v11533_v44 = vpop.permute.xlu0 %3838  ;;  %vm3743_vm9 = vcmp.ge.f32.partialorder %v3639_v56, 0.0  ;;  %v11569_v8 = vsel %vm541_vm1, %v3827_v13, %v11516_v45 }
 0x3ec   : > { %14574 = vst [vmem:[#allocation42_spill] sm:$0xff] %v11529_v23  ;;  %3986 = vrot.lane.b32.xlu0 %v11521_v15, %s9020_s7  ;;  %3988 = vrot.lane.b32.xlu1 %v11529_v23, %s9020_s7 }
 0x3ed   : > { %v3835_v25 = vpop.permute.xlu1 %3834  ;;  %v11541_v41 = vsel %vm3743_vm9, %v3639_v56, %v3780_v37  ;;  %v11563_v56 = vsel %vm541_vm1, %v11476_v62, %v3829_v57 }
 0x3ee   : > { %14576 = vst [vmem:[#allocation35_spill] sm:$0xff] %v11541_v41 }
 0x3ef   : > { %v11543_v48 = vpop.permute.xlu0 %3946 }
 0x3f0   : > { %3882 = vrot.lane.b32.xlu0 %v11539_v39, %s9019_s14  ;;  %3884 = vrot.lane.b32.xlu1 %v11541_v41, %s9019_s14 }
 0x3f1   : > { %v3943_v32 = vpop.permute.xlu1 %3942 }
 0x3f3   : > { %v3833_v27 = vpop.permute.xlu0 %3832 }
 0x3f4   : > { %3880 = vrot.lane.b32.xlu0 %v11529_v23, %s9019_s14  ;;  %3992 = vrot.lane.b32.xlu1 %v11541_v41, %s9020_s7  ;;  %v11555_v61 = vsel %vm541_vm1, %v3829_v57, %v3833_v27  ;;  %v11579_v57 = vsel %vm541_vm1, %v11488_v31, %v3827_v13 }
 0x3f5   : > { %4638 = vmatprep.subr.mxu0 %v11555_v61  ;;  %v11558_v22 = vpop.permute.xlu1 %3840 }
 0x3f6   : > { %4639 = vmatpush1.msra.mxu0 %v11563_v56 }
 0x3f7   : > { %v3941_v55 = vpop.permute.xlu0 %3940  ;;  %4640 = vmatprep.subr.mxu0 %v11569_v8 }
 0x3f8   : > { %3996 = vrot.lane.b32.xlu0 %v11321_v58, %s9020_s7  ;;  %3990 = vrot.lane.b32.xlu1 %v11539_v39, %s9020_s7  ;;  %v11583_v37 = vsel %vm650_vm2, %v3937_v59, %v3941_v55  ;;  %v11600_v39 = vsel %vm650_vm2, %v3935_v36, %v11527_v12  ;;  %v8706_v59 = vld [vmem:[%s14341_s4 + $0x20] sm:$0xff] }
 0x3f9   : > { %4641 = vmatpush1.msra.mxu0 %v11579_v57  ;;  %v11589_v16 = vpop.permute.xlu1 %3948 }
 0x3fa   : > { %4642 = vmatprep.subr.mxu0 %v11583_v37 }
 0x3fb   : > { %4643 = vmatpush1.msra.mxu0 %v4029_v38  ;;  %v3837_v13 = vpop.permute.xlu0 %3836 }
 0x3fc   : > { %3994 = vrot.lane.b32.xlu0 %v11334_v2, %s9020_s7  ;;  %4625 = vperm.xlu1 %8856, %v8707_v33   ;;  %v11605_v41 = vsel %vm541_vm1, %v3837_v13, %v11558_v22  ;;  %v11609_v58 = vsel %vm541_vm1, %v3833_v27, %v3837_v13  ;;  %v4028_v33 = vsel %vm650_vm2, %v11501_v24, %v3935_v36 }
 0x3fd   : > { %4644 = vmatprep.subr.mxu0 %v11600_v39  ;;  %4715 = vmatprep.subr.mxu1 %v11605_v41  ;;  %v11619_v2 = vpop.permute.xlu1 %3928  ;;  %v11625_v27 = vsel %vm541_vm1, %v3835_v25, %v11533_v44  ;;  %v11633_v36 = vsel %vm541_vm1, %v11516_v45, %v3835_v25  ;;  %v3923_v45 = vsel %vm541_vm1, %v11458_v47, %v11476_v62 }
 0x3fe   : > { %4645 = vmatpush1.msra.mxu0 %v4028_v33  ;;  %4716 = vmatpush1.msra.mxu1 %v11609_v58  ;;  %v3922_v62 = vsel %vm541_vm1, %v11474_v11, %v11488_v31  ;;  %v4031_v23 = vsel %vm650_vm2, %v11619_v2, %v11490_v21 }
 0x3ff   : > { %4646 = vmatprep.subr.mxu0 %v11247_v19  ;;  %v3945_v13 = vpop.permute.xlu0 %3944  ;;  %4717 = vmatprep.subr.mxu1 %v11625_v27 }
 0x400   : > { %4620 = vperm.xlu0 %8855, %v8706_v59   ;;  %4647 = vmatpush1.msra.mxu0 %v11233_v28  ;;  %v11638_v26 = vsel %vm650_vm2, %v3945_v13, %v11589_v16  ;;  %v4025_v15 = vsel %vm650_vm2, %v3941_v55, %v3945_v13  ;;  %v11658_v55 = vsel %vm650_vm2, %v3943_v32, %v11543_v48 }
 0x401   : > { %4648 = vmatprep.subr.mxu0 %v11240_v54  ;;  %4718 = vmatpush1.msra.mxu1 %v11633_v36  ;;  %v11644_v59 = vpop.permute.xlu1 %3888  ;;  %v4024_v13 = vsel %vm650_vm2, %v11527_v12, %v3943_v32 }
 0x402   : > { %4649 = vmatpush1.msra.mxu0 %v11227_v53  ;;  %4719 = vmatprep.subr.mxu1 %v11638_v26 }
 0x403   : > { %4650 = vmatprep.subr.mxu0 %v11563_v56  ;;  %4720 = vmatpush1.msra.mxu1 %v4025_v15  ;;  %v11653_v25 = vpop.permute.xlu0 %3926 }
 0x404   : > { %4651 = vmatpush1.msra.mxu0 %v3923_v45  ;;  %4721 = vmatprep.subr.mxu1 %v11658_v55  ;;  %v4030_v31 = vsel %vm650_vm2, %v11653_v25, %v11501_v24 }
 0x405   : > { %4652 = vmatprep.subr.mxu0 %v11579_v57  ;;  %4722 = vmatpush1.msra.mxu1 %v4024_v13  ;;  %v11669_v20 = vpop.permute.xlu1 %3842 }
 0x406   : > { %4653 = vmatpush1.msra.mxu0 %v3922_v62  ;;  %4723 = vmatprep.subr.mxu1 %v11298_v42 }
 0x407   : > { %4654 = vmatprep.subr.mxu0 %v4029_v38  ;;  %4724 = vmatpush1.msra.mxu1 %v11273_v7  ;;  %v11677_v12 = vpop.permute.xlu0 %3886 }
 0x408   : > { %4655 = vmatpush1.msra.mxu0 %v4031_v23  ;;  %4725 = vmatprep.subr.mxu1 %v11286_v34 }
 0x409   : > { %4656 = vmatprep.subr.mxu0 %v4028_v33  ;;  %4726 = vmatpush1.msra.mxu1 %v11263_v52  ;;  %v11685_v38 = vpop.permute.xlu1 %3952 }
 0x40a   : > { %4657 = vmatpush1.msra.mxu0 %v4030_v31  ;;  %4727 = vmatprep.subr.mxu1 %v11609_v58 }
 0x40b   : > { %4658 = vmatprep.subr.mxu0 %v11233_v28  ;;  %4728 = vmatpush1.msra.mxu1 %v11555_v61  ;;  %v11690_v21 = vpop.permute.xlu0 %3950  ;;  %v3925_v28 = vsel %vm541_vm1, %v11644_v59, %v11458_v47  ;;  %v11717_v47 = vld [vmem:[#allocation9 + $0x40] sm:$0xff] }
 0x40c   : > { %4659 = vmatpush1.msra.mxu0 %v11180_v43  ;;  %4729 = vmatprep.subr.mxu1 %v11633_v36  ;;  %v3924_v43 = vsel %vm541_vm1, %v11677_v12, %v11474_v11  ;;  %v4020_v32 = vsel %vm650_vm2, %v11543_v48, %v11690_v21 }
 0x40d   : > { %4660 = vmatprep.subr.mxu0 %v11227_v53  ;;  %4730 = vmatpush1.msra.mxu1 %v11569_v8  ;;  %v3845_v24 = vpop.permute.xlu1 %3844 }
 0x40e   : > { %4661 = vmatpush1.msra.mxu0 %v11173_v14  ;;  %4731 = vmatprep.subr.mxu1 %v4025_v15 }
 0x40f   : > { %4662 = vmatprep.subr.mxu0 %v3923_v45  ;;  %4732 = vmatpush1.msra.mxu1 %v11583_v37  ;;  %v11702_v23 = vpop.permute.xlu0 %3846 }
 0x410   : > { %4663 = vmatpush1.msra.mxu0 %v3925_v28  ;;  %4733 = vmatprep.subr.mxu1 %v4024_v13 }
 0x411   : > { %4664 = vmatprep.subr.mxu0 %v3922_v62  ;;  %4734 = vmatpush1.msra.mxu1 %v11600_v39  ;;  %v11709_v14 = vpop.permute.xlu1 %3850 }
 0x412   : > { %4665 = vmatpush1.msra.mxu0 %v3924_v43  ;;  %4735 = vmatprep.subr.mxu1 %v11273_v7  ;;  %v11743_v7 = vsel %vm650_vm2, %v11589_v16, %v11685_v38  ;;  %v11833_v31 = vsel %vm541_vm1, %v11702_v23, %v11709_v14 }
 0x413   : > { %4694 = vmatprep.subr.mxu0 %v4025_v15  ;;  %4736 = vmatpush1.msra.mxu1 %v11247_v19  ;;  %v11713_v53 = vpop.permute.xlu0 %3954  ;;  %v11728_v15 = vld [vmem:[#allocation9 + $0x58] sm:$0xff] }
 0x414   : > { %4695 = vmatpush2.msra.mxu0 %v11583_v37  ;;  %4737 = vmatprep.subr.mxu1 %v11263_v52  ;;  %v11813_v45 = vsel %vm650_vm2, %v11690_v21, %v11713_v53 }
 0x415   : > { %4696 = vmatprep.subr.mxu0 %v4024_v13  ;;  %4738 = vmatpush1.msra.mxu1 %v11240_v54  ;;  %v11720_v11 = vpop.permute.xlu1 %3956  ;;  %v11734_v54 = vld [vmem:[#allocation9 + $0x50] sm:$0xff] }
 0x416   : > { %4697 = vmatpush2.msra.mxu0 %v11600_v39  ;;  %4739 = vmatprep.subr.mxu1 %v11555_v61  ;;  %v11797_v33 = vsel %vm650_vm2, %v11685_v38, %v11720_v11 }
 0x417   : > { %4699 = vmatmul.mubr.f32.vlgmr.msra.gmra.mxu0 %v11717_v47  ;;  %4788 = vmatprep.subr.mxu0 %v11380_v51  ;;  %v11726_v19 = vpop.permute.xlu0 %3854 }
 0x418   : > { %4740 = vmatpush1.msra.mxu1 %v11563_v56  ;;  %4789 = vmatpush1.msra.mxu0 %v11344_v35  ;;  %v11761_v56 = vsel %vm541_vm1, %v11558_v22, %v3845_v24  ;;  %v11784_v22 = vsel %vm541_vm1, %v11533_v44, %v11669_v20  ;;  %v11821_v13 = vsel %vm541_vm1, %v11709_v14, %v11726_v19 }
 0x419   : > { %4741 = vmatprep.subr.mxu1 %v11569_v8  ;;  %4790 = vmatprep.subr.mxu0 %v11365_v4  ;;  %v3853_v52 = vpop.permute.xlu1 %3852  ;;  %v11773_v8 = vsel %vm541_vm1, %v11669_v20, %v11702_v23 }
 0x41a   : > { %8709 = vmatprep.mubr.msk.f32.mxu0 %vm1279_vm0, %v11728_v15  ;;  %4742 = vmatpush1.msra.mxu1 %v11579_v57 }
 0x41b   : > { %4791 = vmatpush1.msra.mxu0 %v11332_v3  ;;  %4771 = vmatprep.subr.mxu1 %v11743_v7  ;;  %v3849_v39 = vpop.permute.xlu0 %3848 }
 0x41c   : > { %4705 = vmatmul.mubr.f32.gmra.mxu0 %v11734_v54  ;;  %4772 = vmatpush2.msra.mxu1 %v11638_v26  ;;  %v11755_v61 = vsel %vm541_vm1, %v3845_v24, %v3849_v39  ;;  %v11807_v20 = vsel %vm541_vm1, %v3849_v39, %v3853_v52 }
 0x41d   : > { %4773 = vmatprep.subr.mxu1 %v4020_v32  ;;  %4792 = vmatprep.subr.mxu0 %v11755_v61  ;;  %v3961_v16 = vpop.permute.xlu1 %3960 }
 0x41e   : > { %4774 = vmatpush2.msra.mxu1 %v11658_v55  ;;  %4793 = vmatpush1.msra.mxu0 %v11761_v56  ;;  %v4017_v24 = vsel %vm650_vm2, %v11720_v11, %v3961_v16 }
 0x41f   : > { %4776 = vmatmul.mubr.f32.vlgmr.msra.gmra.mxu1 %v11717_v47  ;;  %4865 = vmatprep.subr.mxu1 %v11402_v18  ;;  %v11767_v48 = vpop.permute.xlu0 %3856 }
 0x420   : > { %4866 = vmatpush1.msra.mxu1 %v11391_v30  ;;  %4794 = vmatprep.subr.mxu0 %v11773_v8  ;;  %v11789_v57 = vsel %vm541_vm1, %v3853_v52, %v11767_v48 }
 0x421   : > { %4867 = vmatprep.subr.mxu1 %v11386_v10  ;;  %8711 = vmatprep.mubr.msk.f32.mxu1 %vm1279_vm0, %v11728_v15  ;;  %v3959_v37 = vpop.permute.xlu1 %3958 }
 0x422   : > { %4795 = vmatpush1.msra.mxu0 %v11784_v22  ;;  %4868 = vmatpush1.msra.mxu1 %v11371_v0  ;;  %v4016_v23 = vsel %vm650_vm2, %v11713_v53, %v3959_v37 }
 0x423   : > { %4782 = vmatmul.mubr.f32.gmra.mxu1 %v11734_v54  ;;  %4796 = vmatprep.subr.mxu0 %v11797_v33  ;;  %v11801_v44 = vpop.permute.xlu0 %3964 }
 0x424   : > { %4869 = vmatprep.subr.mxu1 %v11789_v57  ;;  %4797 = vmatpush1.msra.mxu0 %v11743_v7  ;;  %v11826_v62 = vsel %vm650_vm2, %v3961_v16, %v11801_v44 }
 0x425   : > { %4870 = vmatpush1.msra.mxu1 %v11807_v20  ;;  %4798 = vmatprep.subr.mxu0 %v11813_v45  ;;  %v11835_v38 = vpop.permute.xlu1 %3858 }
 0x426   : > { %4871 = vmatprep.subr.mxu1 %v11821_v13  ;;  %4799 = vmatpush1.msra.mxu0 %v4020_v32 }
 0x427   : > { %4872 = vmatpush1.msra.mxu1 %v11833_v31  ;;  %4800 = vmatprep.subr.mxu0 %v11344_v35  ;;  %v11839_v21 = vpop.permute.xlu0 %3962 }
 0x428   : > { %4873 = vmatprep.subr.mxu1 %v11826_v62  ;;  %4801 = vmatpush1.msra.mxu0 %v11295_v50  ;;  %v11849_v28 = vsel %vm650_vm2, %v3959_v37, %v11839_v21 }
 0x429   : > { %4874 = vmatpush1.msra.mxu1 %v4017_v24  ;;  %4802 = vmatprep.subr.mxu0 %v11332_v3  ;;  %v11858_v43 = vpop.permute.xlu1 %3968 }
 0x42a   : > { %4803 = vmatpush1.msra.mxu0 %v11279_v60  ;;  %4875 = vmatprep.subr.mxu1 %v11849_v28 }
 0x42b   : > { %4804 = vmatprep.subr.mxu0 %v11761_v56  ;;  %4876 = vmatpush1.msra.mxu1 %v4016_v23  ;;  %v11864_v14 = vpop.permute.xlu0 %3966 }
 0x42c   : > { %4805 = vmatpush1.msra.mxu0 %v11605_v41  ;;  %4877 = vmatprep.subr.mxu1 %v11391_v30 }
 0x42d   : > { %4806 = vmatprep.subr.mxu0 %v11784_v22  ;;  %4878 = vmatpush1.msra.mxu1 %v11380_v51  ;;  %v3861_v53 = vpop.permute.xlu1 %3860 }
 0x42e   : > { %4807 = vmatpush1.msra.mxu0 %v11625_v27  ;;  %4879 = vmatprep.subr.mxu1 %v11371_v0 }
 0x42f   : > { %4808 = vmatprep.subr.mxu0 %v11743_v7  ;;  %4880 = vmatpush1.msra.mxu1 %v11365_v4 }
 0x430   : > { %4809 = vmatpush1.msra.mxu0 %v11638_v26  ;;  %4881 = vmatprep.subr.mxu1 %v11807_v20 }
 0x431   : > { %4810 = vmatprep.subr.mxu0 %v4020_v32  ;;  %4882 = vmatpush1.msra.mxu1 %v11755_v61 }
 0x432   : > { %4811 = vmatpush1.msra.mxu0 %v11658_v55  ;;  %4883 = vmatprep.subr.mxu1 %v11833_v31 }
 0x433   : > { %4812 = vmatprep.subr.mxu0 %v11295_v50  ;;  %4884 = vmatpush1.msra.mxu1 %v11773_v8 }
 0x434   : > { %v11877_v11 = vpop.permute.xlu0 %3862  ;;  %4813 = vmatpush1.msra.mxu0 %v11298_v42  ;;  %4885 = vmatprep.subr.mxu1 %v4017_v24 }
 0x435   : > { %4814 = vmatprep.subr.mxu0 %v11279_v60  ;;  %4886 = vmatpush1.msra.mxu1 %v11797_v33 }
 0x436   : > { %4815 = vmatpush1.msra.mxu0 %v11286_v34  ;;  %4887 = vmatprep.subr.mxu1 %v4016_v23  ;;  %v11885_v26 = vpop.permute.xlu1 %3866 }
 0x437   : > { %4816 = vmatprep.subr.mxu0 %v11605_v41  ;;  %4888 = vmatpush1.msra.mxu1 %v11813_v45  ;;  %v11940_v41 = vsel %vm541_vm1, %v11767_v48, %v3861_v53 }
 0x438   : > { %v11887_v50 = vpop.permute.xlu0 %3970  ;;  %4817 = vmatpush1.msra.mxu0 %v11609_v58  ;;  %4889 = vmatprep.subr.mxu1 %v11380_v51  ;;  %v11912_v58 = vsel %vm650_vm2, %v11801_v44, %v11858_v43 }
 0x439   : > { %4818 = vmatprep.subr.mxu0 %v11625_v27  ;;  %4890 = vmatpush1.msra.mxu1 %v11344_v35  ;;  %v11949_v27 = vsel %vm541_vm1, %v11835_v38, %v11877_v11 }
 0x43a   : > { %4819 = vmatpush1.msra.mxu0 %v11633_v36  ;;  %4891 = vmatprep.subr.mxu1 %v11365_v4  ;;  %v3973_v34 = vpop.permute.xlu1 %3972  ;;  %v11957_v36 = vsel %vm541_vm1, %v11726_v19, %v11835_v38  ;;  %v11979_v19 = vsel %vm650_vm2, %v11864_v14, %v11887_v50 }
 0x43b   : > { %4848 = vmatprep.subr.mxu0 %v4017_v24  ;;  %4892 = vmatpush1.msra.mxu1 %v11332_v3  ;;  %v11925_v3 = vsel %vm650_vm2, %v11839_v21, %v11864_v14  ;;  %v11964_v55 = vsel %vm650_vm2, %v11858_v43, %v3973_v34  ;;  %v12108_v24 = vld [vmem:[#allocation9 + $0x48] sm:$0xff]  ;;  %v14581_v43 = vld [vmem:[#allocation31_spill] sm:$0xff] }
 0x43c   : > { %v11896_v60 = vpop.permute.xlu0 %3870  ;;  %4849 = vmatpush2.msra.mxu0 %v11797_v33  ;;  %4893 = vmatprep.subr.mxu1 %v11755_v61 }
 0x43d   : > { %4850 = vmatprep.subr.mxu0 %v4016_v23  ;;  %8712 = vmatprep.mubr.msk.f32.mxu0 %vm1279_vm0, %v11346_v63  ;;  %v12000_v61 = vsel %vm541_vm1, %v11885_v26, %v11896_v60 }
 0x43e   : > { %4851 = vmatpush2.msra.mxu0 %v11813_v45  ;;  %4894 = vmatpush1.msra.mxu1 %v11761_v56  ;;  %v3869_v35 = vpop.permute.xlu1 %3868  ;;  %v12010_v56 = vsel %vm541_vm1, %v11877_v11, %v11885_v26  ;;  %v14582_v11 = vld [vmem:[#allocation35_spill] sm:$0xff] }
 0x43f   : > { %4853 = vmatmul.mubr.f32.vlgmr.msra.gmra.mxu0 %v11717_v47  ;;  %4895 = vmatprep.subr.mxu1 %v11773_v8 }
 0x440   : > { %v3865_v42 = vpop.permute.xlu0 %3864  ;;  %4942 = vmatprep.subr.mxu0 %v11450_v49  ;;  %4896 = vmatpush1.msra.mxu1 %v11784_v22 }
 0x441   : > { %4943 = vmatpush1.msra.mxu0 %v11419_v17  ;;  %4925 = vmatprep.subr.mxu1 %v11912_v58  ;;  %v11933_v51 = vsel %vm541_vm1, %v3861_v53, %v3865_v42  ;;  %v11992_v32 = vsel %vm541_vm1, %v3865_v42, %v3869_v35 }
 0x442   : > { %4944 = vmatprep.subr.mxu0 %v11433_v46  ;;  %8713 = vmatprep.mubr.msk.f32.mxu0 %vm1279_vm0, %v11728_v15  ;;  %v3977_v7 = vpop.permute.xlu1 %3976 }
 0x443   : > { %4926 = vmatpush2.msra.mxu1 %v11826_v62  ;;  %4945 = vmatpush1.msra.mxu0 %v11412_v9  ;;  %v4009_v22 = vsel %vm650_vm2, %v3973_v34, %v3977_v7 }
 0x444   : > { %v11927_v4 = vpop.permute.xlu0 %3872  ;;  %4859 = vmatmul.mubr.f32.gmra.mxu0 %v11734_v54  ;;  %4927 = vmatprep.subr.mxu1 %v11925_v3 }
 0x445   : > { %4946 = vmatprep.subr.mxu0 %v11933_v51  ;;  %4928 = vmatpush2.msra.mxu1 %v11849_v28  ;;  %v11986_v39 = vsel %vm541_vm1, %v3869_v35, %v11927_v4 }
 0x446   : > { %8714 = vmatprep.mubr.msk.f32.mxu1 %vm1279_vm0, %v11346_v63  ;;  %4947 = vmatpush1.msra.mxu0 %v11940_v41  ;;  %v3975_v48 = vpop.permute.xlu1 %3974 }
 0x447   : > { %4930 = vmatmul.mubr.f32.vlgmr.msra.gmra.mxu1 %v11717_v47  ;;  %4948 = vmatprep.subr.mxu0 %v11949_v27  ;;  %v4008_v33 = vsel %vm650_vm2, %v11887_v50, %v3975_v48  ;;  %v14583_v50 = vld [vmem:[#allocation30_spill] sm:$0xff] }
 0x448   : > { %5019 = vmatprep.subr.mxu1 %v11480_v40  ;;  %4949 = vmatpush1.msra.mxu0 %v11957_v36  ;;  %v11966_v52 = vpop.permute.xlu0 %3980 }
 0x449   : > { %5020 = vmatpush1.msra.mxu1 %v11465_v29  ;;  %4950 = vmatprep.subr.mxu0 %v11964_v55  ;;  %v12017_v8 = vsel %vm650_vm2, %v3977_v7, %v11966_v52 }
 0x44a   : > { %5021 = vmatprep.subr.mxu1 %v11460_v5  ;;  %8715 = vmatprep.mubr.msk.f32.mxu1 %vm1279_vm0, %v11728_v15  ;;  %v12037_v44 = vpop.permute.xlu1 %3874 }
 0x44b   : > { %4951 = vmatpush1.msra.mxu0 %v11912_v58  ;;  %5022 = vmatpush1.msra.mxu1 %v11441_v6  ;;  %v12125_v23 = vsel %vm541_vm1, %v11896_v60, %v12037_v44  ;;  %v14584_v60 = vld [vmem:[#allocation33_spill] sm:$0xff] }
 0x44c   : > { %4936 = vmatmul.mubr.f32.gmra.mxu1 %v11734_v54  ;;  %4952 = vmatprep.subr.mxu0 %v11979_v19  ;;  %v12002_v16 = vpop.permute.xlu0 %3978 }
 0x44d   : > { %5023 = vmatprep.subr.mxu1 %v11986_v39  ;;  %4953 = vmatpush1.msra.mxu0 %v11925_v3  ;;  %v12027_v37 = vsel %vm650_vm2, %v3975_v48, %v12002_v16 }
 0x44e   : > { %5024 = vmatpush1.msra.mxu1 %v11992_v32  ;;  %4954 = vmatprep.subr.mxu0 %v11419_v17  ;;  %v3985_v21 = vpop.permute.xlu1 %3984 }
 0x44f   : > { %5025 = vmatprep.subr.mxu1 %v12000_v61  ;;  %4955 = vmatpush1.msra.mxu0 %v11402_v18 }
 0x450   : > { %5026 = vmatpush1.msra.mxu1 %v12010_v56  ;;  %4956 = vmatprep.subr.mxu0 %v11412_v9  ;;  %v12039_v45 = vpop.permute.xlu0 %3982 }
 0x451   : > { %5027 = vmatprep.subr.mxu1 %v12017_v8  ;;  %4957 = vmatpush1.msra.mxu0 %v11386_v10 }
 0x452   : > { %5028 = vmatpush1.msra.mxu1 %v4009_v22  ;;  %4958 = vmatprep.subr.mxu0 %v11940_v41 }
 0x453   : > { %5029 = vmatprep.subr.mxu1 %v12027_v37  ;;  %4959 = vmatpush1.msra.mxu0 %v11789_v57 }
 0x454   : > { %5030 = vmatpush1.msra.mxu1 %v4008_v33  ;;  %4960 = vmatprep.subr.mxu0 %v11957_v36 }
 0x455   : > { %5031 = vmatprep.subr.mxu1 %v11465_v29  ;;  %4961 = vmatpush1.msra.mxu0 %v11821_v13 }
 0x456   : > { %5032 = vmatpush1.msra.mxu1 %v11450_v49  ;;  %4962 = vmatprep.subr.mxu0 %v11912_v58 }
 0x457   : > { %5033 = vmatprep.subr.mxu1 %v11441_v6  ;;  %4963 = vmatpush1.msra.mxu0 %v11826_v62 }
 0x458   : > { %5034 = vmatpush1.msra.mxu1 %v11433_v46  ;;  %4964 = vmatprep.subr.mxu0 %v11925_v3 }
 0x459   : > { %5035 = vmatprep.subr.mxu1 %v11992_v32  ;;  %4965 = vmatpush1.msra.mxu0 %v11849_v28 }
 0x45a   : > { %v12049_v38 = vpop.permute.xlu0 %3878  ;;  %5036 = vmatpush1.msra.mxu1 %v11933_v51  ;;  %4966 = vmatprep.subr.mxu0 %v11402_v18  ;;  %v14577_v18 = vld [vmem:[#allocation42_spill] sm:$0xff] }
 0x45b   : > { %5037 = vmatprep.subr.mxu1 %v12010_v56  ;;  %4967 = vmatpush1.msra.mxu0 %v11391_v30  ;;  %v12117_v28 = vsel %vm541_vm1, %v12037_v44, %v12049_v38 }
 0x45c   : > { %5038 = vmatpush1.msra.mxu1 %v11949_v27  ;;  %4968 = vmatprep.subr.mxu0 %v11386_v10  ;;  %v3877_v10 = vpop.permute.xlu1 %3876 }
 0x45d   : > { %5039 = vmatprep.subr.mxu1 %v4009_v22  ;;  %4969 = vmatpush1.msra.mxu0 %v11371_v0 }
 0x45e   : > { %v12058_v62 = vpop.permute.xlu0 %3986  ;;  %5040 = vmatpush1.msra.mxu1 %v11964_v55  ;;  %4970 = vmatprep.subr.mxu0 %v11789_v57  ;;  %v4004_v57 = vsel %vm650_vm2, %v12002_v16, %v12039_v45 }
 0x45f   : > { %5041 = vmatprep.subr.mxu1 %v4008_v33  ;;  %4971 = vmatpush1.msra.mxu0 %v11807_v20  ;;  %v12146_v34 = vsel %vm650_vm2, %v12039_v45, %v12058_v62 }
 0x460   : > { %5042 = vmatpush1.msra.mxu1 %v11979_v19  ;;  %4972 = vmatprep.subr.mxu0 %v11821_v13  ;;  %v3989_v30 = vpop.permute.xlu1 %3988 }
 0x461   : > { %5043 = vmatprep.subr.mxu1 %v11450_v49  ;;  %4973 = vmatpush1.msra.mxu0 %v11833_v31  ;;  %v14580_v49 = vld [vmem:[#allocation40_spill] sm:$0xff]  ;;  %v12106_v31 = vsel %vm541_vm1, %v11927_v4, %v3877_v10  ;;  %v12131_v14 = vsel %vm650_vm2, %v3985_v21, %v3989_v30 }
 0x462   : > { %5044 = vmatpush1.msra.mxu1 %v11419_v17  ;;  %5002 = vmatprep.subr.mxu0 %v4009_v22  ;;  %v3883_v0 = vpop.permute.xlu0 %3882 }
 0x463   : > { %5045 = vmatprep.subr.mxu1 %v11433_v46  ;;  %5003 = vmatpush2.msra.mxu0 %v11964_v55  ;;  %v14578_v46 = vld [vmem:[#allocation34_spill] sm:$0xff]  ;;  %v3890_v3 = vsel %vm541_vm1, %v3883_v0, %v11677_v12 }
 0x464   : > { %5046 = vmatpush1.msra.mxu1 %v11412_v9  ;;  %5004 = vmatprep.subr.mxu0 %v4008_v33  ;;  %v12083_v9 = vsel %vm650_vm2, %v11966_v52, %v3985_v21  ;;  %v3885_v20 = vpop.permute.xlu1 %3884  ;;  %v14587_v21 = vld [vmem:[#allocation36_spill] sm:$0xff] }
 0x465   : > { %5047 = vmatprep.subr.mxu1 %v11933_v51  ;;  %5005 = vmatpush2.msra.mxu0 %v11979_v19  ;;  %v3891_v42 = vsel %vm541_vm1, %v3885_v20, %v11644_v59  ;;  %v3892_v59 = vsel %vm541_vm1, %v12049_v38, %v3883_v0 }
 0x466   : > { %8716 = vmatprep.mubr.msk.f32.mxu0 %vm1279_vm0, %v11346_v63  ;;  %5048 = vmatpush1.msra.mxu1 %v11940_v41  ;;  %v3881_v17 = vpop.permute.xlu0 %3880  ;;  %v14579_v63 = vld [vmem:[#allocation41_spill] sm:$0xff] }
 0x467   : > { %5007 = vmatmul.mubr.f32.vlgmr.msra.gmra.mxu0 %v11717_v47  ;;  %5049 = vmatprep.subr.mxu1 %v11949_v27  ;;  %v12099_v13 = vsel %vm541_vm1, %v3877_v10, %v3881_v17  ;;  %v3893_v58 = vsel %vm541_vm1, %v3881_v17, %v3885_v20 }
 0x468   : > { %5096 = vmatprep.subr.mxu0 %v14577_v18  ;;  %5050 = vmatpush1.msra.mxu1 %v11957_v36  ;;  %v3993_v26 = vpop.permute.xlu1 %3992 }
 0x469   : > { %5097 = vmatpush1.msra.mxu0 %v14578_v46  ;;  %5079 = vmatprep.subr.mxu1 %v12083_v9  ;;  %v4001_v12 = vsel %vm650_vm2, %v3989_v30, %v3993_v26 }
 0x46a   : > { %5098 = vmatprep.subr.mxu0 %v14579_v63  ;;  %8717 = vmatprep.mubr.msk.f32.mxu0 %vm1279_vm0, %v11728_v15  ;;  %v12133_v53 = vpop.permute.xlu0 %3996 }
 0x46b   : > { %5080 = vmatpush2.msra.mxu1 %v12017_v8  ;;  %5099 = vmatpush1.msra.mxu0 %v14580_v49  ;;  %v12169_v51 = vsel %vm650_vm2, %v3993_v26, %v12133_v53  ;;  %v4033_v52 = vsel %vm650_vm2, %v12133_v53, %v11619_v2 }
 0x46c   : > { %5013 = vmatmul.mubr.f32.gmra.mxu0 %v11734_v54  ;;  %5081 = vmatprep.subr.mxu1 %v4004_v57  ;;  %v3991_v4 = vpop.permute.xlu1 %3990 }
 0x46d   : > { %5100 = vmatprep.subr.mxu0 %v12099_v13  ;;  %5082 = vmatpush2.msra.mxu1 %v12027_v37  ;;  %v4000_v27 = vsel %vm650_vm2, %v12058_v62, %v3991_v4 }
 0x46e   : > { %8718 = vmatprep.mubr.msk.f32.mxu1 %vm1279_vm0, %v12108_v24  ;;  %5101 = vmatpush1.msra.mxu0 %v12106_v31  ;;  %v12159_v35 = vpop.permute.xlu0 %3994 }
 0x46f   : > { %5084 = vmatmul.mubr.f32.vlgmr.msra.gmra.mxu1 %v11717_v47  ;;  %5102 = vmatprep.subr.mxu0 %v12117_v28  ;;  %v12179_v41 = vsel %vm650_vm2, %v3991_v4, %v12159_v35  ;;  %v4032_v19 = vsel %vm650_vm2, %v12159_v35, %v11653_v25 }
 0x470   : > { %5173 = vmatprep.subr.mxu1 %v14581_v43  ;;  %5103 = vmatpush1.msra.mxu0 %v12125_v23  ;;  %v5331_v43 = vld [vmem:[#allocation2 + $0x88] sm:$0xff] }
 0x471   : > { %5174 = vmatpush1.msra.mxu1 %v14582_v11  ;;  %5104 = vmatprep.subr.mxu0 %v12131_v14  ;;  %vm5368_vm5 = vcmp.ge.f32.partialorder %v5331_v43, 0.0 }
 0x472   : > { %5175 = vmatprep.subr.mxu1 %v14583_v50  ;;  %8719 = vmatprep.mubr.msk.f32.mxu1 %vm1279_vm0, %v11728_v15 }
 0x473   : > { %5105 = vmatpush1.msra.mxu0 %v12083_v9  ;;  %5176 = vmatpush1.msra.mxu1 %v14584_v60 }
 0x474   : > { %5090 = vmatmul.mubr.f32.gmra.mxu1 %v11734_v54  ;;  %5106 = vmatprep.subr.mxu0 %v12146_v34 }
 0x475   : > { %5177 = vmatprep.subr.mxu1 %v3891_v42  ;;  %5107 = vmatpush1.msra.mxu0 %v4004_v57 }
 0x476   : > { %5178 = vmatpush1.msra.mxu1 %v3893_v58  ;;  %5108 = vmatprep.subr.mxu0 %v14578_v46 }
 0x477   : > { %5179 = vmatprep.subr.mxu1 %v3890_v3  ;;  %5109 = vmatpush1.msra.mxu0 %v11480_v40 }
 0x478   : > { %5180 = vmatpush1.msra.mxu1 %v3892_v59  ;;  %5110 = vmatprep.subr.mxu0 %v14580_v49 }
 0x479   : > { %5181 = vmatprep.subr.mxu1 %v12169_v51  ;;  %5111 = vmatpush1.msra.mxu0 %v11460_v5 }
 0x47a   : > { %5182 = vmatpush1.msra.mxu1 %v4001_v12  ;;  %5112 = vmatprep.subr.mxu0 %v12106_v31 }
 0x47b   : > { %5183 = vmatprep.subr.mxu1 %v12179_v41  ;;  %5113 = vmatpush1.msra.mxu0 %v11986_v39  ;;  %v12251_v2 = vpop.permute.xlu0 %4620 }
 0x47c   : > { %5184 = vmatpush1.msra.mxu1 %v4000_v27  ;;  %5114 = vmatprep.subr.mxu0 %v12125_v23 }
 0x47d   : > { %5185 = vmatprep.subr.mxu1 %v14582_v11  ;;  %5115 = vmatpush1.msra.mxu0 %v12000_v61  ;;  %v14588_v11 = vld [vmem:[#allocation37_spill] sm:$0xff] }
 0x47e   : > { %5186 = vmatpush1.msra.mxu1 %v14577_v18  ;;  %5116 = vmatprep.subr.mxu0 %v12083_v9 }
 0x47f   : > { %5187 = vmatprep.subr.mxu1 %v14584_v60  ;;  %5117 = vmatpush1.msra.mxu0 %v12017_v8 }
 0x480   : > { %5188 = vmatpush1.msra.mxu1 %v14579_v63  ;;  %5118 = vmatprep.subr.mxu0 %v4004_v57 }
 0x481   : > { %5189 = vmatprep.subr.mxu1 %v3893_v58  ;;  %5119 = vmatpush1.msra.mxu0 %v12027_v37 }
 0x482   : > { %5190 = vmatpush1.msra.mxu1 %v12099_v13  ;;  %5120 = vmatprep.subr.mxu0 %v11480_v40  ;;  %v5314_v40 = vld [vmem:[#allocation2] sm:$0xff] }
 0x483   : > { %5191 = vmatprep.subr.mxu1 %v3892_v59  ;;  %5121 = vmatpush1.msra.mxu0 %v11465_v29  ;;  %v12206_v29 = vstv %s8724_s25  ;;  %vm5351_vm10 = vcmp.ge.f32.partialorder %v5314_v40, 0.0  ;;  %s8925_s25 = scalar_lea.vmem %s14284_s15, 256 }
 0x484   : > { %5192 = vmatpush1.msra.mxu1 %v12117_v28  ;;  %5122 = vmatprep.subr.mxu0 %v11460_v5  ;;  %v5388_v5 = vmul.f32 %v12206_v29, %v5314_v40  ;;  %v5405_v53 = vmul.f32 %v12206_v29, %v5331_v43  ;;  %p8926_p0 = scmp.ne.s32.totalorder %s14284_s15, %s8925_s25  ;;  %p8933_p8 = scmp.lt.s32.totalorder %s8931_s10, %s8925_s25 }
 0x485   : > { %5193 = vmatprep.subr.mxu1 %v4001_v12  ;;  %5123 = vmatpush1.msra.mxu0 %v11441_v6  ;;  %v5332_v6 = vld [vmem:[#allocation2 + $0x90] sm:$0xff] }
 0x486   : > { %5194 = vmatpush1.msra.mxu1 %v12131_v14  ;;  %5124 = vmatprep.subr.mxu0 %v11986_v39  ;;  %v5406_v36 = vmul.f32 %v12206_v29, %v5332_v6  ;;  %vm5369_vm11 = vcmp.ge.f32.partialorder %v5332_v6, 0.0  ;;  %v12223_v55 = vsel %vm5351_vm10, %v5314_v40, %v5388_v5  ;;  %v12316_v50 = vsel %vm5368_vm5, %v5331_v43, %v5405_v53  ;;  %v14593_v53 = vld [vmem:[#allocation22_spill] sm:$0xff]  ;;  %p8927_p3 = pnand %p8926_p0, %p14643_p2  ;;  %p8934_p10 = por %p8933_p8, %p8932_p4 }
 0x487   : > { %5195 = vmatprep.subr.mxu1 %v4000_v27  ;;  %5125 = vmatpush1.msra.mxu0 %v11992_v32 }
 0x488   : > { %5196 = vmatpush1.msra.mxu1 %v12146_v34  ;;  %5126 = vmatprep.subr.mxu0 %v12000_v61  ;;  %v12234_v7 = vsel %vm5369_vm11, %v5332_v6, %v5406_v36  ;;  %v14585_v61 = vld [vmem:[#allocation38_spill] sm:$0xff]  ;;  %p8928_p5 = pneg %p8927_p3 }
 0x489   : > { %5197 = vmatprep.subr.mxu1 %v14577_v18  ;;  %5127 = vmatpush1.msra.mxu0 %v12010_v56 }
 0x48a   : > { %5198 = vmatpush1.msra.mxu1 %v14578_v46  ;;  %5156 = vmatprep.subr.mxu0 %v4001_v12  ;;  %p8935_p11 = pnand %p8934_p10, %p8928_p5 }
 0x48b   : > { %5199 = vmatprep.subr.mxu1 %v14579_v63  ;;  %5157 = vmatpush2.msra.mxu0 %v12131_v14 }
 0x48c   : > { %5200 = vmatpush1.msra.mxu1 %v14580_v49  ;;  %5158 = vmatprep.subr.mxu0 %v4000_v27 }
 0x48d   : > { %5201 = vmatprep.subr.mxu1 %v12099_v13  ;;  %5159 = vmatpush2.msra.mxu0 %v12146_v34  ;;  %v5349_v34 = vld [vmem:[#allocation2 + $0x118] sm:$0xff] }
 0x48e   : > { %8720 = vmatprep.mubr.msk.f32.mxu0 %vm1279_vm0, %v12108_v24  ;;  %5202 = vmatpush1.msra.mxu1 %v12106_v31  ;;  %v5423_v58 = vmul.f32 %v12206_v29, %v5349_v34  ;;  %vm5386_vm7 = vcmp.ge.f32.partialorder %v5349_v34, 0.0 }
 0x48f   : > { %5161 = vmatmul.mubr.f32.vlgmr.msra.gmra.mxu0 %v11717_v47  ;;  %5203 = vmatprep.subr.mxu1 %v12117_v28 }
 0x490   : > { %5204 = vmatpush1.msra.mxu1 %v12125_v23  ;;  %8721 = vmatprep.mubr.msk.f32.mxu0 %vm1279_vm0, %v11728_v15  ;;  %v12332_v12 = vsel %vm5386_vm7, %v5349_v34, %v5423_v58 }
 0x491   : > { %5233 = vmatprep.subr.mxu1 %v4033_v52  ;;  %8722 = vmatprep.mubr.msk.f32.mxu1 %vm1279_vm0, %v12108_v24  ;;  %14589 = vst [vmem:[#allocation42_spill] sm:$0xff] %v12332_v12 }
 0x492   : > { %5234 = vmatpush2.msra.mxu1 %v12169_v51  ;;  %5460 = vrot.lane.b32.xlu0 %v12223_v55, %s9019_s14 }
 0x493   : > { %5167 = vmatmul.mubr.f32.gmra.mxu0 %v11734_v54  ;;  %5235 = vmatprep.subr.mxu1 %v4032_v19 }
 0x494   : > { %5236 = vmatpush2.msra.mxu1 %v12179_v41  ;;  %5462 = vrot.lane.b32.xlu1 %v12234_v7, %s9019_s14  ;;  %v14590_v41 = vld [vmem:[#allocation21_spill] sm:$0xff] }
 0x495   : > { %5238 = vmatmul.mubr.f32.vlgmr.msra.gmra.mxu1 %v11717_v47  ;;  %v14586_v47 = vld [vmem:[#allocation39_spill] sm:$0xff] }
 0x496   : > { %8723 = vmatprep.mubr.msk.f32.mxu1 %vm1279_vm0, %v11728_v15 }
 0x499   : > { %5244 = vmatmul.mubr.f32.gmra.mxu1 %v11734_v54  ;;  %v12260_v54 = vpop.permute.xlu1 %4625 }
 0x4d7   : > { %v4700_v25 = vpop.f32.mrf.mxu0 }
 0x4d8   : > { %v4701_v39 = vadd.f32 %v4700_v25, %v12251_v2 }
 0x4d9   : > { %v4702_v32 = vpop.f32.mrf.mxu0 }
 0x4da   : > { %v5250_v16 = vmul.f32 %v4701_v39, %v14585_v61  ;;  %v4703_v56 = vadd.f32 %v4702_v32, %v12251_v2 }
 0x4dc   : > { %v4706_v48 = vpop.f32.mrf.mxu0  ;;  %vm5352_vm12 = vcmp.ge.f32.partialorder %v5250_v16, 0.0  ;;  %v5389_v8 = vmul.f32 %v12206_v29, %v5250_v16  ;;  %v5251_v22 = vmul.f32 %v4703_v56, %v14586_v47 }
 0x4dd   : > { %v4707_v0 = vadd.f32 %v4706_v48, %v12260_v54 }
 0x4de   : > { %v4708_v37 = vpop.f32.mrf.mxu0  ;;  %v12258_v15 = vsel %vm5352_vm12, %v5250_v16, %v5389_v8  ;;  %v5390_v10 = vmul.f32 %v12206_v29, %v5251_v22  ;;  %vm5353_vm13 = vcmp.ge.f32.partialorder %v5251_v22, 0.0  ;;  %v14591_v8 = vld [vmem:[#allocation23_spill] sm:$0xff] }
 0x4df   : > { %v4777_v33 = vpop.f32.mrf.mxu1  ;;  %5464 = vrot.lane.b32.xlu0 %v12258_v15, %s9019_s14  ;;  %v4709_v44 = vadd.f32 %v4708_v37, %v12260_v54  ;;  %v5266_v57 = vmul.f32 %v4707_v0, %v14585_v61  ;;  %v14592_v37 = vld [vmem:[#allocation19_spill] sm:$0xff] }
 0x4e0   : > { %v4778_v45 = vadd.f32 %v4777_v33, %v12251_v2  ;;  %v12275_v63 = vsel %vm5353_vm13, %v5251_v22, %v5390_v10 }
 0x4e1   : > { %v4779_v38 = vpop.f32.mrf.mxu1  ;;  %v5267_v18 = vmul.f32 %v4709_v44, %v14586_v47  ;;  %v5407_v24 = vmul.f32 %v12206_v29, %v5266_v57  ;;  %vm5370_vm4 = vcmp.ge.f32.partialorder %v5266_v57, 0.0 }
 0x4e2   : > { %v5252_v62 = vmul.f32 %v4778_v45, %v14587_v21  ;;  %v4780_v14 = vadd.f32 %v4779_v38, %v12251_v2  ;;  %v12359_v38 = vld [vmem:[#allocation9 + $0x68] sm:$0xff] }
 0x4e3   : > { %v4783_v30 = vpop.f32.mrf.mxu1  ;;  %5572 = vrot.lane.b32.xlu0 %v12258_v15, %s9020_s7  ;;  %v5408_v13 = vmul.f32 %v12206_v29, %v5267_v18  ;;  %vm5371_vm3 = vcmp.ge.f32.partialorder %v5267_v18, 0.0  ;;  %v12301_v23 = vsel %vm5370_vm4, %v5266_v57, %v5407_v24  ;;  %8727 = vmatprep.mubr.msk.f32.mxu0 %vm1279_vm0, %v12359_v38 }
 0x4e4   : > { %v4784_v9 = vadd.f32 %v4783_v30, %v12260_v54  ;;  %vm5354_vm14 = vcmp.ge.f32.partialorder %v5252_v62, 0.0  ;;  %v5391_v17 = vmul.f32 %v12206_v29, %v5252_v62  ;;  %v5253_v26 = vmul.f32 %v4780_v14, %v14588_v11  ;;  %8729 = vmatprep.mubr.msk.f32.mxu1 %vm1279_vm0, %v12359_v38 }
 0x4e5   : > { %v12294_v28 = vsel %vm5371_vm3, %v5267_v18, %v5408_v13  ;;  %v4785_v42 = vpop.f32.mrf.mxu1 }
 0x4e6   : > { %v5268_v46 = vmul.f32 %v4784_v9, %v14587_v21  ;;  %v12277_v49 = vsel %vm5354_vm14, %v5252_v62, %v5391_v17  ;;  %v5392_v60 = vmul.f32 %v12206_v29, %v5253_v26  ;;  %vm5355_vm6 = vcmp.ge.f32.partialorder %v5253_v26, 0.0 }
 0x4e7   : > { %5468 = vrot.lane.b32.xlu0 %v12275_v63, %s9019_s14  ;;  %5472 = vrot.lane.b32.xlu1 %v12277_v49, %s9019_s14  ;;  %v4786_v35 = vadd.f32 %v4785_v42, %v12260_v54 }
 0x4e8   : > { %vm5372_vm15 = vcmp.ge.f32.partialorder %v5268_v46, 0.0  ;;  %v5409_v20 = vmul.f32 %v12206_v29, %v5268_v46  ;;  %v12324_v3 = vsel %vm5355_vm6, %v5253_v26, %v5392_v60 }
 0x4e9   : > { %v5269_v40 = vmul.f32 %v4786_v35, %v14588_v11 }
 0x4ea   : > { %v12286_v31 = vsel %vm5372_vm15, %v5268_v46, %v5409_v20 }
 0x4eb   : > { %5576 = vrot.lane.b32.xlu0 %v12275_v63, %s9020_s7  ;;  %5580 = vrot.lane.b32.xlu1 %v12277_v49, %s9020_s7  ;;  %v5410_v32 = vmul.f32 %v12206_v29, %v5269_v40  ;;  %vm5373_vm9 = vcmp.ge.f32.partialorder %v5269_v40, 0.0 }
 0x4ec   : > { %6276 = vmatprep.subr.mxu0 %v12286_v31 }
 0x4ed   : > { %6277 = vmatpush1.msra.mxu0 %v12294_v28  ;;  %v12357_v45 = vsel %vm5373_vm9, %v5269_v40, %v5410_v32 }
 0x4ee   : > { %6278 = vmatprep.subr.mxu0 %v12277_v49 }
 0x4ef   : > { %6279 = vmatpush1.msra.mxu0 %v12275_v63  ;;  %5474 = vrot.lane.b32.xlu0 %v12286_v31, %s9019_s14 }
 0x4f0   : > { %5466 = vrot.lane.b32.xlu1 %v12301_v23, %s9019_s14 }
 0x4f3   : > { %5582 = vrot.lane.b32.xlu0 %v12286_v31, %s9020_s7 }
 0x4f4   : > { %5574 = vrot.lane.b32.xlu1 %v12301_v23, %s9020_s7 }
 0x4f7   : > { %5568 = vrot.lane.b32.xlu0 %v12223_v55, %s9020_s7 }
 0x4f8   : > { %5470 = vrot.lane.b32.xlu1 %v12294_v28, %s9019_s14 }
 0x4fb   : > { %5528 = vrot.lane.b32.xlu0 %v12316_v50, %s9019_s14 }
 0x4fc   : > { %5578 = vrot.lane.b32.xlu1 %v12294_v28, %s9020_s7 }
 0x4ff   : > { %v4854_v59 = vpop.f32.mrf.mxu0  ;;  %5584 = vrot.lane.b32.xlu0 %v12324_v3, %s9020_s7 }
 0x500   : > { %v4855_v4 = vadd.f32 %v4854_v59, %v12251_v2  ;;  %5570 = vrot.lane.b32.xlu1 %v12234_v7, %s9020_s7 }
 0x501   : > { %v4856_v51 = vpop.f32.mrf.mxu0 }
 0x502   : > { %v5254_v27 = vmul.f32 %v4855_v4, %v14590_v41  ;;  %v4857_v19 = vadd.f32 %v4856_v51, %v12251_v2 }
 0x504   : > { %v4860_v6 = vpop.f32.mrf.mxu0  ;;  %5530 = vrot.lane.b32.xlu1 %v12332_v12, %s9019_s14  ;;  %vm5356_vm8 = vcmp.ge.f32.partialorder %v5254_v27, 0.0  ;;  %v5393_v5 = vmul.f32 %v12206_v29, %v5254_v27  ;;  %v5255_v33 = vmul.f32 %v4857_v19, %v14592_v37 }
 0x505   : > { %v4861_v36 = vadd.f32 %v4860_v6, %v12260_v54  ;;  %v14594_v6 = vld [vmem:[#allocation24_spill] sm:$0xff] }
 0x506   : > { %v12340_v52 = vsel %vm5356_vm8, %v5254_v27, %v5393_v5  ;;  %v4862_v62 = vpop.f32.mrf.mxu0  ;;  %v5394_v46 = vmul.f32 %v12206_v29, %v5255_v33  ;;  %vm5357_vm12 = vcmp.ge.f32.partialorder %v5255_v33, 0.0 }
 0x507   : > { %v5270_v25 = vmul.f32 %v4861_v36, %v14590_v41  ;;  %v4931_v39 = vpop.f32.mrf.mxu1  ;;  %5480 = vrot.lane.b32.xlu0 %v12340_v52, %s9019_s14  ;;  %v4863_v9 = vadd.f32 %v4862_v62, %v12260_v54 }
 0x508   : > { %v4932_v16 = vadd.f32 %v4931_v39, %v12251_v2  ;;  %5476 = vrot.lane.b32.xlu1 %v12324_v3, %s9019_s14  ;;  %v12386_v13 = vsel %vm5357_vm12, %v5255_v33, %v5394_v46 }
 0x509   : > { %v4933_v56 = vpop.f32.mrf.mxu1  ;;  %vm5374_vm10 = vcmp.ge.f32.partialorder %v5270_v25, 0.0  ;;  %v5411_v48 = vmul.f32 %v12206_v29, %v5270_v25  ;;  %v5271_v20 = vmul.f32 %v4863_v9, %v14592_v37 }
 0x50a   : > { %v5256_v22 = vmul.f32 %v4932_v16, %v14591_v8  ;;  %v4934_v24 = vadd.f32 %v4933_v56, %v12251_v2 }
 0x50b   : > { %v12353_v44 = vsel %vm5374_vm10, %v5270_v25, %v5411_v48  ;;  %5588 = vrot.lane.b32.xlu0 %v12340_v52, %s9020_s7  ;;  %v5412_v14 = vmul.f32 %v12206_v29, %v5271_v20  ;;  %vm5375_vm14 = vcmp.ge.f32.partialorder %v5271_v20, 0.0  ;;  %v14595_v25 = vld [vmem:[#allocation25_spill] sm:$0xff] }
 0x50c   : > { %v4937_v10 = vpop.f32.mrf.mxu1  ;;  %6353 = vmatprep.subr.mxu1 %v12353_v44  ;;  %5586 = vrot.lane.b32.xlu1 %v12357_v45, %s9020_s7  ;;  %vm5358_vm11 = vcmp.ge.f32.partialorder %v5256_v22, 0.0  ;;  %v5395_v0 = vmul.f32 %v12206_v29, %v5256_v22  ;;  %v5257_v26 = vmul.f32 %v4934_v24, %v14593_v53 }
 0x50d   : > { %v4938_v30 = vadd.f32 %v4937_v10, %v12260_v54  ;;  %6354 = vmatpush1.msra.mxu1 %v12357_v45  ;;  %v12401_v60 = vsel %vm5375_vm14, %v5271_v20, %v5412_v14 }
 0x50e   : > { %6355 = vmatprep.subr.mxu1 %v12340_v52  ;;  %v12370_v18 = vsel %vm5358_vm11, %v5256_v22, %v5395_v0  ;;  %v4939_v34 = vpop.f32.mrf.mxu1  ;;  %v5396_v42 = vmul.f32 %v12206_v29, %v5257_v26  ;;  %vm5359_vm15 = vcmp.ge.f32.partialorder %v5257_v26, 0.0 }
 0x50f   : > { %v5272_v17 = vmul.f32 %v4938_v30, %v14591_v8  ;;  %6356 = vmatpush1.msra.mxu1 %v12324_v3  ;;  %5488 = vrot.lane.b32.xlu0 %v12370_v18, %s9019_s14  ;;  %v4940_v58 = vadd.f32 %v4939_v34, %v12260_v54 }
 0x510   : > { %5478 = vrot.lane.b32.xlu1 %v12357_v45, %s9019_s14  ;;  %v12411_v35 = vsel %vm5359_vm15, %v5257_v26, %v5396_v42 }
 0x511   : > { %v5413_v57 = vmul.f32 %v12206_v29, %v5272_v17  ;;  %vm5376_vm13 = vcmp.ge.f32.partialorder %v5272_v17, 0.0  ;;  %v5273_v59 = vmul.f32 %v4940_v58, %v14593_v53 }
 0x513   : > { %5482 = vrot.lane.b32.xlu0 %v12353_v44, %s9019_s14  ;;  %v12391_v43 = vsel %vm5376_vm13, %v5272_v17, %v5413_v57  ;;  %v5414_v51 = vmul.f32 %v12206_v29, %v5273_v59  ;;  %vm5377_vm3 = vcmp.ge.f32.partialorder %v5273_v59, 0.0  ;;  %v14596_v17 = vld [vmem:[#allocation26_spill] sm:$0xff] }
 0x514   : > { %5484 = vrot.lane.b32.xlu1 %v12386_v13, %s9019_s14 }
 0x515   : > { %v12424_v19 = vsel %vm5377_vm3, %v5273_v59, %v5414_v51 }
 0x517   : > { %5490 = vrot.lane.b32.xlu0 %v12391_v43, %s9019_s14 }
 0x518   : > { %5590 = vrot.lane.b32.xlu1 %v12353_v44, %s9020_s7 }
 0x51b   : > { %5598 = vrot.lane.b32.xlu0 %v12391_v43, %s9020_s7 }
 0x51c   : > { %5486 = vrot.lane.b32.xlu1 %v12401_v60, %s9019_s14 }
 0x51f   : > { %5596 = vrot.lane.b32.xlu0 %v12370_v18, %s9020_s7 }
 0x520   : > { %5594 = vrot.lane.b32.xlu1 %v12401_v60, %s9020_s7 }
 0x523   : > { %5600 = vrot.lane.b32.xlu0 %v12411_v35, %s9020_s7 }
 0x524   : > { %5592 = vrot.lane.b32.xlu1 %v12386_v13, %s9020_s7 }
 0x527   : > { %v5008_v4 = vpop.f32.mrf.mxu0 }
 0x528   : > { %v5009_v27 = vadd.f32 %v5008_v4, %v12251_v2  ;;  %5492 = vrot.lane.b32.xlu1 %v12411_v35, %s9019_s14 }
 0x529   : > { %v5010_v40 = vpop.f32.mrf.mxu0 }
 0x52a   : > { %v5258_v5 = vmul.f32 %v5009_v27, %v14594_v6  ;;  %v5011_v36 = vadd.f32 %v5010_v40, %v12251_v2 }
 0x52c   : > { %v5259_v39 = vmul.f32 %v5011_v36, %v14595_v25  ;;  %v5014_v32 = vpop.f32.mrf.mxu0  ;;  %vm5360_vm4 = vcmp.ge.f32.partialorder %v5258_v5, 0.0  ;;  %v5397_v16 = vmul.f32 %v12206_v29, %v5258_v5  ;;  %5602 = vrot.lane.b32.xlu1 %v12424_v19, %s9020_s7 }
 0x52d   : > { %v5015_v56 = vadd.f32 %v5014_v32, %v12260_v54 }
 0x52e   : > { %v5016_v48 = vpop.f32.mrf.mxu0  ;;  %v12431_v22 = vsel %vm5360_vm4, %v5258_v5, %v5397_v16  ;;  %v5398_v0 = vmul.f32 %v12206_v29, %v5259_v39  ;;  %vm5361_vm5 = vcmp.ge.f32.partialorder %v5259_v39, 0.0 }
 0x52f   : > { %v5274_v33 = vmul.f32 %v5015_v56, %v14594_v6  ;;  %v5017_v62 = vadd.f32 %v5016_v48, %v12260_v54  ;;  %v5085_v10 = vpop.f32.mrf.mxu1  ;;  %5496 = vrot.lane.b32.xlu0 %v12431_v22, %s9019_s14 }
 0x530   : > { %v5086_v30 = vadd.f32 %v5085_v10, %v12251_v2  ;;  %5494 = vrot.lane.b32.xlu1 %v12424_v19, %s9019_s14  ;;  %v12445_v20 = vsel %vm5361_vm5, %v5259_v39, %v5398_v0  ;;  %v14597_v39 = vld [vmem:[#allocation27_spill] sm:$0xff]  ;;  %v12495_v0 = vpop.permute.xlu0 %5460 }
 0x531   : > { %v5087_v9 = vpop.f32.mrf.mxu1  ;;  %v5275_v57 = vmul.f32 %v5017_v62, %v14595_v25  ;;  %v5415_v24 = vmul.f32 %v12206_v29, %v5274_v33  ;;  %vm5378_vm7 = vcmp.ge.f32.partialorder %v5274_v33, 0.0 }
 0x532   : > { %v5260_v46 = vmul.f32 %v5086_v30, %v14596_v17  ;;  %v5088_v27 = vadd.f32 %v5087_v9, %v12251_v2 }
 0x533   : > { %5604 = vrot.lane.b32.xlu0 %v12431_v22, %s9020_s7  ;;  %v12457_v59 = vsel %vm5378_vm7, %v5274_v33, %v5415_v24  ;;  %v5416_v4 = vmul.f32 %v12206_v29, %v5275_v57  ;;  %vm5379_vm8 = vcmp.ge.f32.partialorder %v5275_v57, 0.0  ;;  %v14598_v24 = vld [vmem:[#allocation28_spill] sm:$0xff] }
 0x534   : > { %v5091_v14 = vpop.f32.mrf.mxu1  ;;  %vm5362_vm6 = vcmp.ge.f32.partialorder %v5260_v46, 0.0  ;;  %v5399_v26 = vmul.f32 %v12206_v29, %v5260_v46  ;;  %5500 = vrot.lane.b32.xlu1 %v12445_v20, %s9019_s14  ;;  %v5261_v32 = vmul.f32 %v5088_v27, %v14597_v39 }
 0x535   : > { %v5092_v34 = vadd.f32 %v5091_v14, %v12260_v54  ;;  %v12466_v40 = vsel %vm5379_vm8, %v5275_v57, %v5416_v4  ;;  %v14599_v4 = vld [vmem:[#allocation20_spill] sm:$0xff] }
 0x536   : > { %v12452_v42 = vsel %vm5362_vm6, %v5260_v46, %v5399_v26  ;;  %v5093_v5 = vpop.f32.mrf.mxu1  ;;  %v5400_v48 = vmul.f32 %v12206_v29, %v5261_v32  ;;  %vm5363_vm10 = vcmp.ge.f32.partialorder %v5261_v32, 0.0 }
 0x537   : > { %v5276_v58 = vmul.f32 %v5092_v34, %v14596_v17  ;;  %5504 = vrot.lane.b32.xlu0 %v12452_v42, %s9019_s14  ;;  %v5094_v16 = vadd.f32 %v5093_v5, %v12260_v54 }
 0x538   : > { %5606 = vrot.lane.b32.xlu1 %v12457_v59, %s9020_s7  ;;  %v12486_v33 = vsel %vm5363_vm10, %v5261_v32, %v5400_v48 }
 0x539   : > { %v5417_v51 = vmul.f32 %v12206_v29, %v5276_v58  ;;  %vm5380_vm9 = vcmp.ge.f32.partialorder %v5276_v58, 0.0  ;;  %v5277_v56 = vmul.f32 %v5094_v16, %v14597_v39 }
 0x53b   : > { %5498 = vrot.lane.b32.xlu0 %v12457_v59, %s9019_s14  ;;  %v12470_v36 = vsel %vm5380_vm9, %v5276_v58, %v5417_v51  ;;  %v5418_v62 = vmul.f32 %v12206_v29, %v5277_v56  ;;  %vm5381_vm11 = vcmp.ge.f32.partialorder %v5277_v56, 0.0  ;;  %v12506_v58 = vpop.permute.xlu1 %5462 }
 0x53c   : > { %5502 = vrot.lane.b32.xlu1 %v12466_v40, %s9019_s14 }
 0x53d   : > { %v12493_v10 = vsel %vm5381_vm11, %v5277_v56, %v5418_v62 }
 0x53f   : > { %5506 = vrot.lane.b32.xlu0 %v12470_v36, %s9019_s14 }
 0x540   : > { %5610 = vrot.lane.b32.xlu1 %v12466_v40, %s9020_s7 }
 0x543   : > { %5614 = vrot.lane.b32.xlu0 %v12470_v36, %s9020_s7 }
 0x544   : > { %5608 = vrot.lane.b32.xlu1 %v12445_v20, %s9020_s7 }
 0x547   : > { %5612 = vrot.lane.b32.xlu0 %v12452_v42, %s9020_s7 }
 0x548   : > { %5508 = vrot.lane.b32.xlu1 %v12486_v33, %s9019_s14 }
 0x54b   : > { %5616 = vrot.lane.b32.xlu0 %v12486_v33, %s9020_s7 }
 0x54c   : > { %5618 = vrot.lane.b32.xlu1 %v12493_v10, %s9020_s7 }
 0x54f   : > { %v5162_v30 = vpop.f32.mrf.mxu0 }
 0x550   : > { %v5163_v9 = vadd.f32 %v5162_v30, %v12251_v2  ;;  %5510 = vrot.lane.b32.xlu1 %v12493_v10, %s9019_s14 }
 0x551   : > { %v5164_v46 = vpop.f32.mrf.mxu0  ;;  %v12502_v57 = vpop.permute.xlu0 %5464 }
 0x552   : > { %v5262_v14 = vmul.f32 %v5163_v9, %v14598_v24  ;;  %v5165_v26 = vadd.f32 %v5164_v46, %v12251_v2 }
 0x553   : > { %v5168_v34 = vpop.f32.mrf.mxu0 }
 0x554   : > { %v5263_v51 = vmul.f32 %v5165_v26, %v14599_v4  ;;  %v5169_v27 = vadd.f32 %v5168_v34, %v12260_v54  ;;  %vm5364_vm12 = vcmp.ge.f32.partialorder %v5262_v14, 0.0  ;;  %v5401_v5 = vmul.f32 %v12206_v29, %v5262_v14  ;;  %v14600_v34 = vld [vmem:[#allocation29_spill] sm:$0xff] }
 0x555   : > { %v5170_v32 = vpop.f32.mrf.mxu0  ;;  %v5239_v16 = vpop.f32.mrf.mxu1 }
 0x556   : > { %v5278_v56 = vmul.f32 %v5169_v27, %v14598_v24  ;;  %v5171_v48 = vadd.f32 %v5170_v32, %v12260_v54  ;;  %v5240_v62 = vadd.f32 %v5239_v16, %v12251_v2  ;;  %v12514_v30 = vsel %vm5364_vm12, %v5262_v14, %v5401_v5  ;;  %v12516_v9 = vpop.permute.xlu0 %5572 }
 0x557   : > { %v5241_v46 = vpop.f32.mrf.mxu1  ;;  %5512 = vrot.lane.b32.xlu0 %v12514_v30, %s9019_s14  ;;  %vm5365_vm13 = vcmp.ge.f32.partialorder %v5263_v51, 0.0  ;;  %v5402_v26 = vmul.f32 %v12206_v29, %v5263_v51 }
 0x558   : > { %v5264_v39 = vmul.f32 %v5240_v62, %v14600_v34  ;;  %v5279_v17 = vmul.f32 %v5171_v48, %v14599_v4  ;;  %v5419_v32 = vmul.f32 %v12206_v29, %v5278_v56  ;;  %vm5382_vm14 = vcmp.ge.f32.partialorder %v5278_v56, 0.0 }
 0x559   : > { %v5245_v27 = vpop.f32.mrf.mxu1  ;;  %v12523_v24 = vsel %vm5365_vm13, %v5263_v51, %v5402_v26  ;;  %v12526_v14 = vpop.permute.xlu1 %5472  ;;  %v5242_v8 = vadd.f32 %v5241_v46, %v12251_v2 }
 0x55a   : > { %14601 = vst [vmem:[#allocation34_spill] sm:$0xff] %v12523_v24  ;;  %v5246_v5 = vadd.f32 %v5245_v27, %v12260_v54  ;;  %5516 = vrot.lane.b32.xlu1 %v12523_v24, %s9019_s14  ;;  %v5403_v16 = vmul.f32 %v12206_v29, %v5264_v39  ;;  %v5469_v25 = vpop.permute.xlu0 %5468  ;;  %vm5366_vm15 = vcmp.ge.f32.partialorder %v5264_v39, 0.0  ;;  %v12534_v48 = vsel %vm5382_vm14, %v5278_v56, %v5419_v32 }
 0x55b   : > { %5620 = vrot.lane.b32.xlu0 %v12514_v30, %s9020_s7  ;;  %v5420_v51 = vmul.f32 %v12206_v29, %v5279_v17  ;;  %v5247_v27 = vpop.f32.mrf.mxu1  ;;  %vm5383_vm3 = vcmp.ge.f32.partialorder %v5279_v17, 0.0 }
 0x55c   : > { %v5280_v26 = vmul.f32 %v5246_v5, %v14600_v34  ;;  %v12540_v4 = vsel %vm5366_vm15, %v5264_v39, %v5403_v16  ;;  %v5248_v56 = vadd.f32 %v5247_v27, %v12260_v54  ;;  %v14602_v16 = vld [vmem:[#allocation32_spill] sm:$0xff] }
 0x55d   : > { %v12537_v62 = vpop.permute.xlu1 %5580  ;;  %v12547_v32 = vsel %vm5383_vm3, %v5279_v17, %v5420_v51  ;;  %v5265_v27 = vmul.f32 %v5242_v8, %v14602_v16 }
 0x55e   : > { %5622 = vrot.lane.b32.xlu1 %v12534_v48, %s9020_s7  ;;  %v5577_v6 = vpop.permute.xlu0 %5576  ;;  %v5421_v5 = vmul.f32 %v12206_v29, %v5280_v26  ;;  %vm5384_vm4 = vcmp.ge.f32.partialorder %v5280_v26, 0.0  ;;  %v5281_v53 = vmul.f32 %v5248_v56, %v14602_v16 }
 0x55f   : > { %5520 = vrot.lane.b32.xlu0 %v12540_v4, %s9019_s14  ;;  %v5404_v16 = vmul.f32 %v12206_v29, %v5265_v27  ;;  %vm5367_vm6 = vcmp.ge.f32.partialorder %v5265_v27, 0.0 }
 0x560   : > { %v12558_v37 = vsel %vm5384_vm4, %v5280_v26, %v5421_v5  ;;  %v5422_v51 = vmul.f32 %v12206_v29, %v5281_v53  ;;  %vm5385_vm5 = vcmp.ge.f32.partialorder %v5281_v53, 0.0  ;;  %v12590_v5 = vsel %vm541_vm1, %v5469_v25, %v12526_v14 }
 0x561   : > { %v12619_v11 = vsel %vm5367_vm6, %v5265_v27, %v5404_v16 }
 0x562   : > { %5518 = vrot.lane.b32.xlu1 %v12547_v32, %s9019_s14  ;;  %v12552_v34 = vpop.permute.xlu0 %5474  ;;  %v5467_v39 = vpop.permute.xlu1 %5466  ;;  %v12584_v8 = vsel %vm5385_vm5, %v5281_v53, %v5422_v51  ;;  %v12599_v53 = vsel %vm541_vm1, %v12502_v57, %v5469_v25  ;;  %v12617_v25 = vsel %vm650_vm2, %v5577_v6, %v12537_v62  ;;  %14606 = vst [vmem:[#allocation35_spill] sm:$0xff] %v12619_v11 }
 0x563   : > { %5514 = vrot.lane.b32.xlu0 %v12534_v48, %s9019_s14  ;;  %14604 = vst [vmem:[#allocation40_spill] sm:$0xff] %v12584_v8  ;;  %v5565_v27 = vsel %vm541_vm1, %v12506_v58, %v5467_v39 }
 0x566   : > { %5626 = vrot.lane.b32.xlu1 %v12547_v32, %s9020_s7  ;;  %v12562_v54 = vpop.permute.xlu0 %5582  ;;  %v5575_v17 = vpop.permute.xlu1 %5574 }
 0x567   : > { %5522 = vrot.lane.b32.xlu0 %v12558_v37, %s9019_s14 }
 0x56a   : > { %5624 = vrot.lane.b32.xlu1 %v12523_v24, %s9020_s7  ;;  %v12570_v2 = vpop.permute.xlu0 %5568  ;;  %v5471_v46 = vpop.permute.xlu1 %5470 }
 0x56b   : > { %14603 = vst [vmem:[#allocation41_spill] sm:$0xff] %v12570_v2  ;;  %5630 = vrot.lane.b32.xlu0 %v12558_v37, %s9020_s7  ;;  %v12577_v26 = vsel %vm541_vm1, %v5471_v46, %v12552_v34  ;;  %v12581_v56 = vsel %vm541_vm1, %v5467_v39, %v5471_v46  ;;  %v8725_v39 = vld [vmem:[%s14341_s4 + $0x30] sm:$0xff] }
 0x56c   : > { %6280 = vmatprep.subr.mxu0 %v12577_v26 }
 0x56d   : > { %6281 = vmatpush1.msra.mxu0 %v12581_v56 }
 0x56e   : > { %5634 = vrot.lane.b32.xlu1 %v12584_v8, %s9020_s7  ;;  %6282 = vmatprep.subr.mxu0 %v12590_v5  ;;  %v5579_v46 = vpop.permute.xlu1 %5578  ;;  %v12603_v51 = vpop.permute.xlu0 %5528 }
 0x56f   : > { %5628 = vrot.lane.b32.xlu0 %v12540_v4, %s9020_s7  ;;  %14605 = vst [vmem:[#allocation31_spill] sm:$0xff] %v12603_v51  ;;  %6283 = vmatpush1.msra.mxu0 %v12599_v53  ;;  %v12609_v29 = vsel %vm650_vm2, %v5579_v46, %v12562_v54  ;;  %v5671_v41 = vsel %vm650_vm2, %v5575_v17, %v5579_v46 }
 0x570   : > { %6284 = vmatprep.subr.mxu0 %v12609_v29  ;;  %v5670_v46 = vsel %vm650_vm2, %v12516_v9, %v5577_v6  ;;  %v8726_v6 = vld [vmem:[%s14341_s4 + $0x38] sm:$0xff] }
 0x571   : > { %6285 = vmatpush1.msra.mxu0 %v5671_v41 }
 0x572   : > { %5526 = vrot.lane.b32.xlu1 %v12584_v8, %s9019_s14  ;;  %6286 = vmatprep.subr.mxu0 %v12617_v25  ;;  %v12624_v21 = vpop.permute.xlu1 %5570  ;;  %v12632_v47 = vpop.permute.xlu0 %5584 }
 0x573   : > { %14607 = vst [vmem:[#allocation30_spill] sm:$0xff] %v12624_v21  ;;  %5632 = vrot.lane.b32.xlu0 %v12619_v11, %s9020_s7  ;;  %6287 = vmatpush1.msra.mxu0 %v5670_v46 }
 0x574   : > { %6288 = vmatprep.subr.mxu0 %v12294_v28 }
 0x575   : > { %6289 = vmatpush1.msra.mxu0 %v12301_v23 }
 0x576   : > { %5638 = vrot.lane.b32.xlu1 %v12332_v12, %s9020_s7  ;;  %6290 = vmatprep.subr.mxu0 %v12275_v63  ;;  %v12638_v16 = vpop.permute.xlu1 %5530 }
 0x577   : > { %5524 = vrot.lane.b32.xlu0 %v12619_v11, %s9019_s14  ;;  %6291 = vmatpush1.msra.mxu0 %v12258_v15  ;;  %v5564_v11 = vsel %vm541_vm1, %v12495_v0, %v12502_v57  ;;  %v5672_v57 = vsel %vm650_vm2, %v12570_v2, %v12516_v9 }
 0x578   : > { %6292 = vmatprep.subr.mxu0 %v12581_v56 }
 0x579   : > { %6293 = vmatpush1.msra.mxu0 %v5565_v27  ;;  %v12650_v61 = vpop.permute.xlu0 %5480 }
 0x57a   : > { %6267 = vperm.xlu1 %8856, %v8726_v6   ;;  %6294 = vmatprep.subr.mxu0 %v12599_v53  ;;  %v5477_v8 = vpop.permute.xlu1 %5476  ;;  %v5673_v6 = vsel %vm650_vm2, %v12624_v21, %v5575_v17 }
 0x57b   : > { %5636 = vrot.lane.b32.xlu0 %v12316_v50, %s9020_s7  ;;  %6295 = vmatpush1.msra.mxu0 %v5564_v11 }
 0x57c   : > { %6296 = vmatprep.subr.mxu0 %v5671_v41 }
 0x57d   : > { %6297 = vmatpush1.msra.mxu0 %v5673_v6  ;;  %v12665_v12 = vpop.permute.xlu0 %5588  ;;  %v12738_v6 = vld [vmem:[#allocation9 + $0x70] sm:$0xff] }
 0x57e   : > { %6298 = vmatprep.subr.mxu0 %v5670_v46  ;;  %v5587_v24 = vpop.permute.xlu1 %5586  ;;  %v5567_v46 = vsel %vm541_vm1, %v12638_v16, %v12506_v58  ;;  %v12713_v58 = vsel %vm541_vm1, %v12526_v14, %v5477_v8  ;;  %v12727_v14 = vld [vmem:[#allocation9 + $0x78] sm:$0xff] }
 0x57f   : > { %6262 = vperm.xlu0 %8855, %v8725_v39   ;;  %6299 = vmatpush1.msra.mxu0 %v5672_v57 }
 0x580   : > { %6300 = vmatprep.subr.mxu0 %v12301_v23 }
 0x581   : > { %6301 = vmatpush1.msra.mxu0 %v12234_v7  ;;  %v12673_v41 = vpop.permute.xlu0 %5488  ;;  %v5566_v7 = vsel %vm541_vm1, %v12603_v51, %v12495_v0  ;;  %v5666_v0 = vsel %vm650_vm2, %v12537_v62, %v12632_v47 }
 0x582   : > { %6302 = vmatprep.subr.mxu0 %v12258_v15  ;;  %v5479_v17 = vpop.permute.xlu1 %5478 }
 0x583   : > { %6303 = vmatpush1.msra.mxu0 %v12223_v55  ;;  %v5667_v55 = vsel %vm650_vm2, %v12562_v54, %v5587_v24  ;;  %v12696_v23 = vsel %vm541_vm1, %v12552_v34, %v5479_v17  ;;  %v12715_v34 = vld [vmem:[#allocation9 + $0x60] sm:$0xff] }
 0x584   : > { %6304 = vmatprep.subr.mxu0 %v5565_v27 }
 0x585   : > { %6305 = vmatpush1.msra.mxu0 %v5567_v46  ;;  %v5483_v9 = vpop.permute.xlu0 %5482 }
 0x586   : > { %6306 = vmatprep.subr.mxu0 %v5564_v11  ;;  %v5485_v39 = vpop.permute.xlu1 %5484  ;;  %v12687_v15 = vsel %vm541_vm1, %v5479_v17, %v5483_v9  ;;  %v12702_v11 = vsel %vm541_vm1, %v5477_v8, %v12650_v61  ;;  %v12734_v8 = vsel %vm650_vm2, %v12632_v47, %v12665_v12 }
 0x587   : > { %6307 = vmatpush1.msra.mxu0 %v5566_v7  ;;  %6357 = vmatprep.subr.mxu1 %v12687_v15  ;;  %v12764_v7 = vsel %vm541_vm1, %v5485_v39, %v12673_v41 }
 0x588   : > { %6336 = vmatprep.subr.mxu0 %v5667_v55  ;;  %6358 = vmatpush1.msra.mxu1 %v12696_v23 }
 0x589   : > { %6337 = vmatpush2.msra.mxu0 %v12609_v29  ;;  %6359 = vmatprep.subr.mxu1 %v12702_v11  ;;  %v12717_v54 = vpop.permute.xlu0 %5490 }
 0x58a   : > { %6338 = vmatprep.subr.mxu0 %v5666_v0  ;;  %v5591_v27 = vpop.permute.xlu1 %5590  ;;  %6360 = vmatpush1.msra.mxu1 %v12713_v58 }
 0x58b   : > { %6339 = vmatpush2.msra.mxu0 %v12617_v25  ;;  %v12723_v62 = vsel %vm650_vm2, %v5587_v24, %v5591_v27 }
 0x58c   : > { %6341 = vmatmul.mubr.f32.vlgmr.msra.gmra.mxu0 %v12715_v34  ;;  %6361 = vmatprep.subr.mxu1 %v12723_v62 }
 0x58d   : > { %6430 = vmatprep.subr.mxu0 %v12391_v43  ;;  %6362 = vmatpush1.msra.mxu1 %v5667_v55  ;;  %v12748_v17 = vpop.permute.xlu0 %5598 }
 0x58e   : > { %6431 = vmatpush1.msra.mxu0 %v12401_v60  ;;  %6363 = vmatprep.subr.mxu1 %v12734_v8  ;;  %v5487_v24 = vpop.permute.xlu1 %5486 }
 0x58f   : > { %6432 = vmatprep.subr.mxu0 %v12370_v18  ;;  %8728 = vmatprep.mubr.msk.f32.mxu0 %vm1279_vm0, %v12727_v14  ;;  %v12746_v57 = vsel %vm541_vm1, %v5487_v24, %v12717_v54  ;;  %v12753_v47 = vsel %vm541_vm1, %v5483_v9, %v5487_v24  ;;  %v12776_v24 = vsel %vm541_vm1, %v12650_v61, %v5485_v39 }
 0x590   : > { %6364 = vmatpush1.msra.mxu1 %v5666_v0  ;;  %6433 = vmatpush1.msra.mxu0 %v12386_v13 }
 0x591   : > { %6347 = vmatmul.mubr.f32.gmra.mxu0 %v12738_v6  ;;  %6365 = vmatprep.subr.mxu1 %v12357_v45  ;;  %v12782_v21 = vpop.permute.xlu0 %5596 }
 0x592   : > { %6434 = vmatprep.subr.mxu0 %v12746_v57  ;;  %6366 = vmatpush1.msra.mxu1 %v12286_v31  ;;  %v5595_v46 = vpop.permute.xlu1 %5594 }
 0x593   : > { %6435 = vmatpush1.msra.mxu0 %v12753_v47  ;;  %6367 = vmatprep.subr.mxu1 %v12324_v3  ;;  %v12769_v9 = vsel %vm650_vm2, %v5595_v46, %v12748_v17  ;;  %v5663_v2 = vsel %vm650_vm2, %v5591_v27, %v5595_v46 }
 0x594   : > { %6436 = vmatprep.subr.mxu0 %v12764_v7  ;;  %6368 = vmatpush1.msra.mxu1 %v12277_v49 }
 0x595   : > { %6437 = vmatpush1.msra.mxu0 %v12776_v24  ;;  %6369 = vmatprep.subr.mxu1 %v12696_v23 }
 0x596   : > { %6438 = vmatprep.subr.mxu0 %v12769_v9  ;;  %6370 = vmatpush1.msra.mxu1 %v12577_v26  ;;  %v5593_v51 = vpop.permute.xlu1 %5592 }
 0x597   : > { %6439 = vmatpush1.msra.mxu0 %v5663_v2  ;;  %6371 = vmatprep.subr.mxu1 %v12713_v58  ;;  %v12790_v61 = vsel %vm650_vm2, %v5593_v51, %v12782_v21  ;;  %v5662_v39 = vsel %vm650_vm2, %v12665_v12, %v5593_v51  ;;  %v12804_v12 = vpop.permute.xlu0 %5600 }
 0x598   : > { %6372 = vmatpush1.msra.mxu1 %v12590_v5  ;;  %6440 = vmatprep.subr.mxu0 %v12790_v61 }
 0x599   : > { %6373 = vmatprep.subr.mxu1 %v5667_v55  ;;  %6441 = vmatpush1.msra.mxu0 %v5662_v39 }
 0x59a   : > { %6374 = vmatpush1.msra.mxu1 %v12609_v29  ;;  %6442 = vmatprep.subr.mxu0 %v12401_v60  ;;  %v12799_v27 = vpop.permute.xlu1 %5492 }
 0x59b   : > { %6375 = vmatprep.subr.mxu1 %v5666_v0  ;;  %6443 = vmatpush1.msra.mxu0 %v12353_v44 }
 0x59c   : > { %6376 = vmatpush1.msra.mxu1 %v12617_v25  ;;  %6444 = vmatprep.subr.mxu0 %v12386_v13  ;;  %v12881_v25 = vsel %vm541_vm1, %v12673_v41, %v12799_v27 }
 0x59d   : > { %6377 = vmatprep.subr.mxu1 %v12286_v31  ;;  %6445 = vmatpush1.msra.mxu0 %v12340_v52 }
 0x59e   : > { %6378 = vmatpush1.msra.mxu1 %v12294_v28  ;;  %6446 = vmatprep.subr.mxu0 %v12753_v47  ;;  %v5603_v51 = vpop.permute.xlu1 %5602 }
 0x59f   : > { %6379 = vmatprep.subr.mxu1 %v12277_v49  ;;  %6447 = vmatpush1.msra.mxu0 %v12687_v15 }
 0x5a0   : > { %6380 = vmatpush1.msra.mxu1 %v12275_v63  ;;  %6448 = vmatprep.subr.mxu0 %v12776_v24 }
 0x5a1   : > { %v12814_v29 = vpop.permute.xlu0 %5496  ;;  %6381 = vmatprep.subr.mxu1 %v12577_v26  ;;  %6449 = vmatpush1.msra.mxu0 %v12702_v11 }
 0x5a2   : > { %6382 = vmatpush1.msra.mxu1 %v12581_v56  ;;  %6450 = vmatprep.subr.mxu0 %v5663_v2  ;;  %v5495_v31 = vpop.permute.xlu1 %5494  ;;  %v12867_v56 = vsel %vm541_vm1, %v12799_v27, %v12814_v29 }
 0x5a3   : > { %6383 = vmatprep.subr.mxu1 %v12590_v5  ;;  %6451 = vmatpush1.msra.mxu0 %v12723_v62  ;;  %v12860_v26 = vsel %vm541_vm1, %v12717_v54, %v5495_v31  ;;  %v5658_v5 = vsel %vm650_vm2, %v12782_v21, %v12804_v12 }
 0x5a4   : > { %6384 = vmatpush1.msra.mxu1 %v12599_v53  ;;  %6452 = vmatprep.subr.mxu0 %v5662_v39 }
 0x5a5   : > { %v12822_v63 = vpop.permute.xlu0 %5604  ;;  %6413 = vmatprep.subr.mxu1 %v5663_v2  ;;  %6453 = vmatpush1.msra.mxu0 %v12734_v8 }
 0x5a6   : > { %6414 = vmatpush2.msra.mxu1 %v12723_v62  ;;  %6454 = vmatprep.subr.mxu0 %v12353_v44  ;;  %v12827_v49 = vpop.permute.xlu1 %5500  ;;  %v12898_v41 = vsel %vm650_vm2, %v12804_v12, %v12822_v63 }
 0x5a7   : > { %6415 = vmatprep.subr.mxu1 %v5662_v39  ;;  %6455 = vmatpush1.msra.mxu0 %v12357_v45  ;;  %v5659_v45 = vsel %vm650_vm2, %v12748_v17, %v5603_v51 }
 0x5a8   : > { %6416 = vmatpush2.msra.mxu1 %v12734_v8  ;;  %6456 = vmatprep.subr.mxu0 %v12340_v52  ;;  %v12941_v8 = vsel %vm541_vm1, %v12814_v29, %v12827_v49 }
 0x5a9   : > { %v12832_v28 = vpop.permute.xlu0 %5504  ;;  %6418 = vmatmul.mubr.f32.vlgmr.msra.gmra.mxu1 %v12715_v34  ;;  %6507 = vmatprep.subr.mxu1 %v12457_v59 }
 0x5aa   : > { %6457 = vmatpush1.msra.mxu0 %v12324_v3  ;;  %6508 = vmatpush1.msra.mxu1 %v12424_v19  ;;  %v12838_v44 = vpop.permute.xlu1 %5606 }
 0x5ab   : > { %6458 = vmatprep.subr.mxu0 %v12687_v15  ;;  %6509 = vmatprep.subr.mxu1 %v12431_v22  ;;  %v12887_v15 = vsel %vm650_vm2, %v5603_v51, %v12838_v44 }
 0x5ac   : > { %8730 = vmatprep.mubr.msk.f32.mxu1 %vm1279_vm0, %v12727_v14  ;;  %6459 = vmatpush1.msra.mxu0 %v12696_v23 }
 0x5ad   : > { %v5499_v52 = vpop.permute.xlu0 %5498  ;;  %6510 = vmatpush1.msra.mxu1 %v12411_v35  ;;  %6460 = vmatprep.subr.mxu0 %v12702_v11 }
 0x5ae   : > { %6424 = vmatmul.mubr.f32.gmra.mxu1 %v12738_v6  ;;  %v12850_v3 = vsel %vm541_vm1, %v5495_v31, %v5499_v52  ;;  %6461 = vmatpush1.msra.mxu0 %v12713_v58  ;;  %v5503_v2 = vpop.permute.xlu1 %5502  ;;  %v12929_v58 = vsel %vm541_vm1, %v12827_v49, %v12832_v28 }
 0x5af   : > { %6511 = vmatprep.subr.mxu1 %v12850_v3  ;;  %6490 = vmatprep.subr.mxu0 %v5659_v45  ;;  %v12921_v0 = vsel %vm541_vm1, %v5499_v52, %v5503_v2 }
 0x5b0   : > { %6512 = vmatpush1.msra.mxu1 %v12860_v26  ;;  %6491 = vmatpush2.msra.mxu0 %v12769_v9 }
 0x5b1   : > { %v12874_v53 = vpop.permute.xlu0 %5506  ;;  %6513 = vmatprep.subr.mxu1 %v12867_v56  ;;  %6492 = vmatprep.subr.mxu0 %v5658_v5 }
 0x5b2   : > { %6514 = vmatpush1.msra.mxu1 %v12881_v25  ;;  %6493 = vmatpush2.msra.mxu0 %v12790_v61  ;;  %v5611_v21 = vpop.permute.xlu1 %5610  ;;  %v12915_v11 = vsel %vm541_vm1, %v5503_v2, %v12874_v53 }
 0x5b3   : > { %6515 = vmatprep.subr.mxu1 %v12887_v15  ;;  %8731 = vmatprep.mubr.msk.f32.mxu0 %vm1279_vm0, %v12359_v38  ;;  %v5655_v46 = vsel %vm650_vm2, %v12838_v44, %v5611_v21 }
 0x5b4   : > { %6516 = vmatpush1.msra.mxu1 %v5659_v45  ;;  %6495 = vmatmul.mubr.f32.vlgmr.msra.gmra.mxu0 %v12715_v34 }
 0x5b5   : > { %6517 = vmatprep.subr.mxu1 %v12898_v41  ;;  %6584 = vmatprep.subr.mxu0 %v12470_v36  ;;  %v12902_v55 = vpop.permute.xlu0 %5614 }
 0x5b6   : > { %6518 = vmatpush1.msra.mxu1 %v5658_v5  ;;  %6585 = vmatpush1.msra.mxu0 %v12466_v40  ;;  %v5609_v23 = vpop.permute.xlu1 %5608  ;;  %v12948_v17 = vsel %vm650_vm2, %v5611_v21, %v12902_v55  ;;  %v14610_v21 = vld [vmem:[#allocation40_spill] sm:$0xff] }
 0x5b7   : > { %6519 = vmatprep.subr.mxu1 %v12424_v19  ;;  %6586 = vmatprep.subr.mxu0 %v12452_v42  ;;  %v5654_v27 = vsel %vm650_vm2, %v12822_v63, %v5609_v23 }
 0x5b8   : > { %8732 = vmatprep.mubr.msk.f32.mxu0 %vm1279_vm0, %v12727_v14  ;;  %6520 = vmatpush1.msra.mxu1 %v12391_v43 }
 0x5b9   : > { %6587 = vmatpush1.msra.mxu0 %v12445_v20  ;;  %6521 = vmatprep.subr.mxu1 %v12411_v35  ;;  %v12933_v62 = vpop.permute.xlu0 %5612 }
 0x5ba   : > { %6501 = vmatmul.mubr.f32.gmra.mxu0 %v12738_v6  ;;  %6588 = vmatprep.subr.mxu0 %v12915_v11  ;;  %v12931_v54 = vpop.permute.xlu1 %5508  ;;  %v12959_v39 = vsel %vm650_vm2, %v5609_v23, %v12933_v62 }
 0x5bb   : > { %6522 = vmatpush1.msra.mxu1 %v12370_v18  ;;  %6589 = vmatpush1.msra.mxu0 %v12921_v0 }
 0x5bc   : > { %6523 = vmatprep.subr.mxu1 %v12860_v26  ;;  %6590 = vmatprep.subr.mxu0 %v12929_v58 }
 0x5bd   : > { %6524 = vmatpush1.msra.mxu1 %v12746_v57  ;;  %6591 = vmatpush1.msra.mxu0 %v12941_v8  ;;  %v12973_v51 = vpop.permute.xlu0 %5616 }
 0x5be   : > { %6525 = vmatprep.subr.mxu1 %v12881_v25  ;;  %6592 = vmatprep.subr.mxu0 %v12948_v17  ;;  %v12966_v12 = vpop.permute.xlu1 %5618 }
 0x5bf   : > { %6526 = vmatpush1.msra.mxu1 %v12764_v7  ;;  %6593 = vmatpush1.msra.mxu0 %v5655_v46 }
 0x5c0   : > { %6527 = vmatprep.subr.mxu1 %v5659_v45  ;;  %6594 = vmatprep.subr.mxu0 %v12959_v39 }
 0x5c1   : > { %6528 = vmatpush1.msra.mxu1 %v12769_v9  ;;  %6595 = vmatpush1.msra.mxu0 %v5654_v27 }
 0x5c2   : > { %6529 = vmatprep.subr.mxu1 %v5658_v5  ;;  %6596 = vmatprep.subr.mxu0 %v12466_v40  ;;  %v5511_v9 = vpop.permute.xlu1 %5510 }
 0x5c3   : > { %6530 = vmatpush1.msra.mxu1 %v12790_v61  ;;  %6597 = vmatpush1.msra.mxu0 %v12457_v59 }
 0x5c4   : > { %6531 = vmatprep.subr.mxu1 %v12391_v43  ;;  %6598 = vmatprep.subr.mxu0 %v12445_v20 }
 0x5c5   : > { %6532 = vmatpush1.msra.mxu1 %v12401_v60  ;;  %6599 = vmatpush1.msra.mxu0 %v12431_v22 }
 0x5c6   : > { %6533 = vmatprep.subr.mxu1 %v12370_v18  ;;  %6600 = vmatprep.subr.mxu0 %v12921_v0 }
 0x5c7   : > { %6534 = vmatpush1.msra.mxu1 %v12386_v13  ;;  %6601 = vmatpush1.msra.mxu0 %v12850_v3 }
 0x5c8   : > { %6535 = vmatprep.subr.mxu1 %v12746_v57  ;;  %6602 = vmatprep.subr.mxu0 %v12941_v8  ;;  %v13028_v57 = vsel %vm541_vm1, %v12874_v53, %v5511_v9 }
 0x5c9   : > { %v12983_v43 = vpop.permute.xlu0 %5512  ;;  %6536 = vmatpush1.msra.mxu1 %v12753_v47  ;;  %6603 = vmatpush1.msra.mxu0 %v12867_v56 }
 0x5ca   : > { %6537 = vmatprep.subr.mxu1 %v12764_v7  ;;  %6604 = vmatprep.subr.mxu0 %v5655_v46  ;;  %v13036_v47 = vsel %vm541_vm1, %v12931_v54, %v12983_v43  ;;  %v5650_v7 = vsel %vm650_vm2, %v12933_v62, %v12973_v51 }
 0x5cb   : > { %6538 = vmatpush1.msra.mxu1 %v12776_v24  ;;  %6605 = vmatpush1.msra.mxu0 %v12887_v15  ;;  %v13047_v24 = vsel %vm541_vm1, %v12832_v28, %v12931_v54 }
 0x5cc   : > { %6567 = vmatprep.subr.mxu1 %v5655_v46  ;;  %6606 = vmatprep.subr.mxu0 %v5654_v27  ;;  %v12992_v13 = vpop.permute.xlu1 %5516 }
 0x5cd   : > { %v12990_v18 = vpop.permute.xlu0 %5620  ;;  %6568 = vmatpush2.msra.mxu1 %v12887_v15  ;;  %6607 = vmatpush1.msra.mxu0 %v12898_v41  ;;  %v13104_v45 = vsel %vm541_vm1, %v12983_v43, %v12992_v13  ;;  %v14609_v15 = vld [vmem:[#allocation42_spill] sm:$0xff] }
 0x5ce   : > { %6569 = vmatprep.subr.mxu1 %v5654_v27  ;;  %6608 = vmatprep.subr.mxu0 %v12457_v59  ;;  %v13067_v63 = vsel %vm650_vm2, %v12973_v51, %v12990_v18  ;;  %v14613_v51 = vld [vmem:[#allocation30_spill] sm:$0xff] }
 0x5cf   : > { %6570 = vmatpush2.msra.mxu1 %v12898_v41  ;;  %8733 = vmatprep.mubr.msk.f32.mxu1 %vm1279_vm0, %v12359_v38 }
 0x5d0   : > { %6609 = vmatpush1.msra.mxu0 %v12424_v19  ;;  %6572 = vmatmul.mubr.f32.vlgmr.msra.gmra.mxu1 %v12715_v34  ;;  %v5623_v59 = vpop.permute.xlu1 %5622 }
 0x5d1   : > { %v13002_v60 = vpop.permute.xlu0 %5520  ;;  %6610 = vmatprep.subr.mxu0 %v12431_v22  ;;  %6661 = vmatprep.subr.mxu1 %v12534_v48  ;;  %v5651_v22 = vsel %vm650_vm2, %v12902_v55, %v12966_v12  ;;  %v13056_v31 = vsel %vm650_vm2, %v12966_v12, %v5623_v59 }
 0x5d2   : > { %6611 = vmatpush1.msra.mxu0 %v12411_v35  ;;  %6662 = vmatpush1.msra.mxu1 %v12493_v10 }
 0x5d3   : > { %6612 = vmatprep.subr.mxu0 %v12850_v3  ;;  %6663 = vmatprep.subr.mxu1 %v12514_v30  ;;  %v13098_v3 = vsel %vm541_vm1, %v12992_v13, %v13002_v60 }
 0x5d4   : > { %8734 = vmatprep.mubr.msk.f32.mxu1 %vm1279_vm0, %v12727_v14  ;;  %6613 = vmatpush1.msra.mxu0 %v12860_v26  ;;  %v5519_v61 = vpop.permute.xlu1 %5518 }
 0x5d5   : > { %v5515_v19 = vpop.permute.xlu0 %5514  ;;  %6664 = vmatpush1.msra.mxu1 %v12486_v33  ;;  %6614 = vmatprep.subr.mxu0 %v12867_v56 }
 0x5d6   : > { %6578 = vmatmul.mubr.f32.gmra.mxu1 %v12738_v6  ;;  %v13018_v35 = vsel %vm541_vm1, %v5511_v9, %v5515_v19  ;;  %6615 = vmatpush1.msra.mxu0 %v12881_v25  ;;  %v13088_v52 = vsel %vm541_vm1, %v5515_v19, %v5519_v61 }
 0x5d7   : > { %6665 = vmatprep.subr.mxu1 %v13018_v35  ;;  %6644 = vmatprep.subr.mxu0 %v5651_v22 }
 0x5d8   : > { %6666 = vmatpush1.msra.mxu1 %v13028_v57  ;;  %6645 = vmatpush2.msra.mxu0 %v12948_v17  ;;  %v5627_v28 = vpop.permute.xlu1 %5626 }
 0x5d9   : > { %v13049_v29 = vpop.permute.xlu0 %5522  ;;  %6667 = vmatprep.subr.mxu1 %v13036_v47  ;;  %6646 = vmatprep.subr.mxu0 %v5650_v7  ;;  %v5647_v5 = vsel %vm650_vm2, %v5623_v59, %v5627_v28 }
 0x5da   : > { %6668 = vmatpush1.msra.mxu1 %v13047_v24  ;;  %6647 = vmatpush2.msra.mxu0 %v12959_v39  ;;  %v13084_v44 = vsel %vm541_vm1, %v5519_v61, %v13049_v29 }
 0x5db   : > { %6669 = vmatprep.subr.mxu1 %v13056_v31  ;;  %8735 = vmatprep.mubr.msk.f32.mxu0 %vm1279_vm0, %v12359_v38  ;;  %v14608_v38 = vld [vmem:[#allocation34_spill] sm:$0xff] }
 0x5dc   : > { %6670 = vmatpush1.msra.mxu1 %v5651_v22  ;;  %6649 = vmatmul.mubr.f32.vlgmr.msra.gmra.mxu0 %v12715_v34  ;;  %v5625_v26 = vpop.permute.xlu1 %5624 }
 0x5dd   : > { %6671 = vmatprep.subr.mxu1 %v13067_v63  ;;  %6738 = vmatprep.subr.mxu0 %v12558_v37  ;;  %v13071_v49 = vpop.permute.xlu0 %5630  ;;  %v5646_v25 = vsel %vm650_vm2, %v12990_v18, %v5625_v26 }
 0x5de   : > { %6672 = vmatpush1.msra.mxu1 %v5650_v7  ;;  %6739 = vmatpush1.msra.mxu0 %v12547_v32  ;;  %v13115_v56 = vsel %vm650_vm2, %v5627_v28, %v13071_v49 }
 0x5df   : > { %6673 = vmatprep.subr.mxu1 %v12493_v10  ;;  %6740 = vmatprep.subr.mxu0 %v12540_v4 }
 0x5e0   : > { %8736 = vmatprep.mubr.msk.f32.mxu0 %vm1279_vm0, %v12727_v14  ;;  %6674 = vmatpush1.msra.mxu1 %v12470_v36 }
 0x5e1   : > { %6741 = vmatpush1.msra.mxu0 %v14608_v38  ;;  %6675 = vmatprep.subr.mxu1 %v12486_v33  ;;  %v13106_v2 = vpop.permute.xlu0 %5628 }
 0x5e2   : > { %6655 = vmatmul.mubr.f32.gmra.mxu0 %v12738_v6  ;;  %6742 = vmatprep.subr.mxu0 %v13084_v44  ;;  %v13125_v53 = vsel %vm650_vm2, %v5625_v26, %v13106_v2 }
 0x5e3   : > { %6676 = vmatpush1.msra.mxu1 %v12452_v42  ;;  %6743 = vmatpush1.msra.mxu0 %v13088_v52 }
 0x5e4   : > { %6677 = vmatprep.subr.mxu1 %v13028_v57  ;;  %6744 = vmatprep.subr.mxu0 %v13098_v3 }
 0x5e5   : > { %6678 = vmatpush1.msra.mxu1 %v12915_v11  ;;  %6745 = vmatpush1.msra.mxu0 %v13104_v45 }
 0x5e6   : > { %6679 = vmatprep.subr.mxu1 %v13047_v24  ;;  %6746 = vmatprep.subr.mxu0 %v13115_v56 }
 0x5e7   : > { %6680 = vmatpush1.msra.mxu1 %v12929_v58  ;;  %6747 = vmatpush1.msra.mxu0 %v5647_v5 }
 0x5e8   : > { %6681 = vmatprep.subr.mxu1 %v5651_v22  ;;  %6748 = vmatprep.subr.mxu0 %v13125_v53  ;;  %v14616_v22 = vld [vmem:[#allocation39_spill] sm:$0xff] }
 0x5e9   : > { %6682 = vmatpush1.msra.mxu1 %v12948_v17  ;;  %6749 = vmatpush1.msra.mxu0 %v5646_v25 }
 0x5ea   : > { %6683 = vmatprep.subr.mxu1 %v5650_v7  ;;  %6750 = vmatprep.subr.mxu0 %v12547_v32 }
 0x5eb   : > { %6684 = vmatpush1.msra.mxu1 %v12959_v39  ;;  %6751 = vmatpush1.msra.mxu0 %v12534_v48 }
 0x5ec   : > { %6685 = vmatprep.subr.mxu1 %v12470_v36  ;;  %6752 = vmatprep.subr.mxu0 %v14608_v38  ;;  %v5635_v36 = vpop.permute.xlu1 %5634 }
 0x5ed   : > { %6686 = vmatpush1.msra.mxu1 %v12466_v40  ;;  %6753 = vmatpush1.msra.mxu0 %v12514_v30  ;;  %v5643_v23 = vsel %vm650_vm2, %v13071_v49, %v5635_v36 }
 0x5ee   : > { %6687 = vmatprep.subr.mxu1 %v12452_v42  ;;  %6754 = vmatprep.subr.mxu0 %v13088_v52  ;;  %v8860_v42 = vld [vmem:[#allocation9 + $0x68] sm:$0xff] }
 0x5ef   : > { %6688 = vmatpush1.msra.mxu1 %v12445_v20  ;;  %6755 = vmatpush1.msra.mxu0 %v13018_v35  ;;  %v5633_v20 = vpop.permute.xlu0 %5632 }
 0x5f0   : > { %6689 = vmatprep.subr.mxu1 %v12915_v11  ;;  %6756 = vmatprep.subr.mxu0 %v13104_v45  ;;  %v5527_v40 = vpop.permute.xlu1 %5526  ;;  %v14612_v11 = vld [vmem:[#allocation31_spill] sm:$0xff] }
 0x5f1   : > { %6690 = vmatpush1.msra.mxu1 %v12921_v0  ;;  %6757 = vmatpush1.msra.mxu0 %v13036_v47  ;;  %v6974_v0 = vld [vmem:[#allocation2 + $0x90] sm:$0xff] }
 0x5f2   : > { %6691 = vmatprep.subr.mxu1 %v12929_v58  ;;  %6758 = vmatprep.subr.mxu0 %v5647_v5  ;;  %vm7011_vm8 = vcmp.ge.f32.partialorder %v6974_v0, 0.0 }
 0x5f3   : > { %6692 = vmatpush1.msra.mxu1 %v12941_v8  ;;  %6759 = vmatpush1.msra.mxu0 %v13056_v31  ;;  %v5525_v41 = vpop.permute.xlu0 %5524  ;;  %v5642_v8 = vsel %vm650_vm2, %v13106_v2, %v5633_v20  ;;  %v14617_v2 = vld [vmem:[#allocation36_spill] sm:$0xff] }
 0x5f4   : > { %6721 = vmatprep.subr.mxu1 %v5647_v5  ;;  %6760 = vmatprep.subr.mxu0 %v5646_v25  ;;  %v5639_v55 = vpop.permute.xlu1 %5638  ;;  %v5534_v58 = vsel %vm541_vm1, %v13002_v60, %v5525_v41  ;;  %v14615_v60 = vld [vmem:[#allocation38_spill] sm:$0xff]  ;;  %v14618_v5 = vld [vmem:[#allocation37_spill] sm:$0xff] }
 0x5f5   : > { %6722 = vmatpush2.msra.mxu1 %v13056_v31  ;;  %6761 = vmatpush1.msra.mxu0 %v13067_v63  ;;  %v5641_v17 = vsel %vm650_vm2, %v5635_v36, %v5639_v55  ;;  %v5675_v9 = vsel %vm650_vm2, %v5639_v55, %v14613_v51 }
 0x5f6   : > { %6723 = vmatprep.subr.mxu1 %v5646_v25  ;;  %6762 = vmatprep.subr.mxu0 %v12534_v48  ;;  %v13171_v48 = vstv %s8743_s12 }
 0x5f7   : > { %6724 = vmatpush2.msra.mxu1 %v13067_v63  ;;  %8737 = vmatprep.mubr.msk.f32.mxu1 %vm1279_vm0, %v8860_v42  ;;  %v5637_v62 = vpop.permute.xlu0 %5636  ;;  %v7048_v46 = vmul.f32 %v13171_v48, %v6974_v0 }
 0x5f8   : > { %6763 = vmatpush1.msra.mxu0 %v12493_v10  ;;  %6726 = vmatmul.mubr.f32.vlgmr.msra.gmra.mxu1 %v12715_v34  ;;  %v14611_v10 = vld [vmem:[#allocation35_spill] sm:$0xff]  ;;  %v5640_v39 = vsel %vm650_vm2, %v5633_v20, %v5637_v62 }
 0x5f9   : > { %6764 = vmatprep.subr.mxu0 %v12514_v30  ;;  %6815 = vmatprep.subr.mxu1 %v14609_v15  ;;  %v6956_v30 = vld [vmem:[#allocation2] sm:$0xff]  ;;  %v13205_v12 = vsel %vm7011_vm8, %v6974_v0, %v7048_v46 }
 0x5fa   : > { %6765 = vmatpush1.msra.mxu0 %v12486_v33  ;;  %6816 = vmatpush1.msra.mxu1 %v14610_v21  ;;  %v5533_v33 = vsel %vm541_vm1, %v5527_v40, %v12638_v16  ;;  %v5532_v16 = vsel %vm541_vm1, %v5525_v41, %v14612_v11  ;;  %v7030_v54 = vmul.f32 %v13171_v48, %v6956_v30  ;;  %vm6993_vm7 = vcmp.ge.f32.partialorder %v6956_v30, 0.0 }
 0x5fb   : > { %6766 = vmatprep.subr.mxu0 %v13018_v35  ;;  %6817 = vmatprep.subr.mxu1 %v12316_v50  ;;  %v5535_v50 = vsel %vm541_vm1, %v13049_v29, %v5527_v40  ;;  %v13243_v35 = vpop.permute.xlu1 %6267 }
 0x5fc   : > { %8738 = vmatprep.mubr.msk.f32.mxu1 %vm1279_vm0, %v12727_v14  ;;  %6767 = vmatpush1.msra.mxu0 %v13028_v57  ;;  %v13200_v27 = vsel %vm6993_vm7, %v6956_v30, %v7030_v54  ;;  %v14620_v54 = vld [vmem:[#allocation19_spill] sm:$0xff] }
 0x5fd   : > { %6818 = vmatpush1.msra.mxu1 %v14611_v10  ;;  %6768 = vmatprep.subr.mxu0 %v13036_v47 }
 0x5fe   : > { %6732 = vmatmul.mubr.f32.gmra.mxu1 %v12738_v6  ;;  %6819 = vmatprep.subr.mxu1 %v5533_v33 }
 0x5ff   : > { %6769 = vmatpush1.msra.mxu0 %v13047_v24  ;;  %6820 = vmatpush1.msra.mxu1 %v5535_v50 }
 0x600   : > { %6798 = vmatprep.subr.mxu0 %v5643_v23  ;;  %6821 = vmatprep.subr.mxu1 %v5532_v16  ;;  %v14619_v16 = vld [vmem:[#allocation21_spill] sm:$0xff] }
 0x601   : > { %6799 = vmatpush2.msra.mxu0 %v13115_v56  ;;  %6822 = vmatpush1.msra.mxu1 %v5534_v58 }
 0x602   : > { %6800 = vmatprep.subr.mxu0 %v5642_v8  ;;  %6823 = vmatprep.subr.mxu1 %v5641_v17 }
 0x603   : > { %6801 = vmatpush2.msra.mxu0 %v13125_v53  ;;  %8739 = vmatprep.mubr.msk.f32.mxu0 %vm1279_vm0, %v8860_v42 }
 0x604   : > { %6824 = vmatpush1.msra.mxu1 %v5643_v23  ;;  %6803 = vmatmul.mubr.f32.vlgmr.msra.gmra.mxu0 %v12715_v34 }
 0x605   : > { %6825 = vmatprep.subr.mxu1 %v5640_v39  ;;  %8740 = vmatprep.mubr.msk.f32.mxu0 %vm1279_vm0, %v12727_v14 }
 0x606   : > { %6826 = vmatpush1.msra.mxu1 %v5642_v8  ;;  %8741 = vmatprep.mubr.msk.f32.mxu1 %vm1279_vm0, %v8860_v42 }
 0x607   : > { %6827 = vmatprep.subr.mxu1 %v14610_v21  ;;  %7102 = vrot.lane.b32.xlu0 %v13200_v27, %s9019_s14 }
 0x608   : > { %6828 = vmatpush1.msra.mxu1 %v12558_v37  ;;  %6809 = vmatmul.mubr.f32.gmra.mxu0 %v12738_v6 }
 0x609   : > { %6829 = vmatprep.subr.mxu1 %v14611_v10  ;;  %7104 = vrot.lane.b32.xlu1 %v13205_v12, %s9019_s14 }
 0x60a   : > { %6830 = vmatpush1.msra.mxu1 %v12540_v4 }
 0x60b   : > { %6831 = vmatprep.subr.mxu1 %v5535_v50 }
 0x60c   : > { %6832 = vmatpush1.msra.mxu1 %v13084_v44 }
 0x60d   : > { %6833 = vmatprep.subr.mxu1 %v5534_v58 }
 0x60e   : > { %6834 = vmatpush1.msra.mxu1 %v13098_v3 }
 0x60f   : > { %6835 = vmatprep.subr.mxu1 %v5643_v23 }
 0x610   : > { %6836 = vmatpush1.msra.mxu1 %v13115_v56 }
 0x611   : > { %6837 = vmatprep.subr.mxu1 %v5642_v8 }
 0x612   : > { %6838 = vmatpush1.msra.mxu1 %v13125_v53 }
 0x613   : > { %6839 = vmatprep.subr.mxu1 %v12558_v37  ;;  %v14614_v37 = vld [vmem:[#allocation41_spill] sm:$0xff] }
 0x614   : > { %6840 = vmatpush1.msra.mxu1 %v12547_v32  ;;  %v13238_v32 = vpop.permute.xlu0 %6262 }
 0x615   : > { %6841 = vmatprep.subr.mxu1 %v12540_v4  ;;  %v5674_v4 = vsel %vm650_vm2, %v5637_v62, %v14614_v37 }
 0x616   : > { %6842 = vmatpush1.msra.mxu1 %v14608_v38 }
 0x617   : > { %6843 = vmatprep.subr.mxu1 %v13084_v44 }
 0x618   : > { %6844 = vmatpush1.msra.mxu1 %v13088_v52 }
 0x619   : > { %6845 = vmatprep.subr.mxu1 %v13098_v3 }
 0x61a   : > { %6846 = vmatpush1.msra.mxu1 %v13104_v45 }
 0x61b   : > { %6875 = vmatprep.subr.mxu1 %v5675_v9 }
 0x61c   : > { %6876 = vmatpush2.msra.mxu1 %v5641_v17 }
 0x61d   : > { %6877 = vmatprep.subr.mxu1 %v5674_v4 }
 0x61e   : > { %6878 = vmatpush2.msra.mxu1 %v5640_v39 }
 0x61f   : > { %6880 = vmatmul.mubr.f32.vlgmr.msra.gmra.mxu1 %v12715_v34 }
 0x620   : > { %8742 = vmatprep.mubr.msk.f32.mxu1 %vm1279_vm0, %v12727_v14 }
 0x623   : > { %6886 = vmatmul.mubr.f32.gmra.mxu1 %v12738_v6 }
 0x64c   : > { %v6342_v43 = vpop.f32.mrf.mxu0 }
 0x64d   : > { %v6343_v18 = vadd.f32 %v6342_v43, %v13238_v32 }
 0x64e   : > { %v6344_v13 = vpop.f32.mrf.mxu0 }
 0x64f   : > { %v6892_v59 = vmul.f32 %v6343_v18, %v14615_v60  ;;  %v6345_v19 = vadd.f32 %v6344_v13, %v13238_v32 }
 0x651   : > { %6924 = vst [vmem:[#allocation2 + $0x8] sm:$0xff] %v6892_v59  ;;  %v6893_v34 = vmul.f32 %v6345_v19, %v14616_v22  ;;  %v6348_v57 = vpop.f32.mrf.mxu0  ;;  %vm6994_vm9 = vcmp.ge.f32.partialorder %v6892_v59, 0.0  ;;  %v7031_v14 = vmul.f32 %v13171_v48, %v6892_v59  ;;  %v6991_v19 = vld [vmem:[#allocation2 + $0x118] sm:$0xff] }
 0x652   : > { %v6349_v6 = vadd.f32 %v6348_v57, %v13243_v35  ;;  %vm7028_vm7 = vcmp.ge.f32.partialorder %v6991_v19, 0.0 }
 0x653   : > { %6925 = vst [vmem:[#allocation2 + $0x10] sm:$0xff] %v6893_v34  ;;  %v6350_v47 = vpop.f32.mrf.mxu0  ;;  %v13248_v7 = vsel %vm6994_vm9, %v6892_v59, %v7031_v14  ;;  %v7032_v63 = vmul.f32 %v13171_v48, %v6893_v34  ;;  %vm6995_vm11 = vcmp.ge.f32.partialorder %v6893_v34, 0.0  ;;  %v6973_v59 = vld [vmem:[#allocation2 + $0x88] sm:$0xff] }
 0x654   : > { %v6908_v24 = vmul.f32 %v6349_v6, %v14615_v60  ;;  %v6351_v61 = vadd.f32 %v6350_v47, %v13243_v35  ;;  %7106 = vrot.lane.b32.xlu0 %v13248_v7, %s9019_s14  ;;  %vm7010_vm6 = vcmp.ge.f32.partialorder %v6973_v59, 0.0  ;;  %v13357_v47 = vld [vmem:[#allocation9 + $0x88] sm:$0xff] }
 0x655   : > { %v13263_v28 = vsel %vm6995_vm11, %v6893_v34, %v7032_v63  ;;  %v7065_v34 = vmul.f32 %v13171_v48, %v6991_v19  ;;  %8746 = vmatprep.mubr.msk.f32.mxu0 %vm1279_vm0, %v13357_v47  ;;  %8748 = vmatprep.mubr.msk.f32.mxu1 %vm1279_vm0, %v13357_v47  ;;  %v14623_v63 = vld [vmem:[#allocation23_spill] sm:$0xff] }
 0x656   : > { %6940 = vst [vmem:[#allocation2 + $0x98] sm:$0xff] %v6908_v24  ;;  %v6909_v29 = vmul.f32 %v6351_v61, %v14616_v22  ;;  %vm7012_vm10 = vcmp.ge.f32.partialorder %v6908_v24, 0.0  ;;  %v7049_v31 = vmul.f32 %v13171_v48, %v6908_v24  ;;  %v7047_v22 = vmul.f32 %v13171_v48, %v6973_v59 }
 0x657   : > { %v13352_v14 = vsel %vm7028_vm7, %v6991_v19, %v7065_v34 }
 0x658   : > { %6941 = vst [vmem:[#allocation2 + $0xa0] sm:$0xff] %v6909_v29  ;;  %7214 = vrot.lane.b32.xlu0 %v13248_v7, %s9020_s7  ;;  %v13259_v49 = vsel %vm7012_vm10, %v6908_v24, %v7049_v31  ;;  %v7050_v38 = vmul.f32 %v13171_v48, %v6909_v29  ;;  %vm7013_vm12 = vcmp.ge.f32.partialorder %v6909_v29, 0.0  ;;  %v13350_v57 = vsel %vm7010_vm6, %v6973_v59, %v7047_v22 }
 0x659   : > { %7108 = vrot.lane.b32.xlu1 %v13259_v49, %s9019_s14  ;;  %14621 = vst [vmem:[#allocation33_spill] sm:$0xff] %v13350_v57  ;;  %14622 = vst [vmem:[#allocation34_spill] sm:$0xff] %v13352_v14 }
 0x65a   : > { %v13272_v44 = vsel %vm7013_vm12, %v6909_v29, %v7050_v38 }
 0x65c   : > { %7110 = vrot.lane.b32.xlu0 %v13263_v28, %s9019_s14 }
 0x65d   : > { %7216 = vrot.lane.b32.xlu1 %v13259_v49, %s9020_s7 }
 0x660   : > { %7218 = vrot.lane.b32.xlu0 %v13263_v28, %s9020_s7 }
 0x661   : > { %7112 = vrot.lane.b32.xlu1 %v13272_v44, %s9019_s14 }
 0x665   : > { %7220 = vrot.lane.b32.xlu1 %v13272_v44, %s9020_s7 }
 0x669   : > { %v6419_v52 = vpop.f32.mrf.mxu1 }
 0x66a   : > { %v6420_v3 = vadd.f32 %v6419_v52, %v13238_v32 }
 0x66b   : > { %v6421_v45 = vpop.f32.mrf.mxu1 }
 0x66c   : > { %v6894_v26 = vmul.f32 %v6420_v3, %v14617_v2  ;;  %v6422_v56 = vadd.f32 %v6421_v45, %v13238_v32  ;;  %v14624_v45 = vld [vmem:[#allocation22_spill] sm:$0xff] }
 0x66e   : > { %6926 = vst [vmem:[#allocation2 + $0x18] sm:$0xff] %v6894_v26  ;;  %v6895_v53 = vmul.f32 %v6422_v56, %v14618_v5  ;;  %v6425_v25 = vpop.f32.mrf.mxu1  ;;  %vm6996_vm13 = vcmp.ge.f32.partialorder %v6894_v26, 0.0  ;;  %v7033_v36 = vmul.f32 %v13171_v48, %v6894_v26 }
 0x66f   : > { %v6426_v20 = vadd.f32 %v6425_v25, %v13243_v35 }
 0x670   : > { %6927 = vst [vmem:[#allocation2 + $0x20] sm:$0xff] %v6895_v53  ;;  %v6427_v42 = vpop.f32.mrf.mxu1  ;;  %v13284_v40 = vsel %vm6996_vm13, %v6894_v26, %v7033_v36  ;;  %vm6997_vm14 = vcmp.ge.f32.partialorder %v6895_v53, 0.0  ;;  %v7034_v15 = vmul.f32 %v13171_v48, %v6895_v53 }
 0x671   : > { %v6910_v21 = vmul.f32 %v6426_v20, %v14617_v2  ;;  %v6428_v41 = vadd.f32 %v6427_v42, %v13243_v35  ;;  %7114 = vrot.lane.b32.xlu1 %v13284_v40, %s9019_s14 }
 0x672   : > { %v13291_v10 = vsel %vm6997_vm14, %v6895_v53, %v7034_v15 }
 0x673   : > { %6942 = vst [vmem:[#allocation2 + $0xa8] sm:$0xff] %v6910_v21  ;;  %v6911_v33 = vmul.f32 %v6428_v41, %v14618_v5  ;;  %7118 = vrot.lane.b32.xlu0 %v13291_v10, %s9019_s14  ;;  %vm7014_vm15 = vcmp.ge.f32.partialorder %v6910_v21, 0.0  ;;  %v7051_v30 = vmul.f32 %v13171_v48, %v6910_v21 }
 0x674   : > { %v6496_v50 = vpop.f32.mrf.mxu0 }
 0x675   : > { %6943 = vst [vmem:[#allocation2 + $0xb0] sm:$0xff] %v6911_v33  ;;  %v6497_v55 = vadd.f32 %v6496_v50, %v13238_v32  ;;  %v13298_v23 = vsel %vm7014_vm15, %v6910_v21, %v7051_v30  ;;  %7222 = vrot.lane.b32.xlu1 %v13284_v40, %s9020_s7  ;;  %v7052_v4 = vmul.f32 %v13171_v48, %v6911_v33  ;;  %vm7015_vm5 = vcmp.ge.f32.partialorder %v6911_v33, 0.0  ;;  %v14625_v50 = vld [vmem:[#allocation24_spill] sm:$0xff] }
 0x676   : > { %v6498_v11 = vpop.f32.mrf.mxu0  ;;  %7917 = vmatprep.subr.mxu0 %v13298_v23 }
 0x677   : > { %v6896_v0 = vmul.f32 %v6497_v55, %v14619_v16  ;;  %v6499_v58 = vadd.f32 %v6498_v11, %v13238_v32  ;;  %7918 = vmatpush1.msra.mxu0 %v13272_v44  ;;  %7226 = vrot.lane.b32.xlu0 %v13291_v10, %s9020_s7  ;;  %v13331_v60 = vsel %vm7015_vm5, %v6911_v33, %v7052_v4 }
 0x678   : > { %7919 = vmatprep.subr.mxu0 %v13284_v40 }
 0x679   : > { %6928 = vst [vmem:[#allocation2 + $0x28] sm:$0xff] %v6896_v0  ;;  %v6897_v62 = vmul.f32 %v6499_v58, %v14620_v54  ;;  %7920 = vmatpush1.msra.mxu0 %v13263_v28  ;;  %vm6998_vm3 = vcmp.ge.f32.partialorder %v6896_v0, 0.0  ;;  %v7035_v8 = vmul.f32 %v13171_v48, %v6896_v0  ;;  %v14626_v58 = vld [vmem:[#allocation25_spill] sm:$0xff] }
 0x67a   : > { %v6502_v17 = vpop.f32.mrf.mxu0 }
 0x67b   : > { %6929 = vst [vmem:[#allocation2 + $0x30] sm:$0xff] %v6897_v62  ;;  %v6503_v46 = vadd.f32 %v6502_v17, %v13243_v35  ;;  %7116 = vrot.lane.b32.xlu0 %v13298_v23, %s9019_s14  ;;  %v13315_v39 = vsel %vm6998_vm3, %v6896_v0, %v7035_v8  ;;  %v7036_v6 = vmul.f32 %v13171_v48, %v6897_v62  ;;  %vm6999_vm8 = vcmp.ge.f32.partialorder %v6897_v62, 0.0 }
 0x67c   : > { %v6504_v51 = vpop.f32.mrf.mxu0  ;;  %7122 = vrot.lane.b32.xlu1 %v13315_v39, %s9019_s14 }
 0x67d   : > { %v6912_v9 = vmul.f32 %v6503_v46, %v14619_v16  ;;  %v6505_v37 = vadd.f32 %v6504_v51, %v13243_v35  ;;  %v13366_v31 = vsel %vm6999_vm8, %v6897_v62, %v7036_v6 }
 0x67f   : > { %6944 = vst [vmem:[#allocation2 + $0xb8] sm:$0xff] %v6912_v9  ;;  %v6913_v43 = vmul.f32 %v6505_v37, %v14620_v54  ;;  %vm7016_vm4 = vcmp.ge.f32.partialorder %v6912_v9, 0.0  ;;  %v7053_v18 = vmul.f32 %v13171_v48, %v6912_v9  ;;  %7224 = vrot.lane.b32.xlu0 %v13298_v23, %s9020_s7 }
 0x680   : > { %7230 = vrot.lane.b32.xlu1 %v13315_v39, %s9020_s7 }
 0x681   : > { %6945 = vst [vmem:[#allocation2 + $0xc0] sm:$0xff] %v6913_v43  ;;  %v13328_v13 = vsel %vm7016_vm4, %v6912_v9, %v7053_v18  ;;  %v7054_v3 = vmul.f32 %v13171_v48, %v6913_v43  ;;  %vm7017_vm9 = vcmp.ge.f32.partialorder %v6913_v43, 0.0 }
 0x682   : > { %7992 = vmatprep.subr.mxu1 %v13328_v13 }
 0x683   : > { %7993 = vmatpush1.msra.mxu1 %v13331_v60  ;;  %7124 = vrot.lane.b32.xlu0 %v13328_v13, %s9019_s14  ;;  %v13380_v25 = vsel %vm7017_vm9, %v6913_v43, %v7054_v3 }
 0x684   : > { %7994 = vmatprep.subr.mxu1 %v13315_v39  ;;  %7120 = vrot.lane.b32.xlu1 %v13331_v60, %s9019_s14 }
 0x685   : > { %7995 = vmatpush1.msra.mxu1 %v13291_v10 }
 0x687   : > { %7232 = vrot.lane.b32.xlu0 %v13328_v13, %s9020_s7 }
 0x688   : > { %7228 = vrot.lane.b32.xlu1 %v13331_v60, %s9020_s7 }
 0x68b   : > { %7210 = vrot.lane.b32.xlu0 %v13200_v27, %s9020_s7 }
 0x68c   : > { %7212 = vrot.lane.b32.xlu1 %v13205_v12, %s9020_s7 }
 0x68f   : > { %7170 = vrot.lane.b32.xlu0 %v13350_v57, %s9019_s14 }
 0x690   : > { %v6573_v24 = vpop.f32.mrf.mxu1  ;;  %7172 = vrot.lane.b32.xlu1 %v13352_v14, %s9019_s14 }
 0x691   : > { %v6574_v61 = vadd.f32 %v6573_v24, %v13238_v32 }
 0x692   : > { %v6575_v29 = vpop.f32.mrf.mxu1 }
 0x693   : > { %v6898_v38 = vmul.f32 %v6574_v61, %v14623_v63  ;;  %v6576_v52 = vadd.f32 %v6575_v29, %v13238_v32  ;;  %7234 = vrot.lane.b32.xlu0 %v13366_v31, %s9020_s7 }
 0x694   : > { %7126 = vrot.lane.b32.xlu1 %v13366_v31, %s9019_s14 }
 0x695   : > { %6930 = vst [vmem:[#allocation2 + $0x38] sm:$0xff] %v6898_v38  ;;  %v6899_v2 = vmul.f32 %v6576_v52, %v14624_v45  ;;  %vm7000_vm10 = vcmp.ge.f32.partialorder %v6898_v38, 0.0  ;;  %v7037_v26 = vmul.f32 %v13171_v48, %v6898_v38  ;;  %v14627_v52 = vld [vmem:[#allocation26_spill] sm:$0xff] }
 0x696   : > { %v6579_v56 = vpop.f32.mrf.mxu1 }
 0x697   : > { %6931 = vst [vmem:[#allocation2 + $0x40] sm:$0xff] %v6899_v2  ;;  %v6580_v5 = vadd.f32 %v6579_v56, %v13243_v35  ;;  %v13378_v53 = vsel %vm7000_vm10, %v6898_v38, %v7037_v26  ;;  %v7038_v21 = vmul.f32 %v13171_v48, %v6899_v2  ;;  %vm7001_vm11 = vcmp.ge.f32.partialorder %v6899_v2, 0.0 }
 0x698   : > { %v6581_v36 = vpop.f32.mrf.mxu1  ;;  %7130 = vrot.lane.b32.xlu0 %v13378_v53, %s9019_s14  ;;  %7236 = vrot.lane.b32.xlu1 %v13380_v25, %s9020_s7 }
 0x699   : > { %v6914_v20 = vmul.f32 %v6580_v5, %v14623_v63  ;;  %v6582_v42 = vadd.f32 %v6581_v36, %v13243_v35  ;;  %v13397_v16 = vsel %vm7001_vm11, %v6899_v2, %v7038_v21  ;;  %v14628_v2 = vld [vmem:[#allocation27_spill] sm:$0xff] }
 0x69b   : > { %6946 = vst [vmem:[#allocation2 + $0xc8] sm:$0xff] %v6914_v20  ;;  %v6915_v15 = vmul.f32 %v6582_v42, %v14624_v45  ;;  %v7055_v0 = vmul.f32 %v13171_v48, %v6914_v20  ;;  %vm7018_vm12 = vcmp.ge.f32.partialorder %v6914_v20, 0.0 }
 0x69c   : > { %v6650_v41 = vpop.f32.mrf.mxu0  ;;  %7238 = vrot.lane.b32.xlu0 %v13378_v53, %s9020_s7  ;;  %7128 = vrot.lane.b32.xlu1 %v13380_v25, %s9019_s14 }
 0x69d   : > { %6947 = vst [vmem:[#allocation2 + $0xd0] sm:$0xff] %v6915_v15  ;;  %v6651_v33 = vadd.f32 %v6650_v41, %v13238_v32  ;;  %v13407_v51 = vsel %vm7018_vm12, %v6914_v20, %v7055_v0  ;;  %v7056_v9 = vmul.f32 %v13171_v48, %v6915_v15  ;;  %vm7019_vm14 = vcmp.ge.f32.partialorder %v6915_v15, 0.0 }
 0x69e   : > { %v6652_v30 = vpop.f32.mrf.mxu0 }
 0x69f   : > { %v6900_v55 = vmul.f32 %v6651_v33, %v14625_v50  ;;  %v6653_v11 = vadd.f32 %v6652_v30, %v13238_v32  ;;  %v13418_v19 = vsel %vm7019_vm14, %v6915_v15, %v7056_v9 }
 0x6a0   : > { %7134 = vrot.lane.b32.xlu1 %v13397_v16, %s9019_s14 }
 0x6a1   : > { %6932 = vst [vmem:[#allocation2 + $0x48] sm:$0xff] %v6900_v55  ;;  %v6901_v54 = vmul.f32 %v6653_v11, %v14626_v58  ;;  %vm7002_vm13 = vcmp.ge.f32.partialorder %v6900_v55, 0.0  ;;  %v7039_v62 = vmul.f32 %v13171_v48, %v6900_v55 }
 0x6a2   : > { %v6656_v8 = vpop.f32.mrf.mxu0 }
 0x6a3   : > { %6933 = vst [vmem:[#allocation2 + $0x50] sm:$0xff] %v6901_v54  ;;  %v6657_v17 = vadd.f32 %v6656_v8, %v13243_v35  ;;  %v13405_v46 = vsel %vm7002_vm13, %v6900_v55, %v7039_v62  ;;  %v7040_v34 = vmul.f32 %v13171_v48, %v6901_v54  ;;  %vm7003_vm3 = vcmp.ge.f32.partialorder %v6901_v54, 0.0  ;;  %v14629_v62 = vld [vmem:[#allocation28_spill] sm:$0xff] }
 0x6a4   : > { %v6658_v37 = vpop.f32.mrf.mxu0  ;;  %7138 = vrot.lane.b32.xlu0 %v13405_v46, %s9019_s14  ;;  %7240 = vrot.lane.b32.xlu1 %v13407_v51, %s9020_s7 }
 0x6a5   : > { %v6916_v4 = vmul.f32 %v6657_v17, %v14625_v50  ;;  %v6659_v43 = vadd.f32 %v6658_v37, %v13243_v35  ;;  %v13435_v6 = vsel %vm7003_vm3, %v6901_v54, %v7040_v34  ;;  %v13485_v34 = vpop.permute.xlu0 %7102 }
 0x6a7   : > { %6948 = vst [vmem:[#allocation2 + $0xd8] sm:$0xff] %v6916_v4  ;;  %v6917_v18 = vmul.f32 %v6659_v43, %v14626_v58  ;;  %v7057_v59 = vmul.f32 %v13171_v48, %v6916_v4  ;;  %vm7020_vm15 = vcmp.ge.f32.partialorder %v6916_v4, 0.0  ;;  %v14630_v43 = vld [vmem:[#allocation20_spill] sm:$0xff] }
 0x6a8   : > { %7132 = vrot.lane.b32.xlu0 %v13407_v51, %s9019_s14  ;;  %7136 = vrot.lane.b32.xlu1 %v13418_v19, %s9019_s14 }
 0x6a9   : > { %6949 = vst [vmem:[#allocation2 + $0xe0] sm:$0xff] %v6917_v18  ;;  %v13424_v22 = vsel %vm7020_vm15, %v6916_v4, %v7057_v59  ;;  %v7058_v24 = vmul.f32 %v13171_v48, %v6917_v18  ;;  %vm7021_vm4 = vcmp.ge.f32.partialorder %v6917_v18, 0.0  ;;  %v13481_v4 = vpop.permute.xlu1 %7104 }
 0x6ab   : > { %v13442_v61 = vsel %vm7021_vm4, %v6917_v18, %v7058_v24 }
 0x6ac   : > { %7140 = vrot.lane.b32.xlu0 %v13424_v22, %s9019_s14  ;;  %7248 = vrot.lane.b32.xlu1 %v13424_v22, %s9020_s7 }
 0x6b0   : > { %7244 = vrot.lane.b32.xlu0 %v13418_v19, %s9020_s7  ;;  %7242 = vrot.lane.b32.xlu1 %v13397_v16, %s9020_s7 }
 0x6b4   : > { %7246 = vrot.lane.b32.xlu0 %v13405_v46, %s9020_s7  ;;  %7142 = vrot.lane.b32.xlu1 %v13435_v6, %s9019_s14 }
 0x6b8   : > { %v6727_v29 = vpop.f32.mrf.mxu1  ;;  %7250 = vrot.lane.b32.xlu0 %v13435_v6, %s9020_s7  ;;  %7252 = vrot.lane.b32.xlu1 %v13442_v61, %s9020_s7 }
 0x6b9   : > { %v6728_v63 = vadd.f32 %v6727_v29, %v13238_v32 }
 0x6ba   : > { %v6729_v38 = vpop.f32.mrf.mxu1 }
 0x6bb   : > { %v6902_v3 = vmul.f32 %v6728_v63, %v14627_v52  ;;  %v6730_v45 = vadd.f32 %v6729_v38, %v13238_v32 }
 0x6bc   : > { %7144 = vrot.lane.b32.xlu1 %v13442_v61, %s9019_s14 }
 0x6bd   : > { %6934 = vst [vmem:[#allocation2 + $0x58] sm:$0xff] %v6902_v3  ;;  %v6903_v26 = vmul.f32 %v6730_v45, %v14628_v2  ;;  %vm7004_vm5 = vcmp.ge.f32.partialorder %v6902_v3, 0.0  ;;  %v7041_v56 = vmul.f32 %v13171_v48, %v6902_v3 }
 0x6be   : > { %v6733_v5 = vpop.f32.mrf.mxu1 }
 0x6bf   : > { %6935 = vst [vmem:[#allocation2 + $0x60] sm:$0xff] %v6903_v26  ;;  %v6734_v36 = vadd.f32 %v6733_v5, %v13243_v35  ;;  %v13456_v20 = vsel %vm7004_vm5, %v6902_v3, %v7041_v56  ;;  %vm7005_vm6 = vcmp.ge.f32.partialorder %v6903_v26, 0.0  ;;  %v7042_v42 = vmul.f32 %v13171_v48, %v6903_v26 }
 0x6c0   : > { %v6735_v15 = vpop.f32.mrf.mxu1  ;;  %7146 = vrot.lane.b32.xlu0 %v13456_v20, %s9019_s14 }
 0x6c1   : > { %v6918_v21 = vmul.f32 %v6734_v36, %v14627_v52  ;;  %v6736_v41 = vadd.f32 %v6735_v15, %v13243_v35  ;;  %v13463_v33 = vsel %vm7005_vm6, %v6903_v26, %v7042_v42 }
 0x6c2   : > { %7150 = vrot.lane.b32.xlu1 %v13463_v33, %s9019_s14 }
 0x6c3   : > { %6950 = vst [vmem:[#allocation2 + $0xe8] sm:$0xff] %v6918_v21  ;;  %v6919_v30 = vmul.f32 %v6736_v41, %v14628_v2  ;;  %vm7022_vm7 = vcmp.ge.f32.partialorder %v6918_v21, 0.0  ;;  %v7059_v50 = vmul.f32 %v13171_v48, %v6918_v21 }
 0x6c4   : > { %v6804_v55 = vpop.f32.mrf.mxu0  ;;  %7254 = vrot.lane.b32.xlu0 %v13456_v20, %s9020_s7 }
 0x6c5   : > { %6951 = vst [vmem:[#allocation2 + $0xf0] sm:$0xff] %v6919_v30  ;;  %v6805_v11 = vadd.f32 %v6804_v55, %v13238_v32  ;;  %v13472_v0 = vsel %vm7022_vm7, %v6918_v21, %v7059_v50  ;;  %vm7023_vm8 = vcmp.ge.f32.partialorder %v6919_v30, 0.0  ;;  %v7060_v58 = vmul.f32 %v13171_v48, %v6919_v30 }
 0x6c6   : > { %v6806_v54 = vpop.f32.mrf.mxu0  ;;  %7256 = vrot.lane.b32.xlu1 %v13472_v0, %s9020_s7  ;;  %v13500_v26 = vpop.permute.xlu0 %7106 }
 0x6c7   : > { %v6904_v8 = vmul.f32 %v6805_v11, %v14629_v62  ;;  %v6807_v17 = vadd.f32 %v6806_v54, %v13238_v32  ;;  %v13479_v37 = vsel %vm7023_vm8, %v6919_v30, %v7060_v58 }
 0x6c8   : > { %v6810_v9 = vpop.f32.mrf.mxu0 }
 0x6c9   : > { %6936 = vst [vmem:[#allocation2 + $0x68] sm:$0xff] %v6904_v8  ;;  %v6905_v18 = vmul.f32 %v6807_v17, %v14630_v43  ;;  %v6811_v59 = vadd.f32 %v6810_v9, %v13243_v35  ;;  %vm7006_vm9 = vcmp.ge.f32.partialorder %v6904_v8, 0.0  ;;  %v7043_v24 = vmul.f32 %v13171_v48, %v6904_v8 }
 0x6ca   : > { %v6812_v29 = vpop.f32.mrf.mxu0  ;;  %7152 = vrot.lane.b32.xlu1 %v13479_v37, %s9019_s14  ;;  %v13515_v42 = vpop.permute.xlu0 %7214 }
 0x6cb   : > { %6937 = vst [vmem:[#allocation2 + $0x70] sm:$0xff] %v6905_v18  ;;  %v6920_v63 = vmul.f32 %v6811_v59, %v14629_v62  ;;  %v6813_v38 = vadd.f32 %v6812_v29, %v13243_v35  ;;  %v13492_v52 = vsel %vm7006_vm9, %v6904_v8, %v7043_v24  ;;  %v13498_v2 = vpop.permute.xlu1 %7108  ;;  %v7044_v30 = vmul.f32 %v13171_v48, %v6905_v18  ;;  %v14632_v8 = vld [vmem:[#allocation29_spill] sm:$0xff]  ;;  %v14633_v59 = vld [vmem:[#allocation32_spill] sm:$0xff] }
 0x6cc   : > { %7154 = vrot.lane.b32.xlu0 %v13492_v52, %s9019_s14  ;;  %vm7007_vm12 = vcmp.ge.f32.partialorder %v6905_v18, 0.0 }
 0x6cd   : > { %6952 = vst [vmem:[#allocation2 + $0xf8] sm:$0xff] %v6920_v63  ;;  %v6921_v3 = vmul.f32 %v6813_v38, %v14630_v43  ;;  %vm7024_vm10 = vcmp.ge.f32.partialorder %v6920_v63, 0.0  ;;  %v7061_v45 = vmul.f32 %v13171_v48, %v6920_v63  ;;  %v13528_v55 = vsel %vm7007_vm12, %v6905_v18, %v7044_v30 }
 0x6ce   : > { %v7111_v41 = vpop.permute.xlu0 %7110  ;;  %14631 = vst [vmem:[#allocation42_spill] sm:$0xff] %v13528_v55 }
 0x6cf   : > { %6953 = vst [vmem:[#allocation2 + $0x100] sm:$0xff] %v6921_v3  ;;  %v13502_v56 = vsel %vm7024_vm10, %v6920_v63, %v7061_v45  ;;  %v7062_v5 = vmul.f32 %v13171_v48, %v6921_v3  ;;  %v13513_v36 = vpop.permute.xlu1 %7216  ;;  %vm7025_vm11 = vcmp.ge.f32.partialorder %v6921_v3, 0.0 }
 0x6d0   : > { %7148 = vrot.lane.b32.xlu0 %v13472_v0, %s9019_s14  ;;  %7264 = vrot.lane.b32.xlu1 %v13502_v56, %s9020_s7 }
 0x6d1   : > { %v13517_v15 = vsel %vm7025_vm11, %v6921_v3, %v7062_v5 }
 0x6d2   : > { %v7219_v62 = vpop.permute.xlu0 %7218 }
 0x6d3   : > { %v7113_v21 = vpop.permute.xlu1 %7112 }
 0x6d4   : > { %7156 = vrot.lane.b32.xlu0 %v13502_v56, %s9019_s14  ;;  %7258 = vrot.lane.b32.xlu1 %v13463_v33, %s9020_s7 }
 0x6d7   : > { %v7221_v58 = vpop.permute.xlu1 %7220 }
 0x6d8   : > { %7260 = vrot.lane.b32.xlu0 %v13479_v37, %s9020_s7  ;;  %7268 = vrot.lane.b32.xlu1 %v13517_v15, %s9020_s7 }
 0x6dc   : > { %7262 = vrot.lane.b32.xlu0 %v13492_v52, %s9020_s7  ;;  %7160 = vrot.lane.b32.xlu1 %v13517_v15, %s9019_s14 }
 0x6df   : > { %v6881_v50 = vpop.f32.mrf.mxu1 }
 0x6e0   : > { %v6882_v11 = vadd.f32 %v6881_v50, %v13238_v32  ;;  %7266 = vrot.lane.b32.xlu0 %v13528_v55, %s9020_s7 }
 0x6e1   : > { %v6883_v54 = vpop.f32.mrf.mxu1 }
 0x6e2   : > { %v6906_v17 = vmul.f32 %v6882_v11, %v14632_v8  ;;  %v6884_v9 = vadd.f32 %v6883_v54, %v13238_v32 }
 0x6e3   : > { %v6887_v43 = vpop.f32.mrf.mxu1  ;;  %v13540_v63 = vpop.permute.xlu1 %7114 }
 0x6e4   : > { %6938 = vst [vmem:[#allocation2 + $0x78] sm:$0xff] %v6906_v17  ;;  %v6907_v24 = vmul.f32 %v6884_v9, %v14633_v59  ;;  %v6888_v29 = vadd.f32 %v6887_v43, %v13243_v35  ;;  %7158 = vrot.lane.b32.xlu0 %v13528_v55, %s9019_s14  ;;  %vm7008_vm13 = vcmp.ge.f32.partialorder %v6906_v17, 0.0  ;;  %v7045_v18 = vmul.f32 %v13171_v48, %v6906_v17 }
 0x6e5   : > { %v6889_v38 = vpop.f32.mrf.mxu1  ;;  %v13542_v3 = vpop.permute.xlu0 %7118 }
 0x6e6   : > { %6939 = vst [vmem:[#allocation2 + $0x80] sm:$0xff] %v6907_v24  ;;  %v6922_v32 = vmul.f32 %v6888_v29, %v14632_v8  ;;  %v6890_v45 = vadd.f32 %v6889_v38, %v13243_v35  ;;  %v13546_v5 = vsel %vm7008_vm13, %v6906_v17, %v7045_v18  ;;  %vm7009_vm14 = vcmp.ge.f32.partialorder %v6907_v24, 0.0 }
 0x6e7   : > { %14634 = vst [vmem:[#allocation40_spill] sm:$0xff] %v13546_v5  ;;  %7162 = vrot.lane.b32.xlu1 %v13546_v5, %s9019_s14  ;;  %v7046_v30 = vmul.f32 %v13171_v48, %v6907_v24  ;;  %v7223_v17 = vpop.permute.xlu1 %7222  ;;  %v13586_v18 = vsel %vm541_vm1, %v7111_v41, %v13540_v63  ;;  %v13591_v38 = vsel %vm541_vm1, %v13500_v26, %v7111_v41 }
 0x6e8   : > { %6954 = vst [vmem:[#allocation2 + $0x108] sm:$0xff] %v6922_v32  ;;  %v6923_v50 = vmul.f32 %v6890_v45, %v14633_v59  ;;  %vm7026_vm15 = vcmp.ge.f32.partialorder %v6922_v32, 0.0  ;;  %v7063_v11 = vmul.f32 %v13171_v48, %v6922_v32  ;;  %v13611_v41 = vsel %vm650_vm2, %v7219_v62, %v7223_v17 }
 0x6e9   : > { %v13553_v54 = vsel %vm7009_vm14, %v6907_v24, %v7046_v30  ;;  %v13555_v9 = vpop.permute.xlu0 %7226  ;;  %v7313_v30 = vsel %vm650_vm2, %v13513_v36, %v7221_v58 }
 0x6ea   : > { %14635 = vst [vmem:[#allocation35_spill] sm:$0xff] %v13553_v54  ;;  %6955 = vst [vmem:[#allocation2 + $0x110] sm:$0xff] %v6923_v50  ;;  %7166 = vrot.lane.b32.xlu0 %v13553_v54, %s9019_s14  ;;  %v13559_v35 = vsel %vm7026_vm15, %v6922_v32, %v7063_v11  ;;  %v7064_v8 = vmul.f32 %v13171_v48, %v6923_v50  ;;  %vm7027_vm3 = vcmp.ge.f32.partialorder %v6923_v50, 0.0 }
 0x6eb   : > { %7272 = vrot.lane.b32.xlu1 %v13559_v35, %s9020_s7  ;;  %v13577_v48 = vsel %vm541_vm1, %v13498_v2, %v7113_v21 }
 0x6ec   : > { %v13566_v59 = vsel %vm7027_vm3, %v6923_v50, %v7064_v8  ;;  %v7312_v50 = vsel %vm650_vm2, %v13515_v42, %v7219_v62 }
 0x6ed   : > { %v7117_v43 = vpop.permute.xlu0 %7116  ;;  %14636 = vst [vmem:[#allocation31_spill] sm:$0xff] %v13566_v59 }
 0x6ee   : > { %7164 = vrot.lane.b32.xlu0 %v13559_v35, %s9019_s14  ;;  %v13568_v24 = vpop.permute.xlu1 %7122  ;;  %v13572_v29 = vsel %vm541_vm1, %v7113_v21, %v7117_v43 }
 0x6ef   : > { %7168 = vrot.lane.b32.xlu1 %v13566_v59, %s9019_s14  ;;  %7921 = vmatprep.subr.mxu0 %v13572_v29 }
 0x6f0   : > { %7922 = vmatpush1.msra.mxu0 %v13577_v48 }
 0x6f1   : > { %v7225_v32 = vpop.permute.xlu0 %7224  ;;  %7923 = vmatprep.subr.mxu0 %v13586_v18 }
 0x6f2   : > { %7270 = vrot.lane.b32.xlu0 %v13546_v5, %s9020_s7  ;;  %v13596_v21 = vpop.permute.xlu1 %7230  ;;  %7924 = vmatpush1.msra.mxu0 %v13591_v38  ;;  %v13601_v45 = vsel %vm650_vm2, %v7221_v58, %v7225_v32 }
 0x6f3   : > { %7280 = vrot.lane.b32.xlu1 %v13352_v14, %s9020_s7  ;;  %7925 = vmatprep.subr.mxu0 %v13601_v45  ;;  %v13655_v14 = vsel %vm541_vm1, %v13540_v63, %v13542_v3 }
 0x6f4   : > { %7926 = vmatpush1.msra.mxu0 %v7313_v30 }
 0x6f5   : > { %v13616_v11 = vpop.permute.xlu0 %7124  ;;  %7927 = vmatprep.subr.mxu0 %v13611_v41 }
 0x6f6   : > { %7276 = vrot.lane.b32.xlu0 %v13566_v59, %s9020_s7  ;;  %v7121_v58 = vpop.permute.xlu1 %7120  ;;  %7928 = vmatpush1.msra.mxu0 %v7312_v50  ;;  %v8744_v59 = vld [vmem:[%s14341_s4 + $0x40] sm:$0xff] }
 0x6f7   : > { %7274 = vrot.lane.b32.xlu1 %v13553_v54, %s9020_s7  ;;  %v13625_v8 = vsel %vm541_vm1, %v7117_v43, %v7121_v58  ;;  %7929 = vmatprep.subr.mxu0 %v13272_v44  ;;  %v13631_v62 = vsel %vm541_vm1, %v7121_v58, %v13616_v11  ;;  %v13646_v43 = vsel %vm541_vm1, %v13542_v3, %v13568_v24 }
 0x6f8   : > { %7996 = vmatprep.subr.mxu1 %v13631_v62  ;;  %7930 = vmatpush1.msra.mxu0 %v13259_v49  ;;  %v7206_v3 = vsel %vm541_vm1, %v13485_v34, %v13500_v26 }
 0x6f9   : > { %7997 = vmatpush1.msra.mxu1 %v13625_v8  ;;  %v13639_v54 = vpop.permute.xlu0 %7232  ;;  %7931 = vmatprep.subr.mxu0 %v13263_v28 }
 0x6fa   : > { %7278 = vrot.lane.b32.xlu0 %v13350_v57, %s9020_s7  ;;  %7998 = vmatprep.subr.mxu1 %v13646_v43  ;;  %v7229_v58 = vpop.permute.xlu1 %7228  ;;  %v7207_v57 = vsel %vm541_vm1, %v13481_v4, %v13498_v2  ;;  %v13683_v2 = vsel %vm650_vm2, %v13555_v9, %v13596_v21  ;;  %s8769_s7 = sshll.u32 %s9003_s21, 8  ;;  %s14292_s21 = scalar_lea.sflag [#allocation7], %s217_s9 }
 0x6fb   : > { %7904 = vperm.xlu1 %8856, %v8744_v59   ;;  %v7309_v55 = vsel %vm650_vm2, %v7225_v32, %v7229_v58  ;;  %7932 = vmatpush1.msra.mxu0 %v13248_v7  ;;  %v13663_v5 = vsel %vm650_vm2, %v7229_v58, %v13639_v54  ;;  %v7308_v32 = vsel %vm650_vm2, %v7223_v17, %v13555_v9  ;;  %s14282_s24 = scalar_lea.hbm %s14342_s5, %s8769_s7 }
 0x6fc   : > { %7999 = vmatpush1.msra.mxu1 %v13655_v14  ;;  %7933 = vmatprep.subr.mxu0 %v13577_v48 }
 0x6fd   : > { %8000 = vmatprep.subr.mxu1 %v13663_v5  ;;  %7934 = vmatpush1.msra.mxu0 %v7207_v57  ;;  %v13672_v63 = vpop.permute.xlu0 %7210 }
 0x6fe   : > { %8001 = vmatpush1.msra.mxu1 %v7309_v55  ;;  %7935 = vmatprep.subr.mxu0 %v13591_v38  ;;  %v13685_v59 = vpop.permute.xlu1 %7212  ;;  %v7314_v9 = vsel %vm650_vm2, %v13672_v63, %v13515_v42 }
 0x6ff   : > { %8002 = vmatprep.subr.mxu1 %v13683_v2  ;;  %v7315_v26 = vsel %vm650_vm2, %v13685_v59, %v13513_v36  ;;  %7936 = vmatpush1.msra.mxu0 %v7206_v3 }
 0x700   : > { %8003 = vmatpush1.msra.mxu1 %v7308_v32  ;;  %7937 = vmatprep.subr.mxu0 %v7313_v30 }
 0x701   : > { %8004 = vmatprep.subr.mxu1 %v13331_v60  ;;  %7938 = vmatpush1.msra.mxu0 %v7315_v26  ;;  %v13696_v58 = vpop.permute.xlu0 %7170 }
 0x702   : > { %8005 = vmatpush1.msra.mxu1 %v13298_v23  ;;  %7939 = vmatprep.subr.mxu0 %v7312_v50  ;;  %v13703_v17 = vpop.permute.xlu1 %7172 }
 0x703   : > { %8006 = vmatprep.subr.mxu1 %v13291_v10  ;;  %7940 = vmatpush1.msra.mxu0 %v7314_v9 }
 0x704   : > { %8007 = vmatpush1.msra.mxu1 %v13284_v40  ;;  %7941 = vmatprep.subr.mxu0 %v13259_v49  ;;  %v7209_v49 = vsel %vm541_vm1, %v13703_v17, %v13481_v4 }
 0x705   : > { %8008 = vmatprep.subr.mxu1 %v13625_v8  ;;  %7942 = vmatpush1.msra.mxu0 %v13205_v12  ;;  %v13710_v36 = vpop.permute.xlu0 %7234  ;;  %v7208_v12 = vsel %vm541_vm1, %v13696_v58, %v13485_v34 }
 0x706   : > { %8009 = vmatpush1.msra.mxu1 %v13572_v29  ;;  %7943 = vmatprep.subr.mxu0 %v13248_v7  ;;  %v13714_v42 = vpop.permute.xlu1 %7126 }
 0x707   : > { %8010 = vmatprep.subr.mxu1 %v13655_v14  ;;  %7944 = vmatpush1.msra.mxu0 %v13200_v27  ;;  %v13805_v30 = vsel %vm541_vm1, %v13568_v24, %v13714_v42 }
 0x708   : > { %8011 = vmatpush1.msra.mxu1 %v13586_v18  ;;  %7945 = vmatprep.subr.mxu0 %v7207_v57  ;;  %v13733_v57 = vld [vmem:[#allocation9 + $0x80] sm:$0xff] }
 0x709   : > { %8012 = vmatprep.subr.mxu1 %v7309_v55  ;;  %7946 = vmatpush1.msra.mxu0 %v7209_v49 }
 0x70a   : > { %8013 = vmatpush1.msra.mxu1 %v13601_v45  ;;  %v13728_v7 = vpop.permute.xlu0 %7130  ;;  %7947 = vmatprep.subr.mxu0 %v7206_v3  ;;  %v7237_v27 = vpop.permute.xlu1 %7236 }
 0x70b   : > { %8014 = vmatprep.subr.mxu1 %v7308_v32  ;;  %7948 = vmatpush1.msra.mxu0 %v7208_v12 }
 0x70c   : > { %8015 = vmatpush1.msra.mxu1 %v13611_v41  ;;  %7977 = vmatprep.subr.mxu0 %v7309_v55 }
 0x70d   : > { %8016 = vmatprep.subr.mxu1 %v13298_v23  ;;  %7978 = vmatpush2.msra.mxu0 %v13601_v45  ;;  %v13746_v23 = vld [vmem:[#allocation9 + $0x98] sm:$0xff]  ;;  %v13798_v45 = vsel %vm541_vm1, %v13714_v42, %v13728_v7 }
 0x70e   : > { %8017 = vmatpush1.msra.mxu1 %v13272_v44  ;;  %7979 = vmatprep.subr.mxu0 %v7308_v32  ;;  %v7129_v4 = vpop.permute.xlu1 %7128  ;;  %v13738_v34 = vpop.permute.xlu0 %7238 }
 0x70f   : > { %8018 = vmatprep.subr.mxu1 %v13284_v40  ;;  %7980 = vmatpush2.msra.mxu0 %v13611_v41  ;;  %v13750_v40 = vld [vmem:[#allocation9 + $0x90] sm:$0xff]  ;;  %v13836_v32 = vsel %vm650_vm2, %v13710_v36, %v13738_v34 }
 0x710   : > { %8019 = vmatpush1.msra.mxu1 %v13263_v28  ;;  %7982 = vmatmul.mubr.f32.vlgmr.msra.gmra.mxu0 %v13733_v57  ;;  %v13757_v28 = vsel %vm650_vm2, %v13639_v54, %v7237_v27 }
 0x711   : > { %8020 = vmatprep.subr.mxu1 %v13572_v29  ;;  %8067 = vmatprep.subr.mxu0 %v13407_v51  ;;  %v13769_v29 = vsel %vm650_vm2, %v13596_v21, %v13710_v36  ;;  %v13789_v21 = vsel %vm541_vm1, %v13616_v11, %v7129_v4 }
 0x712   : > { %8021 = vmatpush1.msra.mxu1 %v13577_v48  ;;  %8068 = vmatpush1.msra.mxu0 %v13380_v25  ;;  %v7135_v44 = vpop.permute.xlu1 %7134 }
 0x713   : > { %8022 = vmatprep.subr.mxu1 %v13586_v18  ;;  %8069 = vmatprep.subr.mxu0 %v13378_v53  ;;  %v13846_v9 = vsel %vm541_vm1, %v13728_v7, %v7135_v44 }
 0x714   : > { %8023 = vmatpush1.msra.mxu1 %v13591_v38  ;;  %8070 = vmatpush1.msra.mxu0 %v13366_v31 }
 0x715   : > { %8052 = vmatprep.subr.mxu1 %v13757_v28  ;;  %8747 = vmatprep.mubr.msk.f32.mxu0 %vm1279_vm0, %v13746_v23 }
 0x716   : > { %v13762_v55 = vpop.permute.xlu0 %7138  ;;  %8053 = vmatpush2.msra.mxu1 %v13663_v5  ;;  %v7241_v48 = vpop.permute.xlu1 %7240  ;;  %7988 = vmatmul.mubr.f32.gmra.mxu0 %v13750_v40 }
 0x717   : > { %8054 = vmatprep.subr.mxu1 %v13769_v29  ;;  %8750 = vmatprep.mubr.msk.f32.mxu0 %vm1279_vm0, %v13357_v47  ;;  %v13821_v3 = vsel %vm650_vm2, %v7237_v27, %v7241_v48  ;;  %v13841_v26 = vsel %vm541_vm1, %v7135_v44, %v13762_v55 }
 0x718   : > { %8055 = vmatpush2.msra.mxu1 %v13683_v2 }
 0x719   : > { %8057 = vmatmul.mubr.f32.vlgmr.msra.gmra.mxu1 %v13733_v57  ;;  %8142 = vmatprep.subr.mxu1 %v13424_v22 }
 0x71a   : > { %v7133_v54 = vpop.permute.xlu0 %7132  ;;  %8143 = vmatpush1.msra.mxu1 %v13418_v19  ;;  %v7137_v18 = vpop.permute.xlu1 %7136  ;;  %8749 = vmatprep.mubr.msk.f32.mxu1 %vm1279_vm0, %v13746_v23 }
 0x71b   : > { %v13783_v38 = vsel %vm541_vm1, %v7129_v4, %v7133_v54  ;;  %8144 = vmatprep.subr.mxu1 %v13405_v46  ;;  %v13812_v50 = vsel %vm541_vm1, %v7133_v54, %v7137_v18 }
 0x71c   : > { %8071 = vmatprep.subr.mxu0 %v13783_v38  ;;  %8145 = vmatpush1.msra.mxu1 %v13397_v16 }
 0x71d   : > { %8072 = vmatpush1.msra.mxu0 %v13789_v21  ;;  %8063 = vmatmul.mubr.f32.gmra.mxu1 %v13750_v40 }
 0x71e   : > { %v13807_v41 = vpop.permute.xlu0 %7140  ;;  %8073 = vmatprep.subr.mxu0 %v13798_v45  ;;  %v13814_v11 = vpop.permute.xlu1 %7248  ;;  %8752 = vmatprep.mubr.msk.f32.mxu1 %vm1279_vm0, %v13357_v47 }
 0x71f   : > { %8074 = vmatpush1.msra.mxu0 %v13805_v30  ;;  %v13826_v24 = vsel %vm541_vm1, %v7137_v18, %v13807_v41 }
 0x720   : > { %8075 = vmatprep.subr.mxu0 %v13821_v3  ;;  %8146 = vmatprep.subr.mxu1 %v13826_v24 }
 0x721   : > { %8076 = vmatpush1.msra.mxu0 %v13757_v28  ;;  %8147 = vmatpush1.msra.mxu1 %v13812_v50 }
 0x722   : > { %v7245_v42 = vpop.permute.xlu0 %7244  ;;  %8077 = vmatprep.subr.mxu0 %v13836_v32  ;;  %8148 = vmatprep.subr.mxu1 %v13841_v26  ;;  %v7243_v49 = vpop.permute.xlu1 %7242 }
 0x723   : > { %v7301_v36 = vsel %vm650_vm2, %v7241_v48, %v7245_v42  ;;  %8078 = vmatpush1.msra.mxu0 %v13769_v29  ;;  %8149 = vmatpush1.msra.mxu1 %v13846_v9  ;;  %v13857_v12 = vsel %vm650_vm2, %v7245_v42, %v13814_v11  ;;  %v7300_v27 = vsel %vm650_vm2, %v13738_v34, %v7243_v49 }
 0x724   : > { %8079 = vmatprep.subr.mxu0 %v13380_v25  ;;  %8150 = vmatprep.subr.mxu1 %v13857_v12 }
 0x725   : > { %8080 = vmatpush1.msra.mxu0 %v13328_v13  ;;  %8151 = vmatpush1.msra.mxu1 %v7301_v36 }
 0x726   : > { %v13862_v7 = vpop.permute.xlu0 %7246  ;;  %8081 = vmatprep.subr.mxu0 %v13366_v31  ;;  %v13868_v4 = vpop.permute.xlu1 %7142 }
 0x727   : > { %8082 = vmatpush1.msra.mxu0 %v13315_v39  ;;  %v13874_v44 = vsel %vm650_vm2, %v7243_v49, %v13862_v7 }
 0x728   : > { %8083 = vmatprep.subr.mxu0 %v13789_v21  ;;  %8152 = vmatprep.subr.mxu1 %v13874_v44 }
 0x729   : > { %8084 = vmatpush1.msra.mxu0 %v13631_v62  ;;  %8153 = vmatpush1.msra.mxu1 %v7300_v27 }
 0x72a   : > { %8085 = vmatprep.subr.mxu0 %v13805_v30  ;;  %8154 = vmatprep.subr.mxu1 %v13418_v19  ;;  %v13881_v34 = vpop.permute.xlu1 %7252  ;;  %v13893_v54 = vpop.permute.xlu0 %7250 }
 0x72b   : > { %8086 = vmatpush1.msra.mxu0 %v13646_v43  ;;  %8155 = vmatpush1.msra.mxu1 %v13407_v51 }
 0x72c   : > { %8087 = vmatprep.subr.mxu0 %v13757_v28  ;;  %8156 = vmatprep.subr.mxu1 %v13397_v16 }
 0x72d   : > { %8088 = vmatpush1.msra.mxu0 %v13663_v5  ;;  %8157 = vmatpush1.msra.mxu1 %v13378_v53 }
 0x72e   : > { %8089 = vmatprep.subr.mxu0 %v13769_v29  ;;  %8158 = vmatprep.subr.mxu1 %v13812_v50  ;;  %v7145_v48 = vpop.permute.xlu1 %7144 }
 0x72f   : > { %8090 = vmatpush1.msra.mxu0 %v13683_v2  ;;  %8159 = vmatpush1.msra.mxu1 %v13783_v38 }
 0x730   : > { %8091 = vmatprep.subr.mxu0 %v13328_v13  ;;  %8160 = vmatprep.subr.mxu1 %v13846_v9  ;;  %v13927_v13 = vsel %vm650_vm2, %v13814_v11, %v13881_v34 }
 0x731   : > { %8092 = vmatpush1.msra.mxu0 %v13331_v60  ;;  %8161 = vmatpush1.msra.mxu1 %v13798_v45 }
 0x732   : > { %8093 = vmatprep.subr.mxu0 %v13315_v39  ;;  %8162 = vmatprep.subr.mxu1 %v7301_v36  ;;  %v13902_v5 = vpop.permute.xlu0 %7146 }
 0x733   : > { %8094 = vmatpush1.msra.mxu0 %v13291_v10  ;;  %8163 = vmatpush1.msra.mxu1 %v13821_v3 }
 0x734   : > { %8095 = vmatprep.subr.mxu0 %v13631_v62  ;;  %8164 = vmatprep.subr.mxu1 %v7300_v27  ;;  %v7151_v2 = vpop.permute.xlu1 %7150  ;;  %v13968_v62 = vsel %vm541_vm1, %v13868_v4, %v13902_v5 }
 0x735   : > { %8096 = vmatpush1.msra.mxu0 %v13625_v8  ;;  %8165 = vmatpush1.msra.mxu1 %v13836_v32 }
 0x736   : > { %8097 = vmatprep.subr.mxu0 %v13646_v43  ;;  %8166 = vmatprep.subr.mxu1 %v13407_v51  ;;  %v13914_v39 = vpop.permute.xlu0 %7254  ;;  %v13957_v51 = vsel %vm541_vm1, %v13807_v41, %v7145_v48  ;;  %v13975_v43 = vsel %vm541_vm1, %v13762_v55, %v13868_v4 }
 0x737   : > { %8098 = vmatpush1.msra.mxu0 %v13655_v14  ;;  %8167 = vmatpush1.msra.mxu1 %v13380_v25 }
 0x738   : > { %8127 = vmatprep.subr.mxu0 %v7301_v36  ;;  %8168 = vmatprep.subr.mxu1 %v13378_v53  ;;  %v7257_v10 = vpop.permute.xlu1 %7256 }
 0x739   : > { %8128 = vmatpush2.msra.mxu0 %v13821_v3  ;;  %8169 = vmatpush1.msra.mxu1 %v13366_v31  ;;  %v13939_v31 = vsel %vm650_vm2, %v13862_v7, %v13893_v54  ;;  %v13986_v29 = vsel %vm650_vm2, %v13881_v34, %v7257_v10  ;;  %v14639_v34 = vld [vmem:[#allocation34_spill] sm:$0xff] }
 0x73a   : > { %8129 = vmatprep.subr.mxu0 %v7300_v27  ;;  %8170 = vmatprep.subr.mxu1 %v13783_v38  ;;  %v14006_v38 = vsel %vm650_vm2, %v13893_v54, %v13914_v39  ;;  %v14640_v54 = vld [vmem:[#allocation31_spill] sm:$0xff] }
 0x73b   : > { %8130 = vmatpush2.msra.mxu0 %v13836_v32  ;;  %8171 = vmatpush1.msra.mxu1 %v13789_v21 }
 0x73c   : > { %8132 = vmatmul.mubr.f32.vlgmr.msra.gmra.mxu0 %v13733_v57  ;;  %8172 = vmatprep.subr.mxu1 %v13798_v45  ;;  %v7153_v14 = vpop.permute.xlu1 %7152  ;;  %v14017_v45 = vsel %vm541_vm1, %v13902_v5, %v7151_v2 }
 0x73d   : > { %8217 = vmatprep.subr.mxu0 %v13472_v0  ;;  %8173 = vmatpush1.msra.mxu1 %v13805_v30 }
 0x73e   : > { %v13929_v60 = vpop.permute.xlu0 %7154  ;;  %8218 = vmatpush1.msra.mxu0 %v13442_v61  ;;  %8202 = vmatprep.subr.mxu1 %v13927_v13 }
 0x73f   : > { %8219 = vmatprep.subr.mxu0 %v13456_v20  ;;  %8203 = vmatpush2.msra.mxu1 %v13857_v12  ;;  %v14012_v21 = vsel %vm541_vm1, %v7151_v2, %v13929_v60  ;;  %v14641_v2 = vld [vmem:[#allocation33_spill] sm:$0xff] }
 0x740   : > { %8220 = vmatpush1.msra.mxu0 %v13435_v6  ;;  %8204 = vmatprep.subr.mxu1 %v13939_v31 }
 0x741   : > { %8205 = vmatpush2.msra.mxu1 %v13874_v44  ;;  %8751 = vmatprep.mubr.msk.f32.mxu0 %vm1279_vm0, %v13746_v23 }
 0x742   : > { %v7149_v53 = vpop.permute.xlu0 %7148  ;;  %8207 = vmatmul.mubr.f32.vlgmr.msra.gmra.mxu1 %v13733_v57  ;;  %8292 = vmatprep.subr.mxu1 %v13502_v56  ;;  %v13960_v8 = vpop.permute.xlu1 %7264 }
 0x743   : > { %v13950_v25 = vsel %vm541_vm1, %v7145_v48, %v7149_v53  ;;  %8293 = vmatpush1.msra.mxu1 %v13479_v37  ;;  %8138 = vmatmul.mubr.f32.gmra.mxu0 %v13750_v40  ;;  %v13997_v55 = vsel %vm541_vm1, %v7149_v53, %v7153_v14 }
 0x744   : > { %8221 = vmatprep.subr.mxu0 %v13950_v25  ;;  %8294 = vmatprep.subr.mxu1 %v13492_v52 }
 0x745   : > { %8222 = vmatpush1.msra.mxu0 %v13957_v51  ;;  %8295 = vmatpush1.msra.mxu1 %v13463_v33 }
 0x746   : > { %v13977_v28 = vpop.permute.xlu0 %7156  ;;  %8223 = vmatprep.subr.mxu0 %v13968_v62  ;;  %8754 = vmatprep.mubr.msk.f32.mxu0 %vm1279_vm0, %v13357_v47  ;;  %v7259_v41 = vpop.permute.xlu1 %7258 }
 0x747   : > { %8224 = vmatpush1.msra.mxu0 %v13975_v43  ;;  %v13991_v18 = vsel %vm541_vm1, %v7153_v14, %v13977_v28  ;;  %8753 = vmatprep.mubr.msk.f32.mxu1 %vm1279_vm0, %v13746_v23  ;;  %v7292_v49 = vsel %vm650_vm2, %v13914_v39, %v7259_v41 }
 0x748   : > { %8225 = vmatprep.subr.mxu0 %v13986_v29  ;;  %8296 = vmatprep.subr.mxu1 %v13991_v18 }
 0x749   : > { %8226 = vmatpush1.msra.mxu0 %v13927_v13  ;;  %8297 = vmatpush1.msra.mxu1 %v13997_v55 }
 0x74a   : > { %v7261_v30 = vpop.permute.xlu0 %7260  ;;  %8227 = vmatprep.subr.mxu0 %v14006_v38  ;;  %8298 = vmatprep.subr.mxu1 %v14012_v21  ;;  %v14048_v36 = vpop.permute.xlu1 %7268 }
 0x74b   : > { %8228 = vmatpush1.msra.mxu0 %v13939_v31  ;;  %8299 = vmatpush1.msra.mxu1 %v14017_v45  ;;  %v14026_v11 = vsel %vm650_vm2, %v7261_v30, %v13960_v8  ;;  %v7293_v3 = vsel %vm650_vm2, %v7257_v10, %v7261_v30  ;;  %v14642_v10 = vld [vmem:[#allocation35_spill] sm:$0xff] }
 0x74c   : > { %8229 = vmatprep.subr.mxu0 %v13442_v61  ;;  %8300 = vmatprep.subr.mxu1 %v14026_v11 }
 0x74d   : > { %8230 = vmatpush1.msra.mxu0 %v13424_v22  ;;  %8301 = vmatpush1.msra.mxu1 %v7293_v3 }
 0x74e   : > { %v14033_v32 = vpop.permute.xlu0 %7262  ;;  %8231 = vmatprep.subr.mxu0 %v13435_v6  ;;  %8213 = vmatmul.mubr.f32.gmra.mxu1 %v13750_v40 }
 0x74f   : > { %8232 = vmatpush1.msra.mxu0 %v13405_v46  ;;  %v14041_v42 = vsel %vm650_vm2, %v7259_v41, %v14033_v32  ;;  %8756 = vmatprep.mubr.msk.f32.mxu1 %vm1279_vm0, %v13357_v47  ;;  %v7161_v47 = vpop.permute.xlu1 %7160 }
 0x750   : > { %8233 = vmatprep.subr.mxu0 %v13957_v51  ;;  %8302 = vmatprep.subr.mxu1 %v14041_v42 }
 0x751   : > { %8234 = vmatpush1.msra.mxu0 %v13826_v24  ;;  %8303 = vmatpush1.msra.mxu1 %v7292_v49 }
 0x752   : > { %v14053_v7 = vpop.permute.xlu0 %7266  ;;  %8235 = vmatprep.subr.mxu0 %v13975_v43  ;;  %8304 = vmatprep.subr.mxu1 %v13479_v37 }
 0x753   : > { %8236 = vmatpush1.msra.mxu0 %v13841_v26  ;;  %8305 = vmatpush1.msra.mxu1 %v13472_v0 }
 0x754   : > { %8237 = vmatprep.subr.mxu0 %v13927_v13  ;;  %8306 = vmatprep.subr.mxu1 %v13463_v33 }
 0x755   : > { %8238 = vmatpush1.msra.mxu0 %v13857_v12  ;;  %8307 = vmatpush1.msra.mxu1 %v13456_v20 }
 0x756   : > { %v7159_v27 = vpop.permute.xlu0 %7158  ;;  %8239 = vmatprep.subr.mxu0 %v13939_v31  ;;  %8308 = vmatprep.subr.mxu1 %v13997_v55 }
 0x757   : > { %8240 = vmatpush1.msra.mxu0 %v13874_v44  ;;  %8309 = vmatpush1.msra.mxu1 %v13950_v25 }
 0x758   : > { %8241 = vmatprep.subr.mxu0 %v13424_v22  ;;  %8310 = vmatprep.subr.mxu1 %v14017_v45  ;;  %v7289_v22 = vsel %vm650_vm2, %v13960_v8, %v14048_v36 }
 0x759   : > { %8242 = vmatpush1.msra.mxu0 %v13418_v19  ;;  %8311 = vmatpush1.msra.mxu1 %v13968_v62  ;;  %v14071_v12 = vpop.permute.xlu1 %7162 }
 0x75a   : > { %8243 = vmatprep.subr.mxu0 %v13405_v46  ;;  %8312 = vmatprep.subr.mxu1 %v7293_v3 }
 0x75b   : > { %8244 = vmatpush1.msra.mxu0 %v13397_v16  ;;  %8313 = vmatpush1.msra.mxu1 %v13986_v29 }
 0x75c   : > { %v7167_v4 = vpop.permute.xlu0 %7166  ;;  %8245 = vmatprep.subr.mxu0 %v13826_v24  ;;  %8314 = vmatprep.subr.mxu1 %v7292_v49  ;;  %v14112_v24 = vsel %vm541_vm1, %v13977_v28, %v7161_v47 }
 0x75d   : > { %8246 = vmatpush1.msra.mxu0 %v13812_v50  ;;  %8315 = vmatpush1.msra.mxu1 %v14006_v38  ;;  %v7273_v46 = vpop.permute.xlu1 %7272  ;;  %v7174_v14 = vsel %vm541_vm1, %v7167_v4, %v13696_v58  ;;  %v7176_v31 = vsel %vm541_vm1, %v14071_v12, %v7167_v4 }
 0x75e   : > { %8247 = vmatprep.subr.mxu0 %v13841_v26  ;;  %8316 = vmatprep.subr.mxu1 %v13472_v0  ;;  %v14638_v0 = vld [vmem:[#allocation42_spill] sm:$0xff]  ;;  %v14121_v26 = vsel %vm541_vm1, %v7159_v27, %v14071_v12  ;;  %v14137_v5 = vsel %vm650_vm2, %v14048_v36, %v7273_v46 }
 0x75f   : > { %8248 = vmatpush1.msra.mxu0 %v13846_v9  ;;  %8317 = vmatpush1.msra.mxu1 %v13442_v61  ;;  %v14637_v61 = vld [vmem:[#allocation40_spill] sm:$0xff]  ;;  %v14126_v9 = vsel %vm541_vm1, %v13929_v60, %v7159_v27 }
 0x760   : > { %v7165_v16 = vpop.permute.xlu0 %7164  ;;  %8277 = vmatprep.subr.mxu0 %v7293_v3  ;;  %8318 = vmatprep.subr.mxu1 %v13456_v20  ;;  %v7288_v20 = vsel %vm650_vm2, %v14033_v32, %v14053_v7 }
 0x761   : > { %8278 = vmatpush2.msra.mxu0 %v13986_v29  ;;  %8319 = vmatpush1.msra.mxu1 %v13435_v6  ;;  %v7169_v6 = vpop.permute.xlu1 %7168  ;;  %v14107_v50 = vsel %vm541_vm1, %v7161_v47, %v7165_v16 }
 0x762   : > { %8279 = vmatprep.subr.mxu0 %v7292_v49  ;;  %8320 = vmatprep.subr.mxu1 %v13950_v25  ;;  %v7175_v13 = vsel %vm541_vm1, %v7169_v6, %v13703_v17  ;;  %v7177_v60 = vsel %vm541_vm1, %v7165_v16, %v7169_v6  ;;  %vm8533_vm1 = vcmask 122880  }
 0x763   : > { %8280 = vmatpush2.msra.mxu0 %v14006_v38  ;;  %8321 = vmatpush1.msra.mxu1 %v13957_v51 }
 0x764   : > { %8282 = vmatmul.mubr.f32.vlgmr.msra.gmra.mxu0 %v13733_v57  ;;  %8322 = vmatprep.subr.mxu1 %v13968_v62  ;;  %v7271_v19 = vpop.permute.xlu0 %7270 }
 0x765   : > { %8367 = vmatprep.subr.mxu0 %v13559_v35  ;;  %8323 = vmatpush1.msra.mxu1 %v13975_v43  ;;  %v14130_v48 = vpop.permute.xlu1 %7280  ;;  %v14145_v39 = vsel %vm650_vm2, %v14053_v7, %v7271_v19 }
 0x766   : > { %8368 = vmatpush1.msra.mxu0 %v13517_v15  ;;  %8352 = vmatprep.subr.mxu1 %v7289_v22 }
 0x767   : > { %8369 = vmatprep.subr.mxu0 %v14637_v61  ;;  %8353 = vmatpush2.msra.mxu1 %v14026_v11 }
 0x768   : > { %8370 = vmatpush1.msra.mxu0 %v14638_v0  ;;  %8354 = vmatprep.subr.mxu1 %v7288_v20  ;;  %v7277_v44 = vpop.permute.xlu0 %7276 }
 0x769   : > { %8371 = vmatprep.subr.mxu0 %v14107_v50  ;;  %8355 = vmatpush2.msra.mxu1 %v14041_v42  ;;  %v7275_v17 = vpop.permute.xlu1 %7274  ;;  %v7283_v25 = vsel %vm650_vm2, %v7277_v44, %v14130_v48  ;;  %v7285_v58 = vsel %vm650_vm2, %v7273_v46, %v7277_v44 }
 0x76a   : > { %8372 = vmatpush1.msra.mxu0 %v14112_v24  ;;  %8357 = vmatmul.mubr.f32.vlgmr.msra.gmra.mxu1 %v13733_v57  ;;  %v7284_v8 = vsel %vm650_vm2, %v7271_v19, %v7275_v17 }
 0x76b   : > { %8373 = vmatprep.subr.mxu0 %v14121_v26  ;;  %8442 = vmatprep.subr.mxu1 %v14639_v34 }
 0x76c   : > { %8374 = vmatpush1.msra.mxu0 %v14126_v9  ;;  %8443 = vmatpush1.msra.mxu1 %v14640_v54  ;;  %v14159_v53 = vpop.permute.xlu0 %7278 }
 0x76d   : > { %8375 = vmatprep.subr.mxu0 %v14137_v5  ;;  %8444 = vmatprep.subr.mxu1 %v14641_v2  ;;  %v7282_v51 = vsel %vm650_vm2, %v7275_v17, %v14159_v53 }
 0x76e   : > { %8376 = vmatpush1.msra.mxu0 %v7289_v22  ;;  %8445 = vmatpush1.msra.mxu1 %v14642_v10 }
 0x76f   : > { %8377 = vmatprep.subr.mxu0 %v14145_v39  ;;  %8446 = vmatprep.subr.mxu1 %v7175_v13 }
 0x770   : > { %8378 = vmatpush1.msra.mxu0 %v7288_v20  ;;  %8447 = vmatpush1.msra.mxu1 %v7177_v60 }
 0x771   : > { %8379 = vmatprep.subr.mxu0 %v13517_v15  ;;  %8448 = vmatprep.subr.mxu1 %v7174_v14 }
 0x772   : > { %8380 = vmatpush1.msra.mxu0 %v13502_v56  ;;  %8449 = vmatpush1.msra.mxu1 %v7176_v31 }
 0x773   : > { %8381 = vmatprep.subr.mxu0 %v14638_v0  ;;  %8450 = vmatprep.subr.mxu1 %v7283_v25 }
 0x774   : > { %8382 = vmatpush1.msra.mxu0 %v13492_v52  ;;  %8451 = vmatpush1.msra.mxu1 %v7285_v58 }
 0x775   : > { %8383 = vmatprep.subr.mxu0 %v14112_v24  ;;  %8452 = vmatprep.subr.mxu1 %v7282_v51 }
 0x776   : > { %8384 = vmatpush1.msra.mxu0 %v13991_v18  ;;  %8453 = vmatpush1.msra.mxu1 %v7284_v8 }
 0x777   : > { %8385 = vmatprep.subr.mxu0 %v14126_v9  ;;  %8454 = vmatprep.subr.mxu1 %v14640_v54 }
 0x778   : > { %8386 = vmatpush1.msra.mxu0 %v14012_v21  ;;  %8455 = vmatpush1.msra.mxu1 %v13559_v35 }
 0x779   : > { %8387 = vmatprep.subr.mxu0 %v7289_v22  ;;  %8456 = vmatprep.subr.mxu1 %v14642_v10 }
 0x77a   : > { %8388 = vmatpush1.msra.mxu0 %v14026_v11  ;;  %8457 = vmatpush1.msra.mxu1 %v14637_v61 }
 0x77b   : > { %8389 = vmatprep.subr.mxu0 %v7288_v20  ;;  %8458 = vmatprep.subr.mxu1 %v7177_v60 }
 0x77c   : > { %8390 = vmatpush1.msra.mxu0 %v14041_v42  ;;  %8459 = vmatpush1.msra.mxu1 %v14107_v50 }
 0x77d   : > { %8391 = vmatprep.subr.mxu0 %v13502_v56  ;;  %8460 = vmatprep.subr.mxu1 %v7176_v31  ;;  %v14231_v56 = vpop.permute.xlu1 %7904 }
 0x77e   : > { %8392 = vmatpush1.msra.mxu0 %v13479_v37  ;;  %8461 = vmatpush1.msra.mxu1 %v14121_v26  ;;  %v7317_v37 = vsel %vm650_vm2, %v14130_v48, %v13685_v59 }
 0x77f   : > { %8393 = vmatprep.subr.mxu0 %v13492_v52  ;;  %8462 = vmatprep.subr.mxu1 %v7285_v58  ;;  %v7316_v52 = vsel %vm650_vm2, %v14159_v53, %v13672_v63 }
 0x780   : > { %8394 = vmatpush1.msra.mxu0 %v13463_v33  ;;  %8463 = vmatpush1.msra.mxu1 %v14137_v5  ;;  %v8861_v33 = vld [vmem:[#allocation9 + $0x88] sm:$0xff] }
 0x781   : > { %8395 = vmatprep.subr.mxu0 %v13991_v18  ;;  %8464 = vmatprep.subr.mxu1 %v7284_v8 }
 0x782   : > { %8396 = vmatpush1.msra.mxu0 %v13997_v55  ;;  %8465 = vmatpush1.msra.mxu1 %v14145_v39 }
 0x783   : > { %8397 = vmatprep.subr.mxu0 %v14012_v21  ;;  %8466 = vmatprep.subr.mxu1 %v13559_v35 }
 0x784   : > { %8755 = vmatprep.mubr.msk.f32.mxu0 %vm1279_vm0, %v13746_v23  ;;  %8398 = vmatpush1.msra.mxu0 %v14017_v45 }
 0x785   : > { %8467 = vmatpush1.msra.mxu1 %v13517_v15  ;;  %8288 = vmatmul.mubr.f32.gmra.mxu0 %v13750_v40 }
 0x786   : > { %8427 = vmatprep.subr.mxu0 %v7285_v58  ;;  %8468 = vmatprep.subr.mxu1 %v14637_v61 }
 0x787   : > { %8428 = vmatpush2.msra.mxu0 %v14137_v5  ;;  %8469 = vmatpush1.msra.mxu1 %v14638_v0 }
 0x788   : > { %8429 = vmatprep.subr.mxu0 %v7284_v8  ;;  %8470 = vmatprep.subr.mxu1 %v14107_v50 }
 0x789   : > { %8757 = vmatprep.mubr.msk.f32.mxu1 %vm1279_vm0, %v13746_v23  ;;  %8430 = vmatpush2.msra.mxu0 %v14145_v39 }
 0x78a   : > { %8758 = vmatprep.mubr.msk.f32.mxu0 %vm1279_vm0, %v8861_v33  ;;  %8471 = vmatpush1.msra.mxu1 %v14112_v24 }
 0x78b   : > { %8363 = vmatmul.mubr.f32.gmra.mxu1 %v13750_v40  ;;  %8432 = vmatmul.mubr.f32.vlgmr.msra.gmra.mxu0 %v13733_v57 }
 0x78c   : > { %8472 = vmatprep.subr.mxu1 %v14121_v26  ;;  %8760 = vmatprep.mubr.msk.f32.mxu1 %vm1279_vm0, %v8861_v33 }
 0x78d   : > { %8473 = vmatpush1.msra.mxu1 %v14126_v9  ;;  %8759 = vmatprep.mubr.msk.f32.mxu0 %vm1279_vm0, %v13746_v23 }
 0x78e   : > { %8502 = vmatprep.subr.mxu1 %v7317_v37 }
 0x78f   : > { %8503 = vmatpush2.msra.mxu1 %v7283_v25  ;;  %8438 = vmatmul.mubr.f32.gmra.mxu0 %v13750_v40 }
 0x790   : > { %8504 = vmatprep.subr.mxu1 %v7316_v52 }
 0x791   : > { %8505 = vmatpush2.msra.mxu1 %v7282_v51 }
 0x792   : > { %8507 = vmatmul.mubr.f32.vlgmr.msra.gmra.mxu1 %v13733_v57 }
 0x793   : > { %8761 = vmatprep.mubr.msk.f32.mxu1 %vm1279_vm0, %v13746_v23 }
 0x796   : > { %8513 = vmatmul.mubr.f32.gmra.mxu1 %v13750_v40 }
 0x7d0   : > { %v7983_v15 = vpop.f32.mrf.mxu0 }
 0x7d1   : > { %v7984_v35 = vadd.f32 %v7983_v15, %v14231_v56 }
 0x7d2   : > { %v7985_v1 = vpop.f32.mrf.mxu0 }
 0x7d3   : > { %v8517_v63 = vmax.f32 %v7984_v35, 0.0  ;;  %v7986_v59 = vadd.f32 %v7985_v1, %v14231_v56 }
 0x7d5   : > { %8534 = vst.msk [vmem:[%s9234_s13] sm:$0x1] %vm8533_vm1, %v8517_v63  ;;  %v8518_v57 = vmax.f32 %v7986_v59, 0.0 }
 0x7d6   : > { %v7989_v62 = vpop.f32.mrf.mxu0 }
 0x7d7   : > { %8535 = vst.msk [vmem:[%s9234_s13 + $0x1] sm:$0x1] %vm8533_vm1, %v8518_v57 }
 0x7d8   : > { %v7990_v23 = vpop.f32.mrf.mxu0 }
 0x7d9   : > { %v8058_v40 = vpop.f32.mrf.mxu1 }
 0x7da   : > { %v8059_v43 = vadd.f32 %v8058_v40, %v14231_v56 }
 0x7db   : > { %v8060_v28 = vpop.f32.mrf.mxu1 }
 0x7dc   : > { %v8519_v29 = vmax.f32 %v8059_v43, 0.0  ;;  %v8061_v18 = vadd.f32 %v8060_v28, %v14231_v56 }
 0x7dd   : > { %v8064_v55 = vpop.f32.mrf.mxu1 }
 0x7de   : > { %8536 = vst.msk [vmem:[%s9234_s13 + $0x2] sm:$0x1] %vm8533_vm1, %v8519_v29  ;;  %v8520_v38 = vmax.f32 %v8061_v18, 0.0 }
 0x7df   : > { %v8065_v21 = vpop.f32.mrf.mxu1 }
 0x7e0   : > { %8537 = vst.msk [vmem:[%s9234_s13 + $0x3] sm:$0x1] %vm8533_vm1, %v8520_v38 }
 0x7fc   : > { %v8133_v45 = vpop.f32.mrf.mxu0 }
 0x7fd   : > { %v8134_v30 = vadd.f32 %v8133_v45, %v14231_v56 }
 0x7fe   : > { %v8135_v41 = vpop.f32.mrf.mxu0 }
 0x7ff   : > { %v8521_v11 = vmax.f32 %v8134_v30, 0.0  ;;  %v8136_v3 = vadd.f32 %v8135_v41, %v14231_v56 }
 0x801   : > { %8538 = vst.msk [vmem:[%s9234_s13 + $0x4] sm:$0x1] %vm8533_vm1, %v8521_v11  ;;  %v8522_v32 = vmax.f32 %v8136_v3, 0.0 }
 0x802   : > { %v8208_v42 = vpop.f32.mrf.mxu1 }
 0x803   : > { %8539 = vst.msk [vmem:[%s9234_s13 + $0x5] sm:$0x1] %vm8533_vm1, %v8522_v32  ;;  %v8209_v49 = vadd.f32 %v8208_v42, %v14231_v56  ;;  %v8139_v36 = vpop.f32.mrf.mxu0 }
 0x804   : > { %v8210_v7 = vpop.f32.mrf.mxu1 }
 0x805   : > { %v8523_v47 = vmax.f32 %v8209_v49, 0.0  ;;  %v8211_v27 = vadd.f32 %v8210_v7, %v14231_v56  ;;  %v8140_v12 = vpop.f32.mrf.mxu0 }
 0x807   : > { %8540 = vst.msk [vmem:[%s9234_s13 + $0x6] sm:$0x1] %vm8533_vm1, %v8523_v47  ;;  %v8524_v4 = vmax.f32 %v8211_v27, 0.0 }
 0x809   : > { %8541 = vst.msk [vmem:[%s9234_s13 + $0x7] sm:$0x1] %vm8533_vm1, %v8524_v4 }
 0x80e   : > { %v8214_v46 = vpop.f32.mrf.mxu1 }
 0x810   : > { %v8215_v16 = vpop.f32.mrf.mxu1 }
 0x824   : > { %v8283_v19 = vpop.f32.mrf.mxu0 }
 0x825   : > { %v8284_v22 = vadd.f32 %v8283_v19, %v14231_v56 }
 0x826   : > { %v8285_v6 = vpop.f32.mrf.mxu0 }
 0x827   : > { %v8525_v61 = vmax.f32 %v8284_v22, 0.0  ;;  %v8286_v20 = vadd.f32 %v8285_v6, %v14231_v56 }
 0x829   : > { %8542 = vst.msk [vmem:[%s9234_s13 + $0x8] sm:$0x1] %vm8533_vm1, %v8525_v61  ;;  %v8526_v0 = vmax.f32 %v8286_v20, 0.0 }
 0x82a   : > { %v8358_v50 = vpop.f32.mrf.mxu1 }
 0x82b   : > { %8543 = vst.msk [vmem:[%s9234_s13 + $0x9] sm:$0x1] %vm8533_vm1, %v8526_v0  ;;  %v8359_v24 = vadd.f32 %v8358_v50, %v14231_v56 }
 0x82c   : > { %v8360_v26 = vpop.f32.mrf.mxu1 }
 0x82d   : > { %v8527_v9 = vmax.f32 %v8359_v24, 0.0  ;;  %v8361_v44 = vadd.f32 %v8360_v26, %v14231_v56 }
 0x82f   : > { %8544 = vst.msk [vmem:[%s9234_s13 + $0xa] sm:$0x1] %vm8533_vm1, %v8527_v9  ;;  %v8528_v34 = vmax.f32 %v8361_v44, 0.0 }
 0x831   : > { %8545 = vst.msk [vmem:[%s9234_s13 + $0xb] sm:$0x1] %vm8533_vm1, %v8528_v34 }
 0x845   : > { %v8289_v48 = vpop.f32.mrf.mxu0 }
 0x847   : > { %v8290_v54 = vpop.f32.mrf.mxu0 }
 0x84b   : > { %v8364_v5 = vpop.f32.mrf.mxu1  ;;  %v8433_v2 = vpop.f32.mrf.mxu0 }
 0x84c   : > { %v8434_v10 = vadd.f32 %v8433_v2, %v14231_v56 }
 0x84d   : > { %v8365_v39 = vpop.f32.mrf.mxu1  ;;  %v8435_v13 = vpop.f32.mrf.mxu0 }
 0x84e   : > { %v8529_v60 = vmax.f32 %v8434_v10, 0.0  ;;  %v8436_v14 = vadd.f32 %v8435_v13, %v14231_v56 }
 0x84f   : > { %v8439_v31 = vpop.f32.mrf.mxu0 }
 0x850   : > { %8546 = vst.msk [vmem:[%s9234_s13 + $0xc] sm:$0x1] %vm8533_vm1, %v8529_v60  ;;  %v8530_v53 = vmax.f32 %v8436_v14, 0.0 }
 0x851   : > { %v8440_v17 = vpop.f32.mrf.mxu0 }
 0x852   : > { %8547 = vst.msk [vmem:[%s9234_s13 + $0xd] sm:$0x1] %vm8533_vm1, %v8530_v53  ;;  %v8508_v25 = vpop.f32.mrf.mxu1 }
 0x853   : > { %v8509_v58 = vadd.f32 %v8508_v25, %v14231_v56 }
 0x854   : > { %v8510_v51 = vpop.f32.mrf.mxu1 }
 0x855   : > { %v8531_v8 = vmax.f32 %v8509_v58, 0.0  ;;  %v8511_v33 = vadd.f32 %v8510_v51, %v14231_v56 }
 0x856   : > { %v8514_v37 = vpop.f32.mrf.mxu1 }
 0x857   : > { %8548 = vst.msk [vmem:[%s9234_s13 + $0xe] sm:$0x1] %vm8533_vm1, %v8531_v8  ;;  %v8532_v52 = vmax.f32 %v8511_v33, 0.0 }
 0x858   : > { %v8515_v15 = vpop.f32.mrf.mxu1 }
 0x859   : > { %8549 = vst.msk [vmem:[%s9234_s13 + $0xf] sm:$0x1] %vm8533_vm1, %v8532_v52 }
 0x85a   : > { %8938 = shalt.err (!%p8935_p11)
}
 0x85b   : > { %s8939_s9 = scalar_lea.hbm %s14282_s24, 256  ;;  %s8943_s12 = scalar_lea.hbm %s14342_s5, 512 }
 0x85c   : > { %p8940_p13 = scmp.ne.s32.totalorder %s14282_s24, %s8939_s9  ;;  %p8944_p7 = scmp.lt.s32.totalorder %s14282_s24, %s14342_s5 }
 0x85d   : > { %p8945_p9 = scmp.lt.s32.totalorder %s8943_s12, %s8939_s9 }
 0x85e   : > { %p8941_p1 = pnand %p8940_p13, %p14643_p2 }
 0x85f   : > { %p8946_p12 = por %p8945_p9, %p8944_p7 }
 0x860   : > { %p8942_p6 = pneg %p8941_p1 }
 0x862   : > { %p8947_p0 = pnand %p8946_p12, %p8942_p6 }
 0x864   : > { %8950 = shalt.err (!%p8947_p0)
}
 0x865   : > { %s9023_s7 = smov 128   ;;  %s9024_s16 = smov 8  }
 0x866   : > { %8778 = dma.vmem_to_hbm [thread:$0]  (%p14643_p2), %s14284_s15, 256, %s14282_s24, %s14292_s21, %s9023_s7, %s9023_s7, %s9024_s16  }
 0x867 PF: > { %p8795_p3 = scmp.ge.s32.totalorder %s9011_s23, 2  ;;  %s8581_s17 = sand.u32 1, %s8991_s18  }
 0x868   : > { %p14644_p5 = scmp.ne.s32.totalorder %s14469_s30, 0  ;;  %s8582_s25 = scalar_lea.sflag [#allocation7], %s8581_s17 }
 0x86a   : > { %p8788_p4 = pnand %p8795_p3, %p14644_p5 }
 0x86c   : > { %p8789_p8 = pneg %p8788_p4 }
 0x86e   : > { %8986 = dma.done.wait (%p8789_p8), %s8582_s25, 256  }
 0x86f   : > { %8988 = vsyncadd (%p8789_p8), %s8582_s25, 4294967040  ;;  %s20_s23 = sadd.s32 1, %s9011_s23   ;;  %s14645_s18 = smov %s8995_s19 }
 0x870   : > { %p17_p10 = scmp.ge.s32.totalorder %s20_s23, 4   ;;  %s14646_s19 = smov %s8999_s20 }
 0x871   : > { %s14647_s20 = smov %s9108_s6  ;;  %s14648_s21 = smov %s9007_s22 }
 0x872   : > { %s14649_s22 = smov %s14651_s26  ;;  %19 = sbr.rel (!%p17_p10) target bundleno = 6 (0x6), region = 91 }
 0x877   :  { %8587 = vsyncpa [#allocation6], 1 }
 0x878   :  { %8589 = vsyncpa [#allocation6 + $0x1], 1 }
 0x879   :  { %8590 = vsyncpa [#allocation7], 1 }
 0x87a   :  { %8592 = vsyncpa [#allocation7 + $0x1], 1 }
 0x87b   :  { %8593 = vsyncpa [#allocation8], 1 }
 0x87c   :  { %8595 = vsyncpa [#allocation8 + $0x1], 1 }
 0x87d   :  { %8596 = vsyncmov [#allocation4] }
 0x880   :  { %s8597_s28 = vpop.sfrf %8596 }
 0x881   :  { %p8767_p2 = scmp.ne.s32.totalorder %s8597_s28, 0 }
 0x883   :  { %8601 = shalt.err (%p8767_p2)  }

</bundles_post_ra>
